<compile_context>
chip_gen: v7x
topology: tpu7x:2x2x1
jax: 0.10.0
libtpu: 0.0.40
codegen_flags: <defaults>
</compile_context>

<pallas_src>
import functools

import jax
import jax.numpy as jnp
from jax.experimental import pallas as pl
from jax.experimental.pallas import tpu as pltpu

MAX_K = 9            # largest conv kernel in the AWMS tail
PAD = MAX_K // 2     # 4: SAME padding for the merged 9x9 kernel
LANE = 128
SUBLANE = 8


def _round_up(n, m):
    return (n + m - 1) // m * m


def _awms_kernel(x_ref, w_ref, b_ref, o_ref, col_ref, *, wp):
    """Merged-9x9 AWMS conv via im2col-over-taps + one MXU matmul.

    x_ref  : (R, FLEN)       R = G*C plane rows (G images x C channels,
                             image-major); zero-padded planes flattened with
                             row stride `wp`, zero-extended to FLEN.
    w_ref  : (G*Cout, 81*R)  lane-dense merged weight, block-diagonal per tap.
    b_ref  : (G*Cout, 1)     combined bias  sum_k scale_k * b_k (per image).
    o_ref  : (G*Cout, ALEN)  flat output planes; pixel (y,x) at p = y*wp + x.
    col_ref: (81*R, ALEN)    VMEM im2col scratch, tap-major rows.
    """
    r, flen = x_ref.shape
    alen = o_ref.shape[1]

    # Load the stacked plane once; every tap window is a lane rotation of it.
    xplane = x_ref[...]

    # im2col over the 81 taps: one roll + one aligned full-sublane, lane-dense
    # store per tap (row offsets are multiples of R = 8 -> no masked stores).
    for dy in range(MAX_K):
        for dx in range(MAX_K):
            s = dy * wp + dx                       # static tap offset
            t = dy * MAX_K + dx
            if s == 0:
                shifted = xplane
            else:
                # shifted[:, p] == xplane[:, p + s]; no wrap reaches p < ALEN
                # because FLEN >= ALEN + 8*wp + 8 (asserted in the wrapper).
                shifted = pltpu.roll(xplane, flen - s, axis=1)
            col_ref[t * r:(t + 1) * r, :] = shifted[:, :alen]
    # TODO(synk): if a bundle dump still shows the roll path binding, factor the
    #   tap shift as (dy roll) o (dx roll) to cut full-plane rolls to <= 17.

    # Single MXU contraction over taps*channels (K = 81*R), f32 accumulate.
    out = jnp.dot(w_ref[...], col_ref[...],
                  preferred_element_type=jnp.float32,
                  precision=jax.lax.Precision.HIGHEST)
    o_ref[...] = (out + b_ref[...]).astype(o_ref.dtype)


@jax.jit
def awms_forward(x_nchw, w9_hwio, bias_eff):
    """sum_k scale_k*(conv_k(x)+b_k), with the four kernels pre-merged into one
    9x9 HWIO weight `w9_hwio` and one combined bias.  NCHW in, NCHW out."""
    B, C, H, W = x_nchw.shape
    Cout = w9_hwio.shape[-1]
    Hp, Wp = H + 2 * PAD, W + 2 * PAD

    # Lane-dense flat sizes: ALEN covers every valid output position y*Wp + x,
    # FLEN additionally covers the largest tap shift (MAX_K-1)*(Wp + 1).
    alen = _round_up(H * Wp, LANE)
    flen = _round_up(alen + (MAX_K - 1) * Wp + (MAX_K - 1), LANE)
    # No-wrap invariant for the in-kernel lane rotations (review request).
    assert flen >= alen + (MAX_K - 1) * (Wp + 1), (flen, alen, Wp)

    # Group G images per grid step so vector ops fill all 8 sublanes.
    G = max(1, min(B, SUBLANE // C)) if C <= SUBLANE else 1
    Bp = _round_up(B, G)
    n_groups = Bp // G
    R = G * C
    assert n_groups == 1 or R % SUBLANE == 0, "unsupported (B, C) combination"

    # --- plain-JAX glue: pad + flatten, no transposes anywhere ---
    xpad = jnp.pad(x_nchw, ((0, Bp - B), (0, 0), (PAD, PAD), (PAD, PAD)))
    xf = xpad.reshape(Bp * C, Hp * Wp)
    xf = jnp.pad(xf, ((0, 0), (0, flen - Hp * Wp)))

    # Lane-dense merged weight: one (G*Cout, G*C) block-diagonal block per tap,
    #   Wbig[g*Cout + co, t*R + g*C + ci] = w9[t, ci, co].
    w_t = jnp.transpose(w9_hwio.reshape(MAX_K * MAX_K, C, Cout), (0, 2, 1))
    blocks = jnp.einsum('gh,tuc->tguhc', jnp.eye(G, dtype=w_t.dtype), w_t)
    kt = MAX_K * MAX_K * R
    w_big = blocks.transpose(1, 2, 0, 3, 4).reshape(G * Cout, kt)
    b_big = jnp.tile(bias_eff.reshape(1, Cout).astype(jnp.float32),
                     (G, 1)).reshape(G * Cout, 1)

    cost = pl.CostEstimate(
        flops=2 * n_groups * (G * Cout) * kt * alen,
        transcendentals=0,
        bytes_accessed=4 * (Bp * C * flen + G * Cout * kt + G * Cout
                            + n_groups * G * Cout * alen))

    out_flat = pl.pallas_call(
        functools.partial(_awms_kernel, wp=Wp),
        out_shape=jax.ShapeDtypeStruct((n_groups * G * Cout, alen), x_nchw.dtype),
        grid_spec=pltpu.PrefetchScalarGridSpec(
            num_scalar_prefetch=0,
            grid=(n_groups,),
            in_specs=[
                pl.BlockSpec((R, flen), lambda g: (g, 0)),
                pl.BlockSpec((G * Cout, kt), lambda g: (0, 0)),
                pl.BlockSpec((G * Cout, 1), lambda g: (0, 0)),
            ],
            out_specs=pl.BlockSpec((G * Cout, alen), lambda g: (g, 0)),
            scratch_shapes=[pltpu.VMEM((kt, alen), jnp.float32)],
        ),
        compiler_params=pltpu.CompilerParams(
            dimension_semantics=("parallel",)),
        cost_estimate=cost,
    )(xf, w_big, b_big)

    # Flat planes -> NCHW: valid pixel (y,x) sits at p = y*Wp + x.
    out = out_flat.reshape(Bp, Cout, alen)[:B, :, :H * Wp]
    out = out.reshape(B, Cout, H, Wp)[:, :, :, :W]
    return out


def make_params(key, n_feats):
    """Deterministic synthetic weight-norm params for the four tails.

    Returns per-kernel-size *effective* HWIO weights with the Scale(0.25)
    already folded in (scale * g * v / ||v||, norm over (kh,kw,Cin) per output
    channel, matching PyTorch weight_norm dim=0 on OIHW), plus raw biases/scales.
    """
    scales = {3: 0.25, 5: 0.25, 7: 0.25, 9: 0.25}
    eff_w, biases = {}, {}
    keys = jax.random.split(key, 12)
    ki = 0
    for k in (3, 5, 7, 9):
        v = jax.random.normal(keys[ki], (k, k, n_feats, n_feats), jnp.float32) * 0.1
        g = jax.random.uniform(keys[ki + 1], (n_feats,), jnp.float32, 0.5, 1.5)
        b = jax.random.normal(keys[ki + 2], (n_feats,), jnp.float32) * 0.05
        ki += 3
        norm = jnp.sqrt(jnp.sum(v * v, axis=(0, 1, 2), keepdims=True))
        eff_w[k] = scales[k] * g[None, None, None, :] * v / norm
        biases[k] = b
    return eff_w, biases, scales


def fold_awms_params(eff_w, biases, scales):
    """conv is linear: sum_k conv(x, w_k) == conv(x, sum_k centre_pad9(w_k))."""
    C, Cout = eff_w[3].shape[2], eff_w[3].shape[3]
    w9 = jnp.zeros((MAX_K, MAX_K, C, Cout), jnp.float32)
    for k in (3, 5, 7, 9):
        off = (MAX_K - k) // 2
        w9 = w9.at[off:off + k, off:off + k, :, :].add(eff_w[k])
    b_eff = sum(scales[k] * biases[k] for k in (3, 5, 7, 9))
    return w9, b_eff


def reference_forward(x_nchw, eff_w, biases, scales):
    """Pure-JAX reference mirroring the PyTorch forward: four separate SAME
    convs (+ their scaled biases), summed, at HIGHEST precision."""
    out = 0.0
    for k in (3, 5, 7, 9):
        y = jax.lax.conv_general_dilated(
            x_nchw, eff_w[k], window_strides=(1, 1), padding="SAME",
            dimension_numbers=("NCHW", "HWIO", "NCHW"),
            precision=jax.lax.Precision.HIGHEST)
        out = out + y + scales[k] * biases[k][None, :, None, None]
    return out


if __name__ == "__main__":
    key = jax.random.PRNGKey(0)
    k_x, k_p = jax.random.split(key)

    B, C, H, W = 2, 4, 16, 16            # n_feats = 4
    x = jax.random.normal(k_x, (B, C, H, W), jnp.float32)

    eff_w, biases, scales = make_params(k_p, C)
    w9, b_eff = fold_awms_params(eff_w, biases, scales)

    out = jax.block_until_ready(awms_forward(x, w9, b_eff))
    ref = reference_forward(x, eff_w, biases, scales)

    assert out.shape == (B, C, H, W)
    err = float(jnp.max(jnp.abs(out - ref)))
    assert jnp.allclose(out, ref, rtol=1e-3, atol=1e-3), err

    print("KERNEL_OK")
</pallas_src>

<mosaic_0001>
module attributes {stable_mosaic.version = 11 : i64} {
  func.func @_awms_kernel(%arg0: i32, %arg1: memref<8x640xf32, #tpu.memory_space<vmem>>, %arg2: memref<8x648xf32, #tpu.memory_space<vmem>>, %arg3: memref<8x1xf32, #tpu.memory_space<vmem>>, %arg4: memref<8x384xf32, #tpu.memory_space<vmem>>, %arg5: memref<648x384xf32, #tpu.memory_space<vmem>>) attributes {dimension_semantics = [#tpu.dimension_semantics<parallel>], iteration_bounds = array<i64: 1>, scalar_prefetch = 0 : i64, scratch_operands = 1 : i64, tpu.core_type = #tpu.core_type<tc>, window_params = [{transform_indices = @transform_0, window_bounds = array<i64: 8, 640>}, {pipeline_mode = #tpu.pipeline_mode<synchronous>, transform_indices = @transform_1, window_bounds = array<i64: 8, 648>}, {pipeline_mode = #tpu.pipeline_mode<synchronous>, transform_indices = @transform_2, window_bounds = array<i64: 8, 1>}, {transform_indices = @transform_3, window_bounds = array<i64: 8, 384>}]} {
    %c0 = arith.constant 0 : index
    %c0_0 = arith.constant 0 : index
    %0 = vector.load %arg1[%c0, %c0_0] : memref<8x640xf32, #tpu.memory_space<vmem>>, vector<8x640xf32>
    %1 = vector.extract_strided_slice %0 {offsets = [0, 0], sizes = [8, 384], strides = [1, 1]} : vector<8x640xf32> to vector<8x384xf32>
    %c0_1 = arith.constant 0 : index
    %c0_2 = arith.constant 0 : index
    %2 = vector.load %arg5[%c0_1, %c0_2] : memref<648x384xf32, #tpu.memory_space<vmem>>, vector<8x384xf32>
    tpu.vector_store %arg5[%c0_1, %c0_2], %1 {strides = array<i32>} : memref<648x384xf32, #tpu.memory_space<vmem>>, vector<8x384xf32>,
    %c639_i32 = arith.constant 639 : i32
    %3 = tpu.dynamic_rotate %0 by %c639_i32 dim 1 : vector<8x640xf32>, i32 -> vector<8x640xf32>
    %4 = vector.extract_strided_slice %3 {offsets = [0, 0], sizes = [8, 384], strides = [1, 1]} : vector<8x640xf32> to vector<8x384xf32>
    %c8 = arith.constant 8 : index
    %c0_3 = arith.constant 0 : index
    %5 = vector.load %arg5[%c8, %c0_3] : memref<648x384xf32, #tpu.memory_space<vmem>>, vector<8x384xf32>
    tpu.vector_store %arg5[%c8, %c0_3], %4 {strides = array<i32>} : memref<648x384xf32, #tpu.memory_space<vmem>>, vector<8x384xf32>,
    %c638_i32 = arith.constant 638 : i32
    %6 = tpu.dynamic_rotate %0 by %c638_i32 dim 1 : vector<8x640xf32>, i32 -> vector<8x640xf32>
    %7 = vector.extract_strided_slice %6 {offsets = [0, 0], sizes = [8, 384], strides = [1, 1]} : vector<8x640xf32> to vector<8x384xf32>
    %c16 = arith.constant 16 : index
    %c0_4 = arith.constant 0 : index
    %8 = vector.load %arg5[%c16, %c0_4] : memref<648x384xf32, #tpu.memory_space<vmem>>, vector<8x384xf32>
    tpu.vector_store %arg5[%c16, %c0_4], %7 {strides = array<i32>} : memref<648x384xf32, #tpu.memory_space<vmem>>, vector<8x384xf32>,
    %c637_i32 = arith.constant 637 : i32
    %9 = tpu.dynamic_rotate %0 by %c637_i32 dim 1 : vector<8x640xf32>, i32 -> vector<8x640xf32>
    %10 = vector.extract_strided_slice %9 {offsets = [0, 0], sizes = [8, 384], strides = [1, 1]} : vector<8x640xf32> to vector<8x384xf32>
    %c24 = arith.constant 24 : index
    %c0_5 = arith.constant 0 : index
    %11 = vector.load %arg5[%c24, %c0_5] : memref<648x384xf32, #tpu.memory_space<vmem>>, vector<8x384xf32>
    tpu.vector_store %arg5[%c24, %c0_5], %10 {strides = array<i32>} : memref<648x384xf32, #tpu.memory_space<vmem>>, vector<8x384xf32>,
    %c636_i32 = arith.constant 636 : i32
    %12 = tpu.dynamic_rotate %0 by %c636_i32 dim 1 : vector<8x640xf32>, i32 -> vector<8x640xf32>
    %13 = vector.extract_strided_slice %12 {offsets = [0, 0], sizes = [8, 384], strides = [1, 1]} : vector<8x640xf32> to vector<8x384xf32>
    %c32 = arith.constant 32 : index
    %c0_6 = arith.constant 0 : index
    %14 = vector.load %arg5[%c32, %c0_6] : memref<648x384xf32, #tpu.memory_space<vmem>>, vector<8x384xf32>
    tpu.vector_store %arg5[%c32, %c0_6], %13 {strides = array<i32>} : memref<648x384xf32, #tpu.memory_space<vmem>>, vector<8x384xf32>,
    %c635_i32 = arith.constant 635 : i32
    %15 = tpu.dynamic_rotate %0 by %c635_i32 dim 1 : vector<8x640xf32>, i32 -> vector<8x640xf32>
    %16 = vector.extract_strided_slice %15 {offsets = [0, 0], sizes = [8, 384], strides = [1, 1]} : vector<8x640xf32> to vector<8x384xf32>
    %c40 = arith.constant 40 : index
    %c0_7 = arith.constant 0 : index
    %17 = vector.load %arg5[%c40, %c0_7] : memref<648x384xf32, #tpu.memory_space<vmem>>, vector<8x384xf32>
    tpu.vector_store %arg5[%c40, %c0_7], %16 {strides = array<i32>} : memref<648x384xf32, #tpu.memory_space<vmem>>, vector<8x384xf32>,
    %c634_i32 = arith.constant 634 : i32
    %18 = tpu.dynamic_rotate %0 by %c634_i32 dim 1 : vector<8x640xf32>, i32 -> vector<8x640xf32>
    %19 = vector.extract_strided_slice %18 {offsets = [0, 0], sizes = [8, 384], strides = [1, 1]} : vector<8x640xf32> to vector<8x384xf32>
    %c48 = arith.constant 48 : index
    %c0_8 = arith.constant 0 : index
    %20 = vector.load %arg5[%c48, %c0_8] : memref<648x384xf32, #tpu.memory_space<vmem>>, vector<8x384xf32>
    tpu.vector_store %arg5[%c48, %c0_8], %19 {strides = array<i32>} : memref<648x384xf32, #tpu.memory_space<vmem>>, vector<8x384xf32>,
    %c633_i32 = arith.constant 633 : i32
    %21 = tpu.dynamic_rotate %0 by %c633_i32 dim 1 : vector<8x640xf32>, i32 -> vector<8x640xf32>
    %22 = vector.extract_strided_slice %21 {offsets = [0, 0], sizes = [8, 384], strides = [1, 1]} : vector<8x640xf32> to vector<8x384xf32>
    %c56 = arith.constant 56 : index
    %c0_9 = arith.constant 0 : index
    %23 = vector.load %arg5[%c56, %c0_9] : memref<648x384xf32, #tpu.memory_space<vmem>>, vector<8x384xf32>
    tpu.vector_store %arg5[%c56, %c0_9], %22 {strides = array<i32>} : memref<648x384xf32, #tpu.memory_space<vmem>>, vector<8x384xf32>,
    %c632_i32 = arith.constant 632 : i32
    %24 = tpu.dynamic_rotate %0 by %c632_i32 dim 1 : vector<8x640xf32>, i32 -> vector<8x640xf32>
    %25 = vector.extract_strided_slice %24 {offsets = [0, 0], sizes = [8, 384], strides = [1, 1]} : vector<8x640xf32> to vector<8x384xf32>
    %c64 = arith.constant 64 : index
    %c0_10 = arith.constant 0 : index
    %26 = vector.load %arg5[%c64, %c0_10] : memref<648x384xf32, #tpu.memory_space<vmem>>, vector<8x384xf32>
    tpu.vector_store %arg5[%c64, %c0_10], %25 {strides = array<i32>} : memref<648x384xf32, #tpu.memory_space<vmem>>, vector<8x384xf32>,
    %c616_i32 = arith.constant 616 : i32
    %27 = tpu.dynamic_rotate %0 by %c616_i32 dim 1 : vector<8x640xf32>, i32 -> vector<8x640xf32>
    %28 = vector.extract_strided_slice %27 {offsets = [0, 0], sizes = [8, 384], strides = [1, 1]} : vector<8x640xf32> to vector<8x384xf32>
    %c72 = arith.constant 72 : index
    %c0_11 = arith.constant 0 : index
    %29 = vector.load %arg5[%c72, %c0_11] : memref<648x384xf32, #tpu.memory_space<vmem>>, vector<8x384xf32>
    tpu.vector_store %arg5[%c72, %c0_11], %28 {strides = array<i32>} : memref<648x384xf32, #tpu.memory_space<vmem>>, vector<8x384xf32>,
    %c615_i32 = arith.constant 615 : i32
    %30 = tpu.dynamic_rotate %0 by %c615_i32 dim 1 : vector<8x640xf32>, i32 -> vector<8x640xf32>
    %31 = vector.extract_strided_slice %30 {offsets = [0, 0], sizes = [8, 384], strides = [1, 1]} : vector<8x640xf32> to vector<8x384xf32>
    %c80 = arith.constant 80 : index
    %c0_12 = arith.constant 0 : index
    %32 = vector.load %arg5[%c80, %c0_12] : memref<648x384xf32, #tpu.memory_space<vmem>>, vector<8x384xf32>
    tpu.vector_store %arg5[%c80, %c0_12], %31 {strides = array<i32>} : memref<648x384xf32, #tpu.memory_space<vmem>>, vector<8x384xf32>,
    %c614_i32 = arith.constant 614 : i32
    %33 = tpu.dynamic_rotate %0 by %c614_i32 dim 1 : vector<8x640xf32>, i32 -> vector<8x640xf32>
    %34 = vector.extract_strided_slice %33 {offsets = [0, 0], sizes = [8, 384], strides = [1, 1]} : vector<8x640xf32> to vector<8x384xf32>
    %c88 = arith.constant 88 : index
    %c0_13 = arith.constant 0 : index
    %35 = vector.load %arg5[%c88, %c0_13] : memref<648x384xf32, #tpu.memory_space<vmem>>, vector<8x384xf32>
    tpu.vector_store %arg5[%c88, %c0_13], %34 {strides = array<i32>} : memref<648x384xf32, #tpu.memory_space<vmem>>, vector<8x384xf32>,
    %c613_i32 = arith.constant 613 : i32
    %36 = tpu.dynamic_rotate %0 by %c613_i32 dim 1 : vector<8x640xf32>, i32 -> vector<8x640xf32>
    %37 = vector.extract_strided_slice %36 {offsets = [0, 0], sizes = [8, 384], strides = [1, 1]} : vector<8x640xf32> to vector<8x384xf32>
    %c96 = arith.constant 96 : index
    %c0_14 = arith.constant 0 : index
    %38 = vector.load %arg5[%c96, %c0_14] : memref<648x384xf32, #tpu.memory_space<vmem>>, vector<8x384xf32>
    tpu.vector_store %arg5[%c96, %c0_14], %37 {strides = array<i32>} : memref<648x384xf32, #tpu.memory_space<vmem>>, vector<8x384xf32>,
    %c612_i32 = arith.constant 612 : i32
    %39 = tpu.dynamic_rotate %0 by %c612_i32 dim 1 : vector<8x640xf32>, i32 -> vector<8x640xf32>
    %40 = vector.extract_strided_slice %39 {offsets = [0, 0], sizes = [8, 384], strides = [1, 1]} : vector<8x640xf32> to vector<8x384xf32>
    %c104 = arith.constant 104 : index
    %c0_15 = arith.constant 0 : index
    %41 = vector.load %arg5[%c104, %c0_15] : memref<648x384xf32, #tpu.memory_space<vmem>>, vector<8x384xf32>
    tpu.vector_store %arg5[%c104, %c0_15], %40 {strides = array<i32>} : memref<648x384xf32, #tpu.memory_space<vmem>>, vector<8x384xf32>,
    %c611_i32 = arith.constant 611 : i32
    %42 = tpu.dynamic_rotate %0 by %c611_i32 dim 1 : vector<8x640xf32>, i32 -> vector<8x640xf32>
    %43 = vector.extract_strided_slice %42 {offsets = [0, 0], sizes = [8, 384], strides = [1, 1]} : vector<8x640xf32> to vector<8x384xf32>
    %c112 = arith.constant 112 : index
    %c0_16 = arith.constant 0 : index
    %44 = vector.load %arg5[%c112, %c0_16] : memref<648x384xf32, #tpu.memory_space<vmem>>, vector<8x384xf32>
    tpu.vector_store %arg5[%c112, %c0_16], %43 {strides = array<i32>} : memref<648x384xf32, #tpu.memory_space<vmem>>, vector<8x384xf32>,
    %c610_i32 = arith.constant 610 : i32
    %45 = tpu.dynamic_rotate %0 by %c610_i32 dim 1 : vector<8x640xf32>, i32 -> vector<8x640xf32>
    %46 = vector.extract_strided_slice %45 {offsets = [0, 0], sizes = [8, 384], strides = [1, 1]} : vector<8x640xf32> to vector<8x384xf32>
    %c120 = arith.constant 120 : index
    %c0_17 = arith.constant 0 : index
    %47 = vector.load %arg5[%c120, %c0_17] : memref<648x384xf32, #tpu.memory_space<vmem>>, vector<8x384xf32>
    tpu.vector_store %arg5[%c120, %c0_17], %46 {strides = array<i32>} : memref<648x384xf32, #tpu.memory_space<vmem>>, vector<8x384xf32>,
    %c609_i32 = arith.constant 609 : i32
    %48 = tpu.dynamic_rotate %0 by %c609_i32 dim 1 : vector<8x640xf32>, i32 -> vector<8x640xf32>
    %49 = vector.extract_strided_slice %48 {offsets = [0, 0], sizes = [8, 384], strides = [1, 1]} : vector<8x640xf32> to vector<8x384xf32>
    %c128 = arith.constant 128 : index
    %c0_18 = arith.constant 0 : index
    %50 = vector.load %arg5[%c128, %c0_18] : memref<648x384xf32, #tpu.memory_space<vmem>>, vector<8x384xf32>
    tpu.vector_store %arg5[%c128, %c0_18], %49 {strides = array<i32>} : memref<648x384xf32, #tpu.memory_space<vmem>>, vector<8x384xf32>,
    %c608_i32 = arith.constant 608 : i32
    %51 = tpu.dynamic_rotate %0 by %c608_i32 dim 1 : vector<8x640xf32>, i32 -> vector<8x640xf32>
    %52 = vector.extract_strided_slice %51 {offsets = [0, 0], sizes = [8, 384], strides = [1, 1]} : vector<8x640xf32> to vector<8x384xf32>
    %c136 = arith.constant 136 : index
    %c0_19 = arith.constant 0 : index
    %53 = vector.load %arg5[%c136, %c0_19] : memref<648x384xf32, #tpu.memory_space<vmem>>, vector<8x384xf32>
    tpu.vector_store %arg5[%c136, %c0_19], %52 {strides = array<i32>} : memref<648x384xf32, #tpu.memory_space<vmem>>, vector<8x384xf32>,
    %c592_i32 = arith.constant 592 : i32
    %54 = tpu.dynamic_rotate %0 by %c592_i32 dim 1 : vector<8x640xf32>, i32 -> vector<8x640xf32>
    %55 = vector.extract_strided_slice %54 {offsets = [0, 0], sizes = [8, 384], strides = [1, 1]} : vector<8x640xf32> to vector<8x384xf32>
    %c144 = arith.constant 144 : index
    %c0_20 = arith.constant 0 : index
    %56 = vector.load %arg5[%c144, %c0_20] : memref<648x384xf32, #tpu.memory_space<vmem>>, vector<8x384xf32>
    tpu.vector_store %arg5[%c144, %c0_20], %55 {strides = array<i32>} : memref<648x384xf32, #tpu.memory_space<vmem>>, vector<8x384xf32>,
    %c591_i32 = arith.constant 591 : i32
    %57 = tpu.dynamic_rotate %0 by %c591_i32 dim 1 : vector<8x640xf32>, i32 -> vector<8x640xf32>
    %58 = vector.extract_strided_slice %57 {offsets = [0, 0], sizes = [8, 384], strides = [1, 1]} : vector<8x640xf32> to vector<8x384xf32>
    %c152 = arith.constant 152 : index
    %c0_21 = arith.constant 0 : index
    %59 = vector.load %arg5[%c152, %c0_21] : memref<648x384xf32, #tpu.memory_space<vmem>>, vector<8x384xf32>
    tpu.vector_store %arg5[%c152, %c0_21], %58 {strides = array<i32>} : memref<648x384xf32, #tpu.memory_space<vmem>>, vector<8x384xf32>,
    %c590_i32 = arith.constant 590 : i32
    %60 = tpu.dynamic_rotate %0 by %c590_i32 dim 1 : vector<8x640xf32>, i32 -> vector<8x640xf32>
    %61 = vector.extract_strided_slice %60 {offsets = [0, 0], sizes = [8, 384], strides = [1, 1]} : vector<8x640xf32> to vector<8x384xf32>
    %c160 = arith.constant 160 : index
    %c0_22 = arith.constant 0 : index
    %62 = vector.load %arg5[%c160, %c0_22] : memref<648x384xf32, #tpu.memory_space<vmem>>, vector<8x384xf32>
    tpu.vector_store %arg5[%c160, %c0_22], %61 {strides = array<i32>} : memref<648x384xf32, #tpu.memory_space<vmem>>, vector<8x384xf32>,
    %c589_i32 = arith.constant 589 : i32
    %63 = tpu.dynamic_rotate %0 by %c589_i32 dim 1 : vector<8x640xf32>, i32 -> vector<8x640xf32>
    %64 = vector.extract_strided_slice %63 {offsets = [0, 0], sizes = [8, 384], strides = [1, 1]} : vector<8x640xf32> to vector<8x384xf32>
    %c168 = arith.constant 168 : index
    %c0_23 = arith.constant 0 : index
    %65 = vector.load %arg5[%c168, %c0_23] : memref<648x384xf32, #tpu.memory_space<vmem>>, vector<8x384xf32>
    tpu.vector_store %arg5[%c168, %c0_23], %64 {strides = array<i32>} : memref<648x384xf32, #tpu.memory_space<vmem>>, vector<8x384xf32>,
    %c588_i32 = arith.constant 588 : i32
    %66 = tpu.dynamic_rotate %0 by %c588_i32 dim 1 : vector<8x640xf32>, i32 -> vector<8x640xf32>
    %67 = vector.extract_strided_slice %66 {offsets = [0, 0], sizes = [8, 384], strides = [1, 1]} : vector<8x640xf32> to vector<8x384xf32>
    %c176 = arith.constant 176 : index
    %c0_24 = arith.constant 0 : index
    %68 = vector.load %arg5[%c176, %c0_24] : memref<648x384xf32, #tpu.memory_space<vmem>>, vector<8x384xf32>
    tpu.vector_store %arg5[%c176, %c0_24], %67 {strides = array<i32>} : memref<648x384xf32, #tpu.memory_space<vmem>>, vector<8x384xf32>,
    %c587_i32 = arith.constant 587 : i32
    %69 = tpu.dynamic_rotate %0 by %c587_i32 dim 1 : vector<8x640xf32>, i32 -> vector<8x640xf32>
    %70 = vector.extract_strided_slice %69 {offsets = [0, 0], sizes = [8, 384], strides = [1, 1]} : vector<8x640xf32> to vector<8x384xf32>
    %c184 = arith.constant 184 : index
    %c0_25 = arith.constant 0 : index
    %71 = vector.load %arg5[%c184, %c0_25] : memref<648x384xf32, #tpu.memory_space<vmem>>, vector<8x384xf32>
    tpu.vector_store %arg5[%c184, %c0_25], %70 {strides = array<i32>} : memref<648x384xf32, #tpu.memory_space<vmem>>, vector<8x384xf32>,
    %c586_i32 = arith.constant 586 : i32
    %72 = tpu.dynamic_rotate %0 by %c586_i32 dim 1 : vector<8x640xf32>, i32 -> vector<8x640xf32>
    %73 = vector.extract_strided_slice %72 {offsets = [0, 0], sizes = [8, 384], strides = [1, 1]} : vector<8x640xf32> to vector<8x384xf32>
    %c192 = arith.constant 192 : index
    %c0_26 = arith.constant 0 : index
    %74 = vector.load %arg5[%c192, %c0_26] : memref<648x384xf32, #tpu.memory_space<vmem>>, vector<8x384xf32>
    tpu.vector_store %arg5[%c192, %c0_26], %73 {strides = array<i32>} : memref<648x384xf32, #tpu.memory_space<vmem>>, vector<8x384xf32>,
    %c585_i32 = arith.constant 585 : i32
    %75 = tpu.dynamic_rotate %0 by %c585_i32 dim 1 : vector<8x640xf32>, i32 -> vector<8x640xf32>
    %76 = vector.extract_strided_slice %75 {offsets = [0, 0], sizes = [8, 384], strides = [1, 1]} : vector<8x640xf32> to vector<8x384xf32>
    %c200 = arith.constant 200 : index
    %c0_27 = arith.constant 0 : index
    %77 = vector.load %arg5[%c200, %c0_27] : memref<648x384xf32, #tpu.memory_space<vmem>>, vector<8x384xf32>
    tpu.vector_store %arg5[%c200, %c0_27], %76 {strides = array<i32>} : memref<648x384xf32, #tpu.memory_space<vmem>>, vector<8x384xf32>,
    %c584_i32 = arith.constant 584 : i32
    %78 = tpu.dynamic_rotate %0 by %c584_i32 dim 1 : vector<8x640xf32>, i32 -> vector<8x640xf32>
    %79 = vector.extract_strided_slice %78 {offsets = [0, 0], sizes = [8, 384], strides = [1, 1]} : vector<8x640xf32> to vector<8x384xf32>
    %c208 = arith.constant 208 : index
    %c0_28 = arith.constant 0 : index
    %80 = vector.load %arg5[%c208, %c0_28] : memref<648x384xf32, #tpu.memory_space<vmem>>, vector<8x384xf32>
    tpu.vector_store %arg5[%c208, %c0_28], %79 {strides = array<i32>} : memref<648x384xf32, #tpu.memory_space<vmem>>, vector<8x384xf32>,
    %c568_i32 = arith.constant 568 : i32
    %81 = tpu.dynamic_rotate %0 by %c568_i32 dim 1 : vector<8x640xf32>, i32 -> vector<8x640xf32>
    %82 = vector.extract_strided_slice %81 {offsets = [0, 0], sizes = [8, 384], strides = [1, 1]} : vector<8x640xf32> to vector<8x384xf32>
    %c216 = arith.constant 216 : index
    %c0_29 = arith.constant 0 : index
    %83 = vector.load %arg5[%c216, %c0_29] : memref<648x384xf32, #tpu.memory_space<vmem>>, vector<8x384xf32>
    tpu.vector_store %arg5[%c216, %c0_29], %82 {strides = array<i32>} : memref<648x384xf32, #tpu.memory_space<vmem>>, vector<8x384xf32>,
    %c567_i32 = arith.constant 567 : i32
    %84 = tpu.dynamic_rotate %0 by %c567_i32 dim 1 : vector<8x640xf32>, i32 -> vector<8x640xf32>
    %85 = vector.extract_strided_slice %84 {offsets = [0, 0], sizes = [8, 384], strides = [1, 1]} : vector<8x640xf32> to vector<8x384xf32>
    %c224 = arith.constant 224 : index
    %c0_30 = arith.constant 0 : index
    %86 = vector.load %arg5[%c224, %c0_30] : memref<648x384xf32, #tpu.memory_space<vmem>>, vector<8x384xf32>
    tpu.vector_store %arg5[%c224, %c0_30], %85 {strides = array<i32>} : memref<648x384xf32, #tpu.memory_space<vmem>>, vector<8x384xf32>,
    %c566_i32 = arith.constant 566 : i32
    %87 = tpu.dynamic_rotate %0 by %c566_i32 dim 1 : vector<8x640xf32>, i32 -> vector<8x640xf32>
    %88 = vector.extract_strided_slice %87 {offsets = [0, 0], sizes = [8, 384], strides = [1, 1]} : vector<8x640xf32> to vector<8x384xf32>
    %c232 = arith.constant 232 : index
    %c0_31 = arith.constant 0 : index
    %89 = vector.load %arg5[%c232, %c0_31] : memref<648x384xf32, #tpu.memory_space<vmem>>, vector<8x384xf32>
    tpu.vector_store %arg5[%c232, %c0_31], %88 {strides = array<i32>} : memref<648x384xf32, #tpu.memory_space<vmem>>, vector<8x384xf32>,
    %c565_i32 = arith.constant 565 : i32
    %90 = tpu.dynamic_rotate %0 by %c565_i32 dim 1 : vector<8x640xf32>, i32 -> vector<8x640xf32>
    %91 = vector.extract_strided_slice %90 {offsets = [0, 0], sizes = [8, 384], strides = [1, 1]} : vector<8x640xf32> to vector<8x384xf32>
    %c240 = arith.constant 240 : index
    %c0_32 = arith.constant 0 : index
    %92 = vector.load %arg5[%c240, %c0_32] : memref<648x384xf32, #tpu.memory_space<vmem>>, vector<8x384xf32>
    tpu.vector_store %arg5[%c240, %c0_32], %91 {strides = array<i32>} : memref<648x384xf32, #tpu.memory_space<vmem>>, vector<8x384xf32>,
    %c564_i32 = arith.constant 564 : i32
    %93 = tpu.dynamic_rotate %0 by %c564_i32 dim 1 : vector<8x640xf32>, i32 -> vector<8x640xf32>
    %94 = vector.extract_strided_slice %93 {offsets = [0, 0], sizes = [8, 384], strides = [1, 1]} : vector<8x640xf32> to vector<8x384xf32>
    %c248 = arith.constant 248 : index
    %c0_33 = arith.constant 0 : index
    %95 = vector.load %arg5[%c248, %c0_33] : memref<648x384xf32, #tpu.memory_space<vmem>>, vector<8x384xf32>
    tpu.vector_store %arg5[%c248, %c0_33], %94 {strides = array<i32>} : memref<648x384xf32, #tpu.memory_space<vmem>>, vector<8x384xf32>,
    %c563_i32 = arith.constant 563 : i32
    %96 = tpu.dynamic_rotate %0 by %c563_i32 dim 1 : vector<8x640xf32>, i32 -> vector<8x640xf32>
    %97 = vector.extract_strided_slice %96 {offsets = [0, 0], sizes = [8, 384], strides = [1, 1]} : vector<8x640xf32> to vector<8x384xf32>
    %c256 = arith.constant 256 : index
    %c0_34 = arith.constant 0 : index
    %98 = vector.load %arg5[%c256, %c0_34] : memref<648x384xf32, #tpu.memory_space<vmem>>, vector<8x384xf32>
    tpu.vector_store %arg5[%c256, %c0_34], %97 {strides = array<i32>} : memref<648x384xf32, #tpu.memory_space<vmem>>, vector<8x384xf32>,
    %c562_i32 = arith.constant 562 : i32
    %99 = tpu.dynamic_rotate %0 by %c562_i32 dim 1 : vector<8x640xf32>, i32 -> vector<8x640xf32>
    %100 = vector.extract_strided_slice %99 {offsets = [0, 0], sizes = [8, 384], strides = [1, 1]} : vector<8x640xf32> to vector<8x384xf32>
    %c264 = arith.constant 264 : index
    %c0_35 = arith.constant 0 : index
    %101 = vector.load %arg5[%c264, %c0_35] : memref<648x384xf32, #tpu.memory_space<vmem>>, vector<8x384xf32>
    tpu.vector_store %arg5[%c264, %c0_35], %100 {strides = array<i32>} : memref<648x384xf32, #tpu.memory_space<vmem>>, vector<8x384xf32>,
    %c561_i32 = arith.constant 561 : i32
    %102 = tpu.dynamic_rotate %0 by %c561_i32 dim 1 : vector<8x640xf32>, i32 -> vector<8x640xf32>
    %103 = vector.extract_strided_slice %102 {offsets = [0, 0], sizes = [8, 384], strides = [1, 1]} : vector<8x640xf32> to vector<8x384xf32>
    %c272 = arith.constant 272 : index
    %c0_36 = arith.constant 0 : index
    %104 = vector.load %arg5[%c272, %c0_36] : memref<648x384xf32, #tpu.memory_space<vmem>>, vector<8x384xf32>
    tpu.vector_store %arg5[%c272, %c0_36], %103 {strides = array<i32>} : memref<648x384xf32, #tpu.memory_space<vmem>>, vector<8x384xf32>,
    %c560_i32 = arith.constant 560 : i32
    %105 = tpu.dynamic_rotate %0 by %c560_i32 dim 1 : vector<8x640xf32>, i32 -> vector<8x640xf32>
    %106 = vector.extract_strided_slice %105 {offsets = [0, 0], sizes = [8, 384], strides = [1, 1]} : vector<8x640xf32> to vector<8x384xf32>
    %c280 = arith.constant 280 : index
    %c0_37 = arith.constant 0 : index
    %107 = vector.load %arg5[%c280, %c0_37] : memref<648x384xf32, #tpu.memory_space<vmem>>, vector<8x384xf32>
    tpu.vector_store %arg5[%c280, %c0_37], %106 {strides = array<i32>} : memref<648x384xf32, #tpu.memory_space<vmem>>, vector<8x384xf32>,
    %c544_i32 = arith.constant 544 : i32
    %108 = tpu.dynamic_rotate %0 by %c544_i32 dim 1 : vector<8x640xf32>, i32 -> vector<8x640xf32>
    %109 = vector.extract_strided_slice %108 {offsets = [0, 0], sizes = [8, 384], strides = [1, 1]} : vector<8x640xf32> to vector<8x384xf32>
    %c288 = arith.constant 288 : index
    %c0_38 = arith.constant 0 : index
    %110 = vector.load %arg5[%c288, %c0_38] : memref<648x384xf32, #tpu.memory_space<vmem>>, vector<8x384xf32>
    tpu.vector_store %arg5[%c288, %c0_38], %109 {strides = array<i32>} : memref<648x384xf32, #tpu.memory_space<vmem>>, vector<8x384xf32>,
    %c543_i32 = arith.constant 543 : i32
    %111 = tpu.dynamic_rotate %0 by %c543_i32 dim 1 : vector<8x640xf32>, i32 -> vector<8x640xf32>
    %112 = vector.extract_strided_slice %111 {offsets = [0, 0], sizes = [8, 384], strides = [1, 1]} : vector<8x640xf32> to vector<8x384xf32>
    %c296 = arith.constant 296 : index
    %c0_39 = arith.constant 0 : index
    %113 = vector.load %arg5[%c296, %c0_39] : memref<648x384xf32, #tpu.memory_space<vmem>>, vector<8x384xf32>
    tpu.vector_store %arg5[%c296, %c0_39], %112 {strides = array<i32>} : memref<648x384xf32, #tpu.memory_space<vmem>>, vector<8x384xf32>,
    %c542_i32 = arith.constant 542 : i32
    %114 = tpu.dynamic_rotate %0 by %c542_i32 dim 1 : vector<8x640xf32>, i32 -> vector<8x640xf32>
    %115 = vector.extract_strided_slice %114 {offsets = [0, 0], sizes = [8, 384], strides = [1, 1]} : vector<8x640xf32> to vector<8x384xf32>
    %c304 = arith.constant 304 : index
    %c0_40 = arith.constant 0 : index
    %116 = vector.load %arg5[%c304, %c0_40] : memref<648x384xf32, #tpu.memory_space<vmem>>, vector<8x384xf32>
    tpu.vector_store %arg5[%c304, %c0_40], %115 {strides = array<i32>} : memref<648x384xf32, #tpu.memory_space<vmem>>, vector<8x384xf32>,
    %c541_i32 = arith.constant 541 : i32
    %117 = tpu.dynamic_rotate %0 by %c541_i32 dim 1 : vector<8x640xf32>, i32 -> vector<8x640xf32>
    %118 = vector.extract_strided_slice %117 {offsets = [0, 0], sizes = [8, 384], strides = [1, 1]} : vector<8x640xf32> to vector<8x384xf32>
    %c312 = arith.constant 312 : index
    %c0_41 = arith.constant 0 : index
    %119 = vector.load %arg5[%c312, %c0_41] : memref<648x384xf32, #tpu.memory_space<vmem>>, vector<8x384xf32>
    tpu.vector_store %arg5[%c312, %c0_41], %118 {strides = array<i32>} : memref<648x384xf32, #tpu.memory_space<vmem>>, vector<8x384xf32>,
    %c540_i32 = arith.constant 540 : i32
    %120 = tpu.dynamic_rotate %0 by %c540_i32 dim 1 : vector<8x640xf32>, i32 -> vector<8x640xf32>
    %121 = vector.extract_strided_slice %120 {offsets = [0, 0], sizes = [8, 384], strides = [1, 1]} : vector<8x640xf32> to vector<8x384xf32>
    %c320 = arith.constant 320 : index
    %c0_42 = arith.constant 0 : index
    %122 = vector.load %arg5[%c320, %c0_42] : memref<648x384xf32, #tpu.memory_space<vmem>>, vector<8x384xf32>
    tpu.vector_store %arg5[%c320, %c0_42], %121 {strides = array<i32>} : memref<648x384xf32, #tpu.memory_space<vmem>>, vector<8x384xf32>,
    %c539_i32 = arith.constant 539 : i32
    %123 = tpu.dynamic_rotate %0 by %c539_i32 dim 1 : vector<8x640xf32>, i32 -> vector<8x640xf32>
    %124 = vector.extract_strided_slice %123 {offsets = [0, 0], sizes = [8, 384], strides = [1, 1]} : vector<8x640xf32> to vector<8x384xf32>
    %c328 = arith.constant 328 : index
    %c0_43 = arith.constant 0 : index
    %125 = vector.load %arg5[%c328, %c0_43] : memref<648x384xf32, #tpu.memory_space<vmem>>, vector<8x384xf32>
    tpu.vector_store %arg5[%c328, %c0_43], %124 {strides = array<i32>} : memref<648x384xf32, #tpu.memory_space<vmem>>, vector<8x384xf32>,
    %c538_i32 = arith.constant 538 : i32
    %126 = tpu.dynamic_rotate %0 by %c538_i32 dim 1 : vector<8x640xf32>, i32 -> vector<8x640xf32>
    %127 = vector.extract_strided_slice %126 {offsets = [0, 0], sizes = [8, 384], strides = [1, 1]} : vector<8x640xf32> to vector<8x384xf32>
    %c336 = arith.constant 336 : index
    %c0_44 = arith.constant 0 : index
    %128 = vector.load %arg5[%c336, %c0_44] : memref<648x384xf32, #tpu.memory_space<vmem>>, vector<8x384xf32>
    tpu.vector_store %arg5[%c336, %c0_44], %127 {strides = array<i32>} : memref<648x384xf32, #tpu.memory_space<vmem>>, vector<8x384xf32>,
    %c537_i32 = arith.constant 537 : i32
    %129 = tpu.dynamic_rotate %0 by %c537_i32 dim 1 : vector<8x640xf32>, i32 -> vector<8x640xf32>
    %130 = vector.extract_strided_slice %129 {offsets = [0, 0], sizes = [8, 384], strides = [1, 1]} : vector<8x640xf32> to vector<8x384xf32>
    %c344 = arith.constant 344 : index
    %c0_45 = arith.constant 0 : index
    %131 = vector.load %arg5[%c344, %c0_45] : memref<648x384xf32, #tpu.memory_space<vmem>>, vector<8x384xf32>
    tpu.vector_store %arg5[%c344, %c0_45], %130 {strides = array<i32>} : memref<648x384xf32, #tpu.memory_space<vmem>>, vector<8x384xf32>,
    %c536_i32 = arith.constant 536 : i32
    %132 = tpu.dynamic_rotate %0 by %c536_i32 dim 1 : vector<8x640xf32>, i32 -> vector<8x640xf32>
    %133 = vector.extract_strided_slice %132 {offsets = [0, 0], sizes = [8, 384], strides = [1, 1]} : vector<8x640xf32> to vector<8x384xf32>
    %c352 = arith.constant 352 : index
    %c0_46 = arith.constant 0 : index
    %134 = vector.load %arg5[%c352, %c0_46] : memref<648x384xf32, #tpu.memory_space<vmem>>, vector<8x384xf32>
    tpu.vector_store %arg5[%c352, %c0_46], %133 {strides = array<i32>} : memref<648x384xf32, #tpu.memory_space<vmem>>, vector<8x384xf32>,
    %c520_i32 = arith.constant 520 : i32
    %135 = tpu.dynamic_rotate %0 by %c520_i32 dim 1 : vector<8x640xf32>, i32 -> vector<8x640xf32>
    %136 = vector.extract_strided_slice %135 {offsets = [0, 0], sizes = [8, 384], strides = [1, 1]} : vector<8x640xf32> to vector<8x384xf32>
    %c360 = arith.constant 360 : index
    %c0_47 = arith.constant 0 : index
    %137 = vector.load %arg5[%c360, %c0_47] : memref<648x384xf32, #tpu.memory_space<vmem>>, vector<8x384xf32>
    tpu.vector_store %arg5[%c360, %c0_47], %136 {strides = array<i32>} : memref<648x384xf32, #tpu.memory_space<vmem>>, vector<8x384xf32>,
    %c519_i32 = arith.constant 519 : i32
    %138 = tpu.dynamic_rotate %0 by %c519_i32 dim 1 : vector<8x640xf32>, i32 -> vector<8x640xf32>
    %139 = vector.extract_strided_slice %138 {offsets = [0, 0], sizes = [8, 384], strides = [1, 1]} : vector<8x640xf32> to vector<8x384xf32>
    %c368 = arith.constant 368 : index
    %c0_48 = arith.constant 0 : index
    %140 = vector.load %arg5[%c368, %c0_48] : memref<648x384xf32, #tpu.memory_space<vmem>>, vector<8x384xf32>
    tpu.vector_store %arg5[%c368, %c0_48], %139 {strides = array<i32>} : memref<648x384xf32, #tpu.memory_space<vmem>>, vector<8x384xf32>,
    %c518_i32 = arith.constant 518 : i32
    %141 = tpu.dynamic_rotate %0 by %c518_i32 dim 1 : vector<8x640xf32>, i32 -> vector<8x640xf32>
    %142 = vector.extract_strided_slice %141 {offsets = [0, 0], sizes = [8, 384], strides = [1, 1]} : vector<8x640xf32> to vector<8x384xf32>
    %c376 = arith.constant 376 : index
    %c0_49 = arith.constant 0 : index
    %143 = vector.load %arg5[%c376, %c0_49] : memref<648x384xf32, #tpu.memory_space<vmem>>, vector<8x384xf32>
    tpu.vector_store %arg5[%c376, %c0_49], %142 {strides = array<i32>} : memref<648x384xf32, #tpu.memory_space<vmem>>, vector<8x384xf32>,
    %c517_i32 = arith.constant 517 : i32
    %144 = tpu.dynamic_rotate %0 by %c517_i32 dim 1 : vector<8x640xf32>, i32 -> vector<8x640xf32>
    %145 = vector.extract_strided_slice %144 {offsets = [0, 0], sizes = [8, 384], strides = [1, 1]} : vector<8x640xf32> to vector<8x384xf32>
    %c384 = arith.constant 384 : index
    %c0_50 = arith.constant 0 : index
    %146 = vector.load %arg5[%c384, %c0_50] : memref<648x384xf32, #tpu.memory_space<vmem>>, vector<8x384xf32>
    tpu.vector_store %arg5[%c384, %c0_50], %145 {strides = array<i32>} : memref<648x384xf32, #tpu.memory_space<vmem>>, vector<8x384xf32>,
    %c516_i32 = arith.constant 516 : i32
    %147 = tpu.dynamic_rotate %0 by %c516_i32 dim 1 : vector<8x640xf32>, i32 -> vector<8x640xf32>
    %148 = vector.extract_strided_slice %147 {offsets = [0, 0], sizes = [8, 384], strides = [1, 1]} : vector<8x640xf32> to vector<8x384xf32>
    %c392 = arith.constant 392 : index
    %c0_51 = arith.constant 0 : index
    %149 = vector.load %arg5[%c392, %c0_51] : memref<648x384xf32, #tpu.memory_space<vmem>>, vector<8x384xf32>
    tpu.vector_store %arg5[%c392, %c0_51], %148 {strides = array<i32>} : memref<648x384xf32, #tpu.memory_space<vmem>>, vector<8x384xf32>,
    %c515_i32 = arith.constant 515 : i32
    %150 = tpu.dynamic_rotate %0 by %c515_i32 dim 1 : vector<8x640xf32>, i32 -> vector<8x640xf32>
    %151 = vector.extract_strided_slice %150 {offsets = [0, 0], sizes = [8, 384], strides = [1, 1]} : vector<8x640xf32> to vector<8x384xf32>
    %c400 = arith.constant 400 : index
    %c0_52 = arith.constant 0 : index
    %152 = vector.load %arg5[%c400, %c0_52] : memref<648x384xf32, #tpu.memory_space<vmem>>, vector<8x384xf32>
    tpu.vector_store %arg5[%c400, %c0_52], %151 {strides = array<i32>} : memref<648x384xf32, #tpu.memory_space<vmem>>, vector<8x384xf32>,
    %c514_i32 = arith.constant 514 : i32
    %153 = tpu.dynamic_rotate %0 by %c514_i32 dim 1 : vector<8x640xf32>, i32 -> vector<8x640xf32>
    %154 = vector.extract_strided_slice %153 {offsets = [0, 0], sizes = [8, 384], strides = [1, 1]} : vector<8x640xf32> to vector<8x384xf32>
    %c408 = arith.constant 408 : index
    %c0_53 = arith.constant 0 : index
    %155 = vector.load %arg5[%c408, %c0_53] : memref<648x384xf32, #tpu.memory_space<vmem>>, vector<8x384xf32>
    tpu.vector_store %arg5[%c408, %c0_53], %154 {strides = array<i32>} : memref<648x384xf32, #tpu.memory_space<vmem>>, vector<8x384xf32>,
    %c513_i32 = arith.constant 513 : i32
    %156 = tpu.dynamic_rotate %0 by %c513_i32 dim 1 : vector<8x640xf32>, i32 -> vector<8x640xf32>
    %157 = vector.extract_strided_slice %156 {offsets = [0, 0], sizes = [8, 384], strides = [1, 1]} : vector<8x640xf32> to vector<8x384xf32>
    %c416 = arith.constant 416 : index
    %c0_54 = arith.constant 0 : index
    %158 = vector.load %arg5[%c416, %c0_54] : memref<648x384xf32, #tpu.memory_space<vmem>>, vector<8x384xf32>
    tpu.vector_store %arg5[%c416, %c0_54], %157 {strides = array<i32>} : memref<648x384xf32, #tpu.memory_space<vmem>>, vector<8x384xf32>,
    %c512_i32 = arith.constant 512 : i32
    %159 = tpu.dynamic_rotate %0 by %c512_i32 dim 1 : vector<8x640xf32>, i32 -> vector<8x640xf32>
    %160 = vector.extract_strided_slice %159 {offsets = [0, 0], sizes = [8, 384], strides = [1, 1]} : vector<8x640xf32> to vector<8x384xf32>
    %c424 = arith.constant 424 : index
    %c0_55 = arith.constant 0 : index
    %161 = vector.load %arg5[%c424, %c0_55] : memref<648x384xf32, #tpu.memory_space<vmem>>, vector<8x384xf32>
    tpu.vector_store %arg5[%c424, %c0_55], %160 {strides = array<i32>} : memref<648x384xf32, #tpu.memory_space<vmem>>, vector<8x384xf32>,
    %c496_i32 = arith.constant 496 : i32
    %162 = tpu.dynamic_rotate %0 by %c496_i32 dim 1 : vector<8x640xf32>, i32 -> vector<8x640xf32>
    %163 = vector.extract_strided_slice %162 {offsets = [0, 0], sizes = [8, 384], strides = [1, 1]} : vector<8x640xf32> to vector<8x384xf32>
    %c432 = arith.constant 432 : index
    %c0_56 = arith.constant 0 : index
    %164 = vector.load %arg5[%c432, %c0_56] : memref<648x384xf32, #tpu.memory_space<vmem>>, vector<8x384xf32>
    tpu.vector_store %arg5[%c432, %c0_56], %163 {strides = array<i32>} : memref<648x384xf32, #tpu.memory_space<vmem>>, vector<8x384xf32>,
    %c495_i32 = arith.constant 495 : i32
    %165 = tpu.dynamic_rotate %0 by %c495_i32 dim 1 : vector<8x640xf32>, i32 -> vector<8x640xf32>
    %166 = vector.extract_strided_slice %165 {offsets = [0, 0], sizes = [8, 384], strides = [1, 1]} : vector<8x640xf32> to vector<8x384xf32>
    %c440 = arith.constant 440 : index
    %c0_57 = arith.constant 0 : index
    %167 = vector.load %arg5[%c440, %c0_57] : memref<648x384xf32, #tpu.memory_space<vmem>>, vector<8x384xf32>
    tpu.vector_store %arg5[%c440, %c0_57], %166 {strides = array<i32>} : memref<648x384xf32, #tpu.memory_space<vmem>>, vector<8x384xf32>,
    %c494_i32 = arith.constant 494 : i32
    %168 = tpu.dynamic_rotate %0 by %c494_i32 dim 1 : vector<8x640xf32>, i32 -> vector<8x640xf32>
    %169 = vector.extract_strided_slice %168 {offsets = [0, 0], sizes = [8, 384], strides = [1, 1]} : vector<8x640xf32> to vector<8x384xf32>
    %c448 = arith.constant 448 : index
    %c0_58 = arith.constant 0 : index
    %170 = vector.load %arg5[%c448, %c0_58] : memref<648x384xf32, #tpu.memory_space<vmem>>, vector<8x384xf32>
    tpu.vector_store %arg5[%c448, %c0_58], %169 {strides = array<i32>} : memref<648x384xf32, #tpu.memory_space<vmem>>, vector<8x384xf32>,
    %c493_i32 = arith.constant 493 : i32
    %171 = tpu.dynamic_rotate %0 by %c493_i32 dim 1 : vector<8x640xf32>, i32 -> vector<8x640xf32>
    %172 = vector.extract_strided_slice %171 {offsets = [0, 0], sizes = [8, 384], strides = [1, 1]} : vector<8x640xf32> to vector<8x384xf32>
    %c456 = arith.constant 456 : index
    %c0_59 = arith.constant 0 : index
    %173 = vector.load %arg5[%c456, %c0_59] : memref<648x384xf32, #tpu.memory_space<vmem>>, vector<8x384xf32>
    tpu.vector_store %arg5[%c456, %c0_59], %172 {strides = array<i32>} : memref<648x384xf32, #tpu.memory_space<vmem>>, vector<8x384xf32>,
    %c492_i32 = arith.constant 492 : i32
    %174 = tpu.dynamic_rotate %0 by %c492_i32 dim 1 : vector<8x640xf32>, i32 -> vector<8x640xf32>
    %175 = vector.extract_strided_slice %174 {offsets = [0, 0], sizes = [8, 384], strides = [1, 1]} : vector<8x640xf32> to vector<8x384xf32>
    %c464 = arith.constant 464 : index
    %c0_60 = arith.constant 0 : index
    %176 = vector.load %arg5[%c464, %c0_60] : memref<648x384xf32, #tpu.memory_space<vmem>>, vector<8x384xf32>
    tpu.vector_store %arg5[%c464, %c0_60], %175 {strides = array<i32>} : memref<648x384xf32, #tpu.memory_space<vmem>>, vector<8x384xf32>,
    %c491_i32 = arith.constant 491 : i32
    %177 = tpu.dynamic_rotate %0 by %c491_i32 dim 1 : vector<8x640xf32>, i32 -> vector<8x640xf32>
    %178 = vector.extract_strided_slice %177 {offsets = [0, 0], sizes = [8, 384], strides = [1, 1]} : vector<8x640xf32> to vector<8x384xf32>
    %c472 = arith.constant 472 : index
    %c0_61 = arith.constant 0 : index
    %179 = vector.load %arg5[%c472, %c0_61] : memref<648x384xf32, #tpu.memory_space<vmem>>, vector<8x384xf32>
    tpu.vector_store %arg5[%c472, %c0_61], %178 {strides = array<i32>} : memref<648x384xf32, #tpu.memory_space<vmem>>, vector<8x384xf32>,
    %c490_i32 = arith.constant 490 : i32
    %180 = tpu.dynamic_rotate %0 by %c490_i32 dim 1 : vector<8x640xf32>, i32 -> vector<8x640xf32>
    %181 = vector.extract_strided_slice %180 {offsets = [0, 0], sizes = [8, 384], strides = [1, 1]} : vector<8x640xf32> to vector<8x384xf32>
    %c480 = arith.constant 480 : index
    %c0_62 = arith.constant 0 : index
    %182 = vector.load %arg5[%c480, %c0_62] : memref<648x384xf32, #tpu.memory_space<vmem>>, vector<8x384xf32>
    tpu.vector_store %arg5[%c480, %c0_62], %181 {strides = array<i32>} : memref<648x384xf32, #tpu.memory_space<vmem>>, vector<8x384xf32>,
    %c489_i32 = arith.constant 489 : i32
    %183 = tpu.dynamic_rotate %0 by %c489_i32 dim 1 : vector<8x640xf32>, i32 -> vector<8x640xf32>
    %184 = vector.extract_strided_slice %183 {offsets = [0, 0], sizes = [8, 384], strides = [1, 1]} : vector<8x640xf32> to vector<8x384xf32>
    %c488 = arith.constant 488 : index
    %c0_63 = arith.constant 0 : index
    %185 = vector.load %arg5[%c488, %c0_63] : memref<648x384xf32, #tpu.memory_space<vmem>>, vector<8x384xf32>
    tpu.vector_store %arg5[%c488, %c0_63], %184 {strides = array<i32>} : memref<648x384xf32, #tpu.memory_space<vmem>>, vector<8x384xf32>,
    %c488_i32 = arith.constant 488 : i32
    %186 = tpu.dynamic_rotate %0 by %c488_i32 dim 1 : vector<8x640xf32>, i32 -> vector<8x640xf32>
    %187 = vector.extract_strided_slice %186 {offsets = [0, 0], sizes = [8, 384], strides = [1, 1]} : vector<8x640xf32> to vector<8x384xf32>
    %c496 = arith.constant 496 : index
    %c0_64 = arith.constant 0 : index
    %188 = vector.load %arg5[%c496, %c0_64] : memref<648x384xf32, #tpu.memory_space<vmem>>, vector<8x384xf32>
    tpu.vector_store %arg5[%c496, %c0_64], %187 {strides = array<i32>} : memref<648x384xf32, #tpu.memory_space<vmem>>, vector<8x384xf32>,
    %c472_i32 = arith.constant 472 : i32
    %189 = tpu.dynamic_rotate %0 by %c472_i32 dim 1 : vector<8x640xf32>, i32 -> vector<8x640xf32>
    %190 = vector.extract_strided_slice %189 {offsets = [0, 0], sizes = [8, 384], strides = [1, 1]} : vector<8x640xf32> to vector<8x384xf32>
    %c504 = arith.constant 504 : index
    %c0_65 = arith.constant 0 : index
    %191 = vector.load %arg5[%c504, %c0_65] : memref<648x384xf32, #tpu.memory_space<vmem>>, vector<8x384xf32>
    tpu.vector_store %arg5[%c504, %c0_65], %190 {strides = array<i32>} : memref<648x384xf32, #tpu.memory_space<vmem>>, vector<8x384xf32>,
    %c471_i32 = arith.constant 471 : i32
    %192 = tpu.dynamic_rotate %0 by %c471_i32 dim 1 : vector<8x640xf32>, i32 -> vector<8x640xf32>
    %193 = vector.extract_strided_slice %192 {offsets = [0, 0], sizes = [8, 384], strides = [1, 1]} : vector<8x640xf32> to vector<8x384xf32>
    %c512 = arith.constant 512 : index
    %c0_66 = arith.constant 0 : index
    %194 = vector.load %arg5[%c512, %c0_66] : memref<648x384xf32, #tpu.memory_space<vmem>>, vector<8x384xf32>
    tpu.vector_store %arg5[%c512, %c0_66], %193 {strides = array<i32>} : memref<648x384xf32, #tpu.memory_space<vmem>>, vector<8x384xf32>,
    %c470_i32 = arith.constant 470 : i32
    %195 = tpu.dynamic_rotate %0 by %c470_i32 dim 1 : vector<8x640xf32>, i32 -> vector<8x640xf32>
    %196 = vector.extract_strided_slice %195 {offsets = [0, 0], sizes = [8, 384], strides = [1, 1]} : vector<8x640xf32> to vector<8x384xf32>
    %c520 = arith.constant 520 : index
    %c0_67 = arith.constant 0 : index
    %197 = vector.load %arg5[%c520, %c0_67] : memref<648x384xf32, #tpu.memory_space<vmem>>, vector<8x384xf32>
    tpu.vector_store %arg5[%c520, %c0_67], %196 {strides = array<i32>} : memref<648x384xf32, #tpu.memory_space<vmem>>, vector<8x384xf32>,
    %c469_i32 = arith.constant 469 : i32
    %198 = tpu.dynamic_rotate %0 by %c469_i32 dim 1 : vector<8x640xf32>, i32 -> vector<8x640xf32>
    %199 = vector.extract_strided_slice %198 {offsets = [0, 0], sizes = [8, 384], strides = [1, 1]} : vector<8x640xf32> to vector<8x384xf32>
    %c528 = arith.constant 528 : index
    %c0_68 = arith.constant 0 : index
    %200 = vector.load %arg5[%c528, %c0_68] : memref<648x384xf32, #tpu.memory_space<vmem>>, vector<8x384xf32>
    tpu.vector_store %arg5[%c528, %c0_68], %199 {strides = array<i32>} : memref<648x384xf32, #tpu.memory_space<vmem>>, vector<8x384xf32>,
    %c468_i32 = arith.constant 468 : i32
    %201 = tpu.dynamic_rotate %0 by %c468_i32 dim 1 : vector<8x640xf32>, i32 -> vector<8x640xf32>
    %202 = vector.extract_strided_slice %201 {offsets = [0, 0], sizes = [8, 384], strides = [1, 1]} : vector<8x640xf32> to vector<8x384xf32>
    %c536 = arith.constant 536 : index
    %c0_69 = arith.constant 0 : index
    %203 = vector.load %arg5[%c536, %c0_69] : memref<648x384xf32, #tpu.memory_space<vmem>>, vector<8x384xf32>
    tpu.vector_store %arg5[%c536, %c0_69], %202 {strides = array<i32>} : memref<648x384xf32, #tpu.memory_space<vmem>>, vector<8x384xf32>,
    %c467_i32 = arith.constant 467 : i32
    %204 = tpu.dynamic_rotate %0 by %c467_i32 dim 1 : vector<8x640xf32>, i32 -> vector<8x640xf32>
    %205 = vector.extract_strided_slice %204 {offsets = [0, 0], sizes = [8, 384], strides = [1, 1]} : vector<8x640xf32> to vector<8x384xf32>
    %c544 = arith.constant 544 : index
    %c0_70 = arith.constant 0 : index
    %206 = vector.load %arg5[%c544, %c0_70] : memref<648x384xf32, #tpu.memory_space<vmem>>, vector<8x384xf32>
    tpu.vector_store %arg5[%c544, %c0_70], %205 {strides = array<i32>} : memref<648x384xf32, #tpu.memory_space<vmem>>, vector<8x384xf32>,
    %c466_i32 = arith.constant 466 : i32
    %207 = tpu.dynamic_rotate %0 by %c466_i32 dim 1 : vector<8x640xf32>, i32 -> vector<8x640xf32>
    %208 = vector.extract_strided_slice %207 {offsets = [0, 0], sizes = [8, 384], strides = [1, 1]} : vector<8x640xf32> to vector<8x384xf32>
    %c552 = arith.constant 552 : index
    %c0_71 = arith.constant 0 : index
    %209 = vector.load %arg5[%c552, %c0_71] : memref<648x384xf32, #tpu.memory_space<vmem>>, vector<8x384xf32>
    tpu.vector_store %arg5[%c552, %c0_71], %208 {strides = array<i32>} : memref<648x384xf32, #tpu.memory_space<vmem>>, vector<8x384xf32>,
    %c465_i32 = arith.constant 465 : i32
    %210 = tpu.dynamic_rotate %0 by %c465_i32 dim 1 : vector<8x640xf32>, i32 -> vector<8x640xf32>
    %211 = vector.extract_strided_slice %210 {offsets = [0, 0], sizes = [8, 384], strides = [1, 1]} : vector<8x640xf32> to vector<8x384xf32>
    %c560 = arith.constant 560 : index
    %c0_72 = arith.constant 0 : index
    %212 = vector.load %arg5[%c560, %c0_72] : memref<648x384xf32, #tpu.memory_space<vmem>>, vector<8x384xf32>
    tpu.vector_store %arg5[%c560, %c0_72], %211 {strides = array<i32>} : memref<648x384xf32, #tpu.memory_space<vmem>>, vector<8x384xf32>,
    %c464_i32 = arith.constant 464 : i32
    %213 = tpu.dynamic_rotate %0 by %c464_i32 dim 1 : vector<8x640xf32>, i32 -> vector<8x640xf32>
    %214 = vector.extract_strided_slice %213 {offsets = [0, 0], sizes = [8, 384], strides = [1, 1]} : vector<8x640xf32> to vector<8x384xf32>
    %c568 = arith.constant 568 : index
    %c0_73 = arith.constant 0 : index
    %215 = vector.load %arg5[%c568, %c0_73] : memref<648x384xf32, #tpu.memory_space<vmem>>, vector<8x384xf32>
    tpu.vector_store %arg5[%c568, %c0_73], %214 {strides = array<i32>} : memref<648x384xf32, #tpu.memory_space<vmem>>, vector<8x384xf32>,
    %c448_i32 = arith.constant 448 : i32
    %216 = tpu.dynamic_rotate %0 by %c448_i32 dim 1 : vector<8x640xf32>, i32 -> vector<8x640xf32>
    %217 = vector.extract_strided_slice %216 {offsets = [0, 0], sizes = [8, 384], strides = [1, 1]} : vector<8x640xf32> to vector<8x384xf32>
    %c576 = arith.constant 576 : index
    %c0_74 = arith.constant 0 : index
    %218 = vector.load %arg5[%c576, %c0_74] : memref<648x384xf32, #tpu.memory_space<vmem>>, vector<8x384xf32>
    tpu.vector_store %arg5[%c576, %c0_74], %217 {strides = array<i32>} : memref<648x384xf32, #tpu.memory_space<vmem>>, vector<8x384xf32>,
    %c447_i32 = arith.constant 447 : i32
    %219 = tpu.dynamic_rotate %0 by %c447_i32 dim 1 : vector<8x640xf32>, i32 -> vector<8x640xf32>
    %220 = vector.extract_strided_slice %219 {offsets = [0, 0], sizes = [8, 384], strides = [1, 1]} : vector<8x640xf32> to vector<8x384xf32>
    %c584 = arith.constant 584 : index
    %c0_75 = arith.constant 0 : index
    %221 = vector.load %arg5[%c584, %c0_75] : memref<648x384xf32, #tpu.memory_space<vmem>>, vector<8x384xf32>
    tpu.vector_store %arg5[%c584, %c0_75], %220 {strides = array<i32>} : memref<648x384xf32, #tpu.memory_space<vmem>>, vector<8x384xf32>,
    %c446_i32 = arith.constant 446 : i32
    %222 = tpu.dynamic_rotate %0 by %c446_i32 dim 1 : vector<8x640xf32>, i32 -> vector<8x640xf32>
    %223 = vector.extract_strided_slice %222 {offsets = [0, 0], sizes = [8, 384], strides = [1, 1]} : vector<8x640xf32> to vector<8x384xf32>
    %c592 = arith.constant 592 : index
    %c0_76 = arith.constant 0 : index
    %224 = vector.load %arg5[%c592, %c0_76] : memref<648x384xf32, #tpu.memory_space<vmem>>, vector<8x384xf32>
    tpu.vector_store %arg5[%c592, %c0_76], %223 {strides = array<i32>} : memref<648x384xf32, #tpu.memory_space<vmem>>, vector<8x384xf32>,
    %c445_i32 = arith.constant 445 : i32
    %225 = tpu.dynamic_rotate %0 by %c445_i32 dim 1 : vector<8x640xf32>, i32 -> vector<8x640xf32>
    %226 = vector.extract_strided_slice %225 {offsets = [0, 0], sizes = [8, 384], strides = [1, 1]} : vector<8x640xf32> to vector<8x384xf32>
    %c600 = arith.constant 600 : index
    %c0_77 = arith.constant 0 : index
    %227 = vector.load %arg5[%c600, %c0_77] : memref<648x384xf32, #tpu.memory_space<vmem>>, vector<8x384xf32>
    tpu.vector_store %arg5[%c600, %c0_77], %226 {strides = array<i32>} : memref<648x384xf32, #tpu.memory_space<vmem>>, vector<8x384xf32>,
    %c444_i32 = arith.constant 444 : i32
    %228 = tpu.dynamic_rotate %0 by %c444_i32 dim 1 : vector<8x640xf32>, i32 -> vector<8x640xf32>
    %229 = vector.extract_strided_slice %228 {offsets = [0, 0], sizes = [8, 384], strides = [1, 1]} : vector<8x640xf32> to vector<8x384xf32>
    %c608 = arith.constant 608 : index
    %c0_78 = arith.constant 0 : index
    %230 = vector.load %arg5[%c608, %c0_78] : memref<648x384xf32, #tpu.memory_space<vmem>>, vector<8x384xf32>
    tpu.vector_store %arg5[%c608, %c0_78], %229 {strides = array<i32>} : memref<648x384xf32, #tpu.memory_space<vmem>>, vector<8x384xf32>,
    %c443_i32 = arith.constant 443 : i32
    %231 = tpu.dynamic_rotate %0 by %c443_i32 dim 1 : vector<8x640xf32>, i32 -> vector<8x640xf32>
    %232 = vector.extract_strided_slice %231 {offsets = [0, 0], sizes = [8, 384], strides = [1, 1]} : vector<8x640xf32> to vector<8x384xf32>
    %c616 = arith.constant 616 : index
    %c0_79 = arith.constant 0 : index
    %233 = vector.load %arg5[%c616, %c0_79] : memref<648x384xf32, #tpu.memory_space<vmem>>, vector<8x384xf32>
    tpu.vector_store %arg5[%c616, %c0_79], %232 {strides = array<i32>} : memref<648x384xf32, #tpu.memory_space<vmem>>, vector<8x384xf32>,
    %c442_i32 = arith.constant 442 : i32
    %234 = tpu.dynamic_rotate %0 by %c442_i32 dim 1 : vector<8x640xf32>, i32 -> vector<8x640xf32>
    %235 = vector.extract_strided_slice %234 {offsets = [0, 0], sizes = [8, 384], strides = [1, 1]} : vector<8x640xf32> to vector<8x384xf32>
    %c624 = arith.constant 624 : index
    %c0_80 = arith.constant 0 : index
    %236 = vector.load %arg5[%c624, %c0_80] : memref<648x384xf32, #tpu.memory_space<vmem>>, vector<8x384xf32>
    tpu.vector_store %arg5[%c624, %c0_80], %235 {strides = array<i32>} : memref<648x384xf32, #tpu.memory_space<vmem>>, vector<8x384xf32>,
    %c441_i32 = arith.constant 441 : i32
    %237 = tpu.dynamic_rotate %0 by %c441_i32 dim 1 : vector<8x640xf32>, i32 -> vector<8x640xf32>
    %238 = vector.extract_strided_slice %237 {offsets = [0, 0], sizes = [8, 384], strides = [1, 1]} : vector<8x640xf32> to vector<8x384xf32>
    %c632 = arith.constant 632 : index
    %c0_81 = arith.constant 0 : index
    %239 = vector.load %arg5[%c632, %c0_81] : memref<648x384xf32, #tpu.memory_space<vmem>>, vector<8x384xf32>
    tpu.vector_store %arg5[%c632, %c0_81], %238 {strides = array<i32>} : memref<648x384xf32, #tpu.memory_space<vmem>>, vector<8x384xf32>,
    %c440_i32 = arith.constant 440 : i32
    %240 = tpu.dynamic_rotate %0 by %c440_i32 dim 1 : vector<8x640xf32>, i32 -> vector<8x640xf32>
    %241 = vector.extract_strided_slice %240 {offsets = [0, 0], sizes = [8, 384], strides = [1, 1]} : vector<8x640xf32> to vector<8x384xf32>
    %c640 = arith.constant 640 : index
    %c0_82 = arith.constant 0 : index
    %242 = vector.load %arg5[%c640, %c0_82] : memref<648x384xf32, #tpu.memory_space<vmem>>, vector<8x384xf32>
    tpu.vector_store %arg5[%c640, %c0_82], %241 {strides = array<i32>} : memref<648x384xf32, #tpu.memory_space<vmem>>, vector<8x384xf32>,
    %c0_83 = arith.constant 0 : index
    %c0_84 = arith.constant 0 : index
    %243 = vector.load %arg2[%c0_83, %c0_84] : memref<8x648xf32, #tpu.memory_space<vmem>>, vector<8x648xf32>
    %c0_85 = arith.constant 0 : index
    %c0_86 = arith.constant 0 : index
    %244 = vector.load %arg5[%c0_85, %c0_86] : memref<648x384xf32, #tpu.memory_space<vmem>>, vector<648x384xf32>
    %cst = arith.constant dense<0.000000e+00> : vector<8x384xf32>
    %245 = tpu.matmul %243, %244, %cst {dimension_numbers = #tpu.dot_dimension_numbers<[1], [0], [0], [1], [0, 0, 1, 1], [], []>, precision = #tpu.contract_precision<fp32>} : vector<8x648xf32>, vector<648x384xf32>, vector<8x384xf32> -> vector<8x384xf32>
    %c0_87 = arith.constant 0 : index
    %c0_88 = arith.constant 0 : index
    %246 = vector.load %arg3[%c0_87, %c0_88] : memref<8x1xf32, #tpu.memory_space<vmem>>, vector<8x1xf32>
    %247 = vector.broadcast %246 : vector<8x1xf32> to vector<8x384xf32>
    %248 = arith.addf %245, %247 : vector<8x384xf32>
    %c0_89 = arith.constant 0 : index
    %c0_90 = arith.constant 0 : index
    %249 = vector.load %arg4[%c0_89, %c0_90] : memref<8x384xf32, #tpu.memory_space<vmem>>, vector<8x384xf32>
    tpu.vector_store %arg4[%c0_89, %c0_90], %248 {strides = array<i32>} : memref<8x384xf32, #tpu.memory_space<vmem>>, vector<8x384xf32>,
    return
  }
  func.func @transform_0(%arg0: i32) -> (i32, i32) {
    %c0_i32 = arith.constant 0 : i32
    %c0_i32_0 = arith.constant 0 : i32
    return %arg0, %c0_i32 : i32, i32
  }
  func.func @transform_1(%arg0: i32) -> (i32, i32) {
    %c0_i32 = arith.constant 0 : i32
    %c0_i32_0 = arith.constant 0 : i32
    %c0_i32_1 = arith.constant 0 : i32
    return %c0_i32, %c0_i32_0 : i32, i32
  }
  func.func @transform_2(%arg0: i32) -> (i32, i32) {
    %c0_i32 = arith.constant 0 : i32
    %c0_i32_0 = arith.constant 0 : i32
    %c0_i32_1 = arith.constant 0 : i32
    return %c0_i32, %c0_i32_0 : i32, i32
  }
  func.func @transform_3(%arg0: i32) -> (i32, i32) {
    %c0_i32 = arith.constant 0 : i32
    %c0_i32_0 = arith.constant 0 : i32
    return %arg0, %c0_i32 : i32, i32
  }
}

</mosaic_0001>

<bundles_post_ra>
// kernel: tile.6
= control target key start
LH: loop header
LB: loop body
LE: loop exit
PB: predicated region body
PF: predicated region fallthrough
CT: control target
= control target key end

     0   :  { %s22_s0 = inlined_call_operand.vmem [shape: f32[4], index: 0, kind: input, shape index: {}]   ;;  %s23_s1 = inlined_call_operand.vmem [shape: f32[2,1,1,4], index: 1, kind: output, shape index: {}]  }
   0x1   :  { %v4_v0 = vld [vmem:[%s22_s0] ss:$0 sm:$0xff] }
   0x2   :  { %5 = vst [vmem:[%s23_s1] sm:$0x3] %v4_v0 }

// kernel: tile.0
= control target key start
LH: loop header
LB: loop body
LE: loop exit
PB: predicated region body
PF: predicated region fallthrough
CT: control target
= control target key end

     0   :  { %s34_s8 = smov 125   ;;  %vm7_vm0 = vcmask 7168   ;;  %s35_s11 = smov 126   ;;  %s61_s0 = inlined_call_operand.vmem [shape: f32[2,1,1,4], index: 0, kind: input, shape index: {}]   ;;  %s62_s1 = inlined_call_operand.vmem [shape: f32[8,1], index: 1, kind: output, shape index: {}]  }
   0x1   :  { %v4_v0 = vld [vmem:[%s61_s0] sm:$0x3]  ;;  %s33_s0 = smov 127  }
   0x2   :  { %5 = vst [vmem:[#allocation0] sm:$0x3] %v4_v0 }
   0x9   :  { %v9_v1 = vld [vmem:[#allocation0] sm:$0x3]  }
   0xa   :  { %v21_v2 = vld [vmem:[#allocation0] sm:$0x3]   ;;  %10 = vrot.lane.b32.xlu0 %v9_v1, %s33_s0 }
   0xb   :  { %22 = vrot.lane.b32.xlu1 %v21_v2, %s34_s8  ;;  %v6_v3 = vld [vmem:[#allocation0] sm:$0x3]  }
   0xc   :  { %v15_v4 = vld [vmem:[#allocation0] sm:$0x3]   ;;  %8 = vst.msk [vmem:[%s62_s1] ss:$4 sm:$0x3] %vm7_vm0, %v6_v3  }
   0xe   :  { %16 = vrot.lane.b32.xlu0 %v15_v4, %s35_s11 }
  0x7c   :  { %v11_v5 = vpop.permute.xlu0 %10  }
  0x7d   :  { %v23_v6 = vpop.permute.xlu1 %22   ;;  %27 = vst.msk [vmem:[%s62_s1 + $0x1] ss:$4 sm:$0x3] %vm7_vm0, %v11_v5  }
  0x7e   :  { %29 = vst.msk [vmem:[%s62_s1 + $0x3] ss:$4 sm:$0x3] %vm7_vm0, %v23_v6  }
  0x80   :  { %v17_v7 = vpop.permute.xlu0 %16  }
  0x81   :  { %28 = vst.msk [vmem:[%s62_s1 + $0x2] ss:$4 sm:$0x3] %vm7_vm0, %v17_v7  }

// kernel: awms_forward.1
= control target key start
LH: loop header
LB: loop body
LE: loop exit
PB: predicated region body
PF: predicated region fallthrough
CT: control target
= control target key end

     0   :  { %s9354_s16 = smov 127   ;;  %s9355_s19 = smov 126   ;;  %v30_v3 = vlaneseq  ;;  %s15406_s0 = inlined_call_operand.vmem [shape: f32[8,640], index: 0, kind: input, shape index: {}]   ;;  %s15407_s1 = inlined_call_operand.vmem [shape: f32[8,648], index: 1, kind: input, shape index: {}]   ;;  %s15408_s2 = inlined_call_operand.vmem [shape: f32[8,1], index: 2, kind: input, shape index: {}]   ;;  %s15409_s3 = inlined_call_operand.vmem [shape: f32[8,384], index: 3, kind: output, shape index: {}]  }
   0x1   :  { %v9456_v0 = vld [vmem:[%s15406_s0 + $0x8] sm:$0xff]  ;;  %v9461_v1 = vld [vmem:[%s15406_s0] sm:$0xff]  ;;  %v9470_v2 = vld [vmem:[%s15406_s0 + $0x10] sm:$0xff]  ;;  %s9356_s20 = smov 125   ;;  %s9357_s21 = smov 124  }
   0x2   :  { %24 = vrot.lane.b32.xlu0 %v9456_v0, %s9354_s16  ;;  %22 = vrot.lane.b32.xlu1 %v9461_v1, %s9354_s16  ;;  %s9358_s22 = smov 123   ;;  %s9359_s23 = smov 122   ;;  %v9580_v4 = vand.u32 127, %v30_v3  ;;  %v9598_v12 = vand.u32 4294901760, %v9456_v0  ;;  %v15411_v15 = vand.u32 4294901760, %v9461_v1 }
   0x3   :  { %s9360_s24 = smov 121   ;;  %s9361_s25 = smov 120  }
   0x4   :  { %s15684_s26 = smov 104   ;;  %s9363_s27 = smov 103   ;;  %vm15518_vm0 = vcmp.lt.s32.totalorder %v9580_v4, 127  ;;  %16105 = vst [vmem:[#allocation4_spill] sm:$0xff] %v9598_v12  ;;  %vm47_vm1 = vcmp.lt.s32.totalorder %v9580_v4, 126  ;;  %vm62_vm2 = vcmp.lt.s32.totalorder %v9580_v4, 125 }
   0x5   :  { %s9364_s28 = smov 102   ;;  %s15415_s29 = smov 101   ;;  %vm77_vm3 = vcmp.lt.s32.totalorder %v9580_v4, 124  ;;  %vm92_vm4 = vcmp.lt.s32.totalorder %v9580_v4, 123  ;;  %vm107_vm5 = vcmp.lt.s32.totalorder %v9580_v4, 122  ;;  %vm122_vm6 = vcmp.lt.s32.totalorder %v9580_v4, 121 }
   0x6   :  { %26 = vrot.lane.b32.xlu0 %v9470_v2, %s9354_s16  ;;  %41 = vrot.lane.b32.xlu1 %v9456_v0, %s9355_s19  ;;  %s15414_s30 = smov 100   ;;  %s15412_s4 = smov 99   ;;  %vm15488_vm7 = vcmp.lt.s32.totalorder %v9580_v4, 120  ;;  %vm15477_vm8 = vcmp.lt.s32.totalorder %v9580_v4, 104  ;;  %vm15507_vm9 = vcmp.lt.s32.totalorder %v9580_v4, 103  ;;  %vm15500_vm10 = vcmp.lt.s32.totalorder %v9580_v4, 102 }
   0x7   :  { %s15410_s5 = smov 98   ;;  %s9369_s6 = smov 97   ;;  %vm15497_vm11 = vcmp.lt.s32.totalorder %v9580_v4, 101  ;;  %vm15491_vm12 = vcmp.lt.s32.totalorder %v9580_v4, 100  ;;  %vm15473_vm13 = vcmp.lt.s32.totalorder %v9580_v4, 99  ;;  %vm15461_vm14 = vcmp.lt.s32.totalorder %v9580_v4, 98 }
   0x8   :  { %s9370_s7 = smov 96   ;;  %s15651_s8 = smov 80   ;;  %vm257_vm15 = vcmp.lt.s32.totalorder %v9580_v4, 97 }
   0x9   :  { %s9372_s9 = smov 79   ;;  %s9373_s10 = smov 78  }
   0xa   :  { %43 = vrot.lane.b32.xlu0 %v9470_v2, %s9355_s19  ;;  %56 = vrot.lane.b32.xlu1 %v9456_v0, %s9356_s20  ;;  %s9374_s11 = smov 77   ;;  %s9375_s12 = smov 76  }
   0xb   :  { %s9376_s13 = smov 75   ;;  %s9377_s14 = smov 74  }
   0xc   :  { %s9378_s15 = smov 73   ;;  %s9379_s17 = smov 72  }
   0xd   :  { %s15641_s18 = smov 56  }
   0xe   :  { %58 = vrot.lane.b32.xlu0 %v9470_v2, %s9356_s20  ;;  %39 = vrot.lane.b32.xlu1 %v9461_v1, %s9355_s19 }
  0x12   :  { %54 = vrot.lane.b32.xlu0 %v9461_v1, %s9356_s20  ;;  %71 = vrot.lane.b32.xlu1 %v9456_v0, %s9357_s21 }
  0x16   :  { %73 = vrot.lane.b32.xlu0 %v9470_v2, %s9357_s21  ;;  %86 = vrot.lane.b32.xlu1 %v9456_v0, %s9358_s22 }
  0x1a   :  { %88 = vrot.lane.b32.xlu0 %v9470_v2, %s9358_s22  ;;  %69 = vrot.lane.b32.xlu1 %v9461_v1, %s9357_s21 }
  0x1e   :  { %84 = vrot.lane.b32.xlu0 %v9461_v1, %s9358_s22  ;;  %101 = vrot.lane.b32.xlu1 %v9456_v0, %s9359_s23 }
  0x22   :  { %103 = vrot.lane.b32.xlu0 %v9470_v2, %s9359_s23  ;;  %116 = vrot.lane.b32.xlu1 %v9456_v0, %s9360_s24 }
  0x26   :  { %118 = vrot.lane.b32.xlu0 %v9470_v2, %s9360_s24  ;;  %99 = vrot.lane.b32.xlu1 %v9461_v1, %s9359_s23 }
  0x2a   :  { %114 = vrot.lane.b32.xlu0 %v9461_v1, %s9360_s24  ;;  %131 = vrot.lane.b32.xlu1 %v9456_v0, %s9361_s25 }
  0x2e   :  { %133 = vrot.lane.b32.xlu0 %v9470_v2, %s9361_s25  ;;  %146 = vrot.lane.b32.xlu1 %v9456_v0, %s15684_s26 }
  0x32   :  { %148 = vrot.lane.b32.xlu0 %v9470_v2, %s15684_s26  ;;  %129 = vrot.lane.b32.xlu1 %v9461_v1, %s9361_s25 }
  0x36   :  { %144 = vrot.lane.b32.xlu0 %v9461_v1, %s15684_s26  ;;  %161 = vrot.lane.b32.xlu1 %v9456_v0, %s9363_s27 }
  0x3a   :  { %163 = vrot.lane.b32.xlu0 %v9470_v2, %s9363_s27  ;;  %176 = vrot.lane.b32.xlu1 %v9456_v0, %s9364_s28 }
  0x3e   :  { %178 = vrot.lane.b32.xlu0 %v9470_v2, %s9364_s28  ;;  %159 = vrot.lane.b32.xlu1 %v9461_v1, %s9363_s27 }
  0x42   :  { %174 = vrot.lane.b32.xlu0 %v9461_v1, %s9364_s28  ;;  %191 = vrot.lane.b32.xlu1 %v9456_v0, %s15415_s29 }
  0x46   :  { %193 = vrot.lane.b32.xlu0 %v9470_v2, %s15415_s29  ;;  %206 = vrot.lane.b32.xlu1 %v9456_v0, %s15414_s30 }
  0x4a   :  { %208 = vrot.lane.b32.xlu0 %v9470_v2, %s15414_s30  ;;  %189 = vrot.lane.b32.xlu1 %v9461_v1, %s15415_s29  ;;  %s15434_s29 = smov 53  }
  0x4e   :  { %204 = vrot.lane.b32.xlu0 %v9461_v1, %s15414_s30  ;;  %221 = vrot.lane.b32.xlu1 %v9456_v0, %s15412_s4  ;;  %s15444_s30 = smov 52  }
  0x52   :  { %223 = vrot.lane.b32.xlu0 %v9470_v2, %s15412_s4  ;;  %236 = vrot.lane.b32.xlu1 %v9456_v0, %s15410_s5 }
  0x56   :  { %238 = vrot.lane.b32.xlu0 %v9470_v2, %s15410_s5  ;;  %219 = vrot.lane.b32.xlu1 %v9461_v1, %s15412_s4  ;;  %s15445_s4 = smov 54  }
  0x5a   :  { %234 = vrot.lane.b32.xlu0 %v9461_v1, %s15410_s5  ;;  %251 = vrot.lane.b32.xlu1 %v9456_v0, %s9369_s6  ;;  %s15446_s5 = smov 55  }
  0x5e   :  { %253 = vrot.lane.b32.xlu0 %v9470_v2, %s9369_s6  ;;  %266 = vrot.lane.b32.xlu1 %v9456_v0, %s9370_s7 }
  0x62   :  { %268 = vrot.lane.b32.xlu0 %v9470_v2, %s9370_s7  ;;  %249 = vrot.lane.b32.xlu1 %v9461_v1, %s9369_s6 }
  0x66   :  { %264 = vrot.lane.b32.xlu0 %v9461_v1, %s9370_s7  ;;  %281 = vrot.lane.b32.xlu1 %v9456_v0, %s15651_s8 }
  0x6a   :  { %283 = vrot.lane.b32.xlu0 %v9470_v2, %s15651_s8  ;;  %296 = vrot.lane.b32.xlu1 %v9456_v0, %s9372_s9 }
  0x6e   :  { %298 = vrot.lane.b32.xlu0 %v9470_v2, %s9372_s9  ;;  %279 = vrot.lane.b32.xlu1 %v9461_v1, %s15651_s8 }
  0x72   :  { %294 = vrot.lane.b32.xlu0 %v9461_v1, %s9372_s9  ;;  %311 = vrot.lane.b32.xlu1 %v9456_v0, %s9373_s10 }
  0x74   :  { %v25_v5 = vpop.permute.xlu0 %24  ;;  %v23_v6 = vpop.permute.xlu1 %22 }
  0x75   :  { %v35_v7 = vsel %vm15518_vm0, %v23_v6, %v25_v5 }
  0x76   :  { %v1450_v8 = vand.u32 4294901760, %v35_v7  ;;  %313 = vrot.lane.b32.xlu0 %v9470_v2, %s9373_s10  ;;  %326 = vrot.lane.b32.xlu1 %v9456_v0, %s9374_s11 }
  0x78   :  { %v9593_v9 = vsub.f32 %v35_v7, %v1450_v8  ;;  %v9595_v10 = vpop.permute.xlu0 %26  ;;  %v42_v11 = vpop.permute.xlu1 %41  ;;  %v9623_v22 = vpack.c.bf16 %v1450_v8, %v15411_v15 }
  0x79   :  { %16104 = vst [vmem:[#allocation3_spill] sm:$0xff] %v9595_v10  ;;  %v34_v13 = vsel %vm15518_vm0, %v25_v5, %v9595_v10  ;;  %vm15528_vm0 = vcmp.lt.s32.totalorder %v9580_v4, 56 }
  0x7a   :  { %v1448_v14 = vand.u32 4294901760, %v34_v13  ;;  %328 = vrot.lane.b32.xlu0 %v9470_v2, %s9374_s11  ;;  %309 = vrot.lane.b32.xlu1 %v9461_v1, %s9373_s10  ;;  %16109 = vst [vmem:[#allocation8_spill] sm:$0xff] %v9623_v22 }
  0x7c   :  { %v9609_v16 = vsub.f32 %v34_v13, %v1448_v14  ;;  %v9611_v17 = vpop.permute.xlu0 %43  ;;  %v57_v18 = vpop.permute.xlu1 %56  ;;  %v9614_v19 = vpack.c.bf16 %v1448_v14, %v9598_v12 }
  0x7d   :  { %16107 = vst [vmem:[#allocation6_spill] sm:$0xff] %v9611_v17  ;;  %v49_v20 = vsel %vm47_vm1, %v42_v11, %v9611_v17 }
  0x7e   :  { %16106 = vst [vmem:[#allocation5_spill] sm:$0xff] %v9609_v16  ;;  %16108 = vst [vmem:[#allocation7_spill] sm:$0xff] %v9614_v19  ;;  %v1452_v21 = vand.u32 4294901760, %v49_v20  ;;  %7725 = vmatprep.subr.bf16.mxu1 %v9614_v19  ;;  %7917 = vmatprep.subr.bf16.mxu0 %v9614_v19 }
  0x7f   :  { %324 = vrot.lane.b32.xlu0 %v9461_v1, %s9374_s11  ;;  %341 = vrot.lane.b32.xlu1 %v9456_v0, %s9375_s12 }
  0x80   :  { %v9630_v23 = vsub.f32 %v49_v20, %v1452_v21  ;;  %7727 = vmatpush1.bf16.msra.mxu1 %v9623_v22  ;;  %7919 = vmatpush1.bf16.msra.mxu0 %v9623_v22  ;;  %v9634_v24 = vpop.permute.xlu0 %58  ;;  %v40_v25 = vpop.permute.xlu1 %39 }
  0x81   :  { %16111 = vst [vmem:[#allocation10_spill] sm:$0xff] %v9634_v24  ;;  %v64_v26 = vsel %vm62_vm2, %v57_v18, %v9634_v24  ;;  %v50_v27 = vsel %vm47_vm1, %v40_v25, %v42_v11 }
  0x82   :  { %16110 = vst [vmem:[#allocation9_spill] sm:$0xff] %v9630_v23  ;;  %v1456_v28 = vand.u32 4294901760, %v64_v26  ;;  %v1454_v29 = vand.u32 4294901760, %v50_v27  ;;  %v1615_v30 = vand.u32 4294901760, %v9630_v23 }
  0x83   :  { %343 = vrot.lane.b32.xlu0 %v9470_v2, %s9375_s12  ;;  %356 = vrot.lane.b32.xlu1 %v9456_v0, %s9376_s13 }
  0x84   :  { %v9646_v31 = vsub.f32 %v64_v26, %v1456_v28  ;;  %v9648_v32 = vsub.f32 %v50_v27, %v1454_v29  ;;  %v55_v33 = vpop.permute.xlu0 %54  ;;  %v72_v34 = vpop.permute.xlu1 %71  ;;  %v9650_v35 = vpack.c.bf16 %v1456_v28, %v1452_v21  ;;  %v1616_v40 = vsub.f32 %v9630_v23, %v1615_v30 }
  0x85   :  { %v65_v36 = vsel %vm62_vm2, %v55_v33, %v57_v18 }
  0x86   :  { %16112 = vst [vmem:[#allocation11_spill] sm:$0xff] %v9646_v31  ;;  %16113 = vst [vmem:[#allocation12_spill] sm:$0xff] %v9648_v32  ;;  %v1621_v37 = vand.u32 4294901760, %v9648_v32  ;;  %v1458_v38 = vand.u32 4294901760, %v65_v36  ;;  %7729 = vmatprep.subr.bf16.mxu1 %v9650_v35  ;;  %7921 = vmatprep.subr.bf16.mxu0 %v9650_v35  ;;  %v1627_v39 = vand.u32 4294901760, %v9646_v31  ;;  %v1617_v53 = vand.u32 4294901760, %v1616_v40 }
  0x87   :  { %16114 = vst [vmem:[#allocation13_spill] sm:$0xff] %v9650_v35  ;;  %358 = vrot.lane.b32.xlu0 %v9470_v2, %s9376_s13  ;;  %339 = vrot.lane.b32.xlu1 %v9461_v1, %s9375_s12 }
  0x88   :  { %v9666_v42 = vsub.f32 %v65_v36, %v1458_v38  ;;  %v9668_v43 = vpop.permute.xlu0 %73  ;;  %v87_v44 = vpop.permute.xlu1 %86  ;;  %v9670_v45 = vpack.c.bf16 %v1458_v38, %v1454_v29  ;;  %v1628_v46 = vsub.f32 %v9646_v31, %v1627_v39  ;;  %v9677_v48 = vpack.c.bf16 %v1627_v39, %v1615_v30 }
  0x89   :  { %16116 = vst [vmem:[#allocation15_spill] sm:$0xff] %v9668_v43  ;;  %v79_v47 = vsel %vm77_vm3, %v72_v34, %v9668_v43  ;;  %v1622_v49 = vsub.f32 %v9648_v32, %v1621_v37 }
  0x8a   :  { %16115 = vst [vmem:[#allocation14_spill] sm:$0xff] %v9666_v42  ;;  %16117 = vst [vmem:[#allocation16_spill] sm:$0xff] %v9670_v45  ;;  %v1633_v50 = vand.u32 4294901760, %v9666_v42  ;;  %v1460_v52 = vand.u32 4294901760, %v79_v47  ;;  %7731 = vmatpush1.bf16.msra.mxu1 %v9670_v45  ;;  %7923 = vmatpush1.bf16.msra.mxu0 %v9670_v45  ;;  %v1629_v54 = vand.u32 4294901760, %v1628_v46 }
  0x8b   :  { %354 = vrot.lane.b32.xlu0 %v9461_v1, %s9376_s13  ;;  %371 = vrot.lane.b32.xlu1 %v9456_v0, %s9377_s14  ;;  %v1623_v63 = vand.u32 4294901760, %v1622_v49 }
  0x8c   :  { %v1634_v55 = vsub.f32 %v9666_v42, %v1633_v50  ;;  %v9690_v56 = vsub.f32 %v79_v47, %v1460_v52  ;;  %v9692_v57 = vpop.permute.xlu0 %88  ;;  %v70_v58 = vpop.permute.xlu1 %69  ;;  %v9694_v59 = vpack.c.bf16 %v1633_v50, %v1621_v37  ;;  %v9701_v62 = vpack.c.bf16 %v1629_v54, %v1617_v53 }
  0x8d   :  { %16119 = vst [vmem:[#allocation18_spill] sm:$0xff] %v9692_v57  ;;  %v94_v60 = vsel %vm92_vm4, %v87_v44, %v9692_v57  ;;  %v80_v61 = vsel %vm77_vm3, %v70_v58, %v72_v34 }
  0x8e   :  { %16118 = vst [vmem:[#allocation17_spill] sm:$0xff] %v9690_v56  ;;  %v1635_v3 = vand.u32 4294901760, %v1634_v55  ;;  %v1464_v5 = vand.u32 4294901760, %v94_v60  ;;  %v1462_v6 = vand.u32 4294901760, %v80_v61  ;;  %v1639_v7 = vand.u32 4294901760, %v9690_v56 }
  0x8f   :  { %373 = vrot.lane.b32.xlu0 %v9470_v2, %s9377_s14  ;;  %386 = vrot.lane.b32.xlu1 %v9456_v0, %s9378_s15 }
  0x90   :  { %v9708_v8 = vsub.f32 %v94_v60, %v1464_v5  ;;  %v9710_v11 = vsub.f32 %v80_v61, %v1462_v6  ;;  %v85_v13 = vpop.permute.xlu0 %84  ;;  %v102_v14 = vpop.permute.xlu1 %101  ;;  %v9712_v18 = vpack.c.bf16 %v1464_v5, %v1460_v52  ;;  %v9714_v20 = vpack.c.bf16 %v1635_v3, %v1623_v63 }
  0x91   :  { %v95_v21 = vsel %vm92_vm4, %v85_v13, %v87_v44  ;;  %v1640_v28 = vsub.f32 %v9690_v56, %v1639_v7 }
  0x92   :  { %16120 = vst [vmem:[#allocation19_spill] sm:$0xff] %v9708_v8  ;;  %16121 = vst [vmem:[#allocation20_spill] sm:$0xff] %v9710_v11  ;;  %v1645_v25 = vand.u32 4294901760, %v9710_v11  ;;  %v1466_v26 = vand.u32 4294901760, %v95_v21  ;;  %7733 = vmatprep.subr.bf16.mxu1 %v9712_v18  ;;  %7925 = vmatprep.subr.bf16.mxu0 %v9712_v18  ;;  %v1651_v27 = vand.u32 4294901760, %v9708_v8 }
  0x93   :  { %16122 = vst [vmem:[#allocation21_spill] sm:$0xff] %v9712_v18  ;;  %388 = vrot.lane.b32.xlu0 %v9470_v2, %s9378_s15  ;;  %369 = vrot.lane.b32.xlu1 %v9461_v1, %s9377_s14  ;;  %v1641_v49 = vand.u32 4294901760, %v1640_v28 }
  0x94   :  { %v9730_v30 = vsub.f32 %v95_v21, %v1466_v26  ;;  %v9732_v33 = vpop.permute.xlu0 %103  ;;  %v117_v34 = vpop.permute.xlu1 %116  ;;  %v9734_v36 = vpack.c.bf16 %v1466_v26, %v1462_v6  ;;  %v1652_v37 = vsub.f32 %v9708_v8, %v1651_v27  ;;  %v9741_v39 = vpack.c.bf16 %v1651_v27, %v1639_v7 }
  0x95   :  { %16124 = vst [vmem:[#allocation23_spill] sm:$0xff] %v9732_v33  ;;  %v109_v38 = vsel %vm107_vm5, %v102_v14, %v9732_v33  ;;  %v1646_v40 = vsub.f32 %v9710_v11, %v1645_v25 }
  0x96   :  { %16123 = vst [vmem:[#allocation22_spill] sm:$0xff] %v9730_v30  ;;  %16125 = vst [vmem:[#allocation24_spill] sm:$0xff] %v9734_v36  ;;  %v1657_v44 = vand.u32 4294901760, %v9730_v30  ;;  %v1468_v47 = vand.u32 4294901760, %v109_v38  ;;  %7735 = vmatpush1.bf16.msra.mxu1 %v9734_v36  ;;  %7927 = vmatpush1.bf16.msra.mxu0 %v9734_v36  ;;  %v1653_v50 = vand.u32 4294901760, %v1652_v37 }
  0x97   :  { %384 = vrot.lane.b32.xlu0 %v9461_v1, %s9378_s15  ;;  %401 = vrot.lane.b32.xlu1 %v9456_v0, %s9379_s17  ;;  %v1647_v3 = vand.u32 4294901760, %v1646_v40 }
  0x98   :  { %v1658_v52 = vsub.f32 %v9730_v30, %v1657_v44  ;;  %v9754_v53 = vsub.f32 %v109_v38, %v1468_v47  ;;  %v9756_v54 = vpop.permute.xlu0 %118  ;;  %v100_v55 = vpop.permute.xlu1 %99  ;;  %v9758_v58 = vpack.c.bf16 %v1657_v44, %v1645_v25  ;;  %v9765_v63 = vpack.c.bf16 %v1653_v50, %v1641_v49 }
  0x99   :  { %16127 = vst [vmem:[#allocation26_spill] sm:$0xff] %v9756_v54  ;;  %v124_v60 = vsel %vm122_vm6, %v117_v34, %v9756_v54  ;;  %v110_v61 = vsel %vm107_vm5, %v100_v55, %v102_v14 }
  0x9a   :  { %16126 = vst [vmem:[#allocation25_spill] sm:$0xff] %v9754_v53  ;;  %v1659_v5 = vand.u32 4294901760, %v1658_v52  ;;  %v1472_v6 = vand.u32 4294901760, %v124_v60  ;;  %v1470_v7 = vand.u32 4294901760, %v110_v61  ;;  %v1663_v13 = vand.u32 4294901760, %v9754_v53 }
  0x9b   :  { %403 = vrot.lane.b32.xlu0 %v9470_v2, %s9379_s17  ;;  %416 = vrot.lane.b32.xlu1 %v9456_v0, %s15641_s18 }
  0x9c   :  { %v9772_v21 = vsub.f32 %v124_v60, %v1472_v6  ;;  %v9774_v25 = vsub.f32 %v110_v61, %v1470_v7  ;;  %v115_v14 = vpop.permute.xlu0 %114  ;;  %v132_v26 = vpop.permute.xlu1 %131  ;;  %v9776_v27 = vpack.c.bf16 %v1472_v6, %v1468_v47  ;;  %v9778_v28 = vpack.c.bf16 %v1659_v5, %v1647_v3 }
  0x9d   :  { %v125_v37 = vsel %vm122_vm6, %v115_v14, %v117_v34  ;;  %v1664_v47 = vsub.f32 %v9754_v53, %v1663_v13 }
  0x9e   :  { %16128 = vst [vmem:[#allocation27_spill] sm:$0xff] %v9772_v21  ;;  %16129 = vst [vmem:[#allocation28_spill] sm:$0xff] %v9774_v25  ;;  %v1669_v38 = vand.u32 4294901760, %v9774_v25  ;;  %v1474_v40 = vand.u32 4294901760, %v125_v37  ;;  %7737 = vmatprep.subr.bf16.mxu1 %v9776_v27  ;;  %7929 = vmatprep.subr.bf16.mxu0 %v9776_v27  ;;  %v1675_v44 = vand.u32 4294901760, %v9772_v21 }
  0x9f   :  { %16130 = vst [vmem:[#allocation29_spill] sm:$0xff] %v9776_v27  ;;  %418 = vrot.lane.b32.xlu0 %v9470_v2, %s15641_s18  ;;  %399 = vrot.lane.b32.xlu1 %v9461_v1, %s9379_s17 }
  0xa0   :  { %v9794_v49 = vsub.f32 %v125_v37, %v1474_v40  ;;  %v9796_v50 = vpop.permute.xlu0 %133  ;;  %v147_v52 = vpop.permute.xlu1 %146  ;;  %v9798_v55 = vpack.c.bf16 %v1474_v40, %v1470_v7  ;;  %v1676_v60 = vsub.f32 %v9772_v21, %v1675_v44  ;;  %v9805_v3 = vpack.c.bf16 %v1675_v44, %v1663_v13 }
  0xa1   :  { %16132 = vst [vmem:[#allocation31_spill] sm:$0xff] %v9796_v50  ;;  %v139_v61 = vsel %vm15488_vm7, %v132_v26, %v9796_v50  ;;  %v1670_v5 = vsub.f32 %v9774_v25, %v1669_v38  ;;  %v1665_v7 = vand.u32 4294901760, %v1664_v47 }
  0xa2   :  { %16131 = vst [vmem:[#allocation30_spill] sm:$0xff] %v9794_v49  ;;  %16133 = vst [vmem:[#allocation32_spill] sm:$0xff] %v9798_v55  ;;  %v1681_v6 = vand.u32 4294901760, %v9794_v49  ;;  %v1476_v37 = vand.u32 4294901760, %v139_v61  ;;  %7739 = vmatpush1.bf16.msra.mxu1 %v9798_v55  ;;  %7931 = vmatpush1.bf16.msra.mxu0 %v9798_v55  ;;  %v1677_v13 = vand.u32 4294901760, %v1676_v60 }
  0xa3   :  { %414 = vrot.lane.b32.xlu0 %v9461_v1, %s15641_s18  ;;  %431 = vrot.lane.b32.xlu1 %v9456_v0, %s15446_s5  ;;  %v1671_v47 = vand.u32 4294901760, %v1670_v5 }
  0xa4   :  { %v1682_v40 = vsub.f32 %v9794_v49, %v1681_v6  ;;  %v9818_v44 = vsub.f32 %v139_v61, %v1476_v37  ;;  %v9820_v34 = vpop.permute.xlu0 %148  ;;  %v130_v14 = vpop.permute.xlu1 %129  ;;  %v9822_v46 = vpack.c.bf16 %v1681_v6, %v1669_v38  ;;  %v9831_v41 = vpack.c.bf16 %v1677_v13, %v1665_v7 }
  0xa5   :  { %16134 = vst [vmem:[#allocation33_spill] sm:$0xff] %v9820_v34  ;;  %v9827_v29 = vsel %vm15477_vm8, %v147_v52, %v9820_v34  ;;  %v140_v51 = vsel %vm15488_vm7, %v130_v14, %v132_v26  ;;  %vm317_vm7 = vcmp.lt.s32.totalorder %v9580_v4, 78 }
  0xa6   :  { %v1683_v60 = vand.u32 4294901760, %v1682_v40  ;;  %v9834_v61 = vand.u32 4294901760, %v9827_v29  ;;  %v1478_v15 = vand.u32 4294901760, %v140_v51 }
  0xa7   :  { %433 = vrot.lane.b32.xlu0 %v9470_v2, %s15446_s5  ;;  %446 = vrot.lane.b32.xlu1 %v9456_v0, %s15445_s4 }
  0xa8   :  { %16135 = vst [vmem:[#allocation34_spill] sm:$0xff] %v9834_v61  ;;  %v9840_v38 = vsub.f32 %v140_v51, %v1478_v15  ;;  %v145_v6 = vpop.permute.xlu0 %144  ;;  %v162_v34 = vpop.permute.xlu1 %161  ;;  %v9843_v26 = vpack.c.bf16 %v9834_v61, %v1476_v37  ;;  %v9845_v5 = vpack.c.bf16 %v1683_v60, %v1671_v47  ;;  %v1186_v47 = vld [vmem:[%s15407_s1 + $0x8] sm:$0xff] }
  0xa9   :  { %v155_v14 = vsel %vm15477_vm8, %v145_v6, %v147_v52  ;;  %v9870_v6 = vand.u32 4294901760, %v1186_v47  ;;  %vm15508_vm8 = vcmp.lt.s32.totalorder %v9580_v4, 79 }
  0xaa   :  { %16136 = vst [vmem:[#allocation35_spill] sm:$0xff] %v9840_v38  ;;  %16137 = vst [vmem:[#allocation36_spill] sm:$0xff] %v9843_v26  ;;  %v1693_v7 = vand.u32 4294901760, %v9840_v38  ;;  %v1482_v13 = vand.u32 4294901760, %v155_v14  ;;  %7741 = vmatprep.subr.bf16.mxu1 %v9843_v26  ;;  %7933 = vmatprep.subr.bf16.mxu0 %v9843_v26 }
  0xab   :  { %448 = vrot.lane.b32.xlu0 %v9470_v2, %s15445_s4  ;;  %429 = vrot.lane.b32.xlu1 %v9461_v1, %s15446_s5  ;;  %16141 = vst [vmem:[#allocation40_spill] sm:$0xff] %v9870_v6  ;;  %s9389_s5 = smov 32  }
  0xac   :  { %v9857_v51 = vsub.f32 %v155_v14, %v1482_v13  ;;  %v9859_v37 = vpop.permute.xlu0 %163  ;;  %v177_v52 = vpop.permute.xlu1 %176  ;;  %v9861_v40 = vpack.c.bf16 %v1482_v13, %v1478_v15  ;;  %v1694_v14 = vsub.f32 %v9840_v38, %v1693_v7 }
  0xad   :  { %16139 = vst [vmem:[#allocation38_spill] sm:$0xff] %v9859_v37  ;;  %v169_v60 = vsel %vm15507_vm9, %v162_v34, %v9859_v37  ;;  %v9883_v37 = vsub.f32 %v1186_v47, %v9870_v6 }
  0xae   :  { %16138 = vst [vmem:[#allocation37_spill] sm:$0xff] %v9857_v51  ;;  %16140 = vst [vmem:[#allocation39_spill] sm:$0xff] %v9861_v40  ;;  %v1705_v50 = vand.u32 4294901760, %v9857_v51  ;;  %v1484_v13 = vand.u32 4294901760, %v169_v60  ;;  %7743 = vmatpush1.bf16.msra.mxu1 %v9861_v40  ;;  %7935 = vmatpush1.bf16.msra.mxu0 %v9861_v40  ;;  %v1695_v47 = vand.u32 4294901760, %v1694_v14 }
  0xaf   :  { %444 = vrot.lane.b32.xlu0 %v9461_v1, %s15445_s4  ;;  %461 = vrot.lane.b32.xlu1 %v9456_v0, %s15434_s29  ;;  %16142 = vst [vmem:[#allocation41_spill] sm:$0xff] %v9883_v37  ;;  %v9898_v49 = vand.u32 4294901760, %v9883_v37  ;;  %s9388_s4 = smov 48  }
  0xb0   :  { %v1706_v10 = vsub.f32 %v9857_v51, %v1705_v50  ;;  %v9886_v26 = vsub.f32 %v169_v60, %v1484_v13  ;;  %v9888_v15 = vpop.permute.xlu0 %178  ;;  %v160_v38 = vpop.permute.xlu1 %159  ;;  %v9890_v55 = vpack.c.bf16 %v1705_v50, %v1693_v7 }
  0xb1   :  { %16144 = vst [vmem:[#allocation43_spill] sm:$0xff] %v9888_v15  ;;  %v184_v40 = vsel %vm15500_vm10, %v177_v52, %v9888_v15  ;;  %v170_v25 = vsel %vm15507_vm9, %v160_v38, %v162_v34  ;;  %16145 = vst [vmem:[#allocation44_spill] sm:$0xff] %v9898_v49  ;;  %v1575_v50 = vsub.f32 %v9883_v37, %v9898_v49  ;;  %2316 = vmatprep.mubr.f32.mxu0 %v9898_v49 }
  0xb2   :  { %16143 = vst [vmem:[#allocation42_spill] sm:$0xff] %v9886_v26  ;;  %v1707_v27 = vand.u32 4294901760, %v1706_v10  ;;  %v1488_v51 = vand.u32 4294901760, %v184_v40  ;;  %v1486_v60 = vand.u32 4294901760, %v170_v25  ;;  %v1711_v7 = vand.u32 4294901760, %v9886_v26 }
  0xb3   :  { %463 = vrot.lane.b32.xlu0 %v9470_v2, %s15434_s29  ;;  %476 = vrot.lane.b32.xlu1 %v9456_v0, %s15444_s30  ;;  %v9918_v36 = vand.u32 4294901760, %v1575_v50  ;;  %vm377_vm9 = vcmp.lt.s32.totalorder %v9580_v4, 74 }
  0xb4   :  { %v9907_v34 = vsub.f32 %v184_v40, %v1488_v51  ;;  %v9909_v38 = vsub.f32 %v170_v25, %v1486_v60  ;;  %v175_v14 = vpop.permute.xlu0 %174  ;;  %v192_v10 = vpop.permute.xlu1 %191  ;;  %v9911_v15 = vpack.c.bf16 %v1488_v51, %v1484_v13  ;;  %v9914_v53 = vpack.c.bf16 %v1707_v27, %v1695_v47 }
  0xb5   :  { %v185_v21 = vsel %vm15500_vm10, %v175_v14, %v177_v52  ;;  %16149 = vst [vmem:[#allocation48_spill] sm:$0xff] %v9918_v36  ;;  %v1712_v27 = vsub.f32 %v9886_v26, %v1711_v7  ;;  %1577 = vmatprep.mubr.f32.mxu1 %v9918_v36  ;;  %vm362_vm10 = vcmp.lt.s32.totalorder %v9580_v4, 75 }
  0xb6   :  { %16146 = vst [vmem:[#allocation45_spill] sm:$0xff] %v9907_v34  ;;  %16147 = vst [vmem:[#allocation46_spill] sm:$0xff] %v9909_v38  ;;  %v1717_v11 = vand.u32 4294901760, %v9909_v38  ;;  %v1490_v30 = vand.u32 4294901760, %v185_v21  ;;  %7745 = vmatprep.subr.bf16.mxu1 %v9911_v15  ;;  %7937 = vmatprep.subr.bf16.mxu0 %v9911_v15  ;;  %v1723_v25 = vand.u32 4294901760, %v9907_v34 }
  0xb7   :  { %16148 = vst [vmem:[#allocation47_spill] sm:$0xff] %v9911_v15  ;;  %478 = vrot.lane.b32.xlu0 %v9470_v2, %s15444_s30  ;;  %459 = vrot.lane.b32.xlu1 %v9461_v1, %s15434_s29  ;;  %s9385_s29 = smov 51  }
  0xb8   :  { %v9932_v52 = vsub.f32 %v185_v21, %v1490_v30  ;;  %v9934_v40 = vpop.permute.xlu0 %193  ;;  %v207_v13 = vpop.permute.xlu1 %206  ;;  %v9936_v47 = vpack.c.bf16 %v1490_v30, %v1486_v60  ;;  %v1724_v50 = vsub.f32 %v9907_v34, %v1723_v25  ;;  %v9944_v49 = vpack.c.bf16 %v1723_v25, %v1711_v7 }
  0xb9   :  { %16151 = vst [vmem:[#allocation50_spill] sm:$0xff] %v9934_v40  ;;  %v199_v14 = vsel %vm15497_vm11, %v192_v10, %v9934_v40  ;;  %v1718_v21 = vsub.f32 %v9909_v38, %v1717_v11  ;;  %v1713_v7 = vand.u32 4294901760, %v1712_v27 }
  0xba   :  { %16150 = vst [vmem:[#allocation49_spill] sm:$0xff] %v9932_v52  ;;  %16152 = vst [vmem:[#allocation51_spill] sm:$0xff] %v9936_v47  ;;  %v1729_v51 = vand.u32 4294901760, %v9932_v52  ;;  %v1492_v60 = vand.u32 4294901760, %v199_v14  ;;  %7747 = vmatpush1.bf16.msra.mxu1 %v9936_v47  ;;  %7939 = vmatpush1.bf16.msra.mxu0 %v9936_v47  ;;  %v1725_v25 = vand.u32 4294901760, %v1724_v50 }
  0xbb   :  { %474 = vrot.lane.b32.xlu0 %v9461_v1, %s15444_s30  ;;  %491 = vrot.lane.b32.xlu1 %v9456_v0, %s9385_s29  ;;  %v1719_v27 = vand.u32 4294901760, %v1718_v21  ;;  %s9386_s30 = smov 50  }
  0xbc   :  { %v1730_v36 = vsub.f32 %v9932_v52, %v1729_v51  ;;  %v9957_v40 = vsub.f32 %v199_v14, %v1492_v60  ;;  %v9959_v15 = vpop.permute.xlu0 %208  ;;  %v190_v30 = vpop.permute.xlu1 %189  ;;  %v9961_v38 = vpack.c.bf16 %v1729_v51, %v1717_v11  ;;  %v9968_v34 = vpack.c.bf16 %v1725_v25, %v1713_v7 }
  0xbd   :  { %16154 = vst [vmem:[#allocation53_spill] sm:$0xff] %v9959_v15  ;;  %v214_v47 = vsel %vm15491_vm12, %v207_v13, %v9959_v15  ;;  %v200_v26 = vsel %vm15497_vm11, %v190_v30, %v192_v10  ;;  %vm347_vm11 = vcmp.lt.s32.totalorder %v9580_v4, 76 }
  0xbe   :  { %16153 = vst [vmem:[#allocation52_spill] sm:$0xff] %v9957_v40  ;;  %v1731_v50 = vand.u32 4294901760, %v1730_v36  ;;  %v1496_v18 = vand.u32 4294901760, %v214_v47  ;;  %v1494_v52 = vand.u32 4294901760, %v200_v26  ;;  %v1735_v11 = vand.u32 4294901760, %v9957_v40  ;;  %v9982_v36 = vld [vmem:[%s15406_s0 + $0x18] sm:$0xff] }
  0xbf   :  { %493 = vrot.lane.b32.xlu0 %v9470_v2, %s9385_s29  ;;  %506 = vrot.lane.b32.xlu1 %v9456_v0, %s9386_s30 }
  0xc0   :  { %v9975_v51 = vsub.f32 %v214_v47, %v1496_v18  ;;  %v9977_v14 = vsub.f32 %v200_v26, %v1494_v52  ;;  %v205_v10 = vpop.permute.xlu0 %204  ;;  %v222_v30 = vpop.permute.xlu1 %221  ;;  %v9984_v21 = vpack.c.bf16 %v1496_v18, %v1492_v60  ;;  %v9986_v7 = vpack.c.bf16 %v1731_v50, %v1719_v27 }
  0xc1   :  { %v215_v25 = vsel %vm15491_vm12, %v205_v10, %v207_v13  ;;  %v1736_v13 = vsub.f32 %v9957_v40, %v1735_v11  ;;  %vm332_vm12 = vcmp.lt.s32.totalorder %v9580_v4, 77 }
  0xc2   :  { %16155 = vst [vmem:[#allocation54_spill] sm:$0xff] %v9975_v51  ;;  %16156 = vst [vmem:[#allocation55_spill] sm:$0xff] %v9977_v14  ;;  %v1741_v47 = vand.u32 4294901760, %v9977_v14  ;;  %v1498_v26 = vand.u32 4294901760, %v215_v25  ;;  %7749 = vmatprep.subr.bf16.mxu1 %v9984_v21  ;;  %7941 = vmatprep.subr.bf16.mxu0 %v9984_v21  ;;  %v1747_v15 = vand.u32 4294901760, %v9975_v51 }
  0xc3   :  { %16157 = vst [vmem:[#allocation56_spill] sm:$0xff] %v9984_v21  ;;  %508 = vrot.lane.b32.xlu0 %v9470_v2, %s9386_s30  ;;  %255 = vrot.lane.b32.xlu1 %v9982_v36, %s9369_s6  ;;  %s16280_s6 = smov 101  }
  0xc4   :  { %v10002_v60 = vsub.f32 %v215_v25, %v1498_v26  ;;  %v10004_v27 = vpop.permute.xlu0 %223  ;;  %v237_v50 = vpop.permute.xlu1 %236  ;;  %v10006_v10 = vpack.c.bf16 %v1498_v26, %v1494_v52  ;;  %v1748_v18 = vsub.f32 %v9975_v51, %v1747_v15  ;;  %v10013_v56 = vpack.c.bf16 %v1747_v15, %v1735_v11 }
  0xc5   :  { %16159 = vst [vmem:[#allocation58_spill] sm:$0xff] %v10004_v27  ;;  %v229_v21 = vsel %vm15473_vm13, %v222_v30, %v10004_v27  ;;  %v1742_v8 = vsub.f32 %v9977_v14, %v1741_v47  ;;  %v1737_v15 = vand.u32 4294901760, %v1736_v13 }
  0xc6   :  { %16158 = vst [vmem:[#allocation57_spill] sm:$0xff] %v10002_v60  ;;  %16160 = vst [vmem:[#allocation59_spill] sm:$0xff] %v10006_v10  ;;  %v1753_v25 = vand.u32 4294901760, %v10002_v60  ;;  %v1500_v45 = vand.u32 4294901760, %v229_v21  ;;  %7751 = vmatpush1.bf16.msra.mxu1 %v10006_v10  ;;  %7943 = vmatpush1.bf16.msra.mxu0 %v10006_v10  ;;  %v1749_v52 = vand.u32 4294901760, %v1748_v18 }
  0xc7   :  { %270 = vrot.lane.b32.xlu0 %v9982_v36, %s9370_s7  ;;  %489 = vrot.lane.b32.xlu1 %v9461_v1, %s9385_s29  ;;  %v1743_v13 = vand.u32 4294901760, %v1742_v8  ;;  %s16281_s7 = smov 100  }
  0xc8   :  { %v1754_v11 = vsub.f32 %v10002_v60, %v1753_v25  ;;  %v10026_v26 = vsub.f32 %v229_v21, %v1500_v45  ;;  %v10028_v27 = vpop.permute.xlu0 %238  ;;  %v220_v40 = vpop.permute.xlu1 %219  ;;  %v10030_v14 = vpack.c.bf16 %v1753_v25, %v1741_v47  ;;  %v10037_v32 = vpack.c.bf16 %v1749_v52, %v1737_v15 }
  0xc9   :  { %16162 = vst [vmem:[#allocation61_spill] sm:$0xff] %v10028_v27  ;;  %v244_v10 = vsel %vm15461_vm14, %v237_v50, %v10028_v27  ;;  %v230_v51 = vsel %vm15473_vm13, %v220_v40, %v222_v30  ;;  %vm15517_vm13 = vcmp.lt.s32.totalorder %v9580_v4, 80 }
  0xca   :  { %16161 = vst [vmem:[#allocation60_spill] sm:$0xff] %v10026_v26  ;;  %16163 = vst [vmem:[#allocation62_spill] sm:$0xff] %v10030_v14  ;;  %v1755_v18 = vand.u32 4294901760, %v1754_v11  ;;  %v1504_v42 = vand.u32 4294901760, %v244_v10  ;;  %v1502_v60 = vand.u32 4294901760, %v230_v51  ;;  %v1759_v21 = vand.u32 4294901760, %v10026_v26 }
  0xcb   :  { %504 = vrot.lane.b32.xlu0 %v9461_v1, %s9386_s30  ;;  %28 = vrot.lane.b32.xlu1 %v9982_v36, %s9354_s16  ;;  %s9387_s16 = smov 49  }
  0xcc   :  { %v10044_v47 = vsub.f32 %v244_v10, %v1504_v42  ;;  %v10046_v25 = vsub.f32 %v230_v51, %v1502_v60  ;;  %v235_v27 = vpop.permute.xlu0 %234  ;;  %v252_v40 = vpop.permute.xlu1 %251  ;;  %v10048_v30 = vpack.c.bf16 %v1504_v42, %v1500_v45  ;;  %v10050_v8 = vpack.c.bf16 %v1755_v18, %v1743_v13 }
  0xcd   :  { %v245_v15 = vsel %vm15461_vm14, %v235_v27, %v237_v50  ;;  %v1760_v45 = vsub.f32 %v10026_v26, %v1759_v21  ;;  %vm272_vm14 = vcmp.lt.s32.totalorder %v9580_v4, 96 }
  0xce   :  { %16164 = vst [vmem:[#allocation63_spill] sm:$0xff] %v10044_v47  ;;  %16165 = vst [vmem:[#allocation64_spill] sm:$0xff] %v10046_v25  ;;  %v1765_v52 = vand.u32 4294901760, %v10046_v25  ;;  %v1506_v11 = vand.u32 4294901760, %v245_v15  ;;  %7753 = vmatprep.subr.bf16.mxu1 %v10048_v30  ;;  %7945 = vmatprep.subr.bf16.mxu0 %v10048_v30  ;;  %v1771_v51 = vand.u32 4294901760, %v10044_v47 }
  0xcf   :  { %16166 = vst [vmem:[#allocation65_spill] sm:$0xff] %v10048_v30  ;;  %521 = vrot.lane.b32.xlu0 %v9456_v0, %s9387_s16  ;;  %523 = vrot.lane.b32.xlu1 %v9470_v2, %s9387_s16 }
  0xd0   :  { %v10066_v27 = vsub.f32 %v245_v15, %v1506_v11  ;;  %v10068_v50 = vpop.permute.xlu0 %253  ;;  %v267_v10 = vpop.permute.xlu1 %266  ;;  %v10070_v13 = vpack.c.bf16 %v1506_v11, %v1502_v60  ;;  %v1772_v18 = vsub.f32 %v10044_v47, %v1771_v51  ;;  %v10077_v30 = vpack.c.bf16 %v1771_v51, %v1759_v21 }
  0xd1   :  { %v259_v42 = vsel %vm257_vm15, %v252_v40, %v10068_v50  ;;  %v1766_v37 = vsub.f32 %v10046_v25, %v1765_v52  ;;  %v1761_v60 = vand.u32 4294901760, %v1760_v45 }
  0xd2   :  { %16167 = vst [vmem:[#allocation66_spill] sm:$0xff] %v10066_v27  ;;  %16168 = vst [vmem:[#allocation67_spill] sm:$0xff] %v10070_v13  ;;  %v1777_v15 = vand.u32 4294901760, %v10066_v27  ;;  %v1508_v35 = vand.u32 4294901760, %v259_v42  ;;  %7755 = vmatpush1.bf16.msra.mxu1 %v10070_v13  ;;  %7947 = vmatpush1.bf16.msra.mxu0 %v10070_v13  ;;  %v1773_v21 = vand.u32 4294901760, %v1772_v18 }
  0xd3   :  { %16169 = vst [vmem:[#allocation68_spill] sm:$0xff] %v10077_v30  ;;  %536 = vrot.lane.b32.xlu0 %v9456_v0, %s9388_s4  ;;  %538 = vrot.lane.b32.xlu1 %v9470_v2, %s9388_s4  ;;  %v1767_v2 = vand.u32 4294901760, %v1766_v37 }
  0xd4   :  { %v1778_v11 = vsub.f32 %v10066_v27, %v1777_v15  ;;  %v10090_v51 = vsub.f32 %v259_v42, %v1508_v35  ;;  %v10092_v47 = vpop.permute.xlu0 %268  ;;  %v250_v26 = vpop.permute.xlu1 %249  ;;  %v10094_v25 = vpack.c.bf16 %v1777_v15, %v1765_v52  ;;  %v10101_v54 = vpack.c.bf16 %v1773_v21, %v1761_v60 }
  0xd5   :  { %v274_v13 = vsel %vm272_vm14, %v267_v10, %v10092_v47  ;;  %v260_v0 = vsel %vm257_vm15, %v250_v26, %v252_v40 }
  0xd6   :  { %16170 = vst [vmem:[#allocation69_spill] sm:$0xff] %v10090_v51  ;;  %16171 = vst [vmem:[#allocation70_spill] sm:$0xff] %v10094_v25  ;;  %v1779_v45 = vand.u32 4294901760, %v1778_v11  ;;  %v1512_v18 = vand.u32 4294901760, %v274_v13  ;;  %v1510_v27 = vand.u32 4294901760, %v260_v0  ;;  %v1783_v52 = vand.u32 4294901760, %v10090_v51 }
  0xd7   :  { %16172 = vst [vmem:[#allocation71_spill] sm:$0xff] %v10101_v54  ;;  %285 = vrot.lane.b32.xlu0 %v9982_v36, %s15651_s8  ;;  %300 = vrot.lane.b32.xlu1 %v9982_v36, %s9372_s9  ;;  %s9390_s9 = smov 31   ;;  %s9410_s8 = smov 108  }
  0xd8   :  { %v10108_v42 = vsub.f32 %v274_v13, %v1512_v18  ;;  %v10110_v15 = vsub.f32 %v260_v0, %v1510_v27  ;;  %v265_v33 = vpop.permute.xlu0 %264  ;;  %v282_v26 = vpop.permute.xlu1 %281  ;;  %v10112_v40 = vpack.c.bf16 %v1512_v18, %v1508_v35  ;;  %v10114_v37 = vpack.c.bf16 %v1779_v45, %v1767_v2 }
  0xd9   :  { %v275_v60 = vsel %vm272_vm14, %v265_v33, %v267_v10  ;;  %v1784_v35 = vsub.f32 %v10090_v51, %v1783_v52 }
  0xda   :  { %16173 = vst [vmem:[#allocation72_spill] sm:$0xff] %v10108_v42  ;;  %16174 = vst [vmem:[#allocation73_spill] sm:$0xff] %v10110_v15  ;;  %v1789_v21 = vand.u32 4294901760, %v10110_v15  ;;  %v1514_v11 = vand.u32 4294901760, %v275_v60  ;;  %7757 = vmatprep.subr.bf16.mxu1 %v10112_v40  ;;  %7949 = vmatprep.subr.bf16.mxu0 %v10112_v40  ;;  %v1795_v13 = vand.u32 4294901760, %v10108_v42 }
  0xdb   :  { %16175 = vst [vmem:[#allocation74_spill] sm:$0xff] %v10112_v40  ;;  %16176 = vst [vmem:[#allocation75_spill] sm:$0xff] %v10114_v37  ;;  %519 = vrot.lane.b32.xlu0 %v9461_v1, %s9387_s16  ;;  %534 = vrot.lane.b32.xlu1 %v9461_v1, %s9388_s4 }
  0xdc   :  { %v10129_v33 = vsub.f32 %v275_v60, %v1514_v11  ;;  %v10132_v10 = vpop.permute.xlu0 %283  ;;  %v297_v2 = vpop.permute.xlu1 %296  ;;  %v10134_v45 = vpack.c.bf16 %v1514_v11, %v1510_v27  ;;  %v1796_v18 = vsub.f32 %v10108_v42, %v1795_v13  ;;  %v1790_v0 = vsub.f32 %v10110_v15, %v1789_v21 }
  0xdd   :  { %16178 = vst [vmem:[#allocation77_spill] sm:$0xff] %v10132_v10  ;;  %v10138_v40 = vpack.c.bf16 %v1795_v13, %v1783_v52  ;;  %v10149_v27 = vsel %vm15517_vm13, %v282_v26, %v10132_v10  ;;  %v1785_v52 = vand.u32 4294901760, %v1784_v35 }
  0xde   :  { %16177 = vst [vmem:[#allocation76_spill] sm:$0xff] %v10129_v33  ;;  %16179 = vst [vmem:[#allocation78_spill] sm:$0xff] %v10134_v45  ;;  %v1801_v23 = vand.u32 4294901760, %v10129_v33  ;;  %7759 = vmatpush1.bf16.msra.mxu1 %v10134_v45  ;;  %7951 = vmatpush1.bf16.msra.mxu0 %v10134_v45  ;;  %v1797_v60 = vand.u32 4294901760, %v1796_v18  ;;  %v1791_v15 = vand.u32 4294901760, %v1790_v0  ;;  %v10168_v35 = vand.u32 4294901760, %v10149_v27 }
  0xdf   :  { %16180 = vst [vmem:[#allocation79_spill] sm:$0xff] %v10138_v40  ;;  %45 = vrot.lane.b32.xlu0 %v9982_v36, %s9355_s19  ;;  %60 = vrot.lane.b32.xlu1 %v9982_v36, %s9356_s20  ;;  %s16271_s19 = smov 55   ;;  %s16272_s20 = smov 54  }
  0xe0   :  { %v1802_v11 = vsub.f32 %v10129_v33, %v1801_v23  ;;  %v10156_v13 = vpop.permute.xlu0 %298  ;;  %v280_v51 = vpop.permute.xlu1 %279  ;;  %v10158_v45 = vpack.c.bf16 %v1801_v23, %v1789_v21  ;;  %v10165_v31 = vpack.c.bf16 %v1797_v60, %v1785_v52  ;;  %16184 = vst [vmem:[#allocation83_spill] sm:$0xff] %v10168_v35  ;;  %v10173_v23 = vld [vmem:[%s15406_s0 + $0x8] sm:$0xff] }
  0xe1   :  { %16181 = vst [vmem:[#allocation80_spill] sm:$0xff] %v10156_v13  ;;  %v304_v42 = vsel %vm15508_vm8, %v297_v2, %v10156_v13  ;;  %v290_v10 = vsel %vm15517_vm13, %v280_v51, %v282_v26  ;;  %v10180_v51 = vld [vmem:[%s15406_s0 + $0x10] sm:$0xff]  ;;  %vm15527_vm13 = vcmp.lt.s32.totalorder %v9580_v4, 72 }
  0xe2   :  { %16182 = vst [vmem:[#allocation81_spill] sm:$0xff] %v10158_v45  ;;  %16183 = vst [vmem:[#allocation82_spill] sm:$0xff] %v10165_v31  ;;  %v1803_v22 = vand.u32 4294901760, %v1802_v11  ;;  %v1520_v18 = vand.u32 4294901760, %v304_v42  ;;  %v1518_v33 = vand.u32 4294901760, %v290_v10 }
  0xe3   :  { %551 = vrot.lane.b32.xlu0 %v10173_v23, %s9389_s5  ;;  %553 = vrot.lane.b32.xlu1 %v10180_v51, %s9389_s5 }
  0xe4   :  { %v10184_v26 = vsub.f32 %v304_v42, %v1520_v18  ;;  %v10186_v21 = vsub.f32 %v290_v10, %v1518_v33  ;;  %v295_v0 = vpop.permute.xlu0 %294  ;;  %v312_v52 = vpop.permute.xlu1 %311  ;;  %v10189_v60 = vpack.c.bf16 %v1520_v18, %v10168_v35  ;;  %v10191_v11 = vpack.c.bf16 %v1803_v22, %v1791_v15 }
  0xe5   :  { %v305_v13 = vsel %vm15508_vm8, %v295_v0, %v297_v2  ;;  %vm392_vm8 = vcmp.lt.s32.totalorder %v9580_v4, 73 }
  0xe6   :  { %16185 = vst [vmem:[#allocation84_spill] sm:$0xff] %v10186_v21  ;;  %16186 = vst [vmem:[#allocation85_spill] sm:$0xff] %v10189_v60  ;;  %v1813_v19 = vand.u32 4294901760, %v10186_v21  ;;  %v1522_v57 = vand.u32 4294901760, %v305_v13  ;;  %7761 = vmatprep.subr.bf16.mxu1 %v10189_v60  ;;  %7953 = vmatprep.subr.bf16.mxu0 %v10189_v60 }
  0xe7   :  { %16187 = vst [vmem:[#allocation86_spill] sm:$0xff] %v10191_v11  ;;  %566 = vrot.lane.b32.xlu0 %v10173_v23, %s9390_s9  ;;  %568 = vrot.lane.b32.xlu1 %v10180_v51, %s9390_s9 }
  0xe8   :  { %v10203_v22 = vsub.f32 %v305_v13, %v1522_v57  ;;  %v10205_v42 = vpop.permute.xlu0 %313  ;;  %v327_v15 = vpop.permute.xlu1 %326  ;;  %v10207_v10 = vpack.c.bf16 %v1522_v57, %v1518_v33  ;;  %v1814_v2 = vsub.f32 %v10186_v21, %v1813_v19 }
  0xe9   :  { %16189 = vst [vmem:[#allocation88_spill] sm:$0xff] %v10205_v42  ;;  %v319_v18 = vsel %vm317_vm7, %v312_v52, %v10205_v42 }
  0xea   :  { %16188 = vst [vmem:[#allocation87_spill] sm:$0xff] %v10203_v22  ;;  %16190 = vst [vmem:[#allocation89_spill] sm:$0xff] %v10207_v10  ;;  %v1825_v0 = vand.u32 4294901760, %v10203_v22  ;;  %v1524_v43 = vand.u32 4294901760, %v319_v18  ;;  %7763 = vmatpush1.bf16.msra.mxu1 %v10207_v10  ;;  %7955 = vmatpush1.bf16.msra.mxu0 %v10207_v10  ;;  %v1815_v42 = vand.u32 4294901760, %v1814_v2 }
  0xeb   :  { %315 = vrot.lane.b32.xlu0 %v9982_v36, %s9373_s10  ;;  %330 = vrot.lane.b32.xlu1 %v9982_v36, %s9374_s11  ;;  %s15676_s10 = smov 7   ;;  %s15662_s11 = smov 6  }
  0xec   :  { %v1826_v57 = vsub.f32 %v10203_v22, %v1825_v0  ;;  %v10224_v33 = vsub.f32 %v319_v18, %v1524_v43  ;;  %v10226_v13 = vpop.permute.xlu0 %328  ;;  %v310_v60 = vpop.permute.xlu1 %309  ;;  %v10228_v21 = vpack.c.bf16 %v1825_v0, %v1813_v19  ;;  %v10239_v18 = vld [vmem:[%s15406_s0] sm:$0xff] }
  0xed   :  { %16192 = vst [vmem:[#allocation91_spill] sm:$0xff] %v10226_v13  ;;  %v334_v10 = vsel %vm332_vm12, %v327_v15, %v10226_v13  ;;  %v320_v45 = vsel %vm317_vm7, %v310_v60, %v312_v52 }
  0xee   :  { %16191 = vst [vmem:[#allocation90_spill] sm:$0xff] %v10224_v33  ;;  %16193 = vst [vmem:[#allocation92_spill] sm:$0xff] %v10228_v21  ;;  %v1827_v11 = vand.u32 4294901760, %v1826_v57  ;;  %v1528_v40 = vand.u32 4294901760, %v334_v10  ;;  %v1526_v31 = vand.u32 4294901760, %v320_v45  ;;  %v1831_v22 = vand.u32 4294901760, %v10224_v33 }
  0xef   :  { %549 = vrot.lane.b32.xlu0 %v10239_v18, %s9389_s5  ;;  %564 = vrot.lane.b32.xlu1 %v10239_v18, %s9390_s9 }
  0xf0   :  { %v10245_v19 = vsub.f32 %v334_v10, %v1528_v40  ;;  %v10247_v2 = vsub.f32 %v320_v45, %v1526_v31  ;;  %v10249_v52 = vpack.c.bf16 %v1528_v40, %v1524_v43  ;;  %v10251_v60 = vpack.c.bf16 %v1827_v11, %v1815_v42 }
  0xf1   :  { %v325_v0 = vpop.permute.xlu0 %324  ;;  %v342_v57 = vpop.permute.xlu1 %341  ;;  %v1832_v21 = vsub.f32 %v10224_v33, %v1831_v22 }
  0xf2   :  { %16194 = vst [vmem:[#allocation93_spill] sm:$0xff] %v10245_v19  ;;  %16195 = vst [vmem:[#allocation94_spill] sm:$0xff] %v10247_v2  ;;  %v335_v13 = vsel %vm332_vm12, %v325_v0, %v327_v15  ;;  %7765 = vmatprep.subr.bf16.mxu1 %v10249_v52  ;;  %7957 = vmatprep.subr.bf16.mxu0 %v10249_v52  ;;  %v1843_v10 = vand.u32 4294901760, %v10245_v19  ;;  %v1837_v43 = vand.u32 4294901760, %v10247_v2 }
  0xf3   :  { %16196 = vst [vmem:[#allocation95_spill] sm:$0xff] %v10249_v52  ;;  %16197 = vst [vmem:[#allocation96_spill] sm:$0xff] %v10251_v60  ;;  %v1530_v40 = vand.u32 4294901760, %v335_v13  ;;  %75 = vrot.lane.b32.xlu0 %v9982_v36, %s9357_s21  ;;  %90 = vrot.lane.b32.xlu1 %v9982_v36, %s9358_s22  ;;  %v1833_v60 = vand.u32 4294901760, %v1832_v21  ;;  %s9391_s21 = smov 30   ;;  %s9392_s22 = smov 29  }
  0xf4   :  { %v1844_v11 = vsub.f32 %v10245_v19, %v1843_v10  ;;  %v10268_v42 = vpack.c.bf16 %v1843_v10, %v1831_v22  ;;  %v1838_v37 = vsub.f32 %v10247_v2, %v1837_v43 }
  0xf5   :  { %v10270_v15 = vsub.f32 %v335_v13, %v1530_v40  ;;  %v10272_v0 = vpop.permute.xlu0 %343  ;;  %v357_v45 = vpop.permute.xlu1 %356  ;;  %v10274_v52 = vpack.c.bf16 %v1530_v40, %v1526_v31 }
  0xf6   :  { %16198 = vst [vmem:[#allocation97_spill] sm:$0xff] %v10268_v42  ;;  %16200 = vst [vmem:[#allocation99_spill] sm:$0xff] %v10272_v0  ;;  %v349_v33 = vsel %vm347_vm11, %v342_v57, %v10272_v0  ;;  %v1845_v25 = vand.u32 4294901760, %v1844_v11  ;;  %v1839_v42 = vand.u32 4294901760, %v1838_v37 }
  0xf7   :  { %16199 = vst [vmem:[#allocation98_spill] sm:$0xff] %v10270_v15  ;;  %16201 = vst [vmem:[#allocation100_spill] sm:$0xff] %v10274_v52  ;;  %v1849_v22 = vand.u32 4294901760, %v10270_v15  ;;  %v1532_v10 = vand.u32 4294901760, %v349_v33  ;;  %581 = vrot.lane.b32.xlu0 %v10173_v23, %s9391_s21  ;;  %583 = vrot.lane.b32.xlu1 %v10180_v51, %s9391_s21 }
  0xf8   :  { %7767 = vmatpush1.bf16.msra.mxu1 %v10274_v52  ;;  %7959 = vmatpush1.bf16.msra.mxu0 %v10274_v52  ;;  %v10290_v31 = vpack.c.bf16 %v1845_v25, %v1833_v60 }
  0xf9   :  { %v1850_v21 = vsub.f32 %v10270_v15, %v1849_v22  ;;  %v10293_v40 = vsub.f32 %v349_v33, %v1532_v10  ;;  %v10295_v11 = vpop.permute.xlu0 %358  ;;  %v340_v13 = vpop.permute.xlu1 %339  ;;  %v10297_v2 = vpack.c.bf16 %v1849_v22, %v1837_v43 }
  0xfa   :  { %16202 = vst [vmem:[#allocation101_spill] sm:$0xff] %v10290_v31  ;;  %16204 = vst [vmem:[#allocation103_spill] sm:$0xff] %v10295_v11  ;;  %v364_v19 = vsel %vm362_vm10, %v357_v45, %v10295_v11  ;;  %v350_v0 = vsel %vm347_vm11, %v340_v13, %v342_v57 }
  0xfb   :  { %16203 = vst [vmem:[#allocation102_spill] sm:$0xff] %v10293_v40  ;;  %16205 = vst [vmem:[#allocation104_spill] sm:$0xff] %v10297_v2  ;;  %v1851_v52 = vand.u32 4294901760, %v1850_v21  ;;  %v1536_v25 = vand.u32 4294901760, %v364_v19  ;;  %v1534_v60 = vand.u32 4294901760, %v350_v0  ;;  %596 = vrot.lane.b32.xlu0 %v10173_v23, %s9392_s22  ;;  %598 = vrot.lane.b32.xlu1 %v10180_v51, %s9392_s22  ;;  %v1855_v33 = vand.u32 4294901760, %v10293_v40 }
  0xfd   :  { %v10309_v43 = vsub.f32 %v364_v19, %v1536_v25  ;;  %v10311_v22 = vsub.f32 %v350_v0, %v1534_v60  ;;  %v355_v15 = vpop.permute.xlu0 %354  ;;  %v372_v11 = vpop.permute.xlu1 %371  ;;  %v10313_v57 = vpack.c.bf16 %v1536_v25, %v1532_v10  ;;  %v10315_v37 = vpack.c.bf16 %v1851_v52, %v1839_v42 }
  0xfe   :  { %v365_v13 = vsel %vm362_vm10, %v355_v15, %v357_v45  ;;  %v1856_v45 = vsub.f32 %v10293_v40, %v1855_v33 }
  0xff   :  { %16206 = vst [vmem:[#allocation105_spill] sm:$0xff] %v10309_v43  ;;  %16207 = vst [vmem:[#allocation106_spill] sm:$0xff] %v10311_v22  ;;  %v1861_v21 = vand.u32 4294901760, %v10311_v22  ;;  %v1538_v2 = vand.u32 4294901760, %v365_v13  ;;  %345 = vrot.lane.b32.xlu0 %v9982_v36, %s9375_s12  ;;  %360 = vrot.lane.b32.xlu1 %v9982_v36, %s9376_s13  ;;  %v1867_v19 = vand.u32 4294901760, %v10309_v43  ;;  %s16296_s12 = smov 53  }
 0x100   :  { %16208 = vst [vmem:[#allocation107_spill] sm:$0xff] %v10313_v57  ;;  %16209 = vst [vmem:[#allocation108_spill] sm:$0xff] %v10315_v37  ;;  %7769 = vmatprep.subr.bf16.mxu1 %v10313_v57  ;;  %7961 = vmatprep.subr.bf16.mxu0 %v10313_v57  ;;  %s16297_s13 = smov 52  }
 0x101   :  { %v10331_v42 = vsub.f32 %v365_v13, %v1538_v2  ;;  %v10333_v15 = vpop.permute.xlu0 %373  ;;  %v387_v0 = vpop.permute.xlu1 %386  ;;  %v10335_v10 = vpack.c.bf16 %v1538_v2, %v1534_v60  ;;  %v1868_v25 = vsub.f32 %v10309_v43, %v1867_v19  ;;  %v10342_v52 = vpack.c.bf16 %v1867_v19, %v1855_v33 }
 0x102   :  { %16211 = vst [vmem:[#allocation110_spill] sm:$0xff] %v10333_v15  ;;  %v379_v37 = vsel %vm377_vm9, %v372_v11, %v10333_v15  ;;  %v1862_v57 = vsub.f32 %v10311_v22, %v1861_v21  ;;  %v1857_v2 = vand.u32 4294901760, %v1856_v45 }
 0x103   :  { %16210 = vst [vmem:[#allocation109_spill] sm:$0xff] %v10331_v42  ;;  %16212 = vst [vmem:[#allocation111_spill] sm:$0xff] %v10335_v10  ;;  %v1873_v13 = vand.u32 4294901760, %v10331_v42  ;;  %v1540_v31 = vand.u32 4294901760, %v379_v37  ;;  %579 = vrot.lane.b32.xlu0 %v10239_v18, %s9391_s21  ;;  %594 = vrot.lane.b32.xlu1 %v10239_v18, %s9392_s22  ;;  %v1869_v60 = vand.u32 4294901760, %v1868_v25 }
 0x104   :  { %16213 = vst [vmem:[#allocation112_spill] sm:$0xff] %v10342_v52  ;;  %7771 = vmatpush1.bf16.msra.mxu1 %v10335_v10  ;;  %7963 = vmatpush1.bf16.msra.mxu0 %v10335_v10  ;;  %v1863_v45 = vand.u32 4294901760, %v1862_v57 }
 0x105   :  { %v1874_v33 = vsub.f32 %v10331_v42, %v1873_v13  ;;  %v10355_v19 = vsub.f32 %v379_v37, %v1540_v31  ;;  %v10357_v43 = vpop.permute.xlu0 %388  ;;  %v370_v40 = vpop.permute.xlu1 %369  ;;  %v10359_v22 = vpack.c.bf16 %v1873_v13, %v1861_v21  ;;  %v10366_v30 = vpack.c.bf16 %v1869_v60, %v1857_v2 }
 0x106   :  { %16215 = vst [vmem:[#allocation114_spill] sm:$0xff] %v10357_v43  ;;  %v394_v15 = vsel %vm392_vm8, %v387_v0, %v10357_v43  ;;  %v380_v52 = vsel %vm377_vm9, %v370_v40, %v372_v11 }
 0x107   :  { %16214 = vst [vmem:[#allocation113_spill] sm:$0xff] %v10355_v19  ;;  %16216 = vst [vmem:[#allocation115_spill] sm:$0xff] %v10359_v22  ;;  %v1875_v25 = vand.u32 4294901760, %v1874_v33  ;;  %v1544_v10 = vand.u32 4294901760, %v394_v15  ;;  %v1542_v42 = vand.u32 4294901760, %v380_v52  ;;  %105 = vrot.lane.b32.xlu0 %v9982_v36, %s9359_s23  ;;  %120 = vrot.lane.b32.xlu1 %v9982_v36, %s9360_s24  ;;  %v1879_v37 = vand.u32 4294901760, %v10355_v19 }
 0x108   :  { %16217 = vst [vmem:[#allocation116_spill] sm:$0xff] %v10366_v30  ;;  %s9393_s23 = smov 28   ;;  %s9394_s24 = smov 27  }
 0x109   :  { %v10373_v21 = vsub.f32 %v394_v15, %v1544_v10  ;;  %v10375_v13 = vsub.f32 %v380_v52, %v1542_v42  ;;  %v385_v43 = vpop.permute.xlu0 %384  ;;  %v402_v40 = vpop.permute.xlu1 %401  ;;  %v10377_v11 = vpack.c.bf16 %v1544_v10, %v1540_v31  ;;  %v10379_v57 = vpack.c.bf16 %v1875_v25, %v1863_v45 }
 0x10a   :  { %v395_v2 = vsel %vm392_vm8, %v385_v43, %v387_v0  ;;  %v1880_v43 = vsub.f32 %v10355_v19, %v1879_v37 }
 0x10b   :  { %16218 = vst [vmem:[#allocation117_spill] sm:$0xff] %v10373_v21  ;;  %16219 = vst [vmem:[#allocation118_spill] sm:$0xff] %v10375_v13  ;;  %v1885_v60 = vand.u32 4294901760, %v10375_v13  ;;  %v1546_v33 = vand.u32 4294901760, %v395_v2  ;;  %611 = vrot.lane.b32.xlu0 %v10173_v23, %s9393_s23  ;;  %613 = vrot.lane.b32.xlu1 %v10180_v51, %s9393_s23  ;;  %v1891_v31 = vand.u32 4294901760, %v10373_v21 }
 0x10c   :  { %16220 = vst [vmem:[#allocation119_spill] sm:$0xff] %v10377_v11  ;;  %16221 = vst [vmem:[#allocation120_spill] sm:$0xff] %v10379_v57  ;;  %7773 = vmatprep.subr.bf16.mxu1 %v10377_v11  ;;  %7965 = vmatprep.subr.bf16.mxu0 %v10377_v11 }
 0x10d   :  { %v10395_v15 = vsub.f32 %v395_v2, %v1546_v33  ;;  %v10397_v0 = vpop.permute.xlu0 %403  ;;  %v417_v10 = vpop.permute.xlu1 %416  ;;  %v10399_v45 = vpack.c.bf16 %v1546_v33, %v1542_v42  ;;  %v1892_v25 = vsub.f32 %v10373_v21, %v1891_v31  ;;  %v10406_v52 = vpack.c.bf16 %v1891_v31, %v1879_v37 }
 0x10e   :  { %16223 = vst [vmem:[#allocation122_spill] sm:$0xff] %v10397_v0  ;;  %v409_v22 = vsel %vm15527_vm13, %v402_v40, %v10397_v0  ;;  %v1886_v11 = vsub.f32 %v10375_v13, %v1885_v60  ;;  %v1881_v42 = vand.u32 4294901760, %v1880_v43 }
 0x10f   :  { %16222 = vst [vmem:[#allocation121_spill] sm:$0xff] %v10395_v15  ;;  %16224 = vst [vmem:[#allocation123_spill] sm:$0xff] %v10399_v45  ;;  %v1897_v2 = vand.u32 4294901760, %v10395_v15  ;;  %v1548_v57 = vand.u32 4294901760, %v409_v22  ;;  %626 = vrot.lane.b32.xlu0 %v10173_v23, %s9394_s24  ;;  %628 = vrot.lane.b32.xlu1 %v10180_v51, %s9394_s24  ;;  %v1893_v37 = vand.u32 4294901760, %v1892_v25 }
 0x110   :  { %16225 = vst [vmem:[#allocation124_spill] sm:$0xff] %v10406_v52  ;;  %7775 = vmatpush1.bf16.msra.mxu1 %v10399_v45  ;;  %7967 = vmatpush1.bf16.msra.mxu0 %v10399_v45  ;;  %v1887_v43 = vand.u32 4294901760, %v1886_v11 }
 0x111   :  { %v1898_v33 = vsub.f32 %v10395_v15, %v1897_v2  ;;  %v10419_v31 = vsub.f32 %v409_v22, %v1548_v57  ;;  %v10421_v0 = vpop.permute.xlu0 %418  ;;  %v400_v19 = vpop.permute.xlu1 %399  ;;  %v10423_v13 = vpack.c.bf16 %v1897_v2, %v1885_v60  ;;  %v10432_v45 = vpack.c.bf16 %v1893_v37, %v1881_v42 }
 0x112   :  { %16227 = vst [vmem:[#allocation126_spill] sm:$0xff] %v10421_v0  ;;  %v10428_v21 = vsel %vm15528_vm0, %v417_v10, %v10421_v0  ;;  %v410_v52 = vsel %vm15527_vm13, %v400_v19, %v402_v40  ;;  %vm15537_vm13 = vcmp.lt.s32.totalorder %v9580_v4, 55 }
 0x113   :  { %16226 = vst [vmem:[#allocation125_spill] sm:$0xff] %v10419_v31  ;;  %16228 = vst [vmem:[#allocation127_spill] sm:$0xff] %v10423_v13  ;;  %v1899_v25 = vand.u32 4294901760, %v1898_v33  ;;  %v10435_v22 = vand.u32 4294901760, %v10428_v21  ;;  %v1550_v15 = vand.u32 4294901760, %v410_v52  ;;  %375 = vrot.lane.b32.xlu0 %v9982_v36, %s9377_s14  ;;  %390 = vrot.lane.b32.xlu1 %v9982_v36, %s9378_s15  ;;  %s9396_s14 = smov 25  }
 0x114   :  { %16229 = vst [vmem:[#allocation128_spill] sm:$0xff] %v10428_v21  ;;  %16230 = vst [vmem:[#allocation129_spill] sm:$0xff] %v10432_v45  ;;  %s16320_s15 = smov 99  }
 0x115   :  { %16231 = vst [vmem:[#allocation130_spill] sm:$0xff] %v10435_v22  ;;  %v10441_v60 = vsub.f32 %v410_v52, %v1550_v15  ;;  %v415_v2 = vpop.permute.xlu0 %414  ;;  %v432_v0 = vpop.permute.xlu1 %431  ;;  %v10444_v19 = vpack.c.bf16 %v10435_v22, %v1548_v57  ;;  %v10446_v40 = vpack.c.bf16 %v1899_v25, %v1887_v43 }
 0x116   :  { %v425_v11 = vsel %vm15528_vm0, %v415_v2, %v417_v10  ;;  %vm15542_vm0 = vcmp.lt.s32.totalorder %v9580_v4, 54 }
 0x117   :  { %16232 = vst [vmem:[#allocation131_spill] sm:$0xff] %v10441_v60  ;;  %16233 = vst [vmem:[#allocation132_spill] sm:$0xff] %v10444_v19  ;;  %v1909_v42 = vand.u32 4294901760, %v10441_v60  ;;  %v1554_v37 = vand.u32 4294901760, %v425_v11  ;;  %609 = vrot.lane.b32.xlu0 %v10239_v18, %s9393_s23  ;;  %624 = vrot.lane.b32.xlu1 %v10239_v18, %s9394_s24 }
 0x118   :  { %16234 = vst [vmem:[#allocation133_spill] sm:$0xff] %v10446_v40  ;;  %7777 = vmatprep.subr.bf16.mxu1 %v10444_v19  ;;  %7969 = vmatprep.subr.bf16.mxu0 %v10444_v19 }
 0x119   :  { %v10458_v57 = vsub.f32 %v425_v11, %v1554_v37  ;;  %v10460_v52 = vpop.permute.xlu0 %433  ;;  %v447_v10 = vpop.permute.xlu1 %446  ;;  %v10462_v33 = vpack.c.bf16 %v1554_v37, %v1550_v15  ;;  %v1910_v25 = vsub.f32 %v10441_v60, %v1909_v42 }
 0x11a   :  { %16236 = vst [vmem:[#allocation135_spill] sm:$0xff] %v10460_v52  ;;  %v439_v43 = vsel %vm15537_vm13, %v432_v0, %v10460_v52 }
 0x11b   :  { %16235 = vst [vmem:[#allocation134_spill] sm:$0xff] %v10458_v57  ;;  %16237 = vst [vmem:[#allocation136_spill] sm:$0xff] %v10462_v33  ;;  %v1921_v2 = vand.u32 4294901760, %v10458_v57  ;;  %v1556_v11 = vand.u32 4294901760, %v439_v43  ;;  %135 = vrot.lane.b32.xlu0 %v9982_v36, %s9361_s25  ;;  %150 = vrot.lane.b32.xlu1 %v9982_v36, %s15684_s26  ;;  %v1911_v45 = vand.u32 4294901760, %v1910_v25  ;;  %s9395_s25 = smov 26  }
 0x11c   :  { %7779 = vmatpush1.bf16.msra.mxu1 %v10462_v33  ;;  %7971 = vmatpush1.bf16.msra.mxu0 %v10462_v33  ;;  %s9414_s26 = smov 88  }
 0x11d   :  { %v1922_v15 = vsub.f32 %v10458_v57, %v1921_v2  ;;  %v10479_v37 = vsub.f32 %v439_v43, %v1556_v11  ;;  %v10481_v52 = vpop.permute.xlu0 %448  ;;  %v430_v13 = vpop.permute.xlu1 %429  ;;  %v10483_v40 = vpack.c.bf16 %v1921_v2, %v1909_v42  ;;  %v10496_v42 = vsub.f32 %v10173_v23, %v9598_v12 }
 0x11e   :  { %16239 = vst [vmem:[#allocation138_spill] sm:$0xff] %v10481_v52  ;;  %v454_v19 = vsel %vm15542_vm0, %v447_v10, %v10481_v52  ;;  %v440_v60 = vsel %vm15537_vm13, %v430_v13, %v432_v0  ;;  %v1185_v52 = vld [vmem:[%s15407_s1] sm:$0xff]  ;;  %vm15557_vm13 = vcmp.lt.s32.totalorder %v9580_v4, 53 }
 0x11f   :  { %16238 = vst [vmem:[#allocation137_spill] sm:$0xff] %v10479_v37  ;;  %16240 = vst [vmem:[#allocation139_spill] sm:$0xff] %v10483_v40  ;;  %v1923_v30 = vand.u32 4294901760, %v1922_v15  ;;  %v1560_v31 = vand.u32 4294901760, %v454_v19  ;;  %v1558_v33 = vand.u32 4294901760, %v440_v60  ;;  %641 = vrot.lane.b32.xlu0 %v10173_v23, %s9395_s25  ;;  %643 = vrot.lane.b32.xlu1 %v10180_v51, %s9395_s25  ;;  %v1927_v43 = vand.u32 4294901760, %v10479_v37 }
 0x120   :  { %16241 = vst [vmem:[#allocation140_spill] sm:$0xff] %v10496_v42 }
 0x121   :  { %v10499_v2 = vsub.f32 %v454_v19, %v1560_v31  ;;  %v10501_v13 = vsub.f32 %v440_v60, %v1558_v33  ;;  %v445_v0 = vpop.permute.xlu0 %444  ;;  %v462_v25 = vpop.permute.xlu1 %461  ;;  %v10503_v15 = vpack.c.bf16 %v1560_v31, %v1556_v11  ;;  %v10508_v57 = vpack.c.bf16 %v1923_v30, %v1911_v45 }
 0x122   :  { %v455_v12 = vsel %vm15542_vm0, %v445_v0, %v447_v10  ;;  %v16246_v45 = vand.u32 4294901760, %v9461_v1  ;;  %v10528_v10 = vand.u32 4294901760, %v1185_v52  ;;  %v1928_v11 = vsub.f32 %v10479_v37, %v1927_v43 }
 0x123   :  { %16242 = vst [vmem:[#allocation141_spill] sm:$0xff] %v10499_v2  ;;  %16243 = vst [vmem:[#allocation142_spill] sm:$0xff] %v10501_v13  ;;  %v1933_v19 = vand.u32 4294901760, %v10501_v13  ;;  %v1562_v40 = vand.u32 4294901760, %v455_v12  ;;  %656 = vrot.lane.b32.xlu0 %v10173_v23, %s9396_s14  ;;  %658 = vrot.lane.b32.xlu1 %v10180_v51, %s9396_s14  ;;  %v1939_v31 = vand.u32 4294901760, %v10499_v2  ;;  %v10538_v1 = vand.u32 4294901760, %v10496_v42 }
 0x124   :  { %16244 = vst [vmem:[#allocation143_spill] sm:$0xff] %v10503_v15  ;;  %16245 = vst [vmem:[#allocation144_spill] sm:$0xff] %v10508_v57  ;;  %v10524_v60 = vsub.f32 %v10239_v18, %v16246_v45  ;;  %7781 = vmatprep.subr.bf16.mxu1 %v10503_v15  ;;  %7973 = vmatprep.subr.bf16.mxu0 %v10503_v15  ;;  %v1603_v15 = vand.u32 4294901760, %v9609_v16  ;;  %vm15558_vm0 = vcmp.lt.s32.totalorder %v9580_v4, 52 }
 0x125   :  { %16247 = vst [vmem:[#allocation145_spill] sm:$0xff] %v10528_v10  ;;  %v10531_v0 = vsub.f32 %v455_v12, %v1562_v40  ;;  %v10533_v57 = vpop.permute.xlu0 %463  ;;  %v477_v24 = vpop.permute.xlu1 %476  ;;  %v10535_v17 = vpack.c.bf16 %v1562_v40, %v1558_v33  ;;  %16251 = vst [vmem:[#allocation149_spill] sm:$0xff] %v10538_v1  ;;  %v1940_v45 = vsub.f32 %v10499_v2, %v1939_v31 }
 0x126   :  { %16249 = vst [vmem:[#allocation147_spill] sm:$0xff] %v10533_v57  ;;  %v469_v30 = vsel %vm15557_vm13, %v462_v25, %v10533_v57  ;;  %v10545_v54 = vpack.c.bf16 %v1939_v31, %v1927_v43  ;;  %v1934_v12 = vsub.f32 %v10501_v13, %v1933_v19  ;;  %v10559_v43 = vsub.f32 %v1185_v52, %v10528_v10 }
 0x127   :  { %16248 = vst [vmem:[#allocation146_spill] sm:$0xff] %v10531_v0  ;;  %16250 = vst [vmem:[#allocation148_spill] sm:$0xff] %v10535_v17  ;;  %v1945_v37 = vand.u32 4294901760, %v10531_v0  ;;  %405 = vrot.lane.b32.xlu0 %v9982_v36, %s9379_s17  ;;  %420 = vrot.lane.b32.xlu1 %v9982_v36, %s15641_s18  ;;  %v1564_v33 = vand.u32 4294901760, %v469_v30  ;;  %v1929_v31 = vand.u32 4294901760, %v1928_v11  ;;  %v1941_v57 = vand.u32 4294901760, %v1940_v45 }
 0x128   :  { %16252 = vst [vmem:[#allocation150_spill] sm:$0xff] %v10545_v54  ;;  %7783 = vmatpush1.bf16.msra.mxu1 %v10535_v17  ;;  %7975 = vmatpush1.bf16.msra.mxu0 %v10535_v17  ;;  %16253 = vst [vmem:[#allocation151_spill] sm:$0xff] %v10559_v43  ;;  %v1592_v54 = vsub.f32 %v10496_v42, %v10538_v1  ;;  %v1935_v17 = vand.u32 4294901760, %v1934_v12  ;;  %v10585_v14 = vand.u32 4294901760, %v10559_v43  ;;  %s16321_s17 = smov 98   ;;  %s9409_s18 = smov 109  }
 0x129   :  { %v1946_v40 = vsub.f32 %v10531_v0, %v1945_v37  ;;  %v10562_v13 = vpop.permute.xlu0 %478  ;;  %v460_v2 = vpop.permute.xlu1 %459  ;;  %v10567_v21 = vpack.c.bf16 %v1945_v37, %v1933_v19  ;;  %v10575_v45 = vpack.c.bf16 %v1941_v57, %v1929_v31  ;;  %v1604_v37 = vsub.f32 %v9609_v16, %v1603_v15 }
 0x12a   :  { %16254 = vst [vmem:[#allocation152_spill] sm:$0xff] %v10562_v13  ;;  %v484_v52 = vsel %vm15558_vm0, %v477_v24, %v10562_v13  ;;  %v470_v11 = vsel %vm15557_vm13, %v460_v2, %v462_v25  ;;  %v10582_v19 = vsub.f32 %v469_v30, %v1564_v33  ;;  %16256 = vst [vmem:[#allocation154_spill] sm:$0xff] %v10585_v14  ;;  %v16258_v31 = vand.u32 4294901760, %v9593_v9 }
 0x12b   :  { %16255 = vst [vmem:[#allocation153_spill] sm:$0xff] %v10567_v21  ;;  %v1947_v0 = vand.u32 4294901760, %v1946_v40  ;;  %v1568_v10 = vand.u32 4294901760, %v484_v52  ;;  %639 = vrot.lane.b32.xlu0 %v10239_v18, %s9395_s25  ;;  %654 = vrot.lane.b32.xlu1 %v10239_v18, %s9396_s14  ;;  %v1566_v57 = vand.u32 4294901760, %v470_v11  ;;  %v10600_v16 = vand.u32 4294901760, %v1592_v54 }
 0x12c   :  { %v1610_v13 = vsub.f32 %v9593_v9, %v16258_v31  ;;  %vm497_vm13 = vcmp.lt.s32.totalorder %v9580_v4, 51 }
 0x12d   :  { %v10587_v22 = vsub.f32 %v484_v52, %v1568_v10  ;;  %v475_v2 = vpop.permute.xlu0 %474  ;;  %v10589_v25 = vpop.permute.xlu1 %491  ;;  %v10591_v12 = vpack.c.bf16 %v1568_v10, %v1564_v33  ;;  %v10593_v40 = vpack.c.bf16 %v1947_v0, %v1935_v17  ;;  %16259 = vst [vmem:[#allocation156_spill] sm:$0xff] %v10600_v16  ;;  %v16260_v52 = vand.u32 4294901760, %v10524_v60 }
 0x12e   :  { %v485_v30 = vsel %vm15558_vm0, %v475_v2, %v477_v24  ;;  %v1605_v17 = vand.u32 4294901760, %v1604_v37  ;;  %v1581_v24 = vsub.f32 %v10559_v43, %v10585_v14  ;;  %v10616_v54 = vsub.f32 %v470_v11, %v1566_v57 }
 0x12f   :  { %16257 = vst [vmem:[#allocation155_spill] sm:$0xff] %v10591_v12  ;;  %v1598_v42 = vsub.f32 %v10524_v60, %v16260_v52  ;;  %v1570_v21 = vand.u32 4294901760, %v485_v30  ;;  %165 = vrot.lane.b32.xlu0 %v9982_v36, %s9363_s27  ;;  %180 = vrot.lane.b32.xlu1 %v9982_v36, %s9364_s28  ;;  %v1611_v37 = vand.u32 4294901760, %v1610_v13  ;;  %v7980_v52 = vpack.c.bf16 %v1603_v15, %v10538_v1  ;;  %s15686_s27 = smov 24   ;;  %s15685_s28 = smov 8  }
 0x130   :  { %7785 = vmatprep.subr.bf16.mxu1 %v10591_v12  ;;  %7977 = vmatprep.subr.bf16.mxu0 %v10591_v12  ;;  %vm512_vm0 = vcmp.lt.s32.totalorder %v9580_v4, 50  ;;  %v10644_v13 = vsub.f32 %v9827_v29, %v9834_v61  ;;  %v16362_v12 = vld [vmem:[#allocation15_spill] sm:$0xff] }
 0x131   :  { %v10618_v0 = vsub.f32 %v485_v30, %v1570_v21  ;;  %v10620_v33 = vpop.permute.xlu0 %493  ;;  %v10622_v36 = vpop.permute.xlu1 %506  ;;  %v10624_v2 = vpack.c.bf16 %v1570_v21, %v1566_v57  ;;  %v1599_v10 = vand.u32 4294901760, %v1598_v42  ;;  %v7788_v21 = vpack.c.bf16 %v1605_v17, %v10600_v16 }
 0x132   :  { %16261 = vst [vmem:[#allocation157_spill] sm:$0xff] %v10620_v33  ;;  %v10630_v31 = vsel %vm497_vm13, %v10589_v25, %v10620_v33  ;;  %16263 = vst [vmem:[#allocation159_spill] sm:$0xff] %v10644_v13  ;;  %v10648_v42 = vand.u32 4294901760, %v1581_v24  ;;  %v1687_v16 = vand.u32 4294901760, %v9818_v44 }
 0x133   :  { %16262 = vst [vmem:[#allocation158_spill] sm:$0xff] %v10624_v2  ;;  %v15559_v30 = vand.u32 4294901760, %v10630_v31  ;;  %671 = vrot.lane.b32.xlu0 %v10173_v23, %s15686_s27  ;;  %673 = vrot.lane.b32.xlu1 %v10180_v51, %s15686_s27 }
 0x134   :  { %7787 = vmatpush1.bf16.msra.mxu1 %v10624_v2  ;;  %7979 = vmatpush1.bf16.msra.mxu0 %v10624_v2  ;;  %16264 = vst [vmem:[#allocation160_spill] sm:$0xff] %v10648_v42  ;;  %v16366_v2 = vld [vmem:[#allocation124_spill] sm:$0xff] }
 0x135   :  { %v10653_v15 = vsub.f32 %v10630_v31, %v15559_v30  ;;  %7789 = vmatprep.subr.bf16.mxu1 %v7788_v21  ;;  %7981 = vmatprep.subr.bf16.mxu0 %v7980_v52  ;;  %v10655_v57 = vpop.permute.xlu0 %508  ;;  %v256_v17 = vpop.permute.xlu1 %255  ;;  %v7790_v52 = vpack.c.bf16 %v1611_v37, %v1599_v10  ;;  %v16267_v21 = vand.u32 4294901760, %v10524_v60  ;;  %v16268_v30 = vand.u32 4294901760, %v9593_v9 }
 0x136   :  { %16266 = vst [vmem:[#allocation162_spill] sm:$0xff] %v10655_v57  ;;  %v10661_v29 = vsel %vm512_vm0, %v10622_v36, %v10655_v57  ;;  %v10667_v24 = vsel %vm257_vm15, %v10068_v50, %v256_v17  ;;  %v10680_v50 = vand.u32 4294901760, %v10644_v13  ;;  %vm542_vm15 = vcmp.lt.s32.totalorder %v9580_v4, 48 }
 0x137   :  { %16265 = vst [vmem:[#allocation161_spill] sm:$0xff] %v10653_v15  ;;  %v15562_v11 = vand.u32 4294901760, %v10661_v29  ;;  %686 = vrot.lane.b32.xlu0 %v10173_v23, %s15685_s28  ;;  %688 = vrot.lane.b32.xlu1 %v10180_v51, %s15685_s28  ;;  %v7982_v1 = vpack.c.bf16 %v16268_v30, %v16267_v21 }
 0x138   :  { %1583 = vmatmul.mubr.f32.vlgmr.msra.gmra.mrb[0].mxu1 %v10648_v42  ;;  %2320 = vmatmul.mubr.f32.vlgmr.msra.gmra.mrb[0].mxu0 %v10585_v14  ;;  %16269 = vst [vmem:[#allocation163_spill] sm:$0xff] %v10680_v50  ;;  %v1688_v14 = vsub.f32 %v9818_v44, %v1687_v16 }
 0x139   :  { %v10685_v17 = vsub.f32 %v10661_v29, %v15562_v11  ;;  %7791 = vmatpush1.bf16.msra.mxu1 %v7790_v52  ;;  %7983 = vmatpush1.bf16.msra.mxu0 %v7982_v1  ;;  %v271_v10 = vpop.permute.xlu0 %270  ;;  %v490_v37 = vpop.permute.xlu1 %489  ;;  %v2875_v1 = vand.u32 4294901760, %v10653_v15 }
 0x13a   :  { %7793 = vmatprep.subr.bf16.mxu1 %v9701_v62  ;;  %7985 = vmatprep.subr.bf16.mxu0 %v9677_v48  ;;  %v10694_v21 = vsel %vm272_vm14, %v10092_v47, %v271_v10  ;;  %v10699_v52 = vsel %vm497_vm13, %v490_v37, %v10589_v25  ;;  %v10707_v48 = vld [vmem:[%s15406_s0 + $0x18] sm:$0xff]  ;;  %v1700_v62 = vsub.f32 %v10644_v13, %v10680_v50  ;;  %v16275_v25 = vand.u32 4294901760, %v10667_v24 }
 0x13b   :  { %16270 = vst [vmem:[#allocation164_spill] sm:$0xff] %v10685_v17  ;;  %v15567_v11 = vand.u32 4294901760, %v10694_v21  ;;  %v15568_v30 = vand.u32 4294901760, %v10699_v52  ;;  %435 = vrot.lane.b32.xlu0 %v10707_v48, %s16271_s19  ;;  %450 = vrot.lane.b32.xlu1 %v10707_v48, %s16272_s20  ;;  %v2887_v47 = vand.u32 4294901760, %v10685_v17  ;;  %vm15579_vm14 = vcmp.lt.s32.totalorder %v9580_v4, 49  ;;  %s9403_s19 = smov 3  }
 0x13c   :  { %1974 = vmatprep.mubr.f32.mxu1 %v9870_v6  ;;  %2583 = vmatprep.mubr.f32.mxu0 %v9870_v6  ;;  %v10738_v61 = vsub.f32 %v10667_v24, %v16275_v25  ;;  %v1689_v42 = vand.u32 4294901760, %v1688_v14  ;;  %s9404_s20 = smov 2  }
 0x13d   :  { %v10723_v10 = vsub.f32 %v10694_v21, %v15567_v11  ;;  %v10728_v37 = vsub.f32 %v10699_v52, %v15568_v30  ;;  %7795 = vmatpush1.bf16.msra.mxu1 %v9714_v20  ;;  %7987 = vmatpush1.bf16.msra.mxu0 %v9694_v59  ;;  %v505_v57 = vpop.permute.xlu0 %504  ;;  %v10732_v33 = vpop.permute.xlu1 %28  ;;  %v2876_v59 = vsub.f32 %v10653_v15, %v2875_v1 }
 0x13e   :  { %16276 = vst [vmem:[#allocation167_spill] sm:$0xff] %v10738_v61  ;;  %7797 = vmatprep.subr.bf16.mxu1 %v9765_v63  ;;  %7989 = vmatprep.subr.bf16.mxu0 %v9741_v39  ;;  %v10745_v20 = vsel %vm512_vm0, %v505_v57, %v10622_v36  ;;  %v10755_v39 = vand.u32 4294901760, %v1700_v62  ;;  %v2888_v63 = vsub.f32 %v10685_v17, %v2887_v47 }
 0x13f   :  { %16273 = vst [vmem:[#allocation165_spill] sm:$0xff] %v10723_v10  ;;  %16274 = vst [vmem:[#allocation166_spill] sm:$0xff] %v10728_v37  ;;  %v2881_v11 = vand.u32 4294901760, %v10728_v37  ;;  %v15571_v30 = vand.u32 4294901760, %v10745_v20  ;;  %669 = vrot.lane.b32.xlu0 %v10239_v18, %s15686_s27  ;;  %684 = vrot.lane.b32.xlu1 %v10239_v18, %s15685_s28  ;;  %s9413_s27 = smov 105   ;;  %s9423_s28 = smov 64  }
 0x140   :  { %16277 = vst [vmem:[#allocation168_spill] sm:$0xff] %v10755_v39  ;;  %v2889_v36 = vand.u32 4294901760, %v2888_v63 }
 0x141   :  { %v10762_v57 = vsub.f32 %v10745_v20, %v15571_v30  ;;  %7799 = vmatpush1.bf16.msra.mxu1 %v9778_v28  ;;  %v10765_v25 = vpop.permute.xlu0 %521  ;;  %v10767_v15 = vpop.permute.xlu1 %523  ;;  %7991 = vmatpush1.bf16.msra.mxu0 %v9758_v58  ;;  %v2877_v28 = vand.u32 4294901760, %v2876_v59  ;;  %v2882_v17 = vsub.f32 %v10728_v37, %v2881_v11  ;;  %v7996_v59 = vpack.c.bf16 %v10680_v50, %v1687_v16 }
 0x142   :  { %16279 = vst [vmem:[#allocation170_spill] sm:$0xff] %v10767_v15  ;;  %7801 = vmatprep.subr.bf16.mxu1 %v9831_v41  ;;  %v10777_v30 = vsel %vm15579_vm14, %v10765_v25, %v10767_v15  ;;  %7993 = vmatprep.subr.bf16.mxu0 %v9805_v3  ;;  %v7804_v41 = vpack.c.bf16 %v10755_v39, %v1689_v42  ;;  %v16285_v15 = vand.u32 4294901760, %v10738_v61  ;;  %v16286_v42 = vand.u32 4294901760, %v10723_v10 }
 0x143   :  { %16278 = vst [vmem:[#allocation169_spill] sm:$0xff] %v10762_v57  ;;  %v2893_v14 = vand.u32 4294901760, %v10762_v57  ;;  %v15578_v58 = vand.u32 4294901760, %v10777_v30  ;;  %195 = vrot.lane.b32.xlu0 %v10707_v48, %s16280_s6  ;;  %210 = vrot.lane.b32.xlu1 %v10707_v48, %s16281_s7  ;;  %v10791_v63 = vpack.c.bf16 %v2889_v36, %v2877_v28  ;;  %v10808_v16 = vpack.c.bf16 %v2887_v47, %v2875_v1  ;;  %s9401_s6 = smov 5   ;;  %s9405_s7 = smov 1  }
 0x144   :  { %v10806_v39 = vpack.c.bf16 %v16286_v42, %v16285_v15 }
 0x145   :  { %16282 = vst [vmem:[#allocation171_spill] sm:$0xff] %v10791_v63  ;;  %v2894_v62 = vsub.f32 %v10762_v57, %v2893_v14  ;;  %v10797_v3 = vsub.f32 %v10777_v30, %v15578_v58  ;;  %7803 = vmatpush1.bf16.msra.mxu1 %v9845_v5  ;;  %v537_v43 = vpop.permute.xlu0 %536  ;;  %v10800_v37 = vpop.permute.xlu1 %538  ;;  %16288 = vst [vmem:[#allocation175_spill] sm:$0xff] %v10808_v16  ;;  %7995 = vmatpush1.bf16.msra.mxu0 %v9822_v46  ;;  %v2883_v5 = vand.u32 4294901760, %v2882_v17 }
 0x146   :  { %16284 = vst [vmem:[#allocation173_spill] sm:$0xff] %v10800_v37  ;;  %16287 = vst [vmem:[#allocation174_spill] sm:$0xff] %v10806_v39  ;;  %7805 = vmatprep.subr.bf16.mxu1 %v7804_v41  ;;  %v10814_v36 = vsel %vm542_vm15, %v537_v43, %v10800_v37  ;;  %7997 = vmatprep.subr.bf16.mxu0 %v7996_v59  ;;  %v10821_v15 = vpack.c.bf16 %v2893_v14, %v2881_v11  ;;  %v16303_v14 = vld [vmem:[#allocation62_spill] sm:$0xff]  ;;  %v16338_v37 = vld [vmem:[#allocation88_spill] sm:$0xff] }
 0x147   :  { %16283 = vst [vmem:[#allocation172_spill] sm:$0xff] %v10797_v3  ;;  %v2895_v28 = vand.u32 4294901760, %v2894_v62  ;;  %v15581_v58 = vand.u32 4294901760, %v10814_v36  ;;  %701 = vrot.lane.b32.xlu0 %v10173_v23, %s15676_s10  ;;  %703 = vrot.lane.b32.xlu1 %v10180_v51, %s15676_s10  ;;  %v10825_v46 = vsub.f32 %v10149_v27, %v10168_v35  ;;  %v2899_v11 = vand.u32 4294901760, %v10797_v3  ;;  %v16340_v39 = vld [vmem:[#allocation91_spill] sm:$0xff] }
 0x148   :  { %16289 = vst [vmem:[#allocation176_spill] sm:$0xff] %v10821_v15  ;;  %v15583_v27 = vand.u32 4294901760, %v10184_v26  ;;  %v16315_v15 = vld [vmem:[#allocation82_spill] sm:$0xff] }
 0x149   :  { %16290 = vst [vmem:[#allocation177_spill] sm:$0xff] %v10825_v46  ;;  %v10830_v17 = vsub.f32 %v10814_v36, %v15581_v58  ;;  %7807 = vmatpush1.bf16.msra.mxu1 %v9914_v53  ;;  %v10833_v1 = vpop.permute.xlu0 %285  ;;  %v10835_v47 = vpop.permute.xlu1 %300  ;;  %v10837_v62 = vpack.c.bf16 %v2895_v28, %v2883_v5  ;;  %7999 = vmatpush1.bf16.msra.mxu0 %v9890_v55  ;;  %v16305_v58 = vld [vmem:[#allocation6_spill] sm:$0xff] }
 0x14a   :  { %16292 = vst [vmem:[#allocation179_spill] sm:$0xff] %v10833_v1  ;;  %7809 = vmatprep.subr.bf16.mxu1 %v9968_v34  ;;  %8001 = vmatprep.subr.bf16.mxu0 %v9944_v49  ;;  %v10853_v49 = vand.u32 4294901760, %v10825_v46  ;;  %v2900_v41 = vsub.f32 %v10797_v3, %v2899_v11 }
 0x14b   :  { %16291 = vst [vmem:[#allocation178_spill] sm:$0xff] %v10830_v17  ;;  %16293 = vst [vmem:[#allocation180_spill] sm:$0xff] %v10837_v62  ;;  %716 = vrot.lane.b32.xlu0 %v10173_v23, %s15662_s11  ;;  %v2911_v53 = vand.u32 4294901760, %v10830_v17  ;;  %718 = vrot.lane.b32.xlu1 %v10180_v51, %s15662_s11 }
 0x14c   :  { %16294 = vst [vmem:[#allocation181_spill] sm:$0xff] %v10853_v49  ;;  %v1808_v28 = vsub.f32 %v10825_v46, %v10853_v49  ;;  %v2901_v35 = vand.u32 4294901760, %v2900_v41 }
 0x14d   :  { %7811 = vmatpush1.bf16.msra.mxu1 %v9986_v7  ;;  %v520_v55 = vpop.permute.xlu0 %519  ;;  %v535_v34 = vpop.permute.xlu1 %534  ;;  %v2912_v23 = vsub.f32 %v10830_v17, %v2911_v53  ;;  %8003 = vmatpush1.bf16.msra.mxu0 %v9961_v38  ;;  %v10868_v59 = vpack.c.bf16 %v2911_v53, %v2899_v11  ;;  %v16300_v53 = vld [vmem:[#allocation130_spill] sm:$0xff] }
 0x14e   :  { %7813 = vmatprep.subr.bf16.mxu1 %v10037_v32  ;;  %v10862_v51 = vsel %vm15579_vm14, %v520_v55, %v10765_v25  ;;  %v10866_v7 = vsel %vm542_vm15, %v535_v34, %v537_v43  ;;  %8005 = vmatprep.subr.bf16.mxu0 %v10013_v56  ;;  %vm557_vm14 = vcmp.lt.s32.totalorder %v9580_v4, 32  ;;  %v1820_v32 = vsub.f32 %v10184_v26, %v15583_v27  ;;  %v16301_v55 = vld [vmem:[#allocation128_spill] sm:$0xff] }
 0x14f   :  { %16295 = vst [vmem:[#allocation182_spill] sm:$0xff] %v10868_v59  ;;  %v15580_v42 = vand.u32 4294901760, %v10862_v51  ;;  %v15582_v5 = vand.u32 4294901760, %v10866_v7  ;;  %465 = vrot.lane.b32.xlu0 %v10707_v48, %s16296_s12  ;;  %480 = vrot.lane.b32.xlu1 %v10707_v48, %s16297_s13  ;;  %v2913_v11 = vand.u32 4294901760, %v2912_v23  ;;  %v10896_v34 = vsub.f32 %v16301_v55, %v16300_v53  ;;  %v16307_v53 = vld [vmem:[#allocation68_spill] sm:$0xff]  ;;  %v16314_v59 = vld [vmem:[#allocation70_spill] sm:$0xff] }
 0x150   :  { %v1821_v41 = vand.u32 4294901760, %v1820_v32  ;;  %s9402_s13 = smov 4   ;;  %s9406_s12 = smov 112  }
 0x151   :  { %v10884_v56 = vsub.f32 %v10862_v51, %v15580_v42  ;;  %v10889_v38 = vsub.f32 %v10866_v7, %v15582_v5  ;;  %7815 = vmatpush1.bf16.msra.mxu1 %v10050_v8  ;;  %v46_v43 = vpop.permute.xlu0 %45  ;;  %v61_v25 = vpop.permute.xlu1 %60  ;;  %16302 = vst [vmem:[#allocation128_spill] sm:$0xff] %v10896_v34  ;;  %8007 = vmatpush1.bf16.msra.mxu0 %v16303_v14  ;;  %v16304_v42 = vld [vmem:[#allocation71_spill] sm:$0xff]  ;;  %v16306_v8 = vld [vmem:[#allocation10_spill] sm:$0xff] }
 0x152   :  { %7817 = vmatprep.subr.bf16.mxu1 %v16304_v42  ;;  %v10903_v5 = vsel %vm47_vm1, %v16305_v58, %v46_v43  ;;  %v10908_v27 = vsel %vm62_vm2, %v16306_v8, %v61_v25  ;;  %8009 = vmatprep.subr.bf16.mxu0 %v16307_v53  ;;  %vm572_vm1 = vcmp.lt.s32.totalorder %v9580_v4, 31  ;;  %v16309_v8 = vld [vmem:[#allocation75_spill] sm:$0xff]  ;;  %v10934_v50 = vpack.c.bf16 %v2913_v11, %v2901_v35 }
 0x153   :  { %16298 = vst [vmem:[#allocation183_spill] sm:$0xff] %v10884_v56  ;;  %16299 = vst [vmem:[#allocation184_spill] sm:$0xff] %v10889_v38  ;;  %v2905_v23 = vand.u32 4294901760, %v10884_v56  ;;  %v2917_v55 = vand.u32 4294901760, %v10889_v38  ;;  %v15586_v42 = vand.u32 4294901760, %v10903_v5  ;;  %699 = vrot.lane.b32.xlu0 %v10239_v18, %s15676_s10  ;;  %714 = vrot.lane.b32.xlu1 %v10239_v18, %s15662_s11  ;;  %v16312_v18 = vand.u32 4294901760, %v10908_v27 }
 0x154   :  { %16311 = vst [vmem:[#allocation6_spill] sm:$0xff] %v10934_v50  ;;  %v10952_v35 = vand.u32 4294901760, %v10896_v34  ;;  %vm587_vm2 = vcmp.lt.s32.totalorder %v9580_v4, 30  ;;  %s9411_s11 = smov 107   ;;  %s9412_s10 = smov 106  }
 0x155   :  { %v2906_v43 = vsub.f32 %v10884_v56, %v2905_v23  ;;  %v2918_v25 = vsub.f32 %v10889_v38, %v2917_v55  ;;  %v10927_v53 = vsub.f32 %v10903_v5, %v15586_v42  ;;  %7819 = vmatpush1.bf16.msra.mxu1 %v16309_v8  ;;  %v10930_v14 = vpop.permute.xlu0 %551  ;;  %v10932_v58 = vpop.permute.xlu1 %553  ;;  %v10939_v32 = vsub.f32 %v10908_v27, %v16312_v18  ;;  %v16319_v56 = vld [vmem:[#allocation79_spill] sm:$0xff]  ;;  %v16324_v18 = vld [vmem:[#allocation86_spill] sm:$0xff] }
 0x156   :  { %16310 = vst [vmem:[#allocation71_spill] sm:$0xff] %v10932_v58  ;;  %8011 = vmatpush1.bf16.msra.mxu0 %v16314_v59  ;;  %7821 = vmatprep.subr.bf16.mxu1 %v16315_v15  ;;  %v10947_v8 = vsel %vm557_vm14, %v10930_v14, %v10932_v58  ;;  %v10949_v42 = vand.u32 4294901760, %v1808_v28  ;;  %16318 = vst [vmem:[#allocation70_spill] sm:$0xff] %v10952_v35  ;;  %v16326_v15 = vld [vmem:[#allocation125_spill] sm:$0xff]  ;;  %v10977_v58 = vpack.c.bf16 %v2917_v55, %v2905_v23  ;;  %v10995_v23 = vld [vmem:[%s15406_s0 + $0x8] sm:$0xff] }
 0x157   :  { %16308 = vst [vmem:[#allocation62_spill] sm:$0xff] %v10927_v53  ;;  %16313 = vst [vmem:[#allocation10_spill] sm:$0xff] %v10939_v32  ;;  %v2907_v11 = vand.u32 4294901760, %v2906_v43  ;;  %v2919_v16 = vand.u32 4294901760, %v2918_v25  ;;  %8013 = vmatprep.subr.bf16.mxu0 %v16319_v56  ;;  %v15593_v59 = vand.u32 4294901760, %v10947_v8  ;;  %225 = vrot.lane.b32.xlu0 %v10707_v48, %s16320_s15  ;;  %v16322_v43 = vand.u32 4294901760, %v10184_v26 }
 0x158   :  { %16316 = vst [vmem:[#allocation68_spill] sm:$0xff] %v10947_v8  ;;  %16317 = vst [vmem:[#allocation75_spill] sm:$0xff] %v10949_v42  ;;  %240 = vrot.lane.b32.xlu1 %v10707_v48, %s16321_s17  ;;  %v7824_v28 = vpack.c.bf16 %v1821_v41, %v10949_v42  ;;  %v1903_v17 = vand.u32 4294901760, %v16326_v15  ;;  %v16329_v41 = vld [vmem:[#allocation81_spill] sm:$0xff]  ;;  %v1916_v55 = vsub.f32 %v10896_v34, %v10952_v35  ;;  %s9407_s15 = smov 111   ;;  %s9408_s17 = smov 110  }
 0x159   :  { %v8016_v25 = vpack.c.bf16 %v16322_v43, %v10853_v49  ;;  %v10969_v56 = vsub.f32 %v10947_v8, %v15593_v59  ;;  %7823 = vmatpush1.bf16.msra.mxu1 %v16324_v18  ;;  %v567_v38 = vpop.permute.xlu0 %566  ;;  %v10972_v3 = vpop.permute.xlu1 %568  ;;  %v10975_v57 = vpack.c.bf16 %v2919_v16, %v2907_v11  ;;  %16328 = vst [vmem:[#allocation125_spill] sm:$0xff] %v10977_v58  ;;  %v16331_v59 = vand.u32 4294901760, %v10927_v53  ;;  %v11004_v11 = vld [vmem:[%s15406_s0 + $0x10] sm:$0xff]  ;;  %v16336_v58 = vld [vmem:[#allocation92_spill] sm:$0xff]  ;;  %v16375_v8 = vld [vmem:[#allocation127_spill] sm:$0xff] }
 0x15a   :  { %16325 = vst [vmem:[#allocation79_spill] sm:$0xff] %v10972_v3  ;;  %8015 = vmatpush1.bf16.msra.mxu0 %v16329_v41  ;;  %7825 = vmatprep.subr.bf16.mxu1 %v7824_v28  ;;  %v10983_v43 = vsel %vm572_vm1, %v567_v38, %v10972_v3  ;;  %v16332_v18 = vand.u32 4294901760, %v10939_v32  ;;  %v16335_v28 = vld [vmem:[#allocation96_spill] sm:$0xff]  ;;  %v16337_v3 = vld [vmem:[#allocation101_spill] sm:$0xff] }
 0x15b   :  { %16323 = vst [vmem:[#allocation82_spill] sm:$0xff] %v10969_v56  ;;  %16327 = vst [vmem:[#allocation86_spill] sm:$0xff] %v10975_v57  ;;  %8017 = vmatprep.subr.bf16.mxu0 %v8016_v25  ;;  %v15598_v16 = vand.u32 4294901760, %v10983_v43  ;;  %731 = vrot.lane.b32.xlu0 %v10995_v23, %s9401_s6  ;;  %v2923_v42 = vand.u32 4294901760, %v10969_v56  ;;  %v11031_v57 = vand.u32 4294901760, %v1916_v55 }
 0x15c   :  { %16330 = vst [vmem:[#allocation81_spill] sm:$0xff] %v10983_v43  ;;  %v10989_v49 = vpack.c.bf16 %v16332_v18, %v16331_v59  ;;  %733 = vrot.lane.b32.xlu1 %v11004_v11, %s9401_s6  ;;  %v1904_v18 = vsub.f32 %v16326_v15, %v1903_v17 }
 0x15d   :  { %v11011_v59 = vsub.f32 %v10983_v43, %v15598_v16  ;;  %7827 = vmatpush1.bf16.msra.mxu1 %v16335_v28  ;;  %v316_v25 = vpop.permute.xlu0 %315  ;;  %v331_v41 = vpop.permute.xlu1 %330  ;;  %v16342_v28 = vld [vmem:[#allocation97_spill] sm:$0xff]  ;;  %16343 = vst [vmem:[#allocation101_spill] sm:$0xff] %v11031_v57  ;;  %v2924_v62 = vsub.f32 %v10969_v56, %v2923_v42  ;;  %v16372_v43 = vand.u32 4294901760, %v10618_v0 }
 0x15e   :  { %16333 = vst [vmem:[#allocation185_spill] sm:$0xff] %v10989_v49  ;;  %8019 = vmatpush1.bf16.msra.mxu0 %v16336_v58  ;;  %7829 = vmatprep.subr.bf16.mxu1 %v16337_v3  ;;  %v11021_v49 = vsel %vm317_vm7, %v16338_v37, %v316_v25  ;;  %v11026_v16 = vsel %vm332_vm12, %v16340_v39, %v331_v41  ;;  %v16344_v41 = vld [vmem:[#allocation108_spill] sm:$0xff]  ;;  %v1905_v55 = vand.u32 4294901760, %v1904_v18  ;;  %vm15828_vm7 = vcmp.lt.s32.totalorder %v9580_v4, 26 }
 0x15f   :  { %16334 = vst [vmem:[#allocation186_spill] sm:$0xff] %v11011_v59  ;;  %16339 = vst [vmem:[#allocation96_spill] sm:$0xff] %v11021_v49  ;;  %8021 = vmatprep.subr.bf16.mxu0 %v16342_v28  ;;  %746 = vrot.lane.b32.xlu0 %v10995_v23, %s9402_s13  ;;  %v2935_v3 = vand.u32 4294901760, %v11011_v59  ;;  %v16345_v58 = vld [vmem:[#allocation104_spill] sm:$0xff]  ;;  %vm16576_vm12 = vcmp.lt.s32.totalorder %v9580_v4, 103 }
 0x160   :  { %16341 = vst [vmem:[#allocation92_spill] sm:$0xff] %v11026_v16  ;;  %748 = vrot.lane.b32.xlu1 %v11004_v11, %s9402_s13  ;;  %v16346_v37 = vld [vmem:[#allocation116_spill] sm:$0xff] }
 0x161   :  { %7831 = vmatpush1.bf16.msra.mxu1 %v16344_v41  ;;  %v550_v28 = vpop.permute.xlu0 %549  ;;  %v565_v50 = vpop.permute.xlu1 %564  ;;  %v2936_v63 = vsub.f32 %v11011_v59, %v2935_v3  ;;  %v11056_v18 = vpack.c.bf16 %v2935_v3, %v2923_v42  ;;  %v16350_v41 = vld [vmem:[#allocation112_spill] sm:$0xff]  ;;  %v16353_v3 = vand.u32 4294901760, %v11026_v16 }
 0x162   :  { %8023 = vmatpush1.bf16.msra.mxu0 %v16345_v58  ;;  %7833 = vmatprep.subr.bf16.mxu1 %v16346_v37  ;;  %v11049_v39 = vsel %vm557_vm14, %v550_v28, %v10930_v14  ;;  %v11053_v25 = vsel %vm572_vm1, %v565_v50, %v567_v38  ;;  %v11064_v37 = vld [vmem:[%s15406_s0] sm:$0xff]  ;;  %v7840_v50 = vpack.c.bf16 %v11031_v57, %v1905_v55  ;;  %v16351_v14 = vand.u32 4294901760, %v11021_v49  ;;  %v16359_v57 = vld [vmem:[#allocation120_spill] sm:$0xff]  ;;  %v16361_v55 = vld [vmem:[#allocation129_spill] sm:$0xff] }
 0x163   :  { %16347 = vst [vmem:[#allocation88_spill] sm:$0xff] %v11049_v39  ;;  %16348 = vst [vmem:[#allocation91_spill] sm:$0xff] %v11053_v25  ;;  %8025 = vmatprep.subr.bf16.mxu0 %v16350_v41  ;;  %v15605_v56 = vand.u32 4294901760, %v11049_v39  ;;  %729 = vrot.lane.b32.xlu0 %v11064_v37, %s9401_s6  ;;  %v8032_v38 = vpack.c.bf16 %v10952_v35, %v1903_v17  ;;  %v11078_v28 = vsub.f32 %v11026_v16, %v16353_v3  ;;  %v16360_v17 = vld [vmem:[#allocation115_spill] sm:$0xff]  ;;  %v16364_v16 = vld [vmem:[#allocation18_spill] sm:$0xff] }
 0x164   :  { %16349 = vst [vmem:[#allocation97_spill] sm:$0xff] %v11056_v18  ;;  %v11073_v42 = vsub.f32 %v11021_v49, %v16351_v14  ;;  %744 = vrot.lane.b32.xlu1 %v11064_v37, %s9402_s13  ;;  %v16355_v41 = vand.u32 4294901760, %v10582_v19  ;;  %v16357_v3 = vand.u32 4294901760, %v11053_v25 }
 0x165   :  { %16354 = vst [vmem:[#allocation104_spill] sm:$0xff] %v11078_v28  ;;  %v11092_v14 = vsub.f32 %v11049_v39, %v15605_v56  ;;  %7835 = vmatpush1.bf16.msra.mxu1 %v16359_v57  ;;  %v76_v18 = vpop.permute.xlu0 %75  ;;  %v91_v59 = vpop.permute.xlu1 %90  ;;  %v2925_v57 = vand.u32 4294901760, %v2924_v62 }
 0x166   :  { %16352 = vst [vmem:[#allocation108_spill] sm:$0xff] %v11073_v42  ;;  %v11085_v58 = vsub.f32 %v10582_v19, %v16355_v41  ;;  %v11097_v35 = vsub.f32 %v11053_v25, %v16357_v3  ;;  %v2937_v41 = vand.u32 4294901760, %v2936_v63  ;;  %8027 = vmatpush1.bf16.msra.mxu0 %v16360_v17  ;;  %7837 = vmatprep.subr.bf16.mxu1 %v16361_v55 }
 0x167   :  { %16356 = vst [vmem:[#allocation116_spill] sm:$0xff] %v11092_v14  ;;  %v11106_v56 = vsel %vm77_vm3, %v16362_v12, %v76_v18  ;;  %v11111_v3 = vsel %vm92_vm4, %v16364_v16, %v91_v59  ;;  %v2929_v49 = vand.u32 4294901760, %v11092_v14  ;;  %8029 = vmatprep.subr.bf16.mxu0 %v16366_v2  ;;  %761 = vrot.lane.b32.xlu0 %v10995_v23, %s9403_s19  ;;  %v16367_v59 = vand.u32 4294901760, %v10587_v22  ;;  %v16369_v12 = vld [vmem:[#allocation133_spill] sm:$0xff] }
 0x168   :  { %16358 = vst [vmem:[#allocation112_spill] sm:$0xff] %v11097_v35  ;;  %16363 = vst [vmem:[#allocation120_spill] sm:$0xff] %v11106_v56  ;;  %v2941_v63 = vand.u32 4294901760, %v11097_v35  ;;  %v15614_v55 = vand.u32 4294901760, %v11106_v56  ;;  %763 = vrot.lane.b32.xlu1 %v11004_v11, %s9403_s19  ;;  %v11141_v39 = vpack.c.bf16 %v2937_v41, %v2925_v57  ;;  %vm602_vm3 = vcmp.lt.s32.totalorder %v9580_v4, 29 }
 0x169   :  { %16365 = vst [vmem:[#allocation115_spill] sm:$0xff] %v11111_v3  ;;  %v1964_v18 = vsub.f32 %v10587_v22, %v16367_v59  ;;  %v2930_v2 = vsub.f32 %v11092_v14, %v2929_v49  ;;  %7839 = vmatpush1.bf16.msra.mxu1 %v16369_v12  ;;  %v11137_v16 = vpop.permute.xlu0 %581  ;;  %v11139_v62 = vpop.permute.xlu1 %583  ;;  %v1970_v59 = vsub.f32 %v10618_v0, %v16372_v43  ;;  %v16373_v14 = vand.u32 4294901760, %v11111_v3 }
 0x16a   :  { %v2942_v17 = vsub.f32 %v11097_v35, %v2941_v63  ;;  %v11134_v25 = vsub.f32 %v11106_v56, %v15614_v55  ;;  %16370 = vst [vmem:[#allocation15_spill] sm:$0xff] %v11139_v62  ;;  %16371 = vst [vmem:[#allocation18_spill] sm:$0xff] %v11141_v39  ;;  %8031 = vmatpush1.bf16.msra.mxu0 %v16375_v8  ;;  %7841 = vmatprep.subr.bf16.mxu1 %v7840_v50  ;;  %v16381_v8 = vld [vmem:[#allocation144_spill] sm:$0xff]  ;;  %vm15843_vm4 = vcmp.lt.s32.totalorder %v9580_v4, 28 }
 0x16b   :  { %v11149_v35 = vsub.f32 %v11111_v3, %v16373_v14  ;;  %v11156_v12 = vsel %vm587_vm2, %v11137_v16, %v11139_v62  ;;  %v2931_v41 = vand.u32 4294901760, %v2930_v2  ;;  %8033 = vmatprep.subr.bf16.mxu0 %v8032_v38  ;;  %776 = vrot.lane.b32.xlu0 %v10995_v23, %s9404_s20  ;;  %v1965_v50 = vand.u32 4294901760, %v1964_v18 }
 0x16c   :  { %16368 = vst [vmem:[#allocation129_spill] sm:$0xff] %v11134_v25  ;;  %v2943_v57 = vand.u32 4294901760, %v2942_v17  ;;  %v15618_v55 = vand.u32 4294901760, %v11156_v12  ;;  %778 = vrot.lane.b32.xlu1 %v11004_v11, %s9404_s20  ;;  %v16376_v14 = vand.u32 4294901760, %v11073_v42  ;;  %v16377_v2 = vand.u32 4294901760, %v11078_v28 }
 0x16d   :  { %16374 = vst [vmem:[#allocation124_spill] sm:$0xff] %v11149_v35  ;;  %v16379_v38 = vand.u32 4294901760, %v10616_v54  ;;  %7843 = vmatpush1.bf16.msra.mxu1 %v16381_v8  ;;  %v597_v39 = vpop.permute.xlu0 %596  ;;  %v11181_v3 = vpop.permute.xlu1 %598  ;;  %v11185_v56 = vpack.c.bf16 %v2941_v63, %v2929_v49  ;;  %v16386_v8 = vand.u32 4294901760, %v11134_v25  ;;  %v16389_v49 = vld [vmem:[#allocation150_spill] sm:$0xff] }
 0x16e   :  { %v11170_v17 = vpack.c.bf16 %v16377_v2, %v16376_v14  ;;  %v11178_v62 = vsub.f32 %v11156_v12, %v15618_v55  ;;  %16382 = vst [vmem:[#allocation144_spill] sm:$0xff] %v11181_v3  ;;  %v11183_v18 = vpack.c.bf16 %v2943_v57, %v2931_v41  ;;  %v16385_v14 = vld [vmem:[#allocation139_spill] sm:$0xff]  ;;  %7845 = vmatprep.subr.bf16.mxu1 %v10575_v45  ;;  %v16387_v55 = vand.u32 4294901760, %v11149_v35 }
 0x16f   :  { %v1958_v43 = vsub.f32 %v10616_v54, %v16379_v38  ;;  %16384 = vst [vmem:[#allocation188_spill] sm:$0xff] %v11185_v56  ;;  %8035 = vmatpush1.bf16.msra.mxu0 %v16385_v14  ;;  %v11192_v2 = vsel %vm602_vm3, %v597_v39, %v11181_v3  ;;  %v1953_v38 = vand.u32 4294901760, %v11085_v58  ;;  %v1971_v41 = vand.u32 4294901760, %v1970_v59  ;;  %759 = vrot.lane.b32.xlu0 %v11064_v37, %s9403_s19  ;;  %v16393_v3 = vld [vmem:[#allocation153_spill] sm:$0xff] }
 0x170   :  { %16378 = vst [vmem:[#allocation133_spill] sm:$0xff] %v11170_v17  ;;  %16380 = vst [vmem:[#allocation127_spill] sm:$0xff] %v11178_v62  ;;  %v11199_v17 = vpack.c.bf16 %v16387_v55, %v16386_v8  ;;  %8037 = vmatprep.subr.bf16.mxu0 %v16389_v49  ;;  %v15620_v63 = vand.u32 4294901760, %v11192_v2  ;;  %774 = vrot.lane.b32.xlu1 %v11064_v37, %s9404_s20  ;;  %v16391_v55 = vand.u32 4294901760, %v10582_v19  ;;  %v16392_v59 = vand.u32 4294901760, %v10587_v22 }
 0x171   :  { %16383 = vst [vmem:[#allocation187_spill] sm:$0xff] %v11183_v18  ;;  %v7848_v45 = vpack.c.bf16 %v1965_v50, %v1953_v38  ;;  %v1959_v57 = vand.u32 4294901760, %v1958_v43  ;;  %7847 = vmatpush1.bf16.msra.mxu1 %v10593_v40  ;;  %v346_v8 = vpop.permute.xlu0 %345  ;;  %v361_v49 = vpop.permute.xlu1 %360  ;;  %v2947_v56 = vand.u32 4294901760, %v11178_v62  ;;  %v16394_v43 = vld [vmem:[#allocation99_spill] sm:$0xff]  ;;  %v16424_v18 = vld [vmem:[#allocation12_spill] sm:$0xff] }
 0x172   :  { %16388 = vst [vmem:[#allocation139_spill] sm:$0xff] %v11199_v17  ;;  %v11210_v58 = vsub.f32 %v11192_v2, %v15620_v63  ;;  %v8040_v14 = vpack.c.bf16 %v16392_v59, %v16391_v55  ;;  %v11222_v50 = vsel %vm347_vm11, %v16394_v43, %v346_v8  ;;  %v16395_v38 = vld [vmem:[#allocation103_spill] sm:$0xff]  ;;  %v16396_v59 = vld [vmem:[#allocation140_spill] sm:$0xff]  ;;  %v16397_v63 = vld [vmem:[#allocation5_spill] sm:$0xff]  ;;  %v16398_v8 = vand.u32 4294901760, %v10616_v54 }
 0x173   :  { %8039 = vmatpush1.bf16.msra.mxu0 %v16393_v3  ;;  %7849 = vmatprep.subr.bf16.mxu1 %v7848_v45  ;;  %v11227_v40 = vsel %vm362_vm10, %v16395_v38, %v361_v49  ;;  %v7850_v55 = vpack.c.bf16 %v1971_v41, %v1959_v57  ;;  %v7852_v3 = vpack.c.bf16 %v16397_v63, %v16396_v59  ;;  %v16399_v43 = vand.u32 4294901760, %v10618_v0  ;;  %v16402_v38 = vld [vmem:[#allocation7_spill] sm:$0xff] }
 0x174   :  { %16390 = vst [vmem:[#allocation150_spill] sm:$0xff] %v11210_v58  ;;  %8041 = vmatprep.subr.bf16.mxu0 %v8040_v14  ;;  %791 = vrot.lane.b32.xlu0 %v10995_v23, %s9405_s7  ;;  %v2959_v14 = vand.u32 4294901760, %v11210_v58  ;;  %v2948_v45 = vsub.f32 %v11178_v62, %v2947_v56  ;;  %v16415_v62 = vld [vmem:[#allocation23_spill] sm:$0xff]  ;;  %vm15812_vm10 = vcmp.lt.s32.totalorder %v9580_v4, 25  ;;  %vm15738_vm11 = vcmp.lt.s32.totalorder %v9580_v4, 24 }
 0x175   :  { %793 = vrot.lane.b32.xlu1 %v11004_v11, %s9405_s7  ;;  %v8042_v49 = vpack.c.bf16 %v16399_v43, %v16398_v8  ;;  %7851 = vmatpush1.bf16.msra.mxu1 %v7850_v55  ;;  %v580_v57 = vpop.permute.xlu0 %579  ;;  %v595_v63 = vpop.permute.xlu1 %594 }
 0x176   :  { %7853 = vmatprep.subr.bf16.mxu1 %v7852_v3  ;;  %v11248_v59 = vsel %vm587_vm2, %v580_v57, %v11137_v16  ;;  %v11252_v8 = vsel %vm602_vm3, %v595_v63, %v597_v39  ;;  %v2960_v43 = vsub.f32 %v11210_v58, %v2959_v14  ;;  %v7854_v3 = vpack.c.bf16 %v9593_v9, %v10524_v60  ;;  %v16405_v39 = vld [vmem:[#allocation145_spill] sm:$0xff]  ;;  %v16417_v58 = vld [vmem:[#allocation26_spill] sm:$0xff] }
 0x177   :  { %8043 = vmatpush1.bf16.msra.mxu0 %v8042_v49  ;;  %16400 = vst [vmem:[#allocation153_spill] sm:$0xff] %v11248_v59  ;;  %16401 = vst [vmem:[#allocation99_spill] sm:$0xff] %v11252_v8  ;;  %v15622_v55 = vand.u32 4294901760, %v11248_v59  ;;  %v15624_v41 = vand.u32 4294901760, %v11252_v8  ;;  %v16403_v16 = vand.u32 4294901760, %v11222_v50  ;;  %v11270_v57 = vpack.c.bf16 %v2959_v14, %v2947_v56 }
 0x178   :  { %8045 = vmatprep.subr.bf16.mxu0 %v16402_v38  ;;  %789 = vrot.lane.b32.xlu0 %v11064_v37, %s9405_s7  ;;  %v2961_v38 = vand.u32 4294901760, %v2960_v43  ;;  %v16407_v63 = vand.u32 4294901760, %v11227_v40  ;;  %v16411_v43 = vld [vmem:[#allocation8_spill] sm:$0xff] }
 0x179   :  { %v11265_v49 = vsub.f32 %v11222_v50, %v16403_v16  ;;  %809 = vrot.lane.b32.xlu1 %v11004_v11, %s9406_s12  ;;  %1976 = vmatmul.mubr.f32.vlgmr.msra.gmra.mrb[0].mxu1 %v16405_v39  ;;  %16406 = vst [vmem:[#allocation5_spill] sm:$0xff] %v11270_v57  ;;  %v11280_v9 = vsub.f32 %v11248_v59, %v15622_v55  ;;  %v106_v56 = vpop.permute.xlu0 %105  ;;  %v121_v14 = vpop.permute.xlu1 %120  ;;  %v16412_v16 = vld [vmem:[#allocation11_spill] sm:$0xff] }
 0x17a   :  { %v11275_v37 = vsub.f32 %v11227_v40, %v16407_v63  ;;  %v11285_v60 = vsub.f32 %v11252_v8, %v15624_v41  ;;  %7855 = vmatpush1.bf16.msra.mxu1 %v7854_v3  ;;  %2585 = vmatmul.mubr.f32.vlgmr.msra.gmra.mrb[0].mxu0 %v16405_v39  ;;  %v16413_v63 = vld [vmem:[#allocation9_spill] sm:$0xff]  ;;  %v11295_v55 = vsel %vm107_vm5, %v16415_v62, %v106_v56  ;;  %v2949_v3 = vand.u32 4294901760, %v2948_v45  ;;  %v16423_v56 = vld [vmem:[#allocation14_spill] sm:$0xff] }
 0x17b   :  { %16404 = vst [vmem:[#allocation103_spill] sm:$0xff] %v11265_v49  ;;  %16409 = vst [vmem:[#allocation189_spill] sm:$0xff] %v11280_v9  ;;  %8047 = vmatpush1.bf16.msra.mxu0 %v16411_v43  ;;  %v16414_v57 = vpack.c.bf16 %v16412_v16, %v16413_v63  ;;  %v11300_v41 = vsel %vm122_vm6, %v16417_v58, %v121_v14  ;;  %v2953_v17 = vand.u32 4294901760, %v11280_v9  ;;  %v16419_v16 = vld [vmem:[#allocation13_spill] sm:$0xff]  ;;  %v15630_v62 = vand.u32 4294901760, %v11295_v55  ;;  %v16429_v63 = vld [vmem:[#allocation16_spill] sm:$0xff] }
 0x17c   :  { %16408 = vst [vmem:[#allocation7_spill] sm:$0xff] %v11275_v37  ;;  %16410 = vst [vmem:[#allocation190_spill] sm:$0xff] %v11285_v60  ;;  %v2965_v43 = vand.u32 4294901760, %v11285_v60  ;;  %8049 = vmatprep.subr.bf16.mxu0 %v16419_v16  ;;  %811 = vrot.lane.b32.xlu0 %v10707_v48, %s9406_s12  ;;  %v16420_v45 = vld [vmem:[#allocation41_spill] sm:$0xff]  ;;  %v11316_v14 = vpack.c.bf16 %v2961_v38, %v2949_v3  ;;  %v16425_v8 = vpack.c.bf16 %v16423_v56, %v16424_v18 }
 0x17d   :  { %7857 = vmatprep.subr.bf16.mxu1 %v16414_v57  ;;  %16416 = vst [vmem:[#allocation8_spill] sm:$0xff] %v11295_v55  ;;  %16418 = vst [vmem:[#allocation11_spill] sm:$0xff] %v11300_v41  ;;  %824 = vrot.lane.b32.xlu1 %v11004_v11, %s9407_s15  ;;  %v2954_v16 = vsub.f32 %v11280_v9, %v2953_v17  ;;  %v11324_v58 = vsub.f32 %v11295_v55, %v15630_v62  ;;  %v612_v59 = vpop.permute.xlu0 %611  ;;  %v11329_v39 = vpop.permute.xlu1 %613  ;;  %v16427_v38 = vand.u32 4294901760, %v11300_v41  ;;  %v16430_v9 = vld [vmem:[#allocation19_spill] sm:$0xff] }
 0x17e   :  { %2176 = vmatprep.mubr.f32.mxu1 %v16420_v45  ;;  %16421 = vst [vmem:[#allocation9_spill] sm:$0xff] %v11316_v14  ;;  %v2966_v57 = vsub.f32 %v11285_v60, %v2965_v43  ;;  %7859 = vmatpush1.bf16.msra.mxu1 %v16425_v8  ;;  %16426 = vst [vmem:[#allocation26_spill] sm:$0xff] %v11329_v39  ;;  %v16431_v60 = vld [vmem:[#allocation17_spill] sm:$0xff]  ;;  %v11344_v18 = vsel %vm15843_vm4, %v612_v59, %v11329_v39  ;;  %vm15833_vm5 = vcmp.lt.s32.totalorder %v9580_v4, 27  ;;  %v16445_v55 = vld [vmem:[#allocation27_spill] sm:$0xff] }
 0x17f   :  { %16422 = vst [vmem:[#allocation23_spill] sm:$0xff] %v11324_v58  ;;  %2720 = vmatprep.mubr.f32.mxu0 %v9870_v6  ;;  %v11335_v3 = vsub.f32 %v11300_v41, %v16427_v38  ;;  %8051 = vmatpush1.bf16.msra.mxu0 %v16429_v63  ;;  %v16432_v62 = vpack.c.bf16 %v16430_v9, %v16431_v60  ;;  %16433 = vst [vmem:[#allocation14_spill] sm:$0xff] %v11344_v18  ;;  %v2955_v8 = vand.u32 4294901760, %v2954_v16  ;;  %v16434_v45 = vld [vmem:[#allocation21_spill] sm:$0xff]  ;;  %v16444_v41 = vld [vmem:[#allocation24_spill] sm:$0xff] }
 0x180   :  { %v2967_v56 = vand.u32 4294901760, %v2966_v57  ;;  %8053 = vmatprep.subr.bf16.mxu0 %v16434_v45  ;;  %v15636_v38 = vand.u32 4294901760, %v11344_v18  ;;  %826 = vrot.lane.b32.xlu0 %v10707_v48, %s9407_s15  ;;  %v16436_v57 = vld [vmem:[#allocation22_spill] sm:$0xff]  ;;  %v16441_v39 = vand.u32 4294901760, %v11265_v49  ;;  %v16442_v9 = vand.u32 4294901760, %v11275_v37 }
 0x181   :  { %16428 = vst [vmem:[#allocation13_spill] sm:$0xff] %v11335_v3  ;;  %7861 = vmatprep.subr.bf16.mxu1 %v16432_v62  ;;  %807 = vrot.lane.b32.xlu1 %v10995_v23, %s9406_s12  ;;  %v16437_v62 = vld [vmem:[#allocation20_spill] sm:$0xff]  ;;  %v627_v45 = vpop.permute.xlu0 %626  ;;  %v11363_v16 = vpop.permute.xlu1 %628  ;;  %vm16465_vm6 = vcmp.lt.s32.totalorder %v9580_v4, 127 }
 0x182   :  { %v11358_v60 = vsub.f32 %v11344_v18, %v15636_v38  ;;  %v16438_v63 = vpack.c.bf16 %v16436_v57, %v16437_v62  ;;  %16439 = vst [vmem:[#allocation16_spill] sm:$0xff] %v11363_v16  ;;  %v11365_v14 = vpack.c.bf16 %v2967_v56, %v2955_v8  ;;  %v11371_v6 = vpack.c.bf16 %v16442_v9, %v16441_v39  ;;  %v16446_v38 = vld [vmem:[#allocation25_spill] sm:$0xff]  ;;  %v16456_v9 = vld [vmem:[#allocation28_spill] sm:$0xff] }
 0x183   :  { %8055 = vmatpush1.bf16.msra.mxu0 %v16444_v41  ;;  %v16447_v18 = vpack.c.bf16 %v16445_v55, %v16446_v38  ;;  %v11380_v57 = vsel %vm15833_vm5, %v627_v45, %v11363_v16  ;;  %v16449_v8 = vand.u32 4294901760, %v11324_v58  ;;  %v16450_v56 = vand.u32 4294901760, %v11335_v3  ;;  %v16455_v38 = vld [vmem:[#allocation30_spill] sm:$0xff]  ;;  %v16463_v16 = vld [vmem:[#allocation36_spill] sm:$0xff]  ;;  %v16521_v58 = vld [vmem:[#allocation67_spill] sm:$0xff] }
 0x184   :  { %16435 = vst [vmem:[#allocation12_spill] sm:$0xff] %v11358_v60  ;;  %7863 = vmatpush1.bf16.msra.mxu1 %v16438_v63  ;;  %16440 = vst [vmem:[#allocation19_spill] sm:$0xff] %v11365_v14  ;;  %v16452_v63 = vld [vmem:[#allocation29_spill] sm:$0xff]  ;;  %v15639_v39 = vand.u32 4294901760, %v11380_v57  ;;  %822 = vrot.lane.b32.xlu0 %v10995_v23, %s9407_s15  ;;  %v11392_v41 = vpack.c.bf16 %v2965_v43, %v2953_v17  ;;  %v7868_v55 = vpack.c.bf16 %v10644_v13, %v9818_v44  ;;  %v16458_v43 = vld [vmem:[#allocation32_spill] sm:$0xff] }
 0x185   :  { %16443 = vst [vmem:[#allocation17_spill] sm:$0xff] %v11371_v6  ;;  %7865 = vmatprep.subr.bf16.mxu1 %v16447_v18  ;;  %16448 = vst [vmem:[#allocation21_spill] sm:$0xff] %v11380_v57  ;;  %v11386_v62 = vpack.c.bf16 %v16450_v56, %v16449_v8  ;;  %8057 = vmatprep.subr.bf16.mxu0 %v16452_v63  ;;  %v16457_v8 = vpack.c.bf16 %v16455_v38, %v16456_v9  ;;  %v376_v56 = vpop.permute.xlu0 %375  ;;  %v391_v63 = vpop.permute.xlu1 %390  ;;  %v2971_v17 = vand.u32 4294901760, %v11358_v60  ;;  %v16461_v13 = vld [vmem:[#allocation114_spill] sm:$0xff] }
 0x186   :  { %16453 = vst [vmem:[#allocation20_spill] sm:$0xff] %v11392_v41  ;;  %839 = vrot.lane.b32.xlu1 %v11004_v11, %s9408_s17  ;;  %v11401_v18 = vsub.f32 %v11380_v57, %v15639_v39  ;;  %v16459_v41 = vld [vmem:[#allocation110_spill] sm:$0xff]  ;;  %v11416_v39 = vsel %vm392_vm8, %v16461_v13, %v391_v63  ;;  %v16464_v13 = vld [vmem:[#allocation3_spill] sm:$0xff]  ;;  %v16468_v63 = vld [vmem:[#allocation37_spill] sm:$0xff]  ;;  %vm16496_vm8 = vcmp.lt.s32.totalorder %v9580_v4, 80 }
 0x187   :  { %16451 = vst [vmem:[#allocation22_spill] sm:$0xff] %v11386_v62  ;;  %8059 = vmatpush1.bf16.msra.mxu0 %v16458_v43  ;;  %v11411_v44 = vsel %vm377_vm9, %v16459_v41, %v376_v56  ;;  %16462 = vst [vmem:[#allocation25_spill] sm:$0xff] %v11416_v39  ;;  %v15645_v9 = vand.u32 4294901760, %v11416_v39  ;;  %v16469_v43 = vld [vmem:[#allocation35_spill] sm:$0xff]  ;;  %v2972_v14 = vsub.f32 %v11358_v60, %v2971_v17  ;;  %vm16505_vm9 = vcmp.lt.s32.totalorder %v9580_v4, 79 }
 0x188   :  { %16454 = vst [vmem:[#allocation24_spill] sm:$0xff] %v11401_v18  ;;  %7867 = vmatpush1.bf16.msra.mxu1 %v16457_v8  ;;  %16460 = vst [vmem:[#allocation27_spill] sm:$0xff] %v11411_v44  ;;  %8061 = vmatprep.subr.bf16.mxu0 %v16463_v16  ;;  %v15642_v38 = vand.u32 4294901760, %v11411_v44  ;;  %v11432_v16 = vsel %vm16465_vm6, %v16464_v13, %v10732_v33  ;;  %v16470_v62 = vpack.c.bf16 %v16468_v63, %v16469_v43  ;;  %v16472_v13 = vld [vmem:[#allocation39_spill] sm:$0xff] }
 0x189   :  { %7869 = vmatprep.subr.bf16.mxu1 %v7868_v55  ;;  %841 = vrot.lane.b32.xlu0 %v10707_v48, %s9408_s17  ;;  %v2983_v55 = vand.u32 4294901760, %v11401_v18  ;;  %v11442_v56 = vsub.f32 %v11416_v39, %v15645_v9  ;;  %v610_v41 = vpop.permute.xlu0 %609  ;;  %v625_v6 = vpop.permute.xlu1 %624  ;;  %v11449_v33 = vand.u32 4294901760, %v11004_v11  ;;  %v16478_v43 = vld [vmem:[#allocation47_spill] sm:$0xff]  ;;  %vm16578_vm6 = vcmp.lt.s32.totalorder %v9580_v4, 102 }
 0x18a   :  { %854 = vrot.lane.b32.xlu1 %v11004_v11, %s9409_s18  ;;  %v11437_v8 = vsub.f32 %v11411_v44, %v15642_v38  ;;  %v16473_v38 = vld [vmem:[#allocation45_spill] sm:$0xff]  ;;  %v16474_v44 = vld [vmem:[#allocation42_spill] sm:$0xff]  ;;  %v11457_v9 = vsel %vm15843_vm4, %v610_v41, %v612_v59  ;;  %v16498_v39 = vld [vmem:[#allocation55_spill] sm:$0xff]  ;;  %vm15853_vm4 = vcmp.lt.s32.totalorder %v9580_v4, 108 }
 0x18b   :  { %16467 = vst [vmem:[#allocation30_spill] sm:$0xff] %v11442_v56  ;;  %16471 = vst [vmem:[#allocation28_spill] sm:$0xff] %v11449_v33  ;;  %8063 = vmatpush1.bf16.msra.mxu0 %v16472_v13  ;;  %v16475_v57 = vpack.c.bf16 %v16473_v38, %v16474_v44  ;;  %v2984_v63 = vsub.f32 %v11401_v18, %v2983_v55  ;;  %v15648_v60 = vand.u32 4294901760, %v11457_v9 }
 0x18c   :  { %16466 = vst [vmem:[#allocation29_spill] sm:$0xff] %v11437_v8  ;;  %7871 = vmatpush1.bf16.msra.mxu1 %v16470_v62  ;;  %16476 = vst [vmem:[#allocation32_spill] sm:$0xff] %v11457_v9  ;;  %v11461_v62 = vsel %vm15833_vm5, %v625_v6, %v627_v45  ;;  %8065 = vmatprep.subr.bf16.mxu0 %v16478_v43  ;;  %v11472_v44 = vpack.c.bf16 %v2983_v55, %v2971_v17  ;;  %v16482_v43 = vld [vmem:[#allocation49_spill] sm:$0xff]  ;;  %v16487_v45 = vld [vmem:[#allocation51_spill] sm:$0xff]  ;;  %vm15847_vm5 = vcmp.lt.s32.totalorder %v9580_v4, 109 }
 0x18d   :  { %7873 = vmatprep.subr.bf16.mxu1 %v16475_v57  ;;  %16477 = vst [vmem:[#allocation110_spill] sm:$0xff] %v11461_v62  ;;  %v15649_v13 = vand.u32 4294901760, %v11461_v62  ;;  %856 = vrot.lane.b32.xlu0 %v10707_v48, %s9409_s18  ;;  %v2985_v59 = vand.u32 4294901760, %v2984_v63  ;;  %v11479_v38 = vsub.f32 %v11457_v9, %v15648_v60  ;;  %v16483_v57 = vld [vmem:[#allocation46_spill] sm:$0xff]  ;;  %v11489_v17 = vpop.permute.xlu0 %135  ;;  %v11491_v55 = vpop.permute.xlu1 %150  ;;  %v11495_v63 = vsub.f32 %v11004_v11, %v11449_v33  ;;  %v16489_v6 = vld [vmem:[#allocation52_spill] sm:$0xff]  ;;  %v16497_v9 = vld [vmem:[#allocation57_spill] sm:$0xff] }
 0x18e   :  { %837 = vrot.lane.b32.xlu1 %v10995_v23, %s9408_s17  ;;  %16479 = vst [vmem:[#allocation114_spill] sm:$0xff] %v11472_v44  ;;  %v16484_v18 = vpack.c.bf16 %v16482_v43, %v16483_v57  ;;  %16485 = vst [vmem:[#allocation37_spill] sm:$0xff] %v11491_v55  ;;  %v16488_v60 = vld [vmem:[#allocation54_spill] sm:$0xff]  ;;  %v16491_v43 = vld [vmem:[#allocation56_spill] sm:$0xff]  ;;  %v16499_v3 = vpack.c.bf16 %v16497_v9, %v16498_v39 }
 0x18f   :  { %16480 = vst [vmem:[#allocation36_spill] sm:$0xff] %v11479_v38  ;;  %v11484_v41 = vsub.f32 %v11461_v62, %v15649_v13  ;;  %16486 = vst [vmem:[#allocation35_spill] sm:$0xff] %v11495_v63  ;;  %8067 = vmatpush1.bf16.msra.mxu0 %v16487_v45  ;;  %v16490_v44 = vpack.c.bf16 %v16488_v60, %v16489_v6  ;;  %v2973_v13 = vand.u32 4294901760, %v2972_v14  ;;  %v2977_v62 = vand.u32 4294901760, %v11479_v38  ;;  %v16507_v39 = vld [vmem:[#allocation63_spill] sm:$0xff] }
 0x190   :  { %7875 = vmatpush1.bf16.msra.mxu1 %v16484_v18  ;;  %8069 = vmatprep.subr.bf16.mxu0 %v16491_v43  ;;  %v16492_v45 = vand.u32 4294901760, %v11432_v16 }
 0x191   :  { %16481 = vst [vmem:[#allocation3_spill] sm:$0xff] %v11484_v41  ;;  %7877 = vmatprep.subr.bf16.mxu1 %v16490_v44  ;;  %v2989_v57 = vand.u32 4294901760, %v11484_v41  ;;  %852 = vrot.lane.b32.xlu0 %v10995_v23, %s9409_s18  ;;  %v11516_v14 = vpack.c.bf16 %v2985_v59, %v2973_v13  ;;  %v16495_v44 = vld [vmem:[#allocation77_spill] sm:$0xff]  ;;  %v2978_v43 = vsub.f32 %v11479_v38, %v2977_v62  ;;  %v11529_v55 = vpop.permute.xlu1 %643  ;;  %v16501_v13 = vand.u32 4294901760, %v11437_v8  ;;  %v16506_v38 = vld [vmem:[#allocation59_spill] sm:$0xff] }
 0x192   :  { %v11512_v60 = vsub.f32 %v11432_v16, %v16492_v45  ;;  %869 = vrot.lane.b32.xlu1 %v11004_v11, %s9410_s8  ;;  %v288_v6 = vsel %vm16496_vm8, %v16495_v44, %v10833_v1  ;;  %v11527_v45 = vpop.permute.xlu0 %641  ;;  %16500 = vst [vmem:[#allocation42_spill] sm:$0xff] %v11529_v55  ;;  %v16502_v59 = vand.u32 4294901760, %v11442_v56  ;;  %v16504_v44 = vld [vmem:[#allocation80_spill] sm:$0xff]  ;;  %v16512_v56 = vld [vmem:[#allocation65_spill] sm:$0xff]  ;;  %vm15803_vm8 = vcmp.lt.s32.totalorder %v9580_v4, 8 }
 0x193   :  { %16494 = vst [vmem:[#allocation45_spill] sm:$0xff] %v11516_v14  ;;  %v2990_v18 = vsub.f32 %v11484_v41, %v2989_v57  ;;  %v11541_v1 = vsel %vm16505_vm9, %v16504_v44, %v10835_v47  ;;  %8071 = vmatpush1.bf16.msra.mxu0 %v16506_v38  ;;  %v11551_v41 = vsel %vm15828_vm7, %v11527_v45, %v11529_v55  ;;  %v11562_v44 = vand.u32 4294901760, %v288_v6 }
 0x194   :  { %16493 = vst [vmem:[#allocation39_spill] sm:$0xff] %v11512_v60  ;;  %7879 = vmatpush1.bf16.msra.mxu1 %v16499_v3  ;;  %v11535_v14 = vpack.c.bf16 %v16502_v59, %v16501_v13  ;;  %v16508_v3 = vld [vmem:[#allocation60_spill] sm:$0xff]  ;;  %16510 = vst [vmem:[#allocation49_spill] sm:$0xff] %v11551_v41  ;;  %v11554_v13 = vand.u32 4294901760, %v11495_v63  ;;  %v2979_v59 = vand.u32 4294901760, %v2978_v43  ;;  %8073 = vmatprep.subr.bf16.mxu0 %v16512_v56  ;;  %v15668_v47 = vand.u32 4294901760, %v11551_v41 }
 0x195   :  { %v16509_v9 = vpack.c.bf16 %v16507_v39, %v16508_v3  ;;  %871 = vrot.lane.b32.xlu0 %v10707_v48, %s9410_s8  ;;  %16513 = vst [vmem:[#allocation51_spill] sm:$0xff] %v11562_v44  ;;  %v11566_v39 = vpack.c.bf16 %v2989_v57, %v2977_v62  ;;  %v16516_v43 = vld [vmem:[#allocation66_spill] sm:$0xff]  ;;  %v16517_v3 = vld [vmem:[#allocation64_spill] sm:$0xff]  ;;  %v11577_v55 = vpop.permute.xlu1 %658  ;;  %v16523_v57 = vld [vmem:[#allocation69_spill] sm:$0xff]  ;;  %vm16644_vm9 = vcmp.lt.s32.totalorder %v9580_v4, 55 }
 0x196   :  { %16503 = vst [vmem:[#allocation47_spill] sm:$0xff] %v11535_v14  ;;  %16511 = vst [vmem:[#allocation46_spill] sm:$0xff] %v11554_v13  ;;  %v2991_v14 = vand.u32 4294901760, %v2990_v18  ;;  %884 = vrot.lane.b32.xlu1 %v11004_v11, %s9411_s11  ;;  %v4964_v18 = vand.u32 4294901760, %v11541_v1  ;;  %v11572_v56 = vsub.f32 %v11551_v41, %v15668_v47  ;;  %v657_v38 = vpop.permute.xlu0 %656  ;;  %v16522_v62 = vld [vmem:[#allocation72_spill] sm:$0xff]  ;;  %v16551_v41 = vand.u32 4294901760, %v10694_v21 }
 0x197   :  { %7881 = vmatprep.subr.bf16.mxu1 %v16509_v9  ;;  %16514 = vst [vmem:[#allocation54_spill] sm:$0xff] %v11566_v39  ;;  %v16518_v9 = vpack.c.bf16 %v16516_v43, %v16517_v3  ;;  %16519 = vst [vmem:[#allocation56_spill] sm:$0xff] %v11577_v55  ;;  %8075 = vmatpush1.bf16.msra.mxu0 %v16521_v58  ;;  %v16524_v39 = vpack.c.bf16 %v16522_v62, %v16523_v57  ;;  %v16526_v3 = vld [vmem:[#allocation74_spill] sm:$0xff]  ;;  %v16527_v58 = vand.u32 4294901760, %v10723_v10 }
 0x198   :  { %16515 = vst [vmem:[#allocation52_spill] sm:$0xff] %v11572_v56  ;;  %v11579_v8 = vpack.c.bf16 %v2991_v14, %v2979_v59  ;;  %v11588_v47 = vsel %vm15812_vm10, %v657_v38, %v11577_v55  ;;  %v3128_v43 = vsub.f32 %v11495_v63, %v11554_v13  ;;  %8077 = vmatprep.subr.bf16.mxu0 %v16526_v3  ;;  %v16528_v59 = vand.u32 4294901760, %v11512_v60  ;;  %v16533_v55 = vld [vmem:[#allocation73_spill] sm:$0xff] }
 0x199   :  { %7883 = vmatpush1.bf16.msra.mxu1 %v16518_v9  ;;  %16525 = vst [vmem:[#allocation57_spill] sm:$0xff] %v11588_v47  ;;  %v15675_v9 = vand.u32 4294901760, %v11588_v47  ;;  %886 = vrot.lane.b32.xlu0 %v10707_v48, %s9411_s11  ;;  %v5141_v14 = vsub.f32 %v10723_v10, %v16527_v58  ;;  %v11603_v62 = vsub.f32 %v288_v6, %v11562_v44  ;;  %v16532_v58 = vld [vmem:[#allocation76_spill] sm:$0xff]  ;;  %v16536_v13 = vand.u32 4294901760, %v10738_v61 }
 0x19a   :  { %16520 = vst [vmem:[#allocation77_spill] sm:$0xff] %v11579_v8  ;;  %7885 = vmatprep.subr.bf16.mxu1 %v16524_v39  ;;  %v5029_v39 = vsub.f32 %v11512_v60, %v16528_v59  ;;  %867 = vrot.lane.b32.xlu1 %v10995_v23, %s9410_s8  ;;  %v7888_v57 = vpack.c.bf16 %v10184_v26, %v10825_v46  ;;  %v11620_v6 = vpop.permute.xlu0 %405  ;;  %v11622_v8 = vpop.permute.xlu1 %420  ;;  %v16537_v46 = vld [vmem:[#allocation78_spill] sm:$0xff]  ;;  %v16539_v60 = vld [vmem:[#allocation85_spill] sm:$0xff]  ;;  %v16558_v21 = vand.u32 4294901760, %v11432_v16  ;;  %v16561_v16 = vand.u32 4294901760, %v10777_v30 }
 0x19b   :  { %16529 = vst [vmem:[#allocation55_spill] sm:$0xff] %v11603_v62  ;;  %v11610_v3 = vsub.f32 %v11541_v1, %v4964_v18  ;;  %v11615_v48 = vsub.f32 %v11588_v47, %v15675_v9  ;;  %v16534_v59 = vpack.c.bf16 %v16532_v58, %v16533_v55  ;;  %16535 = vst [vmem:[#allocation63_spill] sm:$0xff] %v11622_v8  ;;  %8079 = vmatpush1.bf16.msra.mxu0 %v16537_v46  ;;  %v16548_v55 = vld [vmem:[#allocation84_spill] sm:$0xff] }
 0x19c   :  { %v5134_v26 = vsub.f32 %v10738_v61, %v16536_v13  ;;  %v11628_v1 = vand.u32 4294901760, %v3128_v43  ;;  %8081 = vmatprep.subr.bf16.mxu0 %v16539_v60  ;;  %v16540_v58 = vand.u32 4294901760, %v10630_v31  ;;  %v5142_v13 = vand.u32 4294901760, %v5141_v14 }
 0x19d   :  { %16530 = vst [vmem:[#allocation80_spill] sm:$0xff] %v11610_v3  ;;  %16531 = vst [vmem:[#allocation59_spill] sm:$0xff] %v11615_v48  ;;  %7887 = vmatpush1.bf16.msra.mxu1 %v16534_v59  ;;  %882 = vrot.lane.b32.xlu0 %v10995_v23, %s9411_s11  ;;  %v16541_v59 = vand.u32 4294901760, %v10661_v29  ;;  %v3007_v46 = vand.u32 4294901760, %v11615_v48  ;;  %v11645_v60 = vand.u32 4294901760, %v11603_v62  ;;  %v2995_v43 = vand.u32 4294901760, %v11572_v56 }
 0x19e   :  { %7889 = vmatprep.subr.bf16.mxu1 %v7888_v57  ;;  %16538 = vst [vmem:[#allocation60_spill] sm:$0xff] %v11628_v1  ;;  %v5030_v57 = vand.u32 4294901760, %v5029_v39  ;;  %899 = vrot.lane.b32.xlu1 %v11004_v11, %s9412_s10  ;;  %v16544_v29 = vand.u32 4294901760, %v10699_v52  ;;  %v15690_v39 = vand.u32 4294901760, %v11610_v3  ;;  %v640_v10 = vpop.permute.xlu0 %639  ;;  %v655_v61 = vpop.permute.xlu1 %654  ;;  %v16550_v47 = vand.u32 4294901760, %v10667_v24  ;;  %v16553_v52 = vld [vmem:[#allocation89_spill] sm:$0xff] }
 0x19f   :  { %v11639_v9 = vpack.c.bf16 %v16541_v59, %v16540_v58  ;;  %16543 = vst [vmem:[#allocation66_spill] sm:$0xff] %v11645_v60  ;;  %v16545_v58 = vand.u32 4294901760, %v10745_v20  ;;  %v16547_v59 = vld [vmem:[#allocation87_spill] sm:$0xff]  ;;  %v5135_v31 = vand.u32 4294901760, %v5134_v26  ;;  %8083 = vmatpush1.bf16.msra.mxu0 %v16553_v52  ;;  %v16554_v20 = vld [vmem:[#allocation93_spill] sm:$0xff]  ;;  %v11680_v24 = vpack.c.bf16 %v3007_v46, %v2995_v43 }
 0x1a0   :  { %v16549_v63 = vpack.c.bf16 %v16547_v59, %v16548_v55  ;;  %v11664_v8 = vpack.c.bf16 %v16551_v41, %v16550_v47  ;;  %v11673_v55 = vsel %vm15828_vm7, %v640_v10, %v11527_v45  ;;  %v11685_v41 = vpack.c.bf16 %v16558_v21, %v11449_v33  ;;  %v16560_v47 = vld [vmem:[#allocation95_spill] sm:$0xff] }
 0x1a1   :  { %16542 = vst [vmem:[#allocation65_spill] sm:$0xff] %v11639_v9  ;;  %v11654_v14 = vpack.c.bf16 %v16545_v58, %v16544_v29  ;;  %v16555_v29 = vld [vmem:[#allocation90_spill] sm:$0xff]  ;;  %16557 = vst [vmem:[#allocation72_spill] sm:$0xff] %v11680_v24  ;;  %8085 = vmatprep.subr.bf16.mxu0 %v16560_v47  ;;  %v15687_v26 = vand.u32 4294901760, %v11673_v55  ;;  %v11697_v45 = vpack.c.bf16 %v5142_v13, %v5135_v31  ;;  %v16592_v33 = vld [vmem:[#allocation119_spill] sm:$0xff]  ;;  %vm845_vm7 = vcmp.lt.s32.totalorder %v9580_v4, 110 }
 0x1a2   :  { %7891 = vmatpush1.bf16.msra.mxu1 %v16549_v63  ;;  %16552 = vst [vmem:[#allocation67_spill] sm:$0xff] %v11664_v8  ;;  %v16556_v58 = vpack.c.bf16 %v16554_v20, %v16555_v29  ;;  %v11677_v63 = vsel %vm15812_vm10, %v655_v61, %v657_v38  ;;  %16559 = vst [vmem:[#allocation69_spill] sm:$0xff] %v11685_v41  ;;  %v11693_v61 = vld [vmem:[%s15406_s0 + $0x18] sm:$0xff]  ;;  %914 = vrot.lane.b32.xlu1 %v11004_v11, %s9413_s27  ;;  %v16562_v38 = vand.u32 4294901760, %v10814_v36 }
 0x1a3   :  { %16546 = vst [vmem:[#allocation64_spill] sm:$0xff] %v11654_v14  ;;  %v15689_v10 = vand.u32 4294901760, %v11677_v63  ;;  %901 = vrot.lane.b32.xlu0 %v11693_v61, %s9412_s10  ;;  %v11708_v52 = vpack.c.bf16 %v4964_v18, %v11562_v44  ;;  %v11711_v20 = vpack.c.bf16 %v5030_v57, %v11628_v1  ;;  %v4214_v13 = vsub.f32 %v11603_v62, %v11645_v60  ;;  %v16568_v36 = vld [vmem:[#allocation98_spill] sm:$0xff]  ;;  %v181_v57 = vpop.permute.xlu1 %180 }
 0x1a4   :  { %7893 = vmatprep.subr.bf16.mxu1 %v16556_v58  ;;  %v11705_v59 = vpack.c.bf16 %v16562_v38, %v16561_v16  ;;  %v11718_v31 = vsub.f32 %v11673_v55, %v15687_v26  ;;  %v16569_v29 = vld [vmem:[#allocation94_spill] sm:$0xff]  ;;  %v166_v58 = vpop.permute.xlu0 %165  ;;  %v5155_v21 = vsub.f32 %v11610_v3, %v15690_v39  ;;  %v3008_v47 = vsub.f32 %v11615_v48, %v3007_v46  ;;  %v16571_v16 = vld [vmem:[#allocation100_spill] sm:$0xff]  ;;  %v16572_v38 = vld [vmem:[#allocation105_spill] sm:$0xff] }
 0x1a5   :  { %16564 = vst [vmem:[#allocation76_spill] sm:$0xff] %v11708_v52  ;;  %16565 = vst [vmem:[#allocation73_spill] sm:$0xff] %v11711_v20  ;;  %v11723_v30 = vsub.f32 %v11677_v63, %v15689_v10  ;;  %v16570_v18 = vpack.c.bf16 %v16568_v36, %v16569_v29  ;;  %8087 = vmatpush1.bf16.msra.mxu0 %v16571_v16  ;;  %v16573_v26 = vld [vmem:[#allocation102_spill] sm:$0xff]  ;;  %v16577_v36 = vld [vmem:[#allocation43_spill] sm:$0xff]  ;;  %v2996_v46 = vsub.f32 %v11572_v56, %v2995_v43 }
 0x1a6   :  { %16563 = vst [vmem:[#allocation74_spill] sm:$0xff] %v11705_v59  ;;  %16566 = vst [vmem:[#allocation78_spill] sm:$0xff] %v11718_v31  ;;  %v16574_v44 = vpack.c.bf16 %v16572_v38, %v16573_v26  ;;  %v16575_v10 = vld [vmem:[#allocation38_spill] sm:$0xff]  ;;  %v11744_v29 = vsel %vm16578_vm6, %v16577_v36, %v181_v57  ;;  %v16579_v26 = vld [vmem:[#allocation107_spill] sm:$0xff]  ;;  %v16581_v43 = vand.u32 4294901760, %v10939_v32  ;;  %897 = vrot.lane.b32.xlu1 %v10995_v23, %s9412_s10  ;;  %v3009_v60 = vand.u32 4294901760, %v3008_v47 }
 0x1a7   :  { %16567 = vst [vmem:[#allocation85_spill] sm:$0xff] %v11723_v30  ;;  %7895 = vmatpush1.bf16.msra.mxu1 %v16570_v18  ;;  %v11739_v24 = vsel %vm16576_vm12, %v16575_v10, %v166_v58  ;;  %v15696_v18 = vand.u32 4294901760, %v11718_v31  ;;  %v15698_v16 = vand.u32 4294901760, %v11723_v30  ;;  %8089 = vmatprep.subr.bf16.mxu0 %v16579_v26  ;;  %v16580_v58 = vand.u32 4294901760, %v10927_v53  ;;  %v1188_v26 = vld [vmem:[%s15407_s1 + $0x18] sm:$0xff]  ;;  %v16583_v36 = vld [vmem:[#allocation109_spill] sm:$0xff]  ;;  %v11786_v1 = vpop.permute.xlu1 %673 }
 0x1a8   :  { %7897 = vmatprep.subr.bf16.mxu1 %v16574_v44  ;;  %v15702_v10 = vand.u32 4294901760, %v11739_v24  ;;  %916 = vrot.lane.b32.xlu0 %v11693_v61, %s9413_s27  ;;  %v5043_v38 = vsub.f32 %v10939_v32, %v16581_v43  ;;  %v11765_v44 = vand.u32 4294901760, %v4214_v13  ;;  %v16584_v13 = vld [vmem:[#allocation106_spill] sm:$0xff]  ;;  %v11784_v48 = vpop.permute.xlu0 %671  ;;  %16586 = vst [vmem:[#allocation84_spill] sm:$0xff] %v11786_v1  ;;  %v16590_v3 = vld [vmem:[#allocation113_spill] sm:$0xff]  ;;  %vm16646_vm12 = vcmp.lt.s32.totalorder %v9580_v4, 54 }
 0x1a9   :  { %v5036_v57 = vsub.f32 %v10927_v53, %v16580_v58  ;;  %v3002_v39 = vsub.f32 %v11718_v31, %v15696_v18  ;;  %v3014_v58 = vsub.f32 %v11723_v30, %v15698_v16  ;;  %v16585_v56 = vpack.c.bf16 %v16583_v36, %v16584_v13  ;;  %v16588_v16 = vld [vmem:[#allocation111_spill] sm:$0xff]  ;;  %v16589_v53 = vld [vmem:[#allocation117_spill] sm:$0xff] }
 0x1aa   :  { %16582 = vst [vmem:[#allocation87_spill] sm:$0xff] %v11765_v44  ;;  %v11779_v43 = vsub.f32 %v11739_v24, %v15702_v10  ;;  %v16587_v18 = vand.u32 4294901760, %v11744_v29  ;;  %8091 = vmatpush1.bf16.msra.mxu0 %v16588_v16  ;;  %v16591_v10 = vpack.c.bf16 %v16589_v53, %v16590_v3  ;;  %v5156_v36 = vand.u32 4294901760, %v5155_v21  ;;  %935 = vrot.lane.b32.xlu1 %v11004_v11, %s9414_s26 }
 0x1ab   :  { %7899 = vmatpush1.bf16.msra.mxu1 %v16585_v56  ;;  %v11801_v56 = vsel %vm15738_vm11, %v11784_v48, %v11786_v1  ;;  %v2997_v13 = vand.u32 4294901760, %v2996_v46  ;;  %v3003_v47 = vand.u32 4294901760, %v3002_v39  ;;  %v3015_v62 = vand.u32 4294901760, %v3014_v58  ;;  %8093 = vmatprep.subr.bf16.mxu0 %v16592_v33  ;;  %v16601_v1 = vld [vmem:[#allocation121_spill] sm:$0xff]  ;;  %v11833_v20 = vpop.permute.xlu1 %688 }
 0x1ac   :  { %v11791_v32 = vsub.f32 %v11744_v29, %v16587_v18  ;;  %7901 = vmatprep.subr.bf16.mxu1 %v16591_v10  ;;  %v15707_v18 = vand.u32 4294901760, %v11801_v56  ;;  %912 = vrot.lane.b32.xlu0 %v10995_v23, %s9413_s27  ;;  %v11807_v16 = vand.u32 4294901760, %v1188_v26  ;;  %v5037_v53 = vand.u32 4294901760, %v5036_v57  ;;  %v16602_v10 = vld [vmem:[#allocation118_spill] sm:$0xff]  ;;  %16604 = vst [vmem:[#allocation98_spill] sm:$0xff] %v11833_v20 }
 0x1ad   :  { %v5044_v3 = vand.u32 4294901760, %v5043_v38  ;;  %v16594_v39 = vand.u32 4294901760, %v10862_v51  ;;  %v16595_v33 = vand.u32 4294901760, %v10866_v7  ;;  %v16597_v46 = vand.u32 4294901760, %v10903_v5  ;;  %v687_v51 = vpop.permute.xlu0 %686 }
 0x1ae   :  { %16593 = vst [vmem:[#allocation89_spill] sm:$0xff] %v11807_v16  ;;  %v16598_v58 = vand.u32 4294901760, %v10908_v27  ;;  %v11828_v38 = vsub.f32 %v11801_v56, %v15707_v18  ;;  %v16603_v11 = vpack.c.bf16 %v16601_v1, %v16602_v10  ;;  %v11835_v7 = vpack.c.bf16 %v3009_v60, %v2997_v13  ;;  %v16610_v60 = vld [vmem:[#allocation132_spill] sm:$0xff]  ;;  %933 = vrot.lane.b32.xlu1 %v10995_v23, %s9414_s26 }
 0x1af   :  { %v11817_v21 = vpack.c.bf16 %v16595_v33, %v16594_v39  ;;  %v16606_v39 = vld [vmem:[#allocation123_spill] sm:$0xff]  ;;  %v16607_v27 = vpack.c.bf16 %v10896_v34, %v16326_v15  ;;  %v11844_v5 = vsel %vm15803_vm8, %v687_v51, %v11833_v20  ;;  %v16608_v33 = vand.u32 4294901760, %v11073_v42  ;;  %v16622_v34 = vld [vmem:[#allocation88_spill] sm:$0xff] }
 0x1b0   :  { %v11823_v57 = vpack.c.bf16 %v16598_v58, %v16597_v46  ;;  %16600 = vst [vmem:[#allocation95_spill] sm:$0xff] %v11828_v38  ;;  %7903 = vmatpush1.bf16.msra.mxu1 %v16603_v11  ;;  %16605 = vst [vmem:[#allocation94_spill] sm:$0xff] %v11835_v7  ;;  %8095 = vmatpush1.bf16.msra.mxu0 %v16606_v39  ;;  %v11851_v10 = vpack.c.bf16 %v3015_v62, %v3003_v47  ;;  %v3019_v58 = vand.u32 4294901760, %v11828_v38  ;;  %v16612_v62 = vld [vmem:[#allocation68_spill] sm:$0xff]  ;;  %v16614_v11 = vld [vmem:[#allocation81_spill] sm:$0xff] }
 0x1b1   :  { %16596 = vst [vmem:[#allocation93_spill] sm:$0xff] %v11817_v21  ;;  %7905 = vmatprep.subr.bf16.mxu1 %v16607_v27  ;;  %v11849_v1 = vsub.f32 %v11073_v42, %v16608_v33  ;;  %8097 = vmatprep.subr.bf16.mxu0 %v16610_v60  ;;  %v11858_v15 = vpack.c.bf16 %v5156_v36, %v11765_v44  ;;  %v16613_v47 = vand.u32 4294901760, %v16612_v62  ;;  %v16615_v39 = vand.u32 4294901760, %v16614_v11  ;;  %v16624_v44 = vld [vmem:[#allocation91_spill] sm:$0xff] }
 0x1b2   :  { %16599 = vst [vmem:[#allocation90_spill] sm:$0xff] %v11823_v57  ;;  %16609 = vst [vmem:[#allocation100_spill] sm:$0xff] %v11851_v10  ;;  %937 = vrot.lane.b32.xlu0 %v11693_v61, %s9414_s26  ;;  %v11861_v46 = vsub.f32 %v1188_v26, %v11807_v16  ;;  %v11872_v33 = vpack.c.bf16 %v5044_v3, %v5037_v53  ;;  %v16618_v60 = vand.u32 4294901760, %v11078_v28  ;;  %v16619_v26 = vand.u32 4294901760, %v11779_v43  ;;  %v16639_v16 = vld [vmem:[#allocation136_spill] sm:$0xff] }
 0x1b3   :  { %v11870_v27 = vpack.c.bf16 %v16615_v39, %v16613_v47  ;;  %v16620_v18 = vand.u32 4294901760, %v11791_v32  ;;  %v16623_v23 = vand.u32 4294901760, %v16622_v34  ;;  %v16625_v62 = vand.u32 4294901760, %v16624_v44  ;;  %v16630_v39 = vld [vmem:[#allocation134_spill] sm:$0xff]  ;;  %v16633_v34 = vld [vmem:[#allocation96_spill] sm:$0xff]  ;;  %750 = vrot.lane.b32.xlu1 %v11693_v61, %s9402_s13  ;;  %s9421_s13 = smov 82  }
 0x1b4   :  { %16611 = vst [vmem:[#allocation105_spill] sm:$0xff] %v11861_v46  ;;  %16617 = vst [vmem:[#allocation38_spill] sm:$0xff] %v11872_v33  ;;  %v5169_v36 = vsub.f32 %v11078_v28, %v16618_v60  ;;  %v16627_v47 = vand.u32 4294901760, %v11134_v25  ;;  %v16628_v3 = vand.u32 4294901760, %v11844_v5  ;;  %v16631_v60 = vld [vmem:[#allocation131_spill] sm:$0xff]  ;;  %v16635_v44 = vld [vmem:[#allocation92_spill] sm:$0xff]  ;;  %8099 = vmatpush1.bf16.msra.mxu0 %v16639_v16 }
 0x1b5   :  { %16616 = vst [vmem:[#allocation102_spill] sm:$0xff] %v11870_v27  ;;  %v11881_v13 = vpack.c.bf16 %v16620_v18, %v16619_v26  ;;  %v11887_v20 = vpack.c.bf16 %v16625_v62, %v16623_v23  ;;  %v16632_v10 = vpack.c.bf16 %v16630_v39, %v16631_v60  ;;  %v436_v18 = vpop.permute.xlu0 %435  ;;  %v451_v26 = vpop.permute.xlu1 %450  ;;  %v16636_v23 = vand.u32 4294901760, %v16635_v44  ;;  %v16643_v39 = vld [vmem:[#allocation135_spill] sm:$0xff]  ;;  %v16645_v60 = vld [vmem:[#allocation138_spill] sm:$0xff] }
 0x1b6   :  { %v5050_v53 = vsub.f32 %v11134_v25, %v16627_v47  ;;  %v11895_v11 = vsub.f32 %v11844_v5, %v16628_v3  ;;  %v16638_v7 = vand.u32 4294901760, %v11149_v35  ;;  %v16640_v3 = vld [vmem:[#allocation141_spill] sm:$0xff]  ;;  %v16647_v44 = vld [vmem:[#allocation143_spill] sm:$0xff]  ;;  %735 = vrot.lane.b32.xlu0 %v11693_v61, %s9401_s6  ;;  %vm16674_vm6 = vcmp.lt.s32.totalorder %v9580_v4, 101  ;;  %s9420_s6 = smov 83  }
 0x1b7   :  { %16621 = vst [vmem:[#allocation43_spill] sm:$0xff] %v11881_v13  ;;  %16626 = vst [vmem:[#allocation107_spill] sm:$0xff] %v11887_v20  ;;  %7907 = vmatpush1.bf16.msra.mxu1 %v16632_v10  ;;  %v16634_v13 = vand.u32 4294901760, %v16633_v34  ;;  %v16641_v25 = vld [vmem:[#allocation137_spill] sm:$0xff]  ;;  %v11916_v10 = vsel %vm16644_vm9, %v16643_v39, %v436_v18  ;;  %v5163_v34 = vand.u32 4294901760, %v11849_v1  ;;  %8101 = vmatprep.subr.bf16.mxu0 %v16647_v44  ;;  %v5170_v18 = vand.u32 4294901760, %v5169_v36 }
 0x1b8   :  { %16629 = vst [vmem:[#allocation109_spill] sm:$0xff] %v11895_v11  ;;  %v5057_v47 = vsub.f32 %v11149_v35, %v16638_v7  ;;  %v16642_v28 = vpack.c.bf16 %v16640_v3, %v16641_v25  ;;  %v11930_v25 = vand.u32 4294901760, %v11861_v46  ;;  %v3031_v1 = vand.u32 4294901760, %v11895_v11  ;;  %v16652_v44 = vld [vmem:[#allocation120_spill] sm:$0xff]  ;;  %v16654_v16 = vld [vmem:[#allocation115_spill] sm:$0xff]  ;;  %510 = vrot.lane.b32.xlu1 %v11693_v61, %s9386_s30  ;;  %s9426_s30 = smov 61  }
 0x1b9   :  { %v11904_v62 = vpack.c.bf16 %v16636_v23, %v16634_v13  ;;  %v11921_v13 = vsel %vm16646_vm12, %v16645_v60, %v451_v26  ;;  %v16649_v23 = vand.u32 4294901760, %v11718_v31  ;;  %v16650_v3 = vand.u32 4294901760, %v11723_v30  ;;  %v16659_v31 = vld [vmem:[#allocation146_spill] sm:$0xff] }
 0x1ba   :  { %7909 = vmatprep.subr.bf16.mxu1 %v16642_v28  ;;  %16648 = vst [vmem:[#allocation111_spill] sm:$0xff] %v11930_v25  ;;  %v3020_v28 = vsub.f32 %v11828_v38, %v3019_v58  ;;  %v5051_v60 = vand.u32 4294901760, %v5050_v53  ;;  %v16653_v7 = vand.u32 4294901760, %v16652_v44  ;;  %v16655_v35 = vand.u32 4294901760, %v16654_v16  ;;  %v670_v53 = vpop.permute.xlu0 %669  ;;  %v685_v44 = vpop.permute.xlu1 %684  ;;  %v16662_v16 = vld [vmem:[#allocation148_spill] sm:$0xff]  ;;  %495 = vrot.lane.b32.xlu0 %v11693_v61, %s9385_s29  ;;  %s9425_s29 = smov 62  }
 0x1bb   :  { %16637 = vst [vmem:[#allocation106_spill] sm:$0xff] %v11904_v62  ;;  %v11942_v39 = vpack.c.bf16 %v16650_v3, %v16649_v23  ;;  %v16657_v36 = vand.u32 4294901760, %v11916_v10  ;;  %v16658_v26 = vand.u32 4294901760, %v11921_v13  ;;  %v16660_v23 = vld [vmem:[#allocation142_spill] sm:$0xff]  ;;  %8103 = vmatpush1.bf16.msra.mxu0 %v16662_v16  ;;  %vm15778_vm9 = vcmp.lt.s32.totalorder %v9580_v4, 7 }
 0x1bc   :  { %v11948_v42 = vpack.c.bf16 %v16655_v35, %v16653_v7  ;;  %v16661_v3 = vpack.c.bf16 %v16659_v31, %v16660_v23  ;;  %v16663_v35 = vpack.c.bf16 %v10587_v22, %v10582_v19  ;;  %v11970_v7 = vsel %vm15738_vm11, %v670_v53, %v11784_v48  ;;  %780 = vrot.lane.b32.xlu1 %v11693_v61, %s9404_s20 }
 0x1bd   :  { %16651 = vst [vmem:[#allocation117_spill] sm:$0xff] %v11942_v39  ;;  %v11953_v33 = vsub.f32 %v11916_v10, %v16657_v36  ;;  %v11958_v38 = vsub.f32 %v11921_v13, %v16658_v26  ;;  %v5058_v39 = vand.u32 4294901760, %v5057_v47  ;;  %v11974_v26 = vsel %vm15803_vm8, %v685_v44, %v687_v51  ;;  %v16664_v36 = vld [vmem:[#allocation155_spill] sm:$0xff]  ;;  %v16673_v51 = vld [vmem:[#allocation50_spill] sm:$0xff] }
 0x1be   :  { %16656 = vst [vmem:[#allocation113_spill] sm:$0xff] %v11948_v42  ;;  %7911 = vmatpush1.bf16.msra.mxu1 %v16661_v3  ;;  %v3032_v31 = vsub.f32 %v11895_v11, %v3031_v1  ;;  %8105 = vmatprep.subr.bf16.mxu0 %v16664_v36  ;;  %v15719_v47 = vand.u32 4294901760, %v11970_v7  ;;  %v15720_v23 = vand.u32 4294901760, %v11974_v26  ;;  %v2859_v22 = vsub.f32 %v11861_v46, %v11930_v25 }
 0x1bf   :  { %7913 = vmatprep.subr.bf16.mxu1 %v16663_v35  ;;  %v3021_v19 = vand.u32 4294901760, %v3020_v28  ;;  %v15721_v48 = vand.u32 4294901760, %v11953_v33  ;;  %v11988_v53 = vpack.c.bf16 %v3031_v1, %v3019_v58  ;;  %v16668_v28 = vpack.c.bf16 %v10618_v0, %v10616_v54  ;;  %v196_v35 = vpop.permute.xlu0 %195  ;;  %v211_v54 = vpop.permute.xlu1 %210  ;;  %765 = vrot.lane.b32.xlu0 %v11693_v61, %s9403_s19 }
 0x1c0   :  { %v3033_v3 = vand.u32 4294901760, %v3032_v31  ;;  %v11993_v44 = vsub.f32 %v11970_v7, %v15719_v47  ;;  %v11998_v16 = vsub.f32 %v11974_v26, %v15720_v23  ;;  %v16669_v36 = vand.u32 4294901760, %v11156_v12  ;;  %v16672_v47 = vld [vmem:[#allocation158_spill] sm:$0xff]  ;;  %540 = vrot.lane.b32.xlu1 %v11693_v61, %s9388_s4  ;;  %s16845_s4 = smov 7  }
 0x1c1   :  { %16665 = vst [vmem:[#allocation119_spill] sm:$0xff] %v11988_v53  ;;  %v16670_v58 = vand.u32 4294901760, %v11192_v2  ;;  %v12009_v31 = vpack.c.bf16 %v5170_v18, %v5163_v34  ;;  %8107 = vmatpush1.bf16.msra.mxu0 %v16672_v47  ;;  %v12016_v23 = vsel %vm16674_vm6, %v16673_v51, %v196_v35  ;;  %v12019_v0 = vpack.c.bf16 %v5058_v39, %v5051_v60  ;;  %v16676_v51 = vld [vmem:[#allocation53_spill] sm:$0xff]  ;;  %v16678_v60 = vld [vmem:[#allocation151_spill] sm:$0xff] }
 0x1c2   :  { %16666 = vst [vmem:[#allocation121_spill] sm:$0xff] %v11993_v44  ;;  %16667 = vst [vmem:[#allocation118_spill] sm:$0xff] %v11998_v16  ;;  %7915 = vmatpush1.bf16.msra.mxu1 %v16668_v28  ;;  %v12021_v12 = vpack.c.bf16 %v3033_v3, %v3021_v19  ;;  %v3025_v2 = vand.u32 4294901760, %v11993_v44  ;;  %v3037_v34 = vand.u32 4294901760, %v11998_v16  ;;  %8109 = vmatprep.subr.bf16.mxu0 %v11639_v9  ;;  %v15722_v47 = vand.u32 4294901760, %v12016_v23  ;;  %v16688_v18 = vld [vmem:[#allocation99_spill] sm:$0xff] }
 0x1c3   :  { %v12007_v1 = vpack.c.bf16 %v16670_v58, %v16669_v36  ;;  %8685 = vmatprep.subr.bf16.mxu1 %v11664_v8  ;;  %vm16677_vm12 = vcmp.lt.s32.totalorder %v9580_v4, 100  ;;  %v16679_v19 = vand.u32 4294901760, %v11222_v50  ;;  %v16680_v3 = vand.u32 4294901760, %v11227_v40  ;;  %525 = vrot.lane.b32.xlu0 %v11693_v61, %s9387_s16  ;;  %s16837_s16 = smov 104  }
 0x1c4   :  { %16675 = vst [vmem:[#allocation132_spill] sm:$0xff] %v12021_v12  ;;  %v12034_v39 = vsel %vm16677_vm12, %v16676_v51, %v211_v54  ;;  %v12045_v35 = vand.u32 4294901760, %v2859_v22  ;;  %v16683_v36 = vand.u32 4294901760, %v11958_v38  ;;  %v3026_v54 = vsub.f32 %v11993_v44, %v3025_v2  ;;  %v12063_v22 = vpop.permute.xlu0 %701  ;;  %555 = vrot.lane.b32.xlu1 %v11693_v61, %s9389_s5  ;;  %s16851_s5 = smov 6  }
 0x1c5   :  { %16671 = vst [vmem:[#allocation123_spill] sm:$0xff] %v12007_v1  ;;  %2179 = vmatmul.mubr.f32.vlgmr.msra.gmra.mrb[0].mxu1 %v16678_v60  ;;  %v12043_v28 = vpack.c.bf16 %v16680_v3, %v16679_v19  ;;  %v3038_v51 = vsub.f32 %v11998_v16, %v3037_v34  ;;  %v12058_v50 = vsub.f32 %v12016_v23, %v15722_v47  ;;  %v16685_v19 = vld [vmem:[#allocation145_spill] sm:$0xff]  ;;  %v12073_v47 = vpop.permute.xlu1 %703  ;;  %vm15775_vm6 = vcmp.lt.s32.totalorder %v9580_v4, 6  ;;  %v16737_v60 = vld [vmem:[#allocation110_spill] sm:$0xff] }
 0x1c6   :  { %16682 = vst [vmem:[#allocation81_spill] sm:$0xff] %v12045_v35  ;;  %v12051_v58 = vpack.c.bf16 %v16683_v36, %v15721_v48  ;;  %2722 = vmatmul.mubr.f32.vlgmr.msra.gmra.mrb[0].mxu0 %v16685_v19  ;;  %8687 = vmatpush3.bf16.msra.mxu1 %v11685_v41  ;;  %v16686_v3 = vld [vmem:[#allocation153_spill] sm:$0xff]  ;;  %v16689_v48 = vand.u32 4294901760, %v16688_v18  ;;  %16691 = vst [vmem:[#allocation134_spill] sm:$0xff] %v12073_v47  ;;  %v16692_v40 = vand.u32 4294901760, %v11265_v49  ;;  %v16696_v18 = vld [vmem:[#allocation11_spill] sm:$0xff] }
 0x1c7   :  { %16681 = vst [vmem:[#allocation68_spill] sm:$0xff] %v12043_v28  ;;  %v16687_v36 = vand.u32 4294901760, %v16686_v3  ;;  %8111 = vmatpush1.bf16.msra.mxu0 %v11654_v14  ;;  %8689 = vmatprep.subr.bf16.mxu1 %v11708_v52  ;;  %v12081_v9 = vpack.c.bf16 %v3037_v34, %v3025_v2  ;;  %v16694_v3 = vld [vmem:[#allocation8_spill] sm:$0xff]  ;;  %v3027_v14 = vand.u32 4294901760, %v3026_v54  ;;  %v3039_v16 = vand.u32 4294901760, %v3038_v51  ;;  %v16700_v2 = vld [vmem:[#allocation31_spill] sm:$0xff] }
 0x1c8   :  { %16684 = vst [vmem:[#allocation88_spill] sm:$0xff] %v12051_v58  ;;  %v12079_v25 = vsub.f32 %v11265_v49, %v16692_v40  ;;  %v16695_v44 = vand.u32 4294901760, %v16694_v3  ;;  %8113 = vmatprep.subr.bf16.mxu0 %v11705_v59  ;;  %v16699_v11 = vand.u32 4294901760, %v11275_v37  ;;  %vm16701_vm12 = vcmp.lt.s32.totalorder %v9580_v4, 120  ;;  %v12127_v59 = vpop.permute.xlu0 %716  ;;  %2861 = vmatprep.mubr.f32.mxu0 %v12045_v35 }
 0x1c9   :  { %v12069_v53 = vpack.c.bf16 %v16689_v48, %v16687_v36  ;;  %16693 = vst [vmem:[#allocation131_spill] sm:$0xff] %v12081_v9  ;;  %v16697_v48 = vand.u32 4294901760, %v16696_v18  ;;  %v138_v34 = vsel %vm16701_vm12, %v16700_v2, %v11489_v17  ;;  %v16702_v54 = vand.u32 4294901760, %v12034_v39  ;;  %v16705_v18 = vld [vmem:[#allocation23_spill] sm:$0xff]  ;;  %v16707_v2 = vld [vmem:[#allocation37_spill] sm:$0xff]  ;;  %795 = vrot.lane.b32.xlu0 %v11693_v61, %s9405_s7  ;;  %s9422_s7 = smov 81  }
 0x1ca   :  { %v12095_v40 = vsub.f32 %v11275_v37, %v16699_v11  ;;  %v12111_v3 = vsel %vm15778_vm9, %v12063_v22, %v12073_v47  ;;  %v16704_v11 = vld [vmem:[#allocation48_spill] sm:$0xff]  ;;  %v16706_v17 = vand.u32 4294901760, %v16705_v18  ;;  %vm16709_vm12 = vcmp.lt.s32.totalorder %v9580_v4, 104  ;;  %8691 = vmatpush3.bf16.msra.mxu1 %v11823_v57  ;;  %v16713_v47 = vld [vmem:[#allocation122_spill] sm:$0xff]  ;;  %v16715_v9 = vld [vmem:[#allocation63_spill] sm:$0xff] }
 0x1cb   :  { %16690 = vst [vmem:[#allocation91_spill] sm:$0xff] %v12069_v53  ;;  %v12087_v36 = vpack.c.bf16 %v16697_v48, %v16695_v44  ;;  %v12105_v51 = vsub.f32 %v12034_v39, %v16702_v54  ;;  %5007 = vmatprep.mubr.f32.mxu1 %v16704_v11  ;;  %v16708_v44 = vld [vmem:[#allocation33_spill] sm:$0xff]  ;;  %v12130_v30 = vpack.c.bf16 %v3039_v16, %v3027_v14  ;;  %vm16714_vm11 = vcmp.lt.s32.totalorder %v9580_v4, 72 }
 0x1cc   :  { %v12119_v48 = vsub.f32 %v16705_v18, %v16706_v17  ;;  %v153_v54 = vsel %vm16709_vm12, %v16708_v44, %v16707_v2  ;;  %v16711_v11 = vld [vmem:[#allocation13_spill] sm:$0xff]  ;;  %v12141_v44 = vsel %vm16714_vm11, %v16713_v47, %v11620_v6  ;;  %v16716_v2 = vld [vmem:[#allocation126_spill] sm:$0xff]  ;;  %vm16717_vm12 = vcmp.lt.s32.totalorder %v9580_v4, 56  ;;  %8115 = vmatpush1.bf16.msra.mxu0 %v11817_v21  ;;  %8693 = vmatprep.subr.bf16.mxu1 %v11904_v62 }
 0x1cd   :  { %16698 = vst [vmem:[#allocation96_spill] sm:$0xff] %v12087_v36  ;;  %16703 = vst [vmem:[#allocation92_spill] sm:$0xff] %v12105_v51  ;;  %v16712_v46 = vand.u32 4294901760, %v16711_v11  ;;  %v12147_v58 = vsel %vm16717_vm12, %v16716_v2, %v16715_v9  ;;  %v4931_v16 = vand.u32 4294901760, %v138_v34  ;;  %v16719_v35 = vand.u32 4294901760, %v12111_v3  ;;  %8117 = vmatprep.subr.bf16.mxu0 %v11870_v27  ;;  %v16721_v2 = vld [vmem:[#allocation14_spill] sm:$0xff]  ;;  %570 = vrot.lane.b32.xlu0 %v11693_v61, %s9390_s9 }
 0x1ce   :  { %16710 = vst [vmem:[#allocation136_spill] sm:$0xff] %v12130_v30  ;;  %v16722_v14 = vand.u32 4294901760, %v16721_v2  ;;  %v16723_v9 = vld [vmem:[#allocation21_spill] sm:$0xff]  ;;  %v12174_v12 = vand.u32 4294901760, %v153_v54  ;;  %v16727_v27 = vld [vmem:[#allocation27_spill] sm:$0xff]  ;;  %v16732_v41 = vand.u32 4294901760, %v12058_v50  ;;  %8695 = vmatpush3.bf16.msra.mxu1 %v11948_v42 }
 0x1cf   :  { %v12135_v17 = vsub.f32 %v16711_v11, %v16712_v46  ;;  %v12152_v46 = vpop.permute.xlu1 %718  ;;  %v12157_v6 = vsub.f32 %v12111_v3, %v16719_v35  ;;  %v16724_v21 = vand.u32 4294901760, %v16723_v9  ;;  %v16728_v62 = vand.u32 4294901760, %v16727_v27  ;;  %8697 = vmatprep.subr.bf16.mxu1 %v12043_v28  ;;  %v16747_v42 = vld [vmem:[#allocation30_spill] sm:$0xff]  ;;  %s9430_s9 = smov 57  }
 0x1d0   :  { %16718 = vst [vmem:[#allocation141_spill] sm:$0xff] %v12152_v46  ;;  %v12164_v47 = vsel %vm15775_vm6, %v12127_v59, %v12152_v46  ;;  %16726 = vst [vmem:[#allocation138_spill] sm:$0xff] %v12174_v12  ;;  %v16729_v46 = vld [vmem:[#allocation25_spill] sm:$0xff]  ;;  %v16733_v2 = vand.u32 4294901760, %v12105_v51  ;;  %v16738_v8 = vand.u32 4294901760, %v16737_v60  ;;  %v12199_v27 = vand.u32 4294901760, %v12147_v58  ;;  %8119 = vmatpush1.bf16.msra.mxu0 %v11887_v20 }
 0x1d1   :  { %16720 = vst [vmem:[#allocation137_spill] sm:$0xff] %v12157_v6  ;;  %v12172_v30 = vpack.c.bf16 %v16724_v21, %v16722_v14  ;;  %v16730_v57 = vand.u32 4294901760, %v16729_v46  ;;  %v16735_v21 = vld [vmem:[#allocation32_spill] sm:$0xff]  ;;  %vm16746_vm11 = vcmp.lt.s32.totalorder %v9580_v4, 53  ;;  %v12230_v18 = vsub.f32 %v138_v34, %v4931_v16  ;;  %8121 = vmatprep.subr.bf16.mxu0 %v12007_v1  ;;  %v16753_v34 = vld [vmem:[#allocation49_spill] sm:$0xff] }
 0x1d2   :  { %v12189_v9 = vpack.c.bf16 %v16733_v2, %v16732_v41  ;;  %v16736_v14 = vand.u32 4294901760, %v16735_v21  ;;  %16740 = vst [vmem:[#allocation146_spill] sm:$0xff] %v12199_v27  ;;  %v16741_v41 = vld [vmem:[#allocation29_spill] sm:$0xff]  ;;  %v16745_v21 = vld [vmem:[#allocation147_spill] sm:$0xff]  ;;  %v16749_v20 = vld [vmem:[#allocation152_spill] sm:$0xff]  ;;  %vm16750_vm12 = vcmp.lt.s32.totalorder %v9580_v4, 52  ;;  %8699 = vmatpush3.bf16.msra.mxu1 %v12087_v36 }
 0x1d3   :  { %16725 = vst [vmem:[#allocation135_spill] sm:$0xff] %v12172_v30  ;;  %v12183_v52 = vpack.c.bf16 %v16730_v57, %v16728_v62  ;;  %v466_v57 = vpop.permute.xlu0 %465  ;;  %v12205_v62 = vld [vmem:[%s15406_s0 + $0x20] sm:$0xff]  ;;  %v16742_v46 = vand.u32 4294901760, %v16741_v41  ;;  %v481_v11 = vpop.permute.xlu1 %480  ;;  %v16754_v1 = vand.u32 4294901760, %v16753_v34  ;;  %v16758_v19 = vand.u32 4294901760, %v12141_v44 }
 0x1d4   :  { %16734 = vst [vmem:[#allocation120_spill] sm:$0xff] %v12189_v9  ;;  %v12195_v35 = vpack.c.bf16 %v16738_v8, %v16736_v14  ;;  %v16743_v8 = vand.u32 4294901760, %v12164_v47  ;;  %v12222_v14 = vsel %vm16746_vm11, %v16745_v21, %v466_v57  ;;  %v12237_v28 = vsel %vm16750_vm12, %v16749_v20, %v481_v11  ;;  %813 = vrot.lane.b32.xlu1 %v12205_v62, %s9406_s12 }
 0x1d5   :  { %16731 = vst [vmem:[#allocation143_spill] sm:$0xff] %v12183_v52  ;;  %v12210_v2 = vsub.f32 %v16741_v41, %v16742_v46  ;;  %v16748_v46 = vand.u32 4294901760, %v16747_v42  ;;  %v3043_v57 = vand.u32 4294901760, %v12157_v6  ;;  %v12243_v21 = vsub.f32 %v153_v54, %v12174_v12  ;;  %8123 = vmatpush1.bf16.msra.mxu0 %v12069_v53  ;;  %8701 = vmatprep.subr.bf16.mxu1 %v12183_v52 }
 0x1d6   :  { %16739 = vst [vmem:[#allocation115_spill] sm:$0xff] %v12195_v35  ;;  %v12215_v60 = vsub.f32 %v12164_v47, %v16743_v8  ;;  %v15769_v8 = vand.u32 4294901760, %v12222_v14  ;;  %vm737_vm11 = vcmp.lt.s32.totalorder %v9580_v4, 5  ;;  %v12259_v9 = vpack.c.bf16 %v12174_v12, %v4931_v16  ;;  %8125 = vmatprep.subr.bf16.mxu0 %v12172_v30  ;;  %828 = vrot.lane.b32.xlu0 %v12205_v62, %s9407_s15 }
 0x1d7   :  { %v12228_v41 = vsub.f32 %v16747_v42, %v16748_v46  ;;  %16751 = vst [vmem:[#allocation148_spill] sm:$0xff] %v12243_v21  ;;  %v700_v54 = vpop.permute.xlu0 %699  ;;  %v16755_v42 = vld [vmem:[#allocation57_spill] sm:$0xff]  ;;  %v12270_v20 = vpack.c.bf16 %v12199_v27, %v16758_v19  ;;  %v16761_v51 = vand.u32 4294901760, %v11677_v63  ;;  %v16763_v16 = vand.u32 4294901760, %v12237_v28 }
 0x1d8   :  { %16744 = vst [vmem:[#allocation142_spill] sm:$0xff] %v12215_v60  ;;  %v3055_v46 = vand.u32 4294901760, %v12215_v60  ;;  %v12255_v11 = vsub.f32 %v12222_v14, %v15769_v8  ;;  %16752 = vst [vmem:[#allocation155_spill] sm:$0xff] %v12259_v9  ;;  %v16756_v37 = vand.u32 4294901760, %v16755_v42  ;;  %v16760_v8 = vand.u32 4294901760, %v11673_v55  ;;  %585 = vrot.lane.b32.xlu1 %v11693_v61, %s9391_s21  ;;  %8703 = vmatpush3.bf16.msra.mxu1 %v12259_v9 }
 0x1d9   :  { %16759 = vst [vmem:[#allocation50_spill] sm:$0xff] %v12270_v20  ;;  %v12281_v12 = vsub.f32 %v12237_v28, %v16763_v16  ;;  %v12288_v42 = vsel %vm15778_vm9, %v700_v54, %v12063_v22  ;;  %v3044_v19 = vsub.f32 %v12157_v6, %v3043_v57  ;;  %vm752_vm12 = vcmp.lt.s32.totalorder %v9580_v4, 4  ;;  %8127 = vmatpush1.bf16.msra.mxu0 %v12195_v35 }
 0x1da   :  { %v12265_v49 = vpack.c.bf16 %v16756_v37, %v16754_v1  ;;  %v12276_v36 = vpack.c.bf16 %v16761_v51, %v16760_v8  ;;  %v715_v37 = vpop.permute.xlu1 %714  ;;  %v15776_v63 = vand.u32 4294901760, %v12288_v42  ;;  %v3056_v22 = vsub.f32 %v12215_v60, %v3055_v46  ;;  %8705 = vmatprep.subr.bf16.mxu1 %v12270_v20  ;;  %600 = vrot.lane.b32.xlu0 %v11693_v61, %s9392_s22  ;;  %s9415_s22 = smov 87  }
 0x1db   :  { %v12296_v1 = vsel %vm15775_vm6, %v715_v37, %v12127_v59  ;;  %v16764_v51 = vand.u32 4294901760, %v11739_v24  ;;  %v16765_v8 = vand.u32 4294901760, %v11744_v29  ;;  %v16767_v59 = vand.u32 4294901760, %v11801_v56  ;;  %v16778_v24 = vld [vmem:[#allocation61_spill] sm:$0xff] }
 0x1dc   :  { %16757 = vst [vmem:[#allocation158_spill] sm:$0xff] %v12265_v49  ;;  %16762 = vst [vmem:[#allocation53_spill] sm:$0xff] %v12276_v36  ;;  %v15777_v16 = vand.u32 4294901760, %v12296_v1  ;;  %v16768_v37 = vand.u32 4294901760, %v11844_v5  ;;  %v12323_v29 = vsub.f32 %v12288_v42, %v15776_v63  ;;  %v12326_v54 = vpack.c.bf16 %v3055_v46, %v3043_v57  ;;  %8129 = vmatprep.subr.bf16.mxu0 %v12265_v49 }
 0x1dd   :  { %v12306_v34 = vpack.c.bf16 %v16765_v8, %v16764_v51  ;;  %v226_v51 = vpop.permute.xlu0 %225  ;;  %v3057_v8 = vand.u32 4294901760, %v3056_v22  ;;  %vm16774_vm6 = vcmp.lt.s32.totalorder %v9580_v4, 99  ;;  %v16775_v22 = vand.u32 4294901760, %v11916_v10  ;;  %843 = vrot.lane.b32.xlu1 %v12205_v62, %s9408_s17  ;;  %8131 = vmatpush1.bf16.msra.mxu0 %v12276_v36  ;;  %s16937_s17 = smov 80  }
 0x1de   :  { %v12316_v55 = vpack.c.bf16 %v16768_v37, %v16767_v59  ;;  %16770 = vst [vmem:[#allocation8_spill] sm:$0xff] %v12323_v29  ;;  %16771 = vst [vmem:[#allocation11_spill] sm:$0xff] %v12326_v54  ;;  %v12332_v5 = vsub.f32 %v12296_v1, %v15777_v16  ;;  %v16773_v59 = vld [vmem:[#allocation58_spill] sm:$0xff]  ;;  %v241_v63 = vpop.permute.xlu1 %240  ;;  %v16776_v57 = vand.u32 4294901760, %v11921_v13  ;;  %v3049_v56 = vand.u32 4294901760, %v12323_v29  ;;  %858 = vrot.lane.b32.xlu0 %v12205_v62, %s9409_s18  ;;  %s16836_s18 = smov 8  }
 0x1df   :  { %16766 = vst [vmem:[#allocation153_spill] sm:$0xff] %v12306_v34  ;;  %v228_v37 = vsel %vm16774_vm6, %v16773_v59, %v226_v51  ;;  %vm16779_vm9 = vcmp.lt.s32.totalorder %v9580_v4, 98  ;;  %v3045_v51 = vand.u32 4294901760, %v3044_v19  ;;  %v16780_v59 = vand.u32 4294901760, %v11970_v7  ;;  %8707 = vmatpush3.bf16.msra.mxu1 %v12306_v34 }
 0x1e0   :  { %16769 = vst [vmem:[#allocation99_spill] sm:$0xff] %v12316_v55  ;;  %16772 = vst [vmem:[#allocation31_spill] sm:$0xff] %v12332_v5  ;;  %v12343_v46 = vpack.c.bf16 %v16776_v57, %v16775_v22  ;;  %v4949_v16 = vand.u32 4294901760, %v228_v37  ;;  %v243_v54 = vsel %vm16779_vm9, %v16778_v24, %v241_v63  ;;  %v16781_v10 = vand.u32 4294901760, %v11974_v26  ;;  %8133 = vmatprep.subr.bf16.mxu0 %v12316_v55 }
 0x1e1   :  { %v3061_v22 = vand.u32 4294901760, %v12332_v5  ;;  %v4952_v49 = vand.u32 4294901760, %v243_v54  ;;  %v3050_v63 = vsub.f32 %v12323_v29, %v3049_v56  ;;  %v732_v7 = vpop.permute.xlu0 %731  ;;  %v12367_v19 = vpack.c.bf16 %v3057_v8, %v3045_v51  ;;  %615 = vrot.lane.b32.xlu1 %v11693_v61, %s9393_s23  ;;  %s9416_s23 = smov 86  }
 0x1e2   :  { %16777 = vst [vmem:[#allocation48_spill] sm:$0xff] %v12343_v46  ;;  %v12356_v13 = vpack.c.bf16 %v16781_v10, %v16780_v59  ;;  %v12364_v24 = vsub.f32 %v228_v37, %v4949_v16  ;;  %v16783_v26 = vand.u32 4294901760, %v12255_v11  ;;  %v16784_v59 = vand.u32 4294901760, %v12281_v12  ;;  %8709 = vmatprep.subr.bf16.mxu1 %v12343_v46  ;;  %v12387_v8 = vpop.permute.xlu1 %733  ;;  %630 = vrot.lane.b32.xlu0 %v11693_v61, %s9394_s24 }
 0x1e3   :  { %v5072_v57 = vand.u32 4294901760, %v12135_v17  ;;  %v16786_v35 = vand.u32 4294901760, %v12016_v23  ;;  %v16787_v30 = vand.u32 4294901760, %v12034_v39  ;;  %v3062_v37 = vsub.f32 %v12332_v5, %v3061_v22 }
 0x1e4   :  { %16782 = vst [vmem:[#allocation33_spill] sm:$0xff] %v12356_v13  ;;  %v12373_v10 = vpack.c.bf16 %v16784_v59, %v16783_v26  ;;  %v12383_v29 = vsub.f32 %v243_v54, %v4952_v49  ;;  %v3051_v51 = vand.u32 4294901760, %v3050_v63  ;;  %v12396_v23 = vpack.c.bf16 %v3061_v22, %v3049_v56  ;;  %8135 = vmatpush1.bf16.msra.mxu0 %v12356_v13 }
 0x1e5   :  { %v12380_v53 = vpack.c.bf16 %v16787_v30, %v16786_v35  ;;  %v739_v30 = vsel %vm737_vm11, %v732_v7, %v12387_v8  ;;  %v3063_v39 = vand.u32 4294901760, %v3062_v37  ;;  %v16790_v54 = vand.u32 4294901760, %v12222_v14  ;;  %873 = vrot.lane.b32.xlu1 %v12205_v62, %s9410_s8  ;;  %s16832_s8 = smov 24  }
 0x1e6   :  { %16785 = vst [vmem:[#allocation122_spill] sm:$0xff] %v12373_v10  ;;  %16789 = vst [vmem:[#allocation14_spill] sm:$0xff] %v12396_v23  ;;  %v2792_v35 = vand.u32 4294901760, %v739_v30  ;;  %v16791_v63 = vand.u32 4294901760, %v12237_v28  ;;  %vm767_vm9 = vcmp.lt.s32.totalorder %v9580_v4, 3  ;;  %v16793_v56 = vand.u32 4294901760, %v12141_v44  ;;  %888 = vrot.lane.b32.xlu0 %v12205_v62, %s9411_s11 }
 0x1e7   :  { %16788 = vst [vmem:[#allocation126_spill] sm:$0xff] %v12380_v53  ;;  %v12416_v37 = vsub.f32 %v12147_v58, %v12199_v27  ;;  %8711 = vmatpush3.bf16.msra.mxu1 %v12380_v53  ;;  %v16795_v14 = vand.u32 4294901760, %v12111_v3  ;;  %v16796_v28 = vand.u32 4294901760, %v12164_v47  ;;  %v16799_v58 = vand.u32 4294901760, %v12079_v25  ;;  %s9419_s11 = smov 84  }
 0x1e8   :  { %v12405_v59 = vpack.c.bf16 %v16791_v63, %v16790_v54  ;;  %v12412_v22 = vsub.f32 %v12141_v44, %v16793_v56  ;;  %v747_v63 = vpop.permute.xlu0 %746  ;;  %v12425_v17 = vsub.f32 %v739_v30, %v2792_v35  ;;  %v12429_v44 = vpop.permute.xlu1 %748  ;;  %v16800_v56 = vand.u32 4294901760, %v12095_v40 }
 0x1e9   :  { %16794 = vst [vmem:[#allocation27_spill] sm:$0xff] %v12416_v37  ;;  %v12423_v54 = vpack.c.bf16 %v16796_v28, %v16795_v14  ;;  %v5191_v3 = vand.u32 4294901760, %v12210_v2  ;;  %v12438_v47 = vpack.c.bf16 %v3063_v39, %v3051_v51  ;;  %v12440_v14 = vpack.c.bf16 %v4952_v49, %v4949_v16  ;;  %645 = vrot.lane.b32.xlu1 %v11693_v61, %s9395_s25 }
 0x1ea   :  { %16792 = vst [vmem:[#allocation21_spill] sm:$0xff] %v12405_v59  ;;  %16798 = vst [vmem:[#allocation32_spill] sm:$0xff] %v12425_v17  ;;  %8713 = vmatprep.subr.bf16.mxu1 %v12405_v59  ;;  %v12435_v26 = vpack.c.bf16 %v16800_v56, %v16799_v58  ;;  %v754_v30 = vsel %vm752_vm12, %v747_v63, %v12429_v44  ;;  %v5198_v25 = vand.u32 4294901760, %v12228_v41  ;;  %v16802_v40 = vand.u32 4294901760, %v12364_v24 }
 0x1eb   :  { %16797 = vst [vmem:[#allocation25_spill] sm:$0xff] %v12423_v54  ;;  %16801 = vst [vmem:[#allocation110_spill] sm:$0xff] %v12440_v14  ;;  %8137 = vmatprep.subr.bf16.mxu0 %v12423_v54  ;;  %v16803_v28 = vand.u32 4294901760, %v12383_v29  ;;  %v12456_v49 = vand.u32 4294901760, %v12243_v21  ;;  %v16806_v16 = vand.u32 4294901760, %v12288_v42  ;;  %v16807_v51 = vand.u32 4294901760, %v12296_v1  ;;  %8715 = vmatpush3.bf16.msra.mxu1 %v12440_v14 }
 0x1ec   :  { %v2796_v58 = vand.u32 4294901760, %v754_v30  ;;  %v3067_v41 = vand.u32 4294901760, %v12425_v17  ;;  %v16809_v56 = vand.u32 4294901760, %v12230_v18  ;;  %v730_v42 = vpop.permute.xlu0 %729  ;;  %v16810_v1 = vand.u32 4294901760, %v12119_v48  ;;  %8717 = vmatprep.subr.bf16.mxu1 %v11697_v45  ;;  %660 = vrot.lane.b32.xlu0 %v11693_v61, %s9396_s14  ;;  %s9418_s14 = smov 85  }
 0x1ed   :  { %v12453_v2 = vpack.c.bf16 %v16803_v28, %v16802_v40  ;;  %16805 = vst [vmem:[#allocation152_spill] sm:$0xff] %v12456_v49  ;;  %v12462_v39 = vpack.c.bf16 %v16807_v51, %v16806_v16  ;;  %v12479_v51 = vand.u32 4294901760, %v12416_v37  ;;  %v745_v28 = vpop.permute.xlu1 %744  ;;  %vm782_vm6 = vcmp.lt.s32.totalorder %v9580_v4, 2  ;;  %903 = vrot.lane.b32.xlu1 %v12205_v62, %s9412_s10 }
 0x1ee   :  { %v12470_v40 = vsub.f32 %v12230_v18, %v16809_v56  ;;  %v12476_v16 = vpack.c.bf16 %v5072_v57, %v16810_v1  ;;  %v12481_v27 = vsub.f32 %v754_v30, %v2796_v58  ;;  %v740_v56 = vsel %vm737_vm11, %v730_v42, %v732_v7 }
 0x1ef   :  { %16804 = vst [vmem:[#allocation147_spill] sm:$0xff] %v12453_v2  ;;  %16808 = vst [vmem:[#allocation49_spill] sm:$0xff] %v12462_v39  ;;  %8139 = vmatpush1.bf16.msra.mxu0 %v12462_v39  ;;  %v12487_v23 = vpack.c.bf16 %v2796_v58, %v2792_v35  ;;  %v2794_v48 = vand.u32 4294901760, %v740_v56  ;;  %v755_v57 = vsel %vm752_vm12, %v745_v28, %v747_v63  ;;  %v16814_v58 = vand.u32 4294901760, %v11779_v43  ;;  %v16816_v28 = vld [vmem:[#allocation160_spill] sm:$0xff] }
 0x1f0   :  { %16811 = vst [vmem:[#allocation57_spill] sm:$0xff] %v12479_v51  ;;  %16812 = vst [vmem:[#allocation58_spill] sm:$0xff] %v12481_v27  ;;  %v12494_v30 = vpack.c.bf16 %v5198_v25, %v5191_v3  ;;  %v3068_v1 = vsub.f32 %v12425_v17, %v3067_v41  ;;  %v2798_v45 = vand.u32 4294901760, %v755_v57  ;;  %v3236_v7 = vsub.f32 %v12243_v21, %v12456_v49  ;;  %v762_v42 = vpop.permute.xlu0 %761 }
 0x1f1   :  { %16813 = vst [vmem:[#allocation61_spill] sm:$0xff] %v12487_v23  ;;  %8141 = vmatprep.subr.bf16.mxu0 %v12487_v23  ;;  %v3079_v35 = vand.u32 4294901760, %v12481_v27  ;;  %v12508_v3 = vsub.f32 %v11779_v43, %v16814_v58  ;;  %v12510_v25 = vsub.f32 %v740_v56, %v2794_v48  ;;  %5013 = vmatmul.mubr.f32.vlgmr.msra.gmra.mrb[2].mxu1 %v16816_v28  ;;  %v16817_v39 = vand.u32 4294901760, %v12412_v22  ;;  %v16820_v58 = vld [vmem:[#allocation73_spill] sm:$0xff]  ;;  %v12526_v56 = vpop.permute.xlu1 %763  ;;  %v16821_v28 = vld [vmem:[#allocation40_spill] sm:$0xff] }
 0x1f2   :  { %v4322_v23 = vsub.f32 %v12416_v37, %v12479_v51  ;;  %v5079_v63 = vand.u32 4294901760, %v12470_v40  ;;  %v12521_v13 = vpack.c.bf16 %v2798_v45, %v2794_v48  ;;  %v12523_v55 = vsub.f32 %v755_v57, %v2798_v45  ;;  %8719 = vmatpush3.bf16.msra.mxu1 %v16820_v58  ;;  %5243 = vmatprep.mubr.f32.mxu1 %v16821_v28 }
 0x1f3   :  { %16815 = vst [vmem:[#allocation191_spill] sm:$0xff] %v12510_v25  ;;  %v12518_v54 = vsub.f32 %v12412_v22, %v16817_v39  ;;  %v3080_v36 = vsub.f32 %v12481_v27, %v3079_v35  ;;  %v3073_v17 = vand.u32 4294901760, %v12510_v25  ;;  %8721 = vmatprep.subr.bf16.mxu1 %v11858_v15  ;;  %v769_v39 = vsel %vm767_vm9, %v762_v42, %v12526_v56 }
 0x1f4   :  { %16818 = vst [vmem:[#allocation160_spill] sm:$0xff] %v12521_v13  ;;  %16819 = vst [vmem:[#allocation192_spill] sm:$0xff] %v12523_v55  ;;  %v3069_v40 = vand.u32 4294901760, %v3068_v1  ;;  %v12537_v48 = vpack.c.bf16 %v3079_v35, %v3067_v41  ;;  %v3085_v57 = vand.u32 4294901760, %v12523_v55  ;;  %v2800_v58 = vand.u32 4294901760, %v769_v39  ;;  %8143 = vmatpush1.bf16.msra.mxu0 %v12521_v13  ;;  %v777_v35 = vpop.permute.xlu0 %776  ;;  %918 = vrot.lane.b32.xlu0 %v12205_v62, %s9413_s27 }
 0x1f5   :  { %vm15823_vm8 = vcmp.lt.s32.totalorder %v9580_v4, 1  ;;  %v3081_v15 = vand.u32 4294901760, %v3080_v36  ;;  %v16823_v27 = vand.u32 4294901760, %v11791_v32  ;;  %v3074_v41 = vsub.f32 %v12510_v25, %v3073_v17  ;;  %v16827_v36 = vld [vmem:[#allocation38_spill] sm:$0xff]  ;;  %v12560_v2 = vpop.permute.xlu1 %778  ;;  %675 = vrot.lane.b32.xlu1 %v11693_v61, %s16832_s8  ;;  %s9427_s8 = smov 60  }
 0x1f6   :  { %16822 = vst [vmem:[#allocation73_spill] sm:$0xff] %v12537_v48  ;;  %v16824_v48 = vand.u32 4294901760, %v11953_v33  ;;  %v16825_v5 = vand.u32 4294901760, %v11958_v38  ;;  %v3086_v13 = vsub.f32 %v12523_v55, %v3085_v57  ;;  %v12557_v60 = vsub.f32 %v769_v39, %v2800_v58  ;;  %8723 = vmatpush3.bf16.msra.mxu1 %v16827_v36 }
 0x1f7   :  { %v5099_v1 = vsub.f32 %v11791_v32, %v16823_v27  ;;  %v12562_v27 = vpack.c.bf16 %v3081_v15, %v3069_v40  ;;  %v12564_v25 = vpack.c.bf16 %v3085_v57, %v3073_v17  ;;  %v3075_v10 = vand.u32 4294901760, %v3074_v41  ;;  %8725 = vmatprep.subr.bf16.mxu1 %v12009_v31 }
 0x1f8   :  { %v5218_v45 = vsub.f32 %v11953_v33, %v16824_v48  ;;  %v5225_v6 = vsub.f32 %v11958_v38, %v16825_v5  ;;  %16826 = vst [vmem:[#allocation40_spill] sm:$0xff] %v12557_v60  ;;  %v784_v48 = vsel %vm782_vm6, %v777_v35, %v12560_v2  ;;  %v12572_v5 = vand.u32 4294901760, %v3236_v7  ;;  %v760_v57 = vpop.permute.xlu0 %759  ;;  %690 = vrot.lane.b32.xlu0 %v11693_v61, %s16836_s18  ;;  %s9428_s18 = smov 59  }
 0x1f9   :  { %16828 = vst [vmem:[#allocation38_spill] sm:$0xff] %v12562_v27  ;;  %16829 = vst [vmem:[#allocation193_spill] sm:$0xff] %v12564_v25  ;;  %v12574_v39 = vand.u32 4294901760, %v4322_v23  ;;  %v5093_v36 = vand.u32 4294901760, %v12508_v3  ;;  %v3087_v40 = vand.u32 4294901760, %v3086_v13  ;;  %v2804_v15 = vand.u32 4294901760, %v784_v48  ;;  %v775_v13 = vpop.permute.xlu1 %774  ;;  %927 = vrot.lane.b32.xlu1 %v12205_v62, %s16837_s16 }
 0x1fa   :  { %16830 = vst [vmem:[#allocation194_spill] sm:$0xff] %v12572_v5  ;;  %v5205_v31 = vand.u32 4294901760, %v12518_v54  ;;  %v5100_v17 = vand.u32 4294901760, %v5099_v1  ;;  %v5219_v41 = vand.u32 4294901760, %v5218_v45  ;;  %v5226_v25 = vand.u32 4294901760, %v5225_v6  ;;  %8727 = vmatpush3.bf16.msra.mxu1 %v12019_v0  ;;  %s9429_s16 = smov 58  }
 0x1fb   :  { %16831 = vst [vmem:[#allocation195_spill] sm:$0xff] %v12574_v39  ;;  %v3091_v55 = vand.u32 4294901760, %v12557_v60  ;;  %v12581_v27 = vsub.f32 %v784_v48, %v2804_v15  ;;  %v770_v23 = vsel %vm767_vm9, %v760_v57, %v762_v42  ;;  %v12586_v7 = vpack.c.bf16 %v2804_v15, %v2800_v58  ;;  %8729 = vmatprep.subr.bf16.mxu1 %v12435_v26  ;;  %v16843_v58 = vld [vmem:[#allocation92_spill] sm:$0xff] }
 0x1fc   :  { %v12588_v3 = vpack.c.bf16 %v3087_v40, %v3075_v10  ;;  %v16835_v54 = vand.u32 4294901760, %v12058_v50  ;;  %v2802_v6 = vand.u32 4294901760, %v770_v23  ;;  %v785_v45 = vsel %vm782_vm6, %v775_v13, %v777_v35  ;;  %v792_v48 = vpop.permute.xlu0 %791  ;;  %939 = vrot.lane.b32.xlu0 %v12205_v62, %s9414_s26  ;;  %s9424_s26 = smov 63  }
 0x1fd   :  { %16833 = vst [vmem:[#allocation196_spill] sm:$0xff] %v12581_v27  ;;  %16834 = vst [vmem:[#allocation197_spill] sm:$0xff] %v12586_v7  ;;  %v8734_v0 = vpack.c.bf16 %v12572_v5, %v5079_v63  ;;  %vm815_vm10 = vcmp.lt.s32.totalorder %v9580_v4, 112  ;;  %v2806_v10 = vand.u32 4294901760, %v785_v45  ;;  %8145 = vmatprep.subr.bf16.mxu0 %v12586_v7  ;;  %v8736_v42 = vpack.c.bf16 %v12574_v39, %v5205_v31 }
 0x1fe   :  { %v12593_v1 = vsub.f32 %v12058_v50, %v16835_v54  ;;  %v3103_v26 = vand.u32 4294901760, %v12581_v27  ;;  %v12609_v35 = vsub.f32 %v770_v23, %v2802_v6  ;;  %v8738_v40 = vpack.c.bf16 %v5100_v17, %v5093_v36  ;;  %8731 = vmatpush3.bf16.msra.mxu1 %v12476_v16  ;;  %v12617_v54 = vpop.permute.xlu1 %793  ;;  %705 = vrot.lane.b32.xlu1 %v11693_v61, %s16845_s4 }
 0x1ff   :  { %v8740_v63 = vpack.c.bf16 %v5226_v25, %v5219_v41  ;;  %v3092_v15 = vsub.f32 %v12557_v60, %v3091_v55  ;;  %v12612_v57 = vpack.c.bf16 %v2806_v10, %v2802_v6  ;;  %v12614_v13 = vsub.f32 %v785_v45, %v2806_v10  ;;  %16841 = vst [vmem:[#allocation201_spill] sm:$0xff] %v12617_v54 }
 0x200   :  { %16838 = vst [vmem:[#allocation198_spill] sm:$0xff] %v12609_v35  ;;  %v3104_v31 = vsub.f32 %v12581_v27, %v3103_v26  ;;  %v12620_v39 = vpack.c.bf16 %v3103_v26, %v3091_v55  ;;  %v5107_v23 = vand.u32 4294901760, %v12593_v1  ;;  %v16844_v7 = vand.u32 4294901760, %v16843_v58  ;;  %8733 = vmatprep.subr.bf16.mxu1 %v12494_v30  ;;  %v790_v1 = vpop.permute.xlu0 %789  ;;  %720 = vrot.lane.b32.xlu0 %v11693_v61, %s16851_s5 }
 0x201   :  { %16839 = vst [vmem:[#allocation199_spill] sm:$0xff] %v12612_v57  ;;  %16840 = vst [vmem:[#allocation200_spill] sm:$0xff] %v12614_v13  ;;  %v3097_v36 = vand.u32 4294901760, %v12609_v35  ;;  %v799_v16 = vsel %vm15823_vm8, %v792_v48, %v12617_v54  ;;  %v3109_v55 = vand.u32 4294901760, %v12614_v13  ;;  %8147 = vmatpush1.bf16.msra.mxu0 %v12612_v57  ;;  %v16846_v6 = vand.u32 4294901760, %v12255_v11 }
 0x202   :  { %16842 = vst [vmem:[#allocation202_spill] sm:$0xff] %v12620_v39  ;;  %v5113_v25 = vsub.f32 %v16843_v58, %v16844_v7  ;;  %v2808_v41 = vand.u32 4294901760, %v799_v16  ;;  %v3105_v7 = vand.u32 4294901760, %v3104_v31  ;;  %v16847_v10 = vand.u32 4294901760, %v12281_v12  ;;  %8735 = vmatpush3.bf16.msra.mxu1 %v8734_v0  ;;  %v810_v57 = vpop.permute.xlu1 %809 }
 0x203   :  { %v3098_v30 = vsub.f32 %v12609_v35, %v3097_v36  ;;  %v5232_v45 = vsub.f32 %v12255_v11, %v16846_v6  ;;  %v3093_v39 = vand.u32 4294901760, %v3092_v15  ;;  %v3110_v17 = vsub.f32 %v12614_v13, %v3109_v55  ;;  %v16849_v35 = vld [vmem:[#allocation28_spill] sm:$0xff]  ;;  %8737 = vmatprep.subr.bf16.mxu1 %v8736_v42  ;;  %v12669_v42 = vld [vmem:[%s15406_s0 + $0x10] sm:$0xff] }
 0x204   :  { %v5239_v26 = vsub.f32 %v12281_v12, %v16847_v10  ;;  %v12647_v60 = vsub.f32 %v799_v16, %v2808_v41  ;;  %v800_v31 = vsel %vm15823_vm8, %v790_v1, %v792_v48  ;;  %v12652_v27 = vpack.c.bf16 %v16849_v35, %v2808_v41  ;;  %950 = vrot.lane.b32.xlu1 %v12669_v42, %s9415_s22 }
 0x205   :  { %v3099_v54 = vand.u32 4294901760, %v3098_v30  ;;  %v2810_v6 = vand.u32 4294901760, %v800_v31  ;;  %v12656_v10 = vpack.c.bf16 %v3105_v7, %v3093_v39  ;;  %v12658_v15 = vpack.c.bf16 %v3109_v55, %v3097_v36  ;;  %v16855_v39 = vld [vmem:[#allocation4_spill] sm:$0xff]  ;;  %v12679_v55 = vpop.permute.xlu0 %811  ;;  %952 = vrot.lane.b32.xlu0 %v11693_v61, %s9415_s22 }
 0x206   :  { %16848 = vst [vmem:[#allocation92_spill] sm:$0xff] %v12647_v60  ;;  %16850 = vst [vmem:[#allocation28_spill] sm:$0xff] %v12652_v27  ;;  %v5114_v16 = vand.u32 4294901760, %v5113_v25  ;;  %v16853_v0 = vand.u32 4294901760, %v12364_v24  ;;  %v16854_v48 = vand.u32 4294901760, %v12383_v29  ;;  %v3111_v41 = vand.u32 4294901760, %v3110_v17  ;;  %8149 = vmatprep.subr.bf16.mxu0 %v12652_v27  ;;  %8739 = vmatpush3.bf16.msra.mxu1 %v8738_v40  ;;  %v825_v1 = vpop.permute.xlu1 %824 }
 0x207   :  { %16852 = vst [vmem:[#allocation203_spill] sm:$0xff] %v12658_v15  ;;  %v12675_v25 = vpack.c.bf16 %v16855_v39, %v2810_v6  ;;  %v12677_v36 = vsub.f32 %v800_v31, %v2810_v6  ;;  %16858 = vst [vmem:[#allocation205_spill] sm:$0xff] %v12679_v55  ;;  %v5233_v7 = vand.u32 4294901760, %v5232_v45  ;;  %v5240_v17 = vand.u32 4294901760, %v5239_v26  ;;  %8741 = vmatprep.subr.bf16.mxu1 %v8740_v63 }
 0x208   :  { %v5120_v13 = vsub.f32 %v12364_v24, %v16853_v0  ;;  %v5127_v35 = vsub.f32 %v12383_v29, %v16854_v48  ;;  %v817_v30 = vsel %vm815_vm10, %v810_v57, %v12679_v55  ;;  %v12684_v0 = vpack.c.bf16 %v3111_v41, %v3099_v54  ;;  %965 = vrot.lane.b32.xlu1 %v12669_v42, %s9416_s23 }
 0x209   :  { %16856 = vst [vmem:[#allocation4_spill] sm:$0xff] %v12675_v25  ;;  %16857 = vst [vmem:[#allocation204_spill] sm:$0xff] %v12677_v36  ;;  %v2816_v48 = vand.u32 4294901760, %v817_v30  ;;  %vm830_vm8 = vcmp.lt.s32.totalorder %v9580_v4, 111  ;;  %8151 = vmatpush1.bf16.msra.mxu0 %v12675_v25  ;;  %v8742_v40 = vpack.c.bf16 %v5114_v16, %v5107_v23  ;;  %v8744_v54 = vpack.c.bf16 %v5240_v17, %v5233_v7  ;;  %v12694_v26 = vpop.permute.xlu0 %826  ;;  %v12707_v7 = vld [vmem:[%s15406_s0 + $0x8] sm:$0xff] }
 0x20a   :  { %16859 = vst [vmem:[#allocation206_spill] sm:$0xff] %v12684_v0  ;;  %v5121_v31 = vand.u32 4294901760, %v5120_v13  ;;  %v5128_v6 = vand.u32 4294901760, %v5127_v35  ;;  %16861 = vst [vmem:[#allocation208_spill] sm:$0xff] %v12694_v26  ;;  %v9417_v63 = vmov 0   ;;  %v832_v13 = vsel %vm830_vm8, %v825_v1, %v12694_v26  ;;  %v808_v35 = vpop.permute.xlu1 %807  ;;  %967 = vrot.lane.b32.xlu0 %v11693_v61, %s9416_s23 }
 0x20b   :  { %v12692_v45 = vsub.f32 %v817_v30, %v2816_v48  ;;  %9338 = vset.pattern.permute.xlu1 %v9417_v63  ;;  %9339 = vset.pattern.permute.xlu0 %v9417_v63  ;;  %v2820_v41 = vand.u32 4294901760, %v832_v13  ;;  %v818_v39 = vsel %vm815_vm10, %v808_v35, %v810_v57 }
 0x20c   :  { %8743 = vmatpush3.bf16.msra.mxu1 %v8742_v40  ;;  %v2818_v16 = vand.u32 4294901760, %v818_v39  ;;  %948 = vrot.lane.b32.xlu1 %v12707_v7, %s9415_s22  ;;  %v8746_v17 = vpack.c.bf16 %v5128_v6, %v5121_v31  ;;  %v16863_v40 = vld [vmem:[#allocation167_spill] sm:$0xff] }
 0x20d   :  { %16860 = vst [vmem:[#allocation207_spill] sm:$0xff] %v12692_v45  ;;  %8745 = vmatprep.subr.bf16.mxu1 %v8744_v54  ;;  %v3139_v23 = vand.u32 4294901760, %v12692_v45  ;;  %v12711_v30 = vsub.f32 %v832_v13, %v2820_v41  ;;  %v16864_v54 = vld [vmem:[#allocation165_spill] sm:$0xff]  ;;  %v823_v63 = vpop.permute.xlu0 %822  ;;  %v12715_v35 = vpack.c.bf16 %v2820_v41, %v2816_v48  ;;  %v16867_v48 = vld [vmem:[#allocation35_spill] sm:$0xff] }
 0x20e   :  { %v8748_v57 = vpack.c.bf16 %v16864_v54, %v16863_v40  ;;  %v12717_v61 = vsub.f32 %v818_v39, %v2818_v16  ;;  %v833_v15 = vsel %vm830_vm8, %v823_v63, %v825_v1  ;;  %v840_v25 = vpop.permute.xlu1 %839  ;;  %963 = vrot.lane.b32.xlu0 %v12707_v7, %s9416_s23  ;;  %v16868_v6 = vld [vmem:[#allocation39_spill] sm:$0xff]  ;;  %v16870_v39 = vld [vmem:[#allocation80_spill] sm:$0xff]  ;;  %v16873_v63 = vld [vmem:[#allocation145_spill] sm:$0xff] }
 0x20f   :  { %16862 = vst [vmem:[#allocation209_spill] sm:$0xff] %v12711_v30  ;;  %16865 = vst [vmem:[#allocation167_spill] sm:$0xff] %v12715_v35  ;;  %v3140_v27 = vsub.f32 %v12692_v45, %v3139_v23  ;;  %v2822_v0 = vand.u32 4294901760, %v833_v15  ;;  %v3151_v31 = vand.u32 4294901760, %v12711_v30  ;;  %v8750_v13 = vpack.c.bf16 %v16868_v6, %v16867_v48  ;;  %8153 = vmatprep.subr.bf16.mxu0 %v12715_v35  ;;  %v16869_v1 = vld [vmem:[#allocation55_spill] sm:$0xff] }
 0x210   :  { %16866 = vst [vmem:[#allocation165_spill] sm:$0xff] %v12717_v61  ;;  %8747 = vmatpush3.bf16.msra.mxu1 %v8746_v17  ;;  %v3145_v41 = vand.u32 4294901760, %v12717_v61  ;;  %954 = vrot.lane.b32.xlu1 %v12205_v62, %s9415_s22  ;;  %v8752_v17 = vpack.c.bf16 %v16870_v39, %v16869_v1 }
 0x211   :  { %8749 = vmatprep.subr.bf16.mxu1 %v8748_v57  ;;  %v12736_v54 = vpack.c.bf16 %v2822_v0, %v2818_v16  ;;  %v12738_v57 = vsub.f32 %v833_v15, %v2822_v0  ;;  %v12741_v48 = vpop.permute.xlu0 %841  ;;  %v3152_v26 = vsub.f32 %v12711_v30, %v3151_v31  ;;  %v12744_v5 = vpack.c.bf16 %v3151_v31, %v3139_v23  ;;  %v16876_v15 = vld [vmem:[#allocation41_spill] sm:$0xff] }
 0x212   :  { %16874 = vst [vmem:[#allocation210_spill] sm:$0xff] %v12741_v48  ;;  %v3146_v35 = vsub.f32 %v12717_v61, %v3145_v41  ;;  %v847_v1 = vsel %vm845_vm7, %v840_v25, %v12741_v48  ;;  %v855_v40 = vpop.permute.xlu1 %854  ;;  %v3141_v0 = vand.u32 4294901760, %v3140_v27  ;;  %969 = vrot.lane.b32.xlu0 %v12205_v62, %s9416_s23  ;;  %v16879_v27 = vld [vmem:[#allocation108_spill] sm:$0xff] }
 0x213   :  { %16871 = vst [vmem:[#allocation39_spill] sm:$0xff] %v12736_v54  ;;  %16872 = vst [vmem:[#allocation80_spill] sm:$0xff] %v12738_v57  ;;  %5245 = vmatmul.mubr.f32.vlgmr.msra.gmra.mrb[4].mxu1 %v16873_v63  ;;  %v3157_v16 = vand.u32 4294901760, %v12738_v57  ;;  %v2824_v23 = vand.u32 4294901760, %v847_v1  ;;  %v3153_v31 = vand.u32 4294901760, %v3152_v26  ;;  %8155 = vmatpush1.bf16.msra.mxu0 %v12736_v54 }
 0x214   :  { %16875 = vst [vmem:[#allocation211_spill] sm:$0xff] %v12744_v5  ;;  %8751 = vmatpush3.bf16.msra.mxu1 %v8750_v13  ;;  %5380 = vmatprep.mubr.f32.mxu1 %v16876_v15  ;;  %v16877_v13 = vld [vmem:[#allocation62_spill] sm:$0xff]  ;;  %v16880_v15 = vld [vmem:[#allocation104_spill] sm:$0xff] }
 0x215   :  { %8753 = vmatprep.subr.bf16.mxu1 %v8752_v17  ;;  %v16878_v5 = vld [vmem:[#allocation10_spill] sm:$0xff]  ;;  %980 = vrot.lane.b32.xlu1 %v12669_v42, %s9418_s14  ;;  %v8756_v63 = vpack.c.bf16 %v16880_v15, %v16879_v27  ;;  %v3158_v45 = vsub.f32 %v12738_v57, %v3157_v16  ;;  %v12765_v17 = vsub.f32 %v847_v1, %v2824_v23  ;;  %v12767_v61 = vpop.permute.xlu0 %856 }
 0x216   :  { %v8754_v30 = vpack.c.bf16 %v16878_v5, %v16877_v13  ;;  %16882 = vst [vmem:[#allocation62_spill] sm:$0xff] %v12767_v61  ;;  %v12769_v48 = vpack.c.bf16 %v3153_v31, %v3141_v0  ;;  %v12771_v26 = vpack.c.bf16 %v3157_v16, %v3145_v41  ;;  %v3147_v5 = vand.u32 4294901760, %v3146_v35  ;;  %v838_v54 = vpop.permute.xlu1 %837  ;;  %v12781_v0 = vld [vmem:[%s15406_s0 + $0x18] sm:$0xff]  ;;  %v16885_v35 = vld [vmem:[#allocation129_spill] sm:$0xff]  ;;  %v16886_v41 = vld [vmem:[#allocation124_spill] sm:$0xff] }
 0x217   :  { %16881 = vst [vmem:[#allocation41_spill] sm:$0xff] %v12765_v17  ;;  %v862_v13 = vsel %vm15847_vm5, %v855_v40, %v12767_v61  ;;  %v3159_v55 = vand.u32 4294901760, %v3158_v45  ;;  %v848_v1 = vsel %vm845_vm7, %v838_v54, %v840_v25  ;;  %982 = vrot.lane.b32.xlu0 %v12781_v0, %s9418_s14  ;;  %v8758_v16 = vpack.c.bf16 %v16886_v41, %v16885_v35  ;;  %v16888_v25 = vld [vmem:[#allocation103_spill] sm:$0xff] }
 0x218   :  { %16883 = vst [vmem:[#allocation10_spill] sm:$0xff] %v12769_v48  ;;  %16884 = vst [vmem:[#allocation108_spill] sm:$0xff] %v12771_v26  ;;  %8755 = vmatpush3.bf16.msra.mxu1 %v8754_v30  ;;  %v2828_v27 = vand.u32 4294901760, %v862_v13  ;;  %v3163_v30 = vand.u32 4294901760, %v12765_v17  ;;  %v2826_v31 = vand.u32 4294901760, %v848_v1  ;;  %v16889_v54 = vld [vmem:[#allocation7_spill] sm:$0xff] }
 0x219   :  { %8757 = vmatprep.subr.bf16.mxu1 %v8756_v63  ;;  %995 = vrot.lane.b32.xlu1 %v12669_v42, %s9419_s11  ;;  %v8760_v63 = vpack.c.bf16 %v16889_v54, %v16888_v25  ;;  %v853_v15 = vpop.permute.xlu0 %852  ;;  %v12796_v57 = vpack.c.bf16 %v3159_v55, %v3147_v5  ;;  %v16893_v5 = vld [vmem:[#allocation23_spill] sm:$0xff]  ;;  %v16896_v25 = vld [vmem:[#allocation30_spill] sm:$0xff] }
 0x21a   :  { %v12790_v45 = vsub.f32 %v862_v13, %v2828_v27  ;;  %v12794_v26 = vpack.c.bf16 %v2828_v27, %v2824_v23  ;;  %v12798_v48 = vsub.f32 %v848_v1, %v2826_v31  ;;  %v863_v35 = vsel %vm15847_vm5, %v853_v15, %v855_v40  ;;  %v870_v41 = vpop.permute.xlu1 %869  ;;  %v16894_v27 = vld [vmem:[#allocation13_spill] sm:$0xff] }
 0x21b   :  { %16891 = vst [vmem:[#allocation124_spill] sm:$0xff] %v12796_v57  ;;  %v3164_v61 = vsub.f32 %v12765_v17, %v3163_v30  ;;  %v2830_v13 = vand.u32 4294901760, %v863_v35  ;;  %997 = vrot.lane.b32.xlu0 %v12781_v0, %s9419_s11  ;;  %v8762_v1 = vpack.c.bf16 %v16894_v27, %v16893_v5  ;;  %vm15854_vm5 = vcmp.lt.s32.totalorder %v9580_v4, 107 }
 0x21c   :  { %16887 = vst [vmem:[#allocation104_spill] sm:$0xff] %v12790_v45  ;;  %16890 = vst [vmem:[#allocation129_spill] sm:$0xff] %v12794_v26  ;;  %8759 = vmatpush3.bf16.msra.mxu1 %v8758_v16  ;;  %v3175_v23 = vand.u32 4294901760, %v12790_v45  ;;  %v3169_v40 = vand.u32 4294901760, %v12798_v48  ;;  %8157 = vmatprep.subr.bf16.mxu0 %v12794_v26  ;;  %v16895_v16 = vld [vmem:[#allocation29_spill] sm:$0xff] }
 0x21d   :  { %16892 = vst [vmem:[#allocation103_spill] sm:$0xff] %v12798_v48  ;;  %8761 = vmatprep.subr.bf16.mxu1 %v8760_v63  ;;  %978 = vrot.lane.b32.xlu1 %v12707_v7, %s9418_s14  ;;  %v8764_v54 = vpack.c.bf16 %v16896_v25, %v16895_v16  ;;  %v12817_v63 = vpack.c.bf16 %v2830_v13, %v2826_v31  ;;  %v12821_v57 = vpop.permute.xlu0 %871  ;;  %v3165_v31 = vand.u32 4294901760, %v3164_v61 }
 0x21e   :  { %v12819_v15 = vsub.f32 %v863_v35, %v2830_v13  ;;  %v3176_v55 = vsub.f32 %v12790_v45, %v3175_v23  ;;  %v12824_v17 = vpack.c.bf16 %v3175_v23, %v3163_v30  ;;  %v3170_v5 = vsub.f32 %v12798_v48, %v3169_v40  ;;  %v885_v26 = vpop.permute.xlu1 %884  ;;  %v16935_v45 = vld [vmem:[#allocation113_spill] sm:$0xff] }
 0x21f   :  { %16897 = vst [vmem:[#allocation7_spill] sm:$0xff] %v12817_v63  ;;  %v877_v27 = vsel %vm15853_vm4, %v870_v41, %v12821_v57  ;;  %993 = vrot.lane.b32.xlu0 %v12707_v7, %s9419_s11  ;;  %8159 = vmatpush1.bf16.msra.mxu0 %v12817_v63  ;;  %v8766_v23 = vpack.c.bf16 %v12243_v21, %v12230_v18 }
 0x220   :  { %16898 = vst [vmem:[#allocation23_spill] sm:$0xff] %v12819_v15  ;;  %16899 = vst [vmem:[#allocation13_spill] sm:$0xff] %v12824_v17  ;;  %8763 = vmatpush3.bf16.msra.mxu1 %v8762_v1  ;;  %v3181_v35 = vand.u32 4294901760, %v12819_v15  ;;  %v2832_v16 = vand.u32 4294901760, %v877_v27  ;;  %v3177_v30 = vand.u32 4294901760, %v3176_v55  ;;  %v8768_v61 = vpack.c.bf16 %v12416_v37, %v12412_v22 }
 0x221   :  { %8765 = vmatprep.subr.bf16.mxu1 %v8764_v54  ;;  %984 = vrot.lane.b32.xlu1 %v12205_v62, %s9418_s14  ;;  %v12846_v54 = vpop.permute.xlu0 %886  ;;  %v3171_v17 = vand.u32 4294901760, %v3170_v5 }
 0x222   :  { %v3182_v1 = vsub.f32 %v12819_v15, %v3181_v35  ;;  %v12844_v25 = vsub.f32 %v877_v27, %v2832_v16  ;;  %v12848_v13 = vpack.c.bf16 %v3177_v30, %v3165_v31  ;;  %v12850_v55 = vpack.c.bf16 %v3181_v35, %v3169_v40  ;;  %v868_v21 = vpop.permute.xlu1 %867 }
 0x223   :  { %v892_v63 = vsel %vm15854_vm5, %v885_v26, %v12846_v54  ;;  %v878_v27 = vsel %vm15853_vm4, %v868_v21, %v870_v41  ;;  %999 = vrot.lane.b32.xlu0 %v12205_v62, %s9419_s11  ;;  %v8770_v40 = vpack.c.bf16 %v11791_v32, %v11779_v43  ;;  %v8772_v30 = vpack.c.bf16 %v11958_v38, %v11953_v33 }
 0x224   :  { %16900 = vst [vmem:[#allocation29_spill] sm:$0xff] %v12844_v25  ;;  %16901 = vst [vmem:[#allocation30_spill] sm:$0xff] %v12850_v55  ;;  %8767 = vmatpush3.bf16.msra.mxu1 %v8766_v23  ;;  %v3183_v48 = vand.u32 4294901760, %v3182_v1  ;;  %v2836_v37 = vand.u32 4294901760, %v892_v63  ;;  %v3187_v31 = vand.u32 4294901760, %v12844_v25  ;;  %v2834_v5 = vand.u32 4294901760, %v878_v27 }
 0x225   :  { %8769 = vmatprep.subr.bf16.mxu1 %v8768_v61  ;;  %1010 = vrot.lane.b32.xlu1 %v12669_v42, %s9420_s6  ;;  %v883_v23 = vpop.permute.xlu0 %882  ;;  %vm15860_vm4 = vcmp.lt.s32.totalorder %v9580_v4, 106 }
 0x226   :  { %v12864_v35 = vsub.f32 %v892_v63, %v2836_v37  ;;  %v12868_v21 = vpack.c.bf16 %v2836_v37, %v2832_v16  ;;  %v12870_v41 = vpack.c.bf16 %v3183_v48, %v3171_v17  ;;  %v12872_v61 = vsub.f32 %v878_v27, %v2834_v5  ;;  %v900_v43 = vpop.permute.xlu1 %899 }
 0x227   :  { %v893_v32 = vsel %vm15854_vm5, %v883_v23, %v885_v26  ;;  %v3188_v1 = vsub.f32 %v12844_v25, %v3187_v31  ;;  %1012 = vrot.lane.b32.xlu0 %v12781_v0, %s9420_s6  ;;  %v8774_v37 = vpack.c.bf16 %v16843_v58, %v12058_v50  ;;  %v8776_v17 = vpack.c.bf16 %v12281_v12, %v12255_v11  ;;  %v1187_v50 = vld [vmem:[%s15407_s1 + $0x10] sm:$0xff] }
 0x228   :  { %16902 = vst [vmem:[#allocation212_spill] sm:$0xff] %v12864_v35  ;;  %16903 = vst [vmem:[#allocation213_spill] sm:$0xff] %v12868_v21  ;;  %8771 = vmatpush3.bf16.msra.mxu1 %v8770_v40  ;;  %v2838_v63 = vand.u32 4294901760, %v893_v32  ;;  %v3199_v38 = vand.u32 4294901760, %v12864_v35  ;;  %v3193_v48 = vand.u32 4294901760, %v12872_v61  ;;  %8161 = vmatprep.subr.bf16.mxu0 %v12868_v21  ;;  %vm920_vm5 = vcmp.lt.s32.totalorder %v9580_v4, 105 }
 0x229   :  { %16904 = vst [vmem:[#allocation214_spill] sm:$0xff] %v12872_v61  ;;  %8773 = vmatprep.subr.bf16.mxu1 %v8772_v30  ;;  %1025 = vrot.lane.b32.xlu1 %v12669_v42, %s9421_s13  ;;  %v12895_v27 = vpop.permute.xlu0 %901 }
 0x22a   :  { %v12891_v26 = vpack.c.bf16 %v2838_v63, %v2834_v5  ;;  %v12893_v16 = vsub.f32 %v893_v32, %v2838_v63  ;;  %v3200_v58 = vsub.f32 %v12864_v35, %v3199_v38  ;;  %v12901_v40 = vpack.c.bf16 %v3199_v38, %v3187_v31  ;;  %v915_v11 = vpop.permute.xlu1 %914  ;;  %v16932_v35 = vld [vmem:[#allocation34_spill] sm:$0xff] }
 0x22b   :  { %v3194_v30 = vsub.f32 %v12872_v61, %v3193_v48  ;;  %v907_v12 = vsel %vm15860_vm4, %v900_v43, %v12895_v27  ;;  %v3189_v5 = vand.u32 4294901760, %v3188_v1  ;;  %1027 = vrot.lane.b32.xlu0 %v12781_v0, %s9421_s13  ;;  %v8778_v38 = vpack.c.bf16 %v12383_v29, %v12364_v24 }
 0x22c   :  { %16905 = vst [vmem:[#allocation215_spill] sm:$0xff] %v12891_v26  ;;  %16906 = vst [vmem:[#allocation216_spill] sm:$0xff] %v12893_v16  ;;  %8775 = vmatpush3.bf16.msra.mxu1 %v8774_v37  ;;  %v3205_v23 = vand.u32 4294901760, %v12893_v16  ;;  %v2840_v63 = vand.u32 4294901760, %v907_v12  ;;  %v3201_v31 = vand.u32 4294901760, %v3200_v58  ;;  %8163 = vmatpush1.bf16.msra.mxu0 %v12891_v26  ;;  %v12918_v1 = vand.u32 4294901760, %v1187_v50 }
 0x22d   :  { %16907 = vst [vmem:[#allocation217_spill] sm:$0xff] %v12901_v40  ;;  %8777 = vmatprep.subr.bf16.mxu1 %v8776_v17  ;;  %1008 = vrot.lane.b32.xlu1 %v12707_v7, %s9420_s6  ;;  %v12921_v33 = vpop.permute.xlu0 %916  ;;  %v3195_v40 = vand.u32 4294901760, %v3194_v30  ;;  %v16911_v26 = vld [vmem:[#allocation67_spill] sm:$0xff] }
 0x22e   :  { %16908 = vst [vmem:[#allocation218_spill] sm:$0xff] %v12918_v1  ;;  %v3206_v37 = vsub.f32 %v12893_v16, %v3205_v23  ;;  %v12923_v17 = vpack.c.bf16 %v3201_v31, %v3189_v5  ;;  %v12925_v32 = vpack.c.bf16 %v3205_v23, %v3193_v48  ;;  %v922_v29 = vsel %vm920_vm5, %v915_v11, %v12921_v33  ;;  %v898_v24 = vpop.permute.xlu1 %897  ;;  %v16925_v16 = vld [vmem:[#allocation106_spill] sm:$0xff] }
 0x22f   :  { %v12930_v55 = vsub.f32 %v907_v12, %v2840_v63  ;;  %v2844_v21 = vand.u32 4294901760, %v922_v29  ;;  %v908_v61 = vsel %vm15860_vm4, %v898_v24, %v900_v43  ;;  %1023 = vrot.lane.b32.xlu0 %v12707_v7, %s9421_s13  ;;  %v12940_v30 = vsub.f32 %v1187_v50, %v12918_v1  ;;  %v16914_v12 = vld [vmem:[#allocation151_spill] sm:$0xff]  ;;  %v16918_v50 = vld [vmem:[#allocation44_spill] sm:$0xff]  ;;  %v16948_v1 = vld [vmem:[#allocation9_spill] sm:$0xff] }
 0x230   :  { %16909 = vst [vmem:[#allocation219_spill] sm:$0xff] %v12925_v32  ;;  %8779 = vmatpush3.bf16.msra.mxu1 %v8778_v38  ;;  %v3207_v58 = vand.u32 4294901760, %v3206_v37  ;;  %v2842_v48 = vand.u32 4294901760, %v908_v61  ;;  %v16917_v37 = vld [vmem:[#allocation69_spill] sm:$0xff]  ;;  %vm941_vm4 = vcmp.lt.s32.totalorder %v9580_v4, 88 }
 0x231   :  { %16910 = vst [vmem:[#allocation220_spill] sm:$0xff] %v12930_v55  ;;  %8781 = vmatprep.subr.bf16.mxu1 %v16911_v26  ;;  %1014 = vrot.lane.b32.xlu1 %v12205_v62, %s9420_s6  ;;  %16912 = vst [vmem:[#allocation67_spill] sm:$0xff] %v12940_v30  ;;  %v12942_v5 = vsub.f32 %v922_v29, %v2844_v21  ;;  %v913_v23 = vpop.permute.xlu0 %912  ;;  %v12945_v31 = vpack.c.bf16 %v2844_v21, %v2840_v63  ;;  %v16919_v29 = vld [vmem:[#allocation76_spill] sm:$0xff]  ;;  %v15864_v21 = vand.u32 4294901760, %v12930_v55 }
 0x232   :  { %v12947_v38 = vpack.c.bf16 %v3207_v58, %v3195_v40  ;;  %v12949_v43 = vsub.f32 %v908_v61, %v2842_v48  ;;  %v923_v24 = vsel %vm920_vm5, %v913_v23, %v915_v11  ;;  %v936_v32 = vpop.permute.xlu1 %935  ;;  %v12967_v11 = vand.u32 4294901760, %v12940_v30  ;;  %v16924_v40 = vld [vmem:[#allocation90_spill] sm:$0xff] }
 0x233   :  { %16913 = vst [vmem:[#allocation221_spill] sm:$0xff] %v12942_v5  ;;  %5383 = vmatmul.mubr.f32.vlgmr.msra.gmra.mrb[6].mxu1 %v16914_v12  ;;  %16915 = vst [vmem:[#allocation151_spill] sm:$0xff] %v12945_v31  ;;  %v2846_v12 = vand.u32 4294901760, %v923_v24  ;;  %1029 = vrot.lane.b32.xlu0 %v12205_v62, %s9421_s13  ;;  %v15865_v61 = vand.u32 4294901760, %v12942_v5 }
 0x234   :  { %16916 = vst [vmem:[#allocation222_spill] sm:$0xff] %v12949_v43  ;;  %8783 = vmatpush3.bf16.msra.mxu1 %v16917_v37  ;;  %5487 = vmatprep.mubr.f32.mxu1 %v16918_v50  ;;  %16920 = vst [vmem:[#allocation69_spill] sm:$0xff] %v12967_v11 }
 0x235   :  { %8785 = vmatprep.subr.bf16.mxu1 %v16919_v29  ;;  %1040 = vrot.lane.b32.xlu1 %v12669_v42, %s9422_s7  ;;  %v12969_v63 = vpack.c.bf16 %v2846_v12, %v2842_v48  ;;  %v12971_v58 = vsub.f32 %v923_v24, %v2846_v12  ;;  %v12973_v62 = vpop.permute.xlu0 %937  ;;  %v12979_v23 = vpack.c.bf16 %v15865_v61, %v15864_v21  ;;  %v16926_v21 = vld [vmem:[#allocation138_spill] sm:$0xff] }
 0x236   :  { %8165 = vmatprep.subr.bf16.mxu0 %v12945_v31  ;;  %v12986_v31 = vsel %vm941_vm4, %v936_v32, %v12973_v62  ;;  %v934_v48 = vpop.permute.xlu1 %933  ;;  %v2865_v12 = vsub.f32 %v12940_v30, %v12967_v11  ;;  %v16936_v30 = vld [vmem:[#allocation68_spill] sm:$0xff] }
 0x237   :  { %16921 = vst [vmem:[#allocation44_spill] sm:$0xff] %v12969_v63  ;;  %16922 = vst [vmem:[#allocation76_spill] sm:$0xff] %v12971_v58  ;;  %v12995_v61 = vsel %vm941_vm4, %v934_v48, %v936_v32  ;;  %1042 = vrot.lane.b32.xlu0 %v12781_v0, %s9422_s7  ;;  %8167 = vmatpush1.bf16.msra.mxu0 %v12969_v63  ;;  %v16929_v48 = vand.u32 4294901760, %v12949_v43  ;;  %v16930_v25 = vand.u32 4294901760, %v12971_v58 }
 0x238   :  { %16923 = vst [vmem:[#allocation223_spill] sm:$0xff] %v12979_v23  ;;  %8787 = vmatpush3.bf16.msra.mxu1 %v16924_v40  ;;  %v16927_v23 = vand.u32 4294901760, %v12986_v31  ;;  %v16933_v15 = vand.u32 4294901760, %v12995_v61  ;;  %v16958_v40 = vld [vmem:[#allocation94_spill] sm:$0xff] }
 0x239   :  { %8789 = vmatprep.subr.bf16.mxu1 %v16925_v16  ;;  %1038 = vrot.lane.b32.xlu1 %v12707_v7, %s9422_s7  ;;  %v13005_v24 = vpop.permute.xlu0 %735  ;;  %v13016_v50 = vpack.c.bf16 %v16930_v25, %v16929_v48  ;;  %v16940_v48 = vld [vmem:[#allocation171_spill] sm:$0xff] }
 0x23a   :  { %v13010_v32 = vpack.c.bf16 %v16927_v23, %v16926_v21  ;;  %v13021_v63 = vpack.c.bf16 %v16933_v15, %v16932_v35  ;;  %v13024_v11 = vpop.permute.xlu1 %750  ;;  %v13030_v21 = vld [vmem:[%s15406_s0 + $0x20] sm:$0xff]  ;;  %v13037_v15 = vand.u32 4294901760, %v2865_v12  ;;  %v16939_v35 = vld [vmem:[#allocation96_spill] sm:$0xff] }
 0x23b   :  { %16931 = vst [vmem:[#allocation224_spill] sm:$0xff] %v13016_v50  ;;  %1044 = vrot.lane.b32.xlu0 %v13030_v21, %s9422_s7  ;;  %v16941_v12 = vld [vmem:[#allocation180_spill] sm:$0xff] }
 0x23c   :  { %16928 = vst [vmem:[#allocation138_spill] sm:$0xff] %v13010_v32  ;;  %16934 = vst [vmem:[#allocation34_spill] sm:$0xff] %v13021_v63  ;;  %8791 = vmatpush3.bf16.msra.mxu1 %v16935_v45  ;;  %8169 = vmatprep.subr.bf16.mxu0 %v13010_v32  ;;  %v15891_v45 = vand.u32 4294901760, %v12677_v36 }
 0x23d   :  { %8793 = vmatprep.subr.bf16.mxu1 %v16936_v30  ;;  %1053 = vrot.lane.b32.xlu1 %v13030_v21, %s16937_s17  ;;  %16938 = vst [vmem:[#allocation225_spill] sm:$0xff] %v13037_v15  ;;  %v13040_v25 = vpop.permute.xlu0 %495  ;;  %v15892_v30 = vand.u32 4294901760, %v12647_v60 }
 0x23e   :  { %8171 = vmatpush1.bf16.msra.mxu0 %v13021_v63  ;;  %v13043_v23 = vpop.permute.xlu1 %510  ;;  %v16942_v63 = vld [vmem:[#allocation89_spill] sm:$0xff] }
 0x23f   :  { %8173 = vmatprep.subr.bf16.mxu0 %v16940_v48  ;;  %1061 = vrot.lane.b32.xlu0 %v12669_v42, %s9423_s28  ;;  %v16943_v48 = vld [vmem:[#allocation6_spill] sm:$0xff] }
 0x240   :  { %8795 = vmatpush3.bf16.msra.mxu1 %v16939_v35 }
 0x241   :  { %8797 = vmatprep.subr.bf16.mxu1 %v12183_v52  ;;  %1063 = vrot.lane.b32.xlu1 %v12781_v0, %s9423_s28  ;;  %v13051_v50 = vpop.permute.xlu0 %765  ;;  %v16956_v52 = vld [vmem:[#allocation66_spill] sm:$0xff] }
 0x242   :  { %2867 = vmatmul.mubr.f32.vlgmr.msra.gmra.mrb[0].mxu0 %v13037_v15  ;;  %v13055_v32 = vpop.permute.xlu1 %780  ;;  %v16944_v15 = vld [vmem:[#allocation86_spill] sm:$0xff] }
 0x243   :  { %8175 = vmatpush1.bf16.msra.mxu0 %v16941_v12  ;;  %3258 = vmatprep.mubr.f32.mxu0 %v16942_v63 }
 0x244   :  { %8799 = vmatpush3.bf16.msra.mxu1 %v12259_v9  ;;  %8177 = vmatprep.subr.bf16.mxu0 %v16943_v48  ;;  %v16945_v9 = vld [vmem:[#allocation18_spill] sm:$0xff]  ;;  %v16946_v48 = vld [vmem:[#allocation187_spill] sm:$0xff] }
 0x245   :  { %8801 = vmatprep.subr.bf16.mxu1 %v12270_v20  ;;  %1076 = vrot.lane.b32.xlu0 %v12669_v42, %s9424_s26  ;;  %v13062_v12 = vpop.permute.xlu0 %525 }
 0x246   :  { %1078 = vrot.lane.b32.xlu1 %v12781_v0, %s9424_s26  ;;  %v13065_v63 = vpop.permute.xlu1 %540 }
 0x247   :  { %8179 = vmatpush1.bf16.msra.mxu0 %v16944_v15 }
 0x248   :  { %8803 = vmatpush3.bf16.msra.mxu1 %v12306_v34  ;;  %8181 = vmatprep.subr.bf16.mxu0 %v16945_v9  ;;  %v16949_v9 = vld [vmem:[#allocation19_spill] sm:$0xff]  ;;  %v16954_v34 = vld [vmem:[#allocation154_spill] sm:$0xff] }
 0x249   :  { %8805 = vmatprep.subr.bf16.mxu1 %v12343_v46  ;;  %1059 = vrot.lane.b32.xlu0 %v12707_v7, %s9423_s28  ;;  %v13072_v20 = vpop.permute.xlu0 %795 }
 0x24a   :  { %1074 = vrot.lane.b32.xlu1 %v12707_v7, %s9424_s26  ;;  %16947 = vst [vmem:[#allocation171_spill] sm:$0xff] %v13072_v20  ;;  %v13075_v15 = vpop.permute.xlu1 %555  ;;  %v16950_v20 = vld [vmem:[#allocation45_spill] sm:$0xff] }
 0x24b   :  { %8183 = vmatpush1.bf16.msra.mxu0 %v16946_v48 }
 0x24c   :  { %8807 = vmatpush3.bf16.msra.mxu1 %v12380_v53  ;;  %8185 = vmatprep.subr.bf16.mxu0 %v16948_v1  ;;  %v16951_v53 = vld [vmem:[#allocation174_spill] sm:$0xff] }
 0x24d   :  { %8809 = vmatprep.subr.bf16.mxu1 %v12405_v59  ;;  %1065 = vrot.lane.b32.xlu0 %v13030_v21, %s9423_s28  ;;  %v13082_v46 = vpop.permute.xlu0 %570  ;;  %v16952_v1 = vld [vmem:[#allocation46_spill] sm:$0xff] }
 0x24e   :  { %1080 = vrot.lane.b32.xlu1 %v13030_v21, %s9424_s26  ;;  %v13085_v48 = vpop.permute.xlu1 %813 }
 0x24f   :  { %8187 = vmatpush1.bf16.msra.mxu0 %v16949_v9  ;;  %v16953_v9 = vand.u32 4294901760, %v16868_v6  ;;  %v16959_v6 = vand.u32 4294901760, %v12986_v31 }
 0x250   :  { %8811 = vmatpush3.bf16.msra.mxu1 %v12440_v14  ;;  %8189 = vmatprep.subr.bf16.mxu0 %v16950_v20  ;;  %v16955_v14 = vld [vmem:[#allocation77_spill] sm:$0xff]  ;;  %v16957_v20 = vand.u32 4294901760, %v16870_v39 }
 0x251   :  { %8813 = vmatprep.subr.bf16.mxu1 %v16951_v53  ;;  %1091 = vrot.lane.b32.xlu0 %v12669_v42, %s9425_s29  ;;  %v8814_v59 = vpack.c.bf16 %v16953_v9, %v16952_v1  ;;  %v13101_v53 = vpop.permute.xlu0 %828  ;;  %v16964_v9 = vld [vmem:[#allocation185_spill] sm:$0xff]  ;;  %v16971_v1 = vand.u32 4294901760, %v12971_v58 }
 0x252   :  { %1093 = vrot.lane.b32.xlu1 %v12781_v0, %s9425_s29  ;;  %v8816_v35 = vpack.c.bf16 %v16957_v20, %v16956_v52  ;;  %v13105_v16 = vpop.permute.xlu1 %585  ;;  %v16965_v20 = vld [vmem:[#allocation132_spill] sm:$0xff] }
 0x253   :  { %5491 = vmatmul.mubr.f32.vlgmr.msra.gmra.mrb[8].mxu1 %v16954_v34  ;;  %8191 = vmatpush1.bf16.msra.mxu0 %v16955_v14  ;;  %v13111_v34 = vsub.f32 %v12986_v31, %v16959_v6  ;;  %v16961_v14 = vand.u32 4294901760, %v12995_v61  ;;  %v3116_v31 = vsub.f32 %v12647_v60, %v15892_v30  ;;  %v16969_v30 = vld [vmem:[#allocation136_spill] sm:$0xff]  ;;  %v17031_v60 = vld [vmem:[#allocation122_spill] sm:$0xff] }
 0x254   :  { %8815 = vmatpush3.bf16.msra.mxu1 %v8814_v59  ;;  %8193 = vmatprep.subr.bf16.mxu0 %v16958_v40  ;;  %v16963_v59 = vld [vmem:[#allocation100_spill] sm:$0xff] }
 0x255   :  { %16960 = vst [vmem:[#allocation180_spill] sm:$0xff] %v13111_v34  ;;  %8817 = vmatprep.subr.bf16.mxu1 %v8816_v35  ;;  %1106 = vrot.lane.b32.xlu0 %v12669_v42, %s9426_s30  ;;  %v13118_v39 = vsub.f32 %v12995_v61, %v16961_v14  ;;  %v13124_v40 = vpop.permute.xlu0 %600  ;;  %v3122_v35 = vsub.f32 %v12677_v36, %v15891_v45  ;;  %v3117_v6 = vand.u32 4294901760, %v3116_v31  ;;  %v16972_v36 = vld [vmem:[#allocation162_spill] sm:$0xff] }
 0x256   :  { %1108 = vrot.lane.b32.xlu1 %v12781_v0, %s9426_s30  ;;  %5657 = vmatprep.mubr.f32.mxu1 %v16821_v28  ;;  %v13133_v61 = vpop.permute.xlu1 %843  ;;  %v13141_v14 = vsel %vm737_vm11, %v12387_v8, %v13005_v24  ;;  %v16968_v24 = vld [vmem:[#allocation157_spill] sm:$0xff]  ;;  %vm17054_vm11 = vcmp.lt.s32.totalorder %v9580_v4, 24 }
 0x257   :  { %16962 = vst [vmem:[#allocation6_spill] sm:$0xff] %v13118_v39  ;;  %8195 = vmatpush1.bf16.msra.mxu0 %v16963_v59  ;;  %v16966_v59 = vld [vmem:[#allocation133_spill] sm:$0xff]  ;;  %v3123_v52 = vand.u32 4294901760, %v3122_v35  ;;  %v16974_v35 = vand.u32 4294901760, %v12949_v43 }
 0x258   :  { %8819 = vmatpush3.bf16.msra.mxu1 %v16964_v9  ;;  %8197 = vmatprep.subr.bf16.mxu0 %v16965_v20  ;;  %v13151_v9 = vsel %vm752_vm12, %v12429_v44, %v13024_v11  ;;  %v16967_v20 = vand.u32 4294901760, %v12942_v5  ;;  %v16970_v44 = vand.u32 4294901760, %v12930_v55  ;;  %vm17057_vm12 = vcmp.lt.s32.totalorder %v9580_v4, 104 }
 0x259   :  { %8821 = vmatprep.subr.bf16.mxu1 %v16966_v59  ;;  %1089 = vrot.lane.b32.xlu0 %v12707_v7, %s9425_s29  ;;  %v13162_v59 = vsel %vm497_vm13, %v16968_v24, %v13040_v25  ;;  %v13165_v45 = vpop.permute.xlu0 %858  ;;  %v13178_v25 = vsel %vm512_vm0, %v16972_v36, %v13043_v23  ;;  %v3218_v24 = vsub.f32 %v12949_v43, %v16974_v35  ;;  %v16975_v36 = vld [vmem:[#allocation17_spill] sm:$0xff]  ;;  %v16976_v23 = vand.u32 4294901760, %v13111_v34 }
 0x25a   :  { %1104 = vrot.lane.b32.xlu1 %v12707_v7, %s9426_s30  ;;  %v3224_v8 = vsub.f32 %v12942_v5, %v16967_v20  ;;  %v3212_v11 = vsub.f32 %v12930_v55, %v16970_v44  ;;  %v3230_v20 = vsub.f32 %v12971_v58, %v16971_v1  ;;  %v13181_v31 = vpop.permute.xlu1 %615  ;;  %v13192_v44 = vsel %vm767_vm9, %v12526_v56, %v13051_v50 }
 0x25b   :  { %8199 = vmatpush1.bf16.msra.mxu0 %v16969_v30  ;;  %v16973_v30 = vld [vmem:[#allocation139_spill] sm:$0xff]  ;;  %v16978_v56 = vand.u32 4294901760, %v12230_v18  ;;  %v15903_v5 = vand.u32 4294901760, %v13178_v25  ;;  %v16981_v55 = vand.u32 4294901760, %v13141_v14  ;;  %vm16989_vm0 = vcmp.lt.s32.totalorder %v9580_v4, 49 }
 0x25c   :  { %8823 = vmatpush3.bf16.msra.mxu1 %v16973_v30  ;;  %8201 = vmatprep.subr.bf16.mxu0 %v12367_v19  ;;  %v3248_v19 = vsub.f32 %v13111_v34, %v16976_v23  ;;  %v16977_v30 = vand.u32 4294901760, %v13118_v39  ;;  %v16979_v23 = vand.u32 4294901760, %v12412_v22  ;;  %v3213_v58 = vand.u32 4294901760, %v3212_v11  ;;  %v16982_v22 = vld [vmem:[#allocation22_spill] sm:$0xff] }
 0x25d   :  { %8825 = vmatprep.subr.bf16.mxu1 %v16975_v36  ;;  %1095 = vrot.lane.b32.xlu0 %v13030_v21, %s9425_s29  ;;  %v8830_v50 = vpack.c.bf16 %v12456_v49, %v16978_v56  ;;  %v3225_v36 = vand.u32 4294901760, %v3224_v8  ;;  %v13211_v43 = vpop.permute.xlu0 %630  ;;  %v3231_v34 = vand.u32 4294901760, %v3230_v20  ;;  %v13220_v18 = vsub.f32 %v13141_v14, %v16981_v55  ;;  %v16985_v20 = vld [vmem:[#allocation47_spill] sm:$0xff] }
 0x25e   :  { %v3254_v35 = vsub.f32 %v13118_v39, %v16977_v30  ;;  %1110 = vrot.lane.b32.xlu1 %v13030_v21, %s9426_s30  ;;  %v8832_v30 = vpack.c.bf16 %v12479_v51, %v16979_v23  ;;  %v16980_v39 = vld [vmem:[#allocation60_spill] sm:$0xff]  ;;  %v13230_v56 = vpop.permute.xlu1 %873  ;;  %v16984_v11 = vand.u32 4294901760, %v13151_v9  ;;  %v3249_v23 = vand.u32 4294901760, %v3248_v19 }
 0x25f   :  { %8203 = vmatpush1.bf16.msra.mxu0 %v12438_v47  ;;  %v8212_v1 = vpack.c.bf16 %v16980_v39, %v3117_v6  ;;  %v13227_v47 = vsel %vm782_vm6, %v12560_v2, %v13055_v32  ;;  %v16983_v39 = vld [vmem:[#allocation38_spill] sm:$0xff]  ;;  %v3219_v6 = vand.u32 4294901760, %v3218_v24  ;;  %v16986_v2 = vld [vmem:[#allocation156_spill] sm:$0xff]  ;;  %v16987_v8 = vand.u32 4294901760, %v13162_v59 }
 0x260   :  { %8827 = vmatpush3.bf16.msra.mxu1 %v16982_v22  ;;  %8205 = vmatprep.subr.bf16.mxu0 %v16983_v39  ;;  %v13236_v55 = vsub.f32 %v13151_v9, %v16984_v11  ;;  %v8214_v32 = vpack.c.bf16 %v16986_v2, %v3123_v52  ;;  %v3255_v22 = vand.u32 4294901760, %v3254_v35  ;;  %v16988_v24 = vld [vmem:[#allocation170_spill] sm:$0xff]  ;;  %v13260_v52 = vsub.f32 %v13178_v25, %v15903_v5  ;;  %v16991_v35 = vld [vmem:[#allocation173_spill] sm:$0xff]  ;;  %v17015_v51 = vld [vmem:[#allocation88_spill] sm:$0xff] }
 0x261   :  { %8829 = vmatprep.subr.bf16.mxu1 %v16985_v20  ;;  %1121 = vrot.lane.b32.xlu0 %v12669_v42, %s9427_s8  ;;  %v13245_v39 = vsub.f32 %v13162_v59, %v16987_v8  ;;  %v13251_v11 = vsel %vm16989_vm0, %v16988_v24, %v13062_v12  ;;  %v13255_v20 = vpack.c.bf16 %v3225_v36, %v3213_v58  ;;  %v16993_v12 = vld [vmem:[#allocation71_spill] sm:$0xff]  ;;  %v13276_v58 = vpop.permute.xlu0 %888  ;;  %v16995_v24 = vand.u32 4294901760, %v13192_v44 }
 0x262   :  { %16990 = vst [vmem:[#allocation86_spill] sm:$0xff] %v13251_v11  ;;  %1123 = vrot.lane.b32.xlu1 %v12781_v0, %s9427_s8  ;;  %v13267_v8 = vsel %vm542_vm15, %v16991_v35, %v13065_v63  ;;  %v13273_v2 = vsel %vm557_vm14, %v16993_v12, %v13075_v15  ;;  %v16997_v63 = vld [vmem:[#allocation79_spill] sm:$0xff]  ;;  %v13290_v15 = vpop.permute.xlu1 %645  ;;  %vm17016_vm13 = vcmp.lt.s32.totalorder %v9580_v4, 106  ;;  %vm17021_vm14 = vcmp.lt.s32.totalorder %v9580_v4, 109 }
 0x263   :  { %16992 = vst [vmem:[#allocation18_spill] sm:$0xff] %v13267_v8  ;;  %16994 = vst [vmem:[#allocation187_spill] sm:$0xff] %v13273_v2  ;;  %8207 = vmatpush1.bf16.msra.mxu0 %v12588_v3  ;;  %v13282_v5 = vsub.f32 %v13192_v44, %v16995_v24  ;;  %v13288_v35 = vsel %vm572_vm1, %v16997_v63, %v13082_v46  ;;  %v13293_v3 = vpack.c.bf16 %v3231_v34, %v3219_v6  ;;  %v16999_v24 = vld [vmem:[#allocation205_spill] sm:$0xff]  ;;  %v17001_v46 = vld [vmem:[#allocation194_spill] sm:$0xff] }
 0x264   :  { %16998 = vst [vmem:[#allocation19_spill] sm:$0xff] %v13288_v35  ;;  %8831 = vmatpush3.bf16.msra.mxu1 %v8830_v50  ;;  %8209 = vmatprep.subr.bf16.mxu0 %v12656_v10  ;;  %v13301_v19 = vsel %vm815_vm10, %v16999_v24, %v13085_v48  ;;  %v13306_v50 = vpack.c.bf16 %v3249_v23, %v17001_v46  ;;  %v17002_v63 = vld [vmem:[#allocation208_spill] sm:$0xff]  ;;  %v17004_v23 = vand.u32 4294901760, %v13227_v47  ;;  %v17006_v10 = vld [vmem:[#allocation206_spill] sm:$0xff]  ;;  %v17011_v46 = vld [vmem:[#allocation43_spill] sm:$0xff]  ;;  %vm17033_vm15 = vcmp.lt.s32.totalorder %v9580_v4, 28 }
 0x265   :  { %16996 = vst [vmem:[#allocation9_spill] sm:$0xff] %v13282_v5  ;;  %17000 = vst [vmem:[#allocation45_spill] sm:$0xff] %v13301_v19  ;;  %8833 = vmatprep.subr.bf16.mxu1 %v8832_v30  ;;  %1136 = vrot.lane.b32.xlu0 %v12669_v42, %s9428_s18  ;;  %v13315_v48 = vsel %vm830_vm8, %v17002_v63, %v13101_v53  ;;  %v13327_v12 = vpop.permute.xlu0 %660  ;;  %v17007_v6 = vld [vmem:[#allocation168_spill] sm:$0xff]  ;;  %v17008_v30 = vld [vmem:[#allocation15_spill] sm:$0xff]  ;;  %vm17035_vm1 = vcmp.lt.s32.totalorder %v9580_v4, 27  ;;  %vm17049_vm10 = vcmp.lt.s32.totalorder %v9580_v4, 25 }
 0x266   :  { %17003 = vst [vmem:[#allocation174_spill] sm:$0xff] %v13315_v48  ;;  %1138 = vrot.lane.b32.xlu1 %v12781_v0, %s9428_s18  ;;  %v13323_v24 = vsub.f32 %v13227_v47, %v17004_v23  ;;  %v13330_v34 = vpack.c.bf16 %v3255_v22, %v17007_v6  ;;  %v13338_v36 = vsel %vm587_vm2, %v17008_v30, %v13105_v16  ;;  %v17010_v23 = vld [vmem:[#allocation144_spill] sm:$0xff]  ;;  %v904_v22 = vpop.permute.xlu1 %903  ;;  %v17012_v6 = vand.u32 4294901760, %v13251_v11  ;;  %v17014_v16 = vld [vmem:[#allocation210_spill] sm:$0xff] }
 0x267   :  { %8211 = vmatpush1.bf16.msra.mxu0 %v17006_v10  ;;  %17009 = vst [vmem:[#allocation77_spill] sm:$0xff] %v13338_v36  ;;  %v13344_v10 = vsel %vm602_vm3, %v17010_v23, %v13124_v40  ;;  %v13357_v30 = vsel %vm845_vm7, %v17014_v16, %v13133_v61  ;;  %v906_v40 = vsel %vm17016_vm13, %v12895_v27, %v904_v22  ;;  %v17018_v23 = vand.u32 4294901760, %v13273_v2  ;;  %v17020_v61 = vld [vmem:[#allocation62_spill] sm:$0xff]  ;;  %v17027_v22 = vld [vmem:[#allocation120_spill] sm:$0xff] }
 0x268   :  { %17005 = vst [vmem:[#allocation154_spill] sm:$0xff] %v13323_v24  ;;  %8835 = vmatpush3.bf16.msra.mxu1 %v17011_v46  ;;  %8213 = vmatprep.subr.bf16.mxu0 %v8212_v1  ;;  %v13350_v53 = vsub.f32 %v13251_v11, %v17012_v6  ;;  %v17017_v1 = vand.u32 4294901760, %v13267_v8  ;;  %v5853_v27 = vand.u32 4294901760, %v906_v40  ;;  %v17022_v16 = vand.u32 4294901760, %v13288_v35  ;;  %v17028_v63 = vld [vmem:[#allocation10_spill] sm:$0xff] }
 0x269   :  { %8837 = vmatprep.subr.bf16.mxu1 %v17015_v51  ;;  %1119 = vrot.lane.b32.xlu0 %v12707_v7, %s9427_s8  ;;  %v13373_v6 = vsub.f32 %v13273_v2, %v17018_v23  ;;  %v13379_v51 = vsel %vm17021_vm14, %v17020_v61, %v13165_v45  ;;  %v919_v49 = vpop.permute.xlu0 %918  ;;  %v17024_v45 = vand.u32 4294901760, %v13301_v19  ;;  %v17041_v11 = vand.u32 4294901760, %v13357_v30 }
 0x26a   :  { %17013 = vst [vmem:[#allocation94_spill] sm:$0xff] %v13350_v53  ;;  %v13368_v46 = vsub.f32 %v13267_v8, %v17017_v1  ;;  %1134 = vrot.lane.b32.xlu1 %v12707_v7, %s9428_s18  ;;  %v13387_v1 = vsub.f32 %v13288_v35, %v17022_v16  ;;  %v13397_v2 = vsub.f32 %v906_v40, %v5853_v27  ;;  %v13403_v23 = vpop.permute.xlu1 %675  ;;  %v17029_v35 = vand.u32 4294901760, %v13315_v48 }
 0x26b   :  { %17019 = vst [vmem:[#allocation100_spill] sm:$0xff] %v13373_v6  ;;  %8215 = vmatpush1.bf16.msra.mxu0 %v8214_v32  ;;  %v13394_v61 = vsub.f32 %v13301_v19, %v17024_v45  ;;  %v921_v16 = vsel %vm920_vm5, %v12921_v33, %v919_v49  ;;  %v17037_v33 = vand.u32 4294901760, %v13344_v10  ;;  %vm956_vm2 = vcmp.lt.s32.totalorder %v9580_v4, 87 }
 0x26c   :  { %17023 = vst [vmem:[#allocation185_spill] sm:$0xff] %v13387_v1  ;;  %17026 = vst [vmem:[#allocation133_spill] sm:$0xff] %v13397_v2  ;;  %8839 = vmatpush3.bf16.msra.mxu1 %v17027_v22  ;;  %8217 = vmatprep.subr.bf16.mxu0 %v17028_v63  ;;  %v13410_v45 = vsub.f32 %v13315_v48, %v17029_v35  ;;  %v5856_v22 = vand.u32 4294901760, %v921_v16  ;;  %v17032_v63 = vld [vmem:[#allocation26_spill] sm:$0xff]  ;;  %v17034_v35 = vld [vmem:[#allocation16_spill] sm:$0xff]  ;;  %vm17044_vm3 = vcmp.lt.s32.totalorder %v9580_v4, 108 }
 0x26d   :  { %17025 = vst [vmem:[#allocation132_spill] sm:$0xff] %v13394_v61  ;;  %8841 = vmatprep.subr.bf16.mxu1 %v17031_v60  ;;  %1125 = vrot.lane.b32.xlu0 %v13030_v21, %s9427_s8  ;;  %v13422_v32 = vsel %vm17033_vm15, %v17032_v63, %v13181_v31  ;;  %v13428_v40 = vsel %vm17035_vm1, %v17034_v35, %v13211_v43  ;;  %v17036_v60 = vand.u32 4294901760, %v13338_v36  ;;  %v17039_v63 = vld [vmem:[#allocation124_spill] sm:$0xff]  ;;  %v691_v19 = vpop.permute.xlu0 %690  ;;  %vm17045_vm5 = vcmp.lt.s32.totalorder %v9580_v4, 107 }
 0x26e   :  { %17030 = vst [vmem:[#allocation157_spill] sm:$0xff] %v13410_v45  ;;  %1140 = vrot.lane.b32.xlu1 %v13030_v21, %s9428_s18  ;;  %v13440_v48 = vsub.f32 %v13344_v10, %v17037_v33  ;;  %v13442_v31 = vsub.f32 %v921_v16, %v5856_v22  ;;  %v13445_v43 = vpack.c.bf16 %v5856_v22, %v5853_v27  ;;  %v17042_v33 = vld [vmem:[#allocation147_spill] sm:$0xff]  ;;  %v928_v16 = vpop.permute.xlu1 %927  ;;  %v17043_v27 = vand.u32 4294901760, %v13379_v51 }
 0x26f   :  { %v13435_v49 = vsub.f32 %v13338_v36, %v17036_v60  ;;  %8219 = vmatpush1.bf16.msra.mxu0 %v17039_v63  ;;  %v13452_v60 = vsub.f32 %v13357_v30, %v17041_v11  ;;  %v15917_v36 = vand.u32 4294901760, %v13397_v2  ;;  %v15915_v8 = vand.u32 4294901760, %v13422_v32  ;;  %v17050_v63 = vld [vmem:[#allocation145_spill] sm:$0xff] }
 0x270   :  { %17038 = vst [vmem:[#allocation136_spill] sm:$0xff] %v13442_v31  ;;  %17040 = vst [vmem:[#allocation162_spill] sm:$0xff] %v13445_v43  ;;  %8843 = vmatpush3.bf16.msra.mxu1 %v17042_v33  ;;  %8221 = vmatprep.subr.bf16.mxu0 %v12848_v13  ;;  %v13461_v22 = vsub.f32 %v13379_v51, %v17043_v27  ;;  %v15916_v35 = vand.u32 4294901760, %v13428_v40  ;;  %v13473_v13 = vsel %vm17044_vm3, %v12821_v57, %v13230_v56  ;;  %v17046_v57 = vld [vmem:[#allocation42_spill] sm:$0xff] }
 0x271   :  { %8845 = vmatprep.subr.bf16.mxu1 %v16911_v26  ;;  %1151 = vrot.lane.b32.xlu0 %v12669_v42, %s9429_s16  ;;  %v13479_v11 = vsel %vm17045_vm5, %v12846_v54, %v13276_v58  ;;  %vm17047_vm7 = vcmp.lt.s32.totalorder %v9580_v4, 26  ;;  %v17048_v54 = vld [vmem:[#allocation56_spill] sm:$0xff]  ;;  %v940_v42 = vpop.permute.xlu0 %939  ;;  %v17051_v27 = vld [vmem:[#allocation98_spill] sm:$0xff]  ;;  %vm17052_vm8 = vcmp.lt.s32.totalorder %v9580_v4, 8  ;;  %vm17062_vm9 = vcmp.lt.s32.totalorder %v9580_v4, 7 }
 0x272   :  { %1153 = vrot.lane.b32.xlu1 %v12781_v0, %s9429_s16  ;;  %v13492_v56 = vsel %vm17047_vm7, %v17046_v57, %v13290_v15  ;;  %v13498_v58 = vsel %vm17049_vm10, %v17048_v54, %v13327_v12  ;;  %v13506_v26 = vsel %vm17052_vm8, %v17051_v27, %v691_v19  ;;  %v13512_v15 = vsel %vm941_vm4, %v12973_v62, %v940_v42  ;;  %v706_v12 = vpop.permute.xlu1 %705  ;;  %v17053_v54 = vld [vmem:[#allocation84_spill] sm:$0xff]  ;;  %v17056_v57 = vld [vmem:[#allocation37_spill] sm:$0xff]  ;;  %v17061_v42 = vld [vmem:[#allocation134_spill] sm:$0xff] }
 0x273   :  { %5659 = vmatmul.mubr.f32.vlgmr.msra.gmra.mrb[10].mxu1 %v17050_v63  ;;  %8223 = vmatpush1.bf16.msra.mxu0 %v12870_v41  ;;  %v6080_v41 = vsub.f32 %v13397_v2, %v15917_v36  ;;  %v13522_v19 = vsub.f32 %v13422_v32, %v15915_v8  ;;  %vm971_vm4 = vcmp.lt.s32.totalorder %v9580_v4, 86  ;;  %v13535_v62 = vsub.f32 %v13428_v40, %v15916_v35  ;;  %v17064_v36 = vld [vmem:[#allocation90_spill] sm:$0xff]  ;;  %v17065_v35 = vld [vmem:[#allocation141_spill] sm:$0xff] }
 0x274   :  { %8847 = vmatpush3.bf16.msra.mxu1 %v16917_v37  ;;  %8225 = vmatprep.subr.bf16.mxu0 %v12923_v17  ;;  %v15918_v37 = vand.u32 4294901760, %v13473_v13  ;;  %v9352_v17 = vld [vmem:[%s15406_s0 + $0x10] sm:$0xff]  ;;  %v13555_v33 = vsel %vm17057_vm12, %v17056_v57, %v928_v16  ;;  %vm17066_vm6 = vcmp.lt.s32.totalorder %v9580_v4, 6  ;;  %vm986_vm0 = vcmp.lt.s32.totalorder %v9580_v4, 85 }
 0x275   :  { %8849 = vmatprep.subr.bf16.mxu1 %v16919_v29  ;;  %1166 = vrot.lane.b32.xlu0 %v9352_v17, %s9430_s9  ;;  %v13542_v29 = vsel %vm17054_vm11, %v17053_v54, %v13403_v23  ;;  %v17055_v17 = vand.u32 4294901760, %v13442_v31  ;;  %v721_v23 = vpop.permute.xlu0 %720  ;;  %v6081_v57 = vand.u32 4294901760, %v6080_v41  ;;  %vm1001_vm13 = vcmp.lt.s32.totalorder %v9580_v4, 84 }
 0x276   :  { %1168 = vrot.lane.b32.xlu1 %v12781_v0, %s9430_s9  ;;  %5761 = vmatprep.mubr.f32.mxu1 %v16821_v28  ;;  %v17058_v0 = vand.u32 4294901760, %v13220_v18  ;;  %v17059_v28 = vand.u32 4294901760, %v13236_v55  ;;  %v13573_v16 = vsel %vm17066_vm6, %v17065_v35, %v721_v23  ;;  %v17069_v23 = vld [vmem:[#allocation106_spill] sm:$0xff]  ;;  %vm17166_vm14 = vcmp.lt.s32.totalorder %v9580_v4, 1 }
 0x277   :  { %v6087_v8 = vsub.f32 %v13442_v31, %v17055_v17  ;;  %8227 = vmatpush1.bf16.msra.mxu0 %v12947_v38  ;;  %v13567_v17 = vsel %vm17062_vm9, %v17061_v42, %v706_v12  ;;  %17067 = vst [vmem:[#allocation60_spill] sm:$0xff] %v13573_v16  ;;  %v951_v38 = vpop.permute.xlu1 %950  ;;  %v17068_v12 = vand.u32 4294901760, %v13479_v11  ;;  %vm1016_vm15 = vcmp.lt.s32.totalorder %v9580_v4, 83 }
 0x278   :  { %v13562_v54 = vpack.c.bf16 %v17059_v28, %v17058_v0  ;;  %17063 = vst [vmem:[#allocation17_spill] sm:$0xff] %v13567_v17  ;;  %8851 = vmatpush3.bf16.msra.mxu1 %v17064_v36  ;;  %8229 = vmatprep.subr.bf16.mxu0 %v13255_v20  ;;  %v13579_v0 = vsub.f32 %v13473_v13, %v15918_v37  ;;  %v17070_v20 = vand.u32 4294901760, %v13498_v58  ;;  %v17073_v37 = vand.u32 4294901760, %v13260_v52 }
 0x279   :  { %v6088_v27 = vand.u32 4294901760, %v6087_v8  ;;  %v13584_v42 = vsub.f32 %v13479_v11, %v17068_v12  ;;  %8853 = vmatprep.subr.bf16.mxu1 %v17069_v23  ;;  %1149 = vrot.lane.b32.xlu0 %v12707_v7, %s9429_s16  ;;  %v17072_v12 = vand.u32 4294901760, %v13245_v39  ;;  %v17075_v36 = vand.u32 4294901760, %v13492_v56 }
 0x27a   :  { %17060 = vst [vmem:[#allocation139_spill] sm:$0xff] %v13562_v54  ;;  %v13594_v8 = vsub.f32 %v13498_v58, %v17070_v20  ;;  %1164 = vrot.lane.b32.xlu1 %v12707_v7, %s9430_s9  ;;  %v953_v7 = vpop.permute.xlu0 %952  ;;  %v17079_v54 = vand.u32 4294901760, %v13282_v5  ;;  %v17093_v5 = vand.u32 4294901760, %v13567_v17  ;;  %vm1031_vm1 = vcmp.lt.s32.totalorder %v9580_v4, 82 }
 0x27b   :  { %v13599_v28 = vpack.c.bf16 %v6088_v27, %v6081_v57  ;;  %v13605_v23 = vpack.c.bf16 %v17073_v37, %v17072_v12  ;;  %v13611_v20 = vsub.f32 %v13492_v56, %v17075_v36  ;;  %8231 = vmatpush1.bf16.msra.mxu0 %v13293_v3  ;;  %v17076_v57 = vand.u32 4294901760, %v13506_v26  ;;  %v17077_v12 = vld [vmem:[#allocation113_spill] sm:$0xff]  ;;  %v966_v35 = vpop.permute.xlu1 %965 }
 0x27c   :  { %8855 = vmatpush3.bf16.msra.mxu1 %v17077_v12  ;;  %v13625_v36 = vsel %vm956_vm2, %v951_v38, %v953_v7  ;;  %8233 = vmatprep.subr.bf16.mxu0 %v13306_v50  ;;  %v17080_v3 = vand.u32 4294901760, %v13323_v24  ;;  %v17084_v50 = vld [vmem:[#allocation68_spill] sm:$0xff]  ;;  %vm1067_vm3 = vcmp.lt.s32.totalorder %v9580_v4, 64  ;;  %vm17312_vm5 = vcmp.lt.s32.totalorder %v9580_v4, 80 }
 0x27d   :  { %17071 = vst [vmem:[#allocation22_spill] sm:$0xff] %v13599_v28  ;;  %17074 = vst [vmem:[#allocation38_spill] sm:$0xff] %v13605_v23  ;;  %v13620_v37 = vsub.f32 %v13506_v26, %v17076_v57  ;;  %v17082_v23 = vand.u32 4294901760, %v13542_v29  ;;  %8857 = vmatprep.subr.bf16.mxu1 %v17084_v50  ;;  %1155 = vrot.lane.b32.xlu0 %v13030_v21, %s9429_s16  ;;  %v17089_v50 = vand.u32 4294901760, %v13373_v6  ;;  %v17100_v6 = vld [vmem:[#allocation161_spill] sm:$0xff]  ;;  %vm1082_vm7 = vcmp.lt.s32.totalorder %v9580_v4, 63 }
 0x27e   :  { %17078 = vst [vmem:[#allocation47_spill] sm:$0xff] %v13625_v36  ;;  %v13632_v41 = vpack.c.bf16 %v17080_v3, %v17079_v54  ;;  %v17083_v36 = vand.u32 4294901760, %v13512_v15  ;;  %v17085_v3 = vand.u32 4294901760, %v13573_v16  ;;  %1170 = vrot.lane.b32.xlu1 %v13030_v21, %s9430_s9  ;;  %vm1097_vm10 = vcmp.lt.s32.totalorder %v9580_v4, 62 }
 0x27f   :  { %v13639_v12 = vsub.f32 %v13542_v29, %v17082_v23  ;;  %v17086_v23 = vand.u32 4294901760, %v13350_v53  ;;  %v13678_v53 = vsub.f32 %v13567_v17, %v17093_v5  ;;  %8235 = vmatpush1.bf16.msra.mxu0 %v13330_v34  ;;  %v949_v34 = vpop.permute.xlu1 %948  ;;  %v17102_v17 = vand.u32 4294901760, %v13435_v49 }
 0x280   :  { %17081 = vst [vmem:[#allocation156_spill] sm:$0xff] %v13632_v41  ;;  %v13644_v28 = vsub.f32 %v13512_v15, %v17083_v36  ;;  %v13653_v57 = vsub.f32 %v13573_v16, %v17085_v3  ;;  %v17087_v36 = vand.u32 4294901760, %v13368_v46  ;;  %v17090_v41 = vand.u32 4294901760, %v13387_v1 }
 0x281   :  { %v17092_v3 = vand.u32 4294901760, %v13555_v33  ;;  %vm1112_vm8 = vcmp.lt.s32.totalorder %v9580_v4, 61  ;;  %vm1142_vm11 = vcmp.lt.s32.totalorder %v9580_v4, 59  ;;  %vm1440_vm12 = vcmask 64512  }
 0x282   :  { %v13661_v27 = vpack.c.bf16 %v17087_v36, %v17086_v23  ;;  %v13667_v24 = vpack.c.bf16 %v17090_v41, %v17089_v50  ;;  %v968_v23 = vpop.permute.xlu0 %967  ;;  %v1434_v41 = vld [vmem:[%s15408_s2] sm:$0xff]  ;;  %v17094_v36 = vand.u32 4294901760, %v13394_v61  ;;  %v17095_v50 = vand.u32 4294901760, %v13410_v45  ;;  %s17109_s2 = smov 56  }
 0x283   :  { %v13673_v16 = vsub.f32 %v13555_v33, %v17092_v3  ;;  %v13694_v5 = vsel %vm971_vm4, %v966_v35, %v968_v23  ;;  %v17103_v61 = vand.u32 4294901760, %v13440_v48  ;;  %1179 = vrot.lane.b32.xlu0 %v13030_v21, %s17109_s2  ;;  %1437 = vperm.xlu1 %9338, %v1434_v41   ;;  %v17118_v21 = vand.u32 4294901760, %v13594_v8  ;;  %v17120_v3 = vld [vmem:[#allocation169_spill] sm:$0xff]  ;;  %v955_v41 = vpop.permute.xlu1 %954 }
 0x284   :  { %17088 = vst [vmem:[#allocation170_spill] sm:$0xff] %v13661_v27  ;;  %17091 = vst [vmem:[#allocation173_spill] sm:$0xff] %v13667_v24  ;;  %v13688_v54 = vpack.c.bf16 %v17095_v50, %v17094_v36  ;;  %v17097_v24 = vld [vmem:[#allocation96_spill] sm:$0xff]  ;;  %v17105_v36 = vand.u32 4294901760, %v13452_v60  ;;  %v17106_v50 = vand.u32 4294901760, %v13461_v22  ;;  %vm1157_vm9 = vcmp.lt.s32.totalorder %v9580_v4, 58 }
 0x285   :  { %8859 = vmatpush3.bf16.msra.mxu1 %v17097_v24  ;;  %17098 = vst [vmem:[#allocation79_spill] sm:$0xff] %v13694_v5  ;;  %v17099_v27 = vld [vmem:[#allocation164_spill] sm:$0xff]  ;;  %v13703_v45 = vpack.c.bf16 %v17103_v61, %v17102_v17  ;;  %v17108_v5 = vld [vmem:[#allocation143_spill] sm:$0xff]  ;;  %v17110_v61 = vld [vmem:[#allocation218_spill] sm:$0xff]  ;;  %v17111_v17 = vand.u32 4294901760, %v13522_v19  ;;  %vm1172_vm6 = vcmp.lt.s32.totalorder %v9580_v4, 57 }
 0x286   :  { %17096 = vst [vmem:[#allocation71_spill] sm:$0xff] %v13688_v54  ;;  %v17101_v1 = vpack.c.bf16 %v17099_v27, %v17100_v6  ;;  %v13709_v24 = vpack.c.bf16 %v17106_v50, %v17105_v36  ;;  %8861 = vmatprep.subr.bf16.mxu1 %v17108_v5  ;;  %v959_v6 = vsel %vm956_vm2, %v949_v34, %v951_v38  ;;  %v17112_v27 = vand.u32 4294901760, %v13535_v62 }
 0x287   :  { %17104 = vst [vmem:[#allocation205_spill] sm:$0xff] %v13703_v45  ;;  %3260 = vmatmul.mubr.f32.vlgmr.msra.gmra.mrb[0].mxu0 %v17110_v61  ;;  %v17114_v50 = vand.u32 4294901760, %v13579_v0  ;;  %v17115_v5 = vand.u32 4294901760, %v13584_v42  ;;  %v17117_v38 = vand.u32 4294901760, %v13611_v20 }
 0x288   :  { %8237 = vmatprep.subr.bf16.mxu0 %v17101_v1  ;;  %17107 = vst [vmem:[#allocation194_spill] sm:$0xff] %v13709_v24  ;;  %v13724_v36 = vpack.c.bf16 %v17112_v27, %v17111_v17  ;;  %v4014_v1 = vand.u32 4294901760, %v959_v6  ;;  %v17121_v24 = vld [vmem:[#allocation166_spill] sm:$0xff]  ;;  %v964_v17 = vpop.permute.xlu0 %963  ;;  %v17123_v27 = vld [vmem:[#allocation105_spill] sm:$0xff] }
 0x289   :  { %v13730_v54 = vpack.c.bf16 %v17115_v5, %v17114_v50  ;;  %v13736_v34 = vpack.c.bf16 %v17118_v21, %v17117_v38  ;;  %v17122_v45 = vpack.c.bf16 %v17120_v3, %v17121_v24  ;;  %3460 = vmatprep.mubr.f32.mxu0 %v17123_v27  ;;  %v17125_v50 = vand.u32 4294901760, %v13442_v31  ;;  %v17127_v38 = vld [vmem:[#allocation155_spill] sm:$0xff]  ;;  %v17129_v3 = vld [vmem:[#allocation172_spill] sm:$0xff] }
 0x28a   :  { %17113 = vst [vmem:[#allocation208_spill] sm:$0xff] %v13724_v36  ;;  %v17124_v36 = vand.u32 4294901760, %v13397_v2  ;;  %8863 = vmatpush3.bf16.msra.mxu1 %v17127_v38  ;;  %v974_v21 = vsel %vm971_vm4, %v964_v17, %v966_v35  ;;  %v17131_v24 = vand.u32 4294901760, %v13639_v12  ;;  %v17132_v2 = vand.u32 4294901760, %v13620_v37 }
 0x28b   :  { %17116 = vst [vmem:[#allocation206_spill] sm:$0xff] %v13730_v54  ;;  %17119 = vst [vmem:[#allocation168_spill] sm:$0xff] %v13736_v34  ;;  %8239 = vmatpush1.bf16.msra.mxu0 %v17122_v45  ;;  %v17128_v34 = vld [vmem:[#allocation178_spill] sm:$0xff]  ;;  %v957_v38 = vsel %vm956_vm2, %v953_v7, %v955_v41  ;;  %v17135_v54 = vand.u32 4294901760, %v13673_v16  ;;  %v17136_v35 = vand.u32 4294901760, %v13644_v28  ;;  %v17144_v7 = vld [vmem:[#allocation184_spill] sm:$0xff] }
 0x28c   :  { %v13747_v5 = vpack.c.bf16 %v17125_v50, %v17124_v36  ;;  %v17130_v45 = vpack.c.bf16 %v17128_v34, %v17129_v3  ;;  %v13760_v27 = vpack.c.bf16 %v17132_v2, %v17131_v24  ;;  %v17134_v36 = vld [vmem:[#allocation50_spill] sm:$0xff]  ;;  %v4018_v50 = vand.u32 4294901760, %v974_v21  ;;  %v17145_v41 = vld [vmem:[#allocation183_spill] sm:$0xff]  ;;  %v970_v31 = vpop.permute.xlu0 %969 }
 0x28d   :  { %8865 = vmatprep.subr.bf16.mxu1 %v17134_v36  ;;  %v13769_v17 = vpack.c.bf16 %v17136_v35, %v17135_v54  ;;  %v17138_v34 = vand.u32 4294901760, %v13678_v53  ;;  %v17139_v3 = vand.u32 4294901760, %v13653_v57  ;;  %v13777_v2 = vsub.f32 %v959_v6, %v4014_v1  ;;  %v17147_v54 = vld [vmem:[#allocation153_spill] sm:$0xff] }
 0x28e   :  { %17126 = vst [vmem:[#allocation15_spill] sm:$0xff] %v13747_v5  ;;  %8241 = vmatprep.subr.bf16.mxu0 %v17130_v45  ;;  %17133 = vst [vmem:[#allocation144_spill] sm:$0xff] %v13760_v27  ;;  %v13779_v24 = vpack.c.bf16 %v4018_v50, %v4014_v1  ;;  %v13781_v36 = vsub.f32 %v974_v21, %v4018_v50  ;;  %v6631_v27 = vand.u32 4294901760, %v957_v38  ;;  %8867 = vmatpush3.bf16.msra.mxu1 %v17147_v54  ;;  %v17151_v21 = vld [vmem:[#allocation48_spill] sm:$0xff]  ;;  %v17160_v1 = vld [vmem:[#allocation150_spill] sm:$0xff] }
 0x28f   :  { %17137 = vst [vmem:[#allocation43_spill] sm:$0xff] %v13769_v17  ;;  %v13775_v45 = vpack.c.bf16 %v17139_v3, %v17138_v34  ;;  %17141 = vst [vmem:[#allocation88_spill] sm:$0xff] %v13777_v2  ;;  %v17146_v5 = vpack.c.bf16 %v17144_v7, %v17145_v41  ;;  %v972_v35 = vsel %vm971_vm4, %v968_v23, %v970_v31  ;;  %v981_v17 = vpop.permute.xlu1 %980  ;;  %v17148_v34 = vld [vmem:[#allocation186_spill] sm:$0xff]  ;;  %8869 = vmatprep.subr.bf16.mxu1 %v17151_v21  ;;  %v17155_v31 = vld [vmem:[#allocation112_spill] sm:$0xff] }
 0x290   :  { %17142 = vst [vmem:[#allocation62_spill] sm:$0xff] %v13779_v24  ;;  %17143 = vst [vmem:[#allocation120_spill] sm:$0xff] %v13781_v36  ;;  %v17149_v3 = vld [vmem:[#allocation82_spill] sm:$0xff]  ;;  %v6634_v50 = vand.u32 4294901760, %v972_v35  ;;  %v17156_v23 = vld [vmem:[#allocation116_spill] sm:$0xff]  ;;  %vm1046_vm2 = vcmp.lt.s32.totalorder %v9580_v4, 81 }
 0x291   :  { %17140 = vst [vmem:[#allocation210_spill] sm:$0xff] %v13775_v45  ;;  %8243 = vmatpush1.bf16.msra.mxu0 %v17146_v5  ;;  %v17150_v6 = vpack.c.bf16 %v17148_v34, %v17149_v3  ;;  %v13796_v5 = vsub.f32 %v957_v38, %v6631_v27  ;;  %v17157_v54 = vpack.c.bf16 %v17155_v31, %v17156_v23  ;;  %v983_v34 = vpop.permute.xlu0 %982  ;;  %v17158_v3 = vld [vmem:[#allocation126_spill] sm:$0xff]  ;;  %v17161_v24 = vld [vmem:[#allocation127_spill] sm:$0xff]  ;;  %v17165_v31 = vld [vmem:[#allocation201_spill] sm:$0xff]  ;;  %vm1127_vm4 = vcmp.lt.s32.totalorder %v9580_v4, 60 }
 0x292   :  { %v13798_v7 = vpack.c.bf16 %v6634_v50, %v6631_v27  ;;  %v13800_v41 = vsub.f32 %v972_v35, %v6634_v50  ;;  %8871 = vmatpush3.bf16.msra.mxu1 %v17158_v3  ;;  %v17162_v38 = vpack.c.bf16 %v17160_v1, %v17161_v24  ;;  %v17163_v35 = vld [vmem:[#allocation21_spill] sm:$0xff]  ;;  %v17164_v50 = vld [vmem:[#allocation171_spill] sm:$0xff]  ;;  %v17170_v24 = vand.u32 4294901760, %v13141_v14 }
 0x293   :  { %8245 = vmatprep.subr.bf16.mxu0 %v17150_v6  ;;  %17152 = vst [vmem:[#allocation10_spill] sm:$0xff] %v13796_v5  ;;  %v13808_v6 = vsel %vm986_vm0, %v981_v17, %v983_v34  ;;  %v996_v21 = vpop.permute.xlu1 %995  ;;  %8873 = vmatprep.subr.bf16.mxu1 %v17163_v35  ;;  %v13821_v23 = vsel %vm17166_vm14, %v17165_v31, %v17164_v50  ;;  %v17168_v3 = vld [vmem:[#allocation189_spill] sm:$0xff]  ;;  %v17171_v1 = vand.u32 4294901760, %v13151_v9  ;;  %v17173_v35 = vld [vmem:[#allocation110_spill] sm:$0xff]  ;;  %v17175_v50 = vld [vmem:[#allocation24_spill] sm:$0xff]  ;;  %v17178_v9 = vand.u32 4294901760, %v13162_v59 }
 0x294   :  { %17153 = vst [vmem:[#allocation122_spill] sm:$0xff] %v13798_v7  ;;  %17154 = vst [vmem:[#allocation26_spill] sm:$0xff] %v13800_v41  ;;  %v17176_v31 = vld [vmem:[#allocation12_spill] sm:$0xff]  ;;  %v17184_v59 = vand.u32 4294901760, %v13192_v44 }
 0x295   :  { %8247 = vmatpush1.bf16.msra.mxu0 %v17157_v54  ;;  %17159 = vst [vmem:[#allocation16_spill] sm:$0xff] %v13808_v6  ;;  %v17167_v54 = vld [vmem:[#allocation190_spill] sm:$0xff]  ;;  %v998_v27 = vpop.permute.xlu0 %997  ;;  %v17177_v41 = vpack.c.bf16 %v17175_v50, %v17176_v31  ;;  %v17182_v50 = vld [vmem:[#allocation36_spill] sm:$0xff] }
 0x296   :  { %8249 = vmatprep.subr.bf16.mxu0 %v17162_v38  ;;  %v17169_v7 = vpack.c.bf16 %v17167_v54, %v17168_v3  ;;  %v13830_v38 = vpack.c.bf16 %v17171_v1, %v17170_v24  ;;  %8875 = vmatpush3.bf16.msra.mxu1 %v17173_v35  ;;  %v13835_v45 = vsel %vm1001_vm13, %v996_v21, %v998_v27  ;;  %v9353_v24 = vld [vmem:[%s15406_s0 + $0x18] sm:$0xff]  ;;  %v17187_v3 = vld [vmem:[#allocation59_spill] sm:$0xff] }
 0x297   :  { %17174 = vst [vmem:[#allocation147_spill] sm:$0xff] %v13835_v45  ;;  %v979_v6 = vpop.permute.xlu1 %978  ;;  %v5832_v1 = vand.u32 4294901760, %v9353_v24 }
 0x298   :  { %17172 = vst [vmem:[#allocation124_spill] sm:$0xff] %v13830_v38  ;;  %8877 = vmatprep.subr.bf16.mxu1 %v13830_v38  ;;  %v989_v14 = vsel %vm986_vm0, %v979_v6, %v981_v17  ;;  %v17188_v38 = vld [vmem:[#allocation52_spill] sm:$0xff] }
 0x299   :  { %8251 = vmatpush1.bf16.msra.mxu0 %v17169_v7  ;;  %v17179_v7 = vand.u32 4294901760, %v13178_v25  ;;  %v4022_v35 = vand.u32 4294901760, %v989_v14  ;;  %5763 = vmatmul.mubr.f32.vlgmr.msra.gmra.mrb[12].mxu1 %v17050_v63  ;;  %v17185_v25 = vand.u32 4294901760, %v13227_v47  ;;  %v994_v6 = vpop.permute.xlu0 %993  ;;  %v17189_v63 = vpack.c.bf16 %v17187_v3, %v17188_v38  ;;  %v17190_v47 = vld [vmem:[#allocation81_spill] sm:$0xff] }
 0x29a   :  { %8253 = vmatprep.subr.bf16.mxu0 %v17177_v41  ;;  %v17181_v41 = vld [vmem:[#allocation3_spill] sm:$0xff]  ;;  %5869 = vmatprep.mubr.f32.mxu1 %v17190_v47 }
 0x29b   :  { %v13847_v54 = vpack.c.bf16 %v17179_v7, %v17178_v9  ;;  %v17183_v31 = vpack.c.bf16 %v17181_v41, %v17182_v50  ;;  %v13861_v17 = vpack.c.bf16 %v17185_v25, %v17184_v59  ;;  %v1004_v9 = vsel %vm1001_vm13, %v994_v6, %v996_v21  ;;  %v985_v7 = vpop.permute.xlu1 %984  ;;  %v17191_v50 = vld [vmem:[#allocation86_spill] sm:$0xff] }
 0x29c   :  { %v4026_v41 = vand.u32 4294901760, %v1004_v9  ;;  %v987_v44 = vsel %vm986_vm0, %v983_v34, %v985_v7  ;;  %v17193_v59 = vld [vmem:[#allocation18_spill] sm:$0xff]  ;;  %v17196_v21 = vand.u32 4294901760, %v13821_v23  ;;  %v13883_v38 = vsub.f32 %v989_v14, %v4022_v35  ;;  %v17201_v34 = vld [vmem:[#allocation85_spill] sm:$0xff] }
 0x29d   :  { %17180 = vst [vmem:[#allocation42_spill] sm:$0xff] %v13847_v54  ;;  %8255 = vmatpush1.bf16.msra.mxu0 %v17183_v31  ;;  %17186 = vst [vmem:[#allocation56_spill] sm:$0xff] %v13861_v17  ;;  %8879 = vmatpush3.bf16.msra.mxu1 %v13847_v54  ;;  %v17192_v31 = vand.u32 4294901760, %v17191_v50  ;;  %v17194_v25 = vand.u32 4294901760, %v17193_v59  ;;  %v17202_v7 = vld [vmem:[#allocation78_spill] sm:$0xff]  ;;  %v1000_v50 = vpop.permute.xlu0 %999  ;;  %vm17612_vm0 = vcmp.lt.s32.totalorder %v9580_v4, 56 }
 0x29e   :  { %8257 = vmatprep.subr.bf16.mxu0 %v17189_v63  ;;  %8881 = vmatprep.subr.bf16.mxu1 %v13861_v17  ;;  %v13881_v6 = vpack.c.bf16 %v5832_v1, %v17196_v21  ;;  %17198 = vst [vmem:[#allocation84_spill] sm:$0xff] %v13883_v38  ;;  %v13885_v3 = vpack.c.bf16 %v4026_v41, %v4022_v35  ;;  %v6637_v17 = vand.u32 4294901760, %v987_v44  ;;  %v17205_v21 = vld [vmem:[#allocation95_spill] sm:$0xff] }
 0x29f   :  { %v13877_v54 = vpack.c.bf16 %v17194_v25, %v17192_v31  ;;  %v13887_v63 = vsub.f32 %v1004_v9, %v4026_v41  ;;  %v17203_v47 = vpack.c.bf16 %v17201_v34, %v17202_v7  ;;  %v1002_v31 = vsel %vm1001_vm13, %v998_v27, %v1000_v50  ;;  %v1011_v59 = vpop.permute.xlu1 %1010  ;;  %v17204_v25 = vld [vmem:[#allocation109_spill] sm:$0xff]  ;;  %v17207_v41 = vld [vmem:[#allocation187_spill] sm:$0xff] }
 0x2a0   :  { %17197 = vst [vmem:[#allocation98_spill] sm:$0xff] %v13881_v6  ;;  %17199 = vst [vmem:[#allocation37_spill] sm:$0xff] %v13885_v3  ;;  %v17206_v14 = vpack.c.bf16 %v17204_v25, %v17205_v21  ;;  %v6640_v9 = vand.u32 4294901760, %v1002_v31  ;;  %v17208_v34 = vand.u32 4294901760, %v17207_v41  ;;  %v17209_v7 = vld [vmem:[#allocation19_spill] sm:$0xff]  ;;  %v13908_v27 = vsub.f32 %v987_v44, %v6637_v17  ;;  %v17215_v21 = vld [vmem:[#allocation118_spill] sm:$0xff] }
 0x2a1   :  { %17195 = vst [vmem:[#allocation145_spill] sm:$0xff] %v13877_v54  ;;  %17200 = vst [vmem:[#allocation134_spill] sm:$0xff] %v13887_v63  ;;  %8259 = vmatpush1.bf16.msra.mxu0 %v17203_v47  ;;  %8883 = vmatpush3.bf16.msra.mxu1 %v13877_v54  ;;  %v17210_v47 = vand.u32 4294901760, %v17209_v7  ;;  %v17220_v63 = vld [vmem:[#allocation174_spill] sm:$0xff]  ;;  %v13923_v41 = vpop.permute.xlu0 %1012  ;;  %v17232_v7 = vld [vmem:[#allocation31_spill] sm:$0xff] }
 0x2a2   :  { %8261 = vmatprep.subr.bf16.mxu0 %v17206_v14  ;;  %8885 = vmatprep.subr.bf16.mxu1 %v13881_v6  ;;  %17212 = vst [vmem:[#allocation141_spill] sm:$0xff] %v13908_v27  ;;  %v13910_v50 = vpack.c.bf16 %v6640_v9, %v6637_v17  ;;  %v13912_v25 = vsub.f32 %v1002_v31, %v6640_v9  ;;  %v17216_v14 = vld [vmem:[#allocation121_spill] sm:$0xff]  ;;  %v17221_v38 = vand.u32 4294901760, %v17220_v63  ;;  %17223 = vst [vmem:[#allocation96_spill] sm:$0xff] %v13923_v41  ;;  %v17225_v31 = vld [vmem:[#allocation142_spill] sm:$0xff] }
 0x2a3   :  { %v13906_v3 = vpack.c.bf16 %v17210_v47, %v17208_v34  ;;  %v17217_v35 = vpack.c.bf16 %v17215_v21, %v17216_v14  ;;  %v17218_v6 = vld [vmem:[#allocation45_spill] sm:$0xff]  ;;  %v13929_v17 = vsel %vm1016_vm15, %v1011_v59, %v13923_v41  ;;  %v1026_v44 = vpop.permute.xlu1 %1025  ;;  %v17230_v63 = vand.u32 4294901760, %v13344_v10  ;;  %v17233_v47 = vld [vmem:[#allocation8_spill] sm:$0xff] }
 0x2a4   :  { %17213 = vst [vmem:[#allocation106_spill] sm:$0xff] %v13910_v50  ;;  %17214 = vst [vmem:[#allocation113_spill] sm:$0xff] %v13912_v25  ;;  %v17219_v54 = vand.u32 4294901760, %v17218_v6  ;;  %v17226_v9 = vld [vmem:[#allocation137_spill] sm:$0xff]  ;;  %v17234_v21 = vpack.c.bf16 %v17232_v7, %v17233_v47  ;;  %v17235_v14 = vand.u32 4294901760, %v13357_v30  ;;  %v17244_v47 = vand.u32 4294901760, %v13428_v40 }
 0x2a5   :  { %17211 = vst [vmem:[#allocation90_spill] sm:$0xff] %v13906_v3  ;;  %8263 = vmatpush1.bf16.msra.mxu0 %v17217_v35  ;;  %8887 = vmatpush3.bf16.msra.mxu1 %v13906_v3  ;;  %17224 = vst [vmem:[#allocation164_spill] sm:$0xff] %v13929_v17  ;;  %v17227_v34 = vpack.c.bf16 %v17225_v31, %v17226_v9  ;;  %v17236_v31 = vand.u32 4294901760, %v13379_v51  ;;  %v17243_v51 = vand.u32 4294901760, %v13422_v32  ;;  %v17247_v6 = vld [vmem:[#allocation191_spill] sm:$0xff] }
 0x2a6   :  { %v13921_v45 = vpack.c.bf16 %v17221_v38, %v17219_v54  ;;  %v17228_v54 = vld [vmem:[#allocation77_spill] sm:$0xff]  ;;  %v13982_v41 = vsub.f32 %v9353_v24, %v5832_v1  ;;  %v17258_v24 = vand.u32 4294901760, %v13498_v58 }
 0x2a7   :  { %8265 = vmatprep.subr.bf16.mxu0 %v17227_v34  ;;  %v17229_v38 = vand.u32 4294901760, %v17228_v54  ;;  %v13951_v9 = vpack.c.bf16 %v17236_v31, %v17235_v14  ;;  %v13953_v34 = vpop.permute.xlu0 %1027  ;;  %v1009_v54 = vpop.permute.xlu1 %1008  ;;  %v17246_v31 = vld [vmem:[#allocation192_spill] sm:$0xff] }
 0x2a8   :  { %17222 = vst [vmem:[#allocation68_spill] sm:$0xff] %v13921_v45  ;;  %8889 = vmatprep.subr.bf16.mxu1 %v13921_v45  ;;  %17238 = vst [vmem:[#allocation218_spill] sm:$0xff] %v13953_v34  ;;  %v13959_v10 = vsel %vm1031_vm1, %v1026_v44, %v13953_v34  ;;  %v1019_v30 = vsel %vm1016_vm15, %v1009_v54, %v1011_v59  ;;  %v17248_v50 = vpack.c.bf16 %v17246_v31, %v17247_v6  ;;  %v17253_v59 = vld [vmem:[#allocation196_spill] sm:$0xff] }
 0x2a9   :  { %v13942_v35 = vpack.c.bf16 %v17230_v63, %v17229_v38  ;;  %8267 = vmatpush1.bf16.msra.mxu0 %v17234_v21  ;;  %17237 = vst [vmem:[#allocation143_spill] sm:$0xff] %v13951_v9  ;;  %17239 = vst [vmem:[#allocation169_spill] sm:$0xff] %v13959_v10  ;;  %v17240_v38 = vld [vmem:[#allocation58_spill] sm:$0xff]  ;;  %v17241_v63 = vld [vmem:[#allocation32_spill] sm:$0xff]  ;;  %v13971_v21 = vpack.c.bf16 %v17244_v47, %v17243_v51  ;;  %v4030_v14 = vand.u32 4294901760, %v1019_v30  ;;  %v17249_v34 = vand.u32 4294901760, %v13473_v13 }
 0x2aa   :  { %v17242_v7 = vpack.c.bf16 %v17240_v38, %v17241_v63  ;;  %v17250_v38 = vand.u32 4294901760, %v13479_v11  ;;  %v17254_v54 = vld [vmem:[#allocation40_spill] sm:$0xff]  ;;  %v13993_v11 = vpop.f32.mrb[0].mxu1  ;;  %v17262_v51 = vld [vmem:[#allocation35_spill] sm:$0xff]  ;;  %v17263_v31 = vand.u32 4294901760, %v13220_v18 }
 0x2ab   :  { %17231 = vst [vmem:[#allocation161_spill] sm:$0xff] %v13942_v35  ;;  %8891 = vmatpush3.bf16.msra.mxu1 %v13942_v35  ;;  %17245 = vst [vmem:[#allocation166_spill] sm:$0xff] %v13971_v21  ;;  %v13987_v40 = vpop.permute.xlu1 %1014  ;;  %v17255_v6 = vpack.c.bf16 %v17253_v59, %v17254_v54  ;;  %v17265_v54 = vand.u32 4294901760, %v13821_v23  ;;  %v14016_v58 = vsub.f32 %v1019_v30, %v4030_v14  ;;  %v17275_v30 = vand.u32 4294901760, %v13245_v39 }
 0x2ac   :  { %8269 = vmatprep.subr.bf16.mxu0 %v17242_v7  ;;  %8893 = vmatprep.subr.bf16.mxu1 %v13951_v9  ;;  %v13980_v63 = vpack.c.bf16 %v17250_v38, %v17249_v34  ;;  %v1024_v7 = vpop.permute.xlu0 %1023  ;;  %17252 = vst [vmem:[#allocation178_spill] sm:$0xff] %v13987_v40  ;;  %17256 = vst [vmem:[#allocation172_spill] sm:$0xff] %v13993_v11  ;;  %v14001_v34 = vpop.f32.mrb[1].mxu1  ;;  %v5996_v38 = vsub.f32 %v13220_v18, %v17263_v31 }
 0x2ad   :  { %8271 = vmatpush1.bf16.msra.mxu0 %v17248_v50  ;;  %v1034_v32 = vsel %vm1031_vm1, %v1024_v7, %v1026_v44  ;;  %v17257_v50 = vand.u32 4294901760, %v13492_v56  ;;  %17260 = vst [vmem:[#allocation184_spill] sm:$0xff] %v14001_v34  ;;  %v17261_v44 = vld [vmem:[#allocation92_spill] sm:$0xff]  ;;  %v17264_v7 = vand.u32 4294901760, %v13236_v55  ;;  %v14014_v56 = vsub.f32 %v13821_v23, %v17265_v54  ;;  %17266 = vst [vmem:[#allocation183_spill] sm:$0xff] %v14016_v58 }
 0x2ae   :  { %17251 = vst [vmem:[#allocation155_spill] sm:$0xff] %v13980_v63  ;;  %8273 = vmatprep.subr.bf16.mxu0 %v17255_v6  ;;  %v4034_v13 = vand.u32 4294901760, %v1034_v32  ;;  %v8276_v47 = vpack.c.bf16 %v17262_v51, %v17261_v44  ;;  %v17270_v51 = vld [vmem:[#allocation198_spill] sm:$0xff]  ;;  %v17273_v44 = vld [vmem:[#allocation204_spill] sm:$0xff]  ;;  %v17281_v23 = vand.u32 4294901760, %v13512_v15  ;;  %v17289_v15 = vld [vmem:[#allocation207_spill] sm:$0xff] }
 0x2af   :  { %8895 = vmatpush3.bf16.msra.mxu1 %v13971_v21  ;;  %v13999_v1 = vpack.c.bf16 %v17258_v24, %v17257_v50  ;;  %v6003_v59 = vsub.f32 %v13236_v55, %v17264_v7  ;;  %v17269_v24 = vld [vmem:[#allocation200_spill] sm:$0xff]  ;;  %v1041_v21 = vpop.permute.xlu1 %1040 }
 0x2b0   :  { %8897 = vmatprep.subr.bf16.mxu1 %v13980_v63  ;;  %v14018_v6 = vpack.c.bf16 %v4034_v13, %v4030_v14  ;;  %v14020_v50 = vsub.f32 %v1034_v32, %v4034_v13  ;;  %v17271_v40 = vpack.c.bf16 %v17269_v24, %v17270_v51  ;;  %v14025_v31 = vpop.permute.xlu0 %1029  ;;  %v17274_v63 = vld [vmem:[#allocation140_spill] sm:$0xff]  ;;  %v5884_v14 = vsub.f32 %v13245_v39, %v17275_v30 }
 0x2b1   :  { %17259 = vst [vmem:[#allocation50_spill] sm:$0xff] %v13999_v1  ;;  %17272 = vst [vmem:[#allocation82_spill] sm:$0xff] %v14025_v31  ;;  %v8278_v7 = vpack.c.bf16 %v17274_v63, %v17273_v44  ;;  %v17276_v32 = vand.u32 4294901760, %v13260_v52  ;;  %v17277_v63 = vand.u32 4294901760, %v13542_v29  ;;  %v5997_v24 = vand.u32 4294901760, %v5996_v38  ;;  %v17283_v31 = vld [vmem:[#allocation9_spill] sm:$0xff] }
 0x2b2   :  { %17267 = vst [vmem:[#allocation153_spill] sm:$0xff] %v14018_v6  ;;  %17268 = vst [vmem:[#allocation186_spill] sm:$0xff] %v14020_v50  ;;  %8275 = vmatpush1.bf16.msra.mxu0 %v17271_v40  ;;  %v6004_v51 = vand.u32 4294901760, %v6003_v59  ;;  %v17284_v44 = vand.u32 4294901760, %v17283_v31  ;;  %v17288_v59 = vld [vmem:[#allocation209_spill] sm:$0xff] }
 0x2b3   :  { %8899 = vmatpush3.bf16.msra.mxu1 %v13999_v1  ;;  %8277 = vmatprep.subr.bf16.mxu0 %v8276_v47  ;;  %v5891_v13 = vsub.f32 %v13260_v52, %v17276_v32  ;;  %v17278_v47 = vand.u32 4294901760, %v13506_v26  ;;  %v17280_v32 = vand.u32 4294901760, %v13555_v33  ;;  %v1039_v33 = vpop.permute.xlu1 %1038  ;;  %v17294_v1 = vand.u32 4294901760, %v13368_v46  ;;  %v17295_v50 = vld [vmem:[#allocation17_spill] sm:$0xff] }
 0x2b4   :  { %8901 = vmatprep.subr.bf16.mxu1 %v13445_v43  ;;  %v1043_v6 = vpop.permute.xlu0 %1042  ;;  %v6010_v29 = vsub.f32 %v17283_v31, %v17284_v44  ;;  %v17285_v43 = vld [vmem:[#allocation154_spill] sm:$0xff]  ;;  %v17296_v58 = vand.u32 4294901760, %v17295_v50  ;;  %v8908_v34 = vpack.c.bf16 %v6004_v51, %v5997_v24 }
 0x2b5   :  { %v14045_v54 = vpack.c.bf16 %v17278_v47, %v17277_v63  ;;  %v14052_v40 = vpack.c.bf16 %v17281_v23, %v17280_v32  ;;  %v17286_v26 = vand.u32 4294901760, %v17285_v43  ;;  %v14063_v38 = vsel %vm1046_vm2, %v1041_v21, %v1043_v6  ;;  %v17291_v32 = vld [vmem:[#allocation94_spill] sm:$0xff] }
 0x2b6   :  { %8279 = vmatpush1.bf16.msra.mxu0 %v8278_v7  ;;  %17287 = vst [vmem:[#allocation116_spill] sm:$0xff] %v14063_v38  ;;  %v17290_v7 = vpack.c.bf16 %v17288_v59, %v17289_v15  ;;  %v5885_v23 = vand.u32 4294901760, %v5884_v14  ;;  %v5892_v47 = vand.u32 4294901760, %v5891_v13  ;;  %v17292_v30 = vand.u32 4294901760, %v17291_v32  ;;  %v17297_v59 = vld [vmem:[#allocation60_spill] sm:$0xff] }
 0x2b7   :  { %17279 = vst [vmem:[#allocation48_spill] sm:$0xff] %v14045_v54  ;;  %17282 = vst [vmem:[#allocation112_spill] sm:$0xff] %v14052_v40  ;;  %v6017_v63 = vsub.f32 %v17285_v43, %v17286_v26  ;;  %8903 = vmatpush3.bf16.msra.mxu1 %v14045_v54  ;;  %v17293_v26 = vand.u32 4294901760, %v13982_v41  ;;  %v5905_v38 = vsub.f32 %v13368_v46, %v17294_v1  ;;  %v17298_v15 = vand.u32 4294901760, %v17297_v59  ;;  %v17307_v59 = vld [vmem:[#allocation41_spill] sm:$0xff] }
 0x2b8   :  { %8281 = vmatprep.subr.bf16.mxu0 %v17290_v7  ;;  %v5898_v44 = vsub.f32 %v17291_v32, %v17292_v30  ;;  %8905 = vmatprep.subr.bf16.mxu1 %v14052_v40  ;;  %v14086_v13 = vsel %vm1046_vm2, %v1039_v33, %v1041_v21  ;;  %v17301_v30 = vld [vmem:[#allocation80_spill] sm:$0xff]  ;;  %v17302_v7 = vld [vmem:[#allocation165_spill] sm:$0xff]  ;;  %v6011_v11 = vand.u32 4294901760, %v6010_v29  ;;  %v17304_v1 = vand.u32 4294901760, %v14014_v56  ;;  %v1054_v21 = vpop.permute.xlu1 %1053 }
 0x2b9   :  { %v6031_v54 = vsub.f32 %v13982_v41, %v17293_v26  ;;  %v14082_v14 = vpack.c.bf16 %v17298_v15, %v17296_v58  ;;  %17300 = vst [vmem:[#allocation150_spill] sm:$0xff] %v14086_v13  ;;  %v17303_v40 = vpack.c.bf16 %v17301_v30, %v17302_v7  ;;  %v1045_v26 = vpop.permute.xlu0 %1044  ;;  %v6018_v9 = vand.u32 4294901760, %v6017_v63  ;;  %v17306_v33 = vld [vmem:[#allocation104_spill] sm:$0xff]  ;;  %v17309_v63 = vld [vmem:[#allocation185_spill] sm:$0xff] }
 0x2ba   :  { %v6024_v50 = vsub.f32 %v14014_v56, %v17304_v1  ;;  %v14097_v58 = vsel %vm1046_vm2, %v1043_v6, %v1045_v26  ;;  %v17308_v15 = vpack.c.bf16 %v17306_v33, %v17307_v59  ;;  %v8910_v24 = vpack.c.bf16 %v5892_v47, %v5885_v23  ;;  %v17311_v6 = vld [vmem:[#allocation179_spill] sm:$0xff]  ;;  %v17320_v13 = vld [vmem:[#allocation100_spill] sm:$0xff] }
 0x2bb   :  { %17299 = vst [vmem:[#allocation126_spill] sm:$0xff] %v14082_v14  ;;  %8283 = vmatpush1.bf16.msra.mxu0 %v17303_v40  ;;  %8907 = vmatpush3.bf16.msra.mxu1 %v14082_v14  ;;  %17305 = vst [vmem:[#allocation127_spill] sm:$0xff] %v14097_v58  ;;  %v5899_v40 = vand.u32 4294901760, %v5898_v44  ;;  %v6032_v51 = vand.u32 4294901760, %v6031_v54  ;;  %v5906_v29 = vand.u32 4294901760, %v5905_v38  ;;  %v17310_v30 = vand.u32 4294901760, %v17309_v63 }
 0x2bc   :  { %8285 = vmatprep.subr.bf16.mxu0 %v17308_v15  ;;  %8909 = vmatprep.subr.bf16.mxu1 %v8908_v34  ;;  %v14110_v26 = vsel %vm17312_vm5, %v17311_v6, %v1054_v21  ;;  %v17314_v44 = vld [vmem:[#allocation225_spill] sm:$0xff]  ;;  %v17315_v34 = vld [vmem:[#allocation23_spill] sm:$0xff]  ;;  %v8912_v38 = vpack.c.bf16 %v6018_v9, %v6011_v11  ;;  %v6025_v59 = vand.u32 4294901760, %v6024_v50  ;;  %v17321_v14 = vand.u32 4294901760, %v17320_v13  ;;  %v14131_v9 = vpop.permute.xlu1 %1063 }
 0x2bd   :  { %v5919_v7 = vsub.f32 %v17309_v63, %v17310_v30  ;;  %17313 = vst [vmem:[#allocation21_spill] sm:$0xff] %v14110_v26  ;;  %v17316_v54 = vld [vmem:[#allocation103_spill] sm:$0xff]  ;;  %v1062_v47 = vpop.permute.xlu0 %1061  ;;  %v17318_v15 = vld [vmem:[#allocation157_spill] sm:$0xff]  ;;  %v17322_v6 = vand.u32 4294901760, %v14097_v58  ;;  %17327 = vst [vmem:[#allocation201_spill] sm:$0xff] %v14131_v9  ;;  %v17328_v11 = vand.u32 4294901760, %v14110_v26 }
 0x2be   :  { %5875 = vmatmul.mubr.f32.vlgmr.msra.gmra.mrb[14].mxu1 %v17314_v44  ;;  %v17317_v23 = vpack.c.bf16 %v17315_v34, %v17316_v54  ;;  %v17319_v30 = vand.u32 4294901760, %v17318_v15  ;;  %v5912_v21 = vsub.f32 %v17320_v13, %v17321_v14  ;;  %v17324_v44 = vld [vmem:[#allocation212_spill] sm:$0xff]  ;;  %v17325_v34 = vld [vmem:[#allocation29_spill] sm:$0xff] }
 0x2bf   :  { %v14126_v33 = vsub.f32 %v14097_v58, %v17322_v6  ;;  %8911 = vmatpush3.bf16.msra.mxu1 %v8910_v24  ;;  %v17326_v54 = vpack.c.bf16 %v17324_v44, %v17325_v34  ;;  %v14136_v50 = vsub.f32 %v14110_v26, %v17328_v11  ;;  %v14144_v24 = vsel %vm1067_vm3, %v1062_v47, %v14131_v9  ;;  %v17336_v58 = vld [vmem:[#allocation214_spill] sm:$0xff] }
 0x2c0   :  { %8287 = vmatpush1.bf16.msra.mxu0 %v17317_v23  ;;  %v6045_v1 = vsub.f32 %v17318_v15, %v17319_v30  ;;  %8913 = vmatprep.subr.bf16.mxu1 %v8912_v38  ;;  %v17330_v23 = vld [vmem:[#allocation132_spill] sm:$0xff]  ;;  %17332 = vst [vmem:[#allocation189_spill] sm:$0xff] %v14144_v24  ;;  %v5920_v6 = vand.u32 4294901760, %v5919_v7  ;;  %v17333_v44 = vand.u32 4294901760, %v13440_v48  ;;  %v8914_v11 = vpack.c.bf16 %v5906_v29, %v5899_v40  ;;  %v17334_v38 = vld [vmem:[#allocation89_spill] sm:$0xff] }
 0x2c1   :  { %17323 = vst [vmem:[#allocation171_spill] sm:$0xff] %v14126_v33  ;;  %8289 = vmatprep.subr.bf16.mxu0 %v17326_v54  ;;  %17329 = vst [vmem:[#allocation190_spill] sm:$0xff] %v14136_v50  ;;  %v17331_v14 = vand.u32 4294901760, %v17330_v23  ;;  %6105 = vmatprep.mubr.f32.mxu1 %v17334_v38  ;;  %v8916_v9 = vpack.c.bf16 %v6032_v51, %v6025_v59  ;;  %v1077_v24 = vpop.permute.xlu0 %1076  ;;  %v17338_v7 = vand.u32 4294901760, %v13461_v22  ;;  %v5913_v45 = vand.u32 4294901760, %v5912_v21  ;;  %v17340_v29 = vld [vmem:[#allocation221_spill] sm:$0xff]  ;;  %v14165_v38 = vpop.permute.xlu1 %1078 }
 0x2c2   :  { %v5933_v34 = vsub.f32 %v13440_v48, %v17333_v44  ;;  %v6046_v17 = vand.u32 4294901760, %v6045_v1  ;;  %v17339_v44 = vand.u32 4294901760, %v13435_v49  ;;  %v17341_v54 = vld [vmem:[#allocation220_spill] sm:$0xff]  ;;  %17343 = vst [vmem:[#allocation110_spill] sm:$0xff] %v14165_v38  ;;  %v14173_v1 = vsel %vm1082_vm7, %v1077_v24, %v14165_v38 }
 0x2c3   :  { %v6038_v30 = vsub.f32 %v17330_v23, %v17331_v14  ;;  %v17335_v14 = vld [vmem:[#allocation216_spill] sm:$0xff]  ;;  %v6059_v35 = vsub.f32 %v13461_v22, %v17338_v7  ;;  %8915 = vmatpush3.bf16.msra.mxu1 %v8914_v11  ;;  %v17342_v26 = vpack.c.bf16 %v17340_v29, %v17341_v54  ;;  %17345 = vst [vmem:[#allocation24_spill] sm:$0xff] %v14173_v1  ;;  %v17346_v59 = vand.u32 4294901760, %v14126_v33 }
 0x2c4   :  { %v17337_v10 = vpack.c.bf16 %v17335_v14, %v17336_v58  ;;  %v5926_v40 = vsub.f32 %v13435_v49, %v17339_v44  ;;  %8917 = vmatprep.subr.bf16.mxu1 %v8916_v9  ;;  %v17344_v58 = vand.u32 4294901760, %v13452_v60  ;;  %v17347_v21 = vand.u32 4294901760, %v14136_v50  ;;  %v17350_v14 = vld [vmem:[#allocation148_spill] sm:$0xff] }
 0x2c5   :  { %v17349_v54 = vand.u32 4294901760, %v13535_v62  ;;  %v17351_v7 = vld [vmem:[#allocation180_spill] sm:$0xff]  ;;  %v1060_v1 = vpop.permute.xlu0 %1059  ;;  %v6060_v33 = vand.u32 4294901760, %v6059_v35  ;;  %v17355_v50 = vand.u32 4294901760, %v13584_v42 }
 0x2c6   :  { %8291 = vmatpush1.bf16.msra.mxu0 %v17337_v10  ;;  %v6039_v10 = vand.u32 4294901760, %v6038_v30  ;;  %v6052_v51 = vsub.f32 %v13452_v60, %v17344_v58  ;;  %v14179_v11 = vpack.c.bf16 %v17347_v21, %v17346_v59  ;;  %v8918_v30 = vpack.c.bf16 %v5920_v6, %v5913_v45  ;;  %v17352_v29 = vld [vmem:[#allocation76_spill] sm:$0xff]  ;;  %v17353_v58 = vld [vmem:[#allocation222_spill] sm:$0xff] }
 0x2c7   :  { %8293 = vmatprep.subr.bf16.mxu0 %v17342_v26  ;;  %v5934_v26 = vand.u32 4294901760, %v5933_v34  ;;  %v5947_v9 = vsub.f32 %v13535_v62, %v17349_v54  ;;  %v8296_v44 = vpack.c.bf16 %v17351_v7, %v17350_v14  ;;  %v17354_v3 = vpack.c.bf16 %v17352_v29, %v17353_v58  ;;  %v17356_v34 = vld [vmem:[#allocation159_spill] sm:$0xff]  ;;  %v17357_v21 = vld [vmem:[#allocation6_spill] sm:$0xff] }
 0x2c8   :  { %17348 = vst [vmem:[#allocation12_spill] sm:$0xff] %v14179_v11  ;;  %v8920_v38 = vpack.c.bf16 %v6046_v17, %v6039_v10  ;;  %v6073_v59 = vsub.f32 %v13584_v42, %v17355_v50  ;;  %v8298_v11 = vpack.c.bf16 %v17357_v21, %v17356_v34  ;;  %v5927_v25 = vand.u32 4294901760, %v5926_v40  ;;  %8919 = vmatpush3.bf16.msra.mxu1 %v8918_v30 }
 0x2c9   :  { %v17358_v45 = vand.u32 4294901760, %v13522_v19  ;;  %v1070_v54 = vsel %vm1067_vm3, %v1060_v1, %v1062_v47  ;;  %v6053_v35 = vand.u32 4294901760, %v6052_v51  ;;  %v17359_v10 = vand.u32 4294901760, %v13579_v0  ;;  %v14210_v1 = vpop.permute.xlu0 %1065 }
 0x2ca   :  { %8295 = vmatpush1.bf16.msra.mxu0 %v17354_v3  ;;  %v1075_v3 = vpop.permute.xlu1 %1074  ;;  %8921 = vmatprep.subr.bf16.mxu1 %v8920_v38  ;;  %v4046_v17 = vand.u32 4294901760, %v1070_v54  ;;  %v5948_v14 = vand.u32 4294901760, %v5947_v9  ;;  %v17360_v29 = vand.u32 4294901760, %v13594_v8  ;;  %v8922_v58 = vpack.c.bf16 %v5934_v26, %v5927_v25  ;;  %17362 = vst [vmem:[#allocation3_spill] sm:$0xff] %v14210_v1 }
 0x2cb   :  { %v5940_v6 = vsub.f32 %v13522_v19, %v17358_v45  ;;  %8297 = vmatprep.subr.bf16.mxu0 %v8296_v44  ;;  %v6066_v50 = vsub.f32 %v13579_v0, %v17359_v10  ;;  %v1085_v40 = vsel %vm1082_vm7, %v1075_v3, %v1077_v24  ;;  %v17361_v47 = vand.u32 4294901760, %v13611_v20  ;;  %v17364_v24 = vld [vmem:[#allocation65_spill] sm:$0xff] }
 0x2cc   :  { %v5961_v30 = vsub.f32 %v13594_v8, %v17360_v29  ;;  %v4050_v34 = vand.u32 4294901760, %v1085_v40  ;;  %v8924_v51 = vpack.c.bf16 %v6060_v33, %v6053_v35  ;;  %v6074_v44 = vand.u32 4294901760, %v6073_v59  ;;  %8923 = vmatpush3.bf16.msra.mxu1 %v8922_v58  ;;  %v17370_v35 = vld [vmem:[#allocation64_spill] sm:$0xff] }
 0x2cd   :  { %v5954_v38 = vsub.f32 %v13611_v20, %v17361_v47  ;;  %v5941_v45 = vand.u32 4294901760, %v5940_v6  ;;  %v14212_v10 = vsub.f32 %v1070_v54, %v4046_v17  ;;  %v6067_v26 = vand.u32 4294901760, %v6066_v50  ;;  %v17369_v6 = vld [vmem:[#allocation67_spill] sm:$0xff]  ;;  %v7336_v54 = vpop.f32.mrb[2].mxu1 }
 0x2ce   :  { %8299 = vmatpush1.bf16.msra.mxu0 %v8298_v11  ;;  %v14215_v9 = vpack.c.bf16 %v4050_v34, %v4046_v17  ;;  %v14217_v3 = vsub.f32 %v1085_v40, %v4050_v34  ;;  %v14219_v25 = vpop.permute.xlu1 %1080  ;;  %8925 = vmatprep.subr.bf16.mxu1 %v8924_v51  ;;  %v5962_v29 = vand.u32 4294901760, %v5961_v30  ;;  %v17368_v33 = vand.u32 4294901760, %v13620_v37  ;;  %v1092_v40 = vpop.permute.xlu0 %1091  ;;  %v17372_v50 = vld [vmem:[#allocation111_spill] sm:$0xff]  ;;  %v17374_v51 = vld [vmem:[#allocation74_spill] sm:$0xff] }
 0x2cf   :  { %17363 = vst [vmem:[#allocation36_spill] sm:$0xff] %v14212_v10  ;;  %8301 = vmatprep.subr.bf16.mxu0 %v17364_v24  ;;  %17367 = vst [vmem:[#allocation81_spill] sm:$0xff] %v14219_v25  ;;  %v8926_v59 = vpack.c.bf16 %v5948_v14, %v5941_v45  ;;  %v8928_v17 = vpack.c.bf16 %v6074_v44, %v6067_v26  ;;  %v17371_v58 = vand.u32 4294901760, %v13644_v28  ;;  %v5955_v30 = vand.u32 4294901760, %v5954_v38  ;;  %v7337_v1 = vpop.f32.mrb[3].mxu1 }
 0x2d0   :  { %17365 = vst [vmem:[#allocation59_spill] sm:$0xff] %v14215_v9  ;;  %17366 = vst [vmem:[#allocation52_spill] sm:$0xff] %v14217_v3  ;;  %v5975_v11 = vsub.f32 %v13620_v37, %v17368_v33  ;;  %v17373_v47 = vand.u32 4294901760, %v13639_v12  ;;  %v17376_v44 = vand.u32 4294901760, %v13673_v16  ;;  %v17378_v9 = vld [vmem:[#allocation93_spill] sm:$0xff] }
 0x2d1   :  { %3463 = vmatmul.mubr.f32.vlgmr.msra.gmra.mrb[0].mxu0 %v17369_v6  ;;  %v6101_v34 = vsub.f32 %v13644_v28, %v17371_v58  ;;  %8927 = vmatpush3.bf16.msra.mxu1 %v8926_v59  ;;  %v17377_v58 = vand.u32 4294901760, %v13653_v57 }
 0x2d2   :  { %8303 = vmatpush1.bf16.msra.mxu0 %v17370_v35  ;;  %3600 = vmatprep.mubr.f32.mxu0 %v17372_v50  ;;  %v5968_v14 = vsub.f32 %v13639_v12, %v17373_v47  ;;  %v14237_v45 = vpop.permute.xlu1 %1093  ;;  %v6094_v26 = vsub.f32 %v13673_v16, %v17376_v44  ;;  %v5976_v33 = vand.u32 4294901760, %v5975_v11  ;;  %v8930_v47 = vpack.c.bf16 %v5962_v29, %v5955_v30  ;;  %v1107_v25 = vpop.permute.xlu0 %1106  ;;  %v17382_v29 = vld [vmem:[#allocation22_spill] sm:$0xff] }
 0x2d3   :  { %8305 = vmatprep.subr.bf16.mxu0 %v17374_v51  ;;  %17375 = vst [vmem:[#allocation86_spill] sm:$0xff] %v14237_v45  ;;  %8929 = vmatprep.subr.bf16.mxu1 %v8928_v17  ;;  %v14245_v38 = vsel %vm1097_vm10, %v1092_v40, %v14237_v45  ;;  %v5989_v59 = vsub.f32 %v13653_v57, %v17377_v58  ;;  %v6102_v17 = vand.u32 4294901760, %v6101_v34  ;;  %v17379_v44 = vand.u32 4294901760, %v13678_v53  ;;  %v17380_v45 = vld [vmem:[#allocation102_spill] sm:$0xff] }
 0x2d4   :  { %v5969_v51 = vand.u32 4294901760, %v5968_v14  ;;  %v14258_v58 = vadd.f32 %v7337_v1, %v7336_v54  ;;  %v6095_v30 = vand.u32 4294901760, %v6094_v26  ;;  %v17384_v54 = vld [vmem:[#allocation123_spill] sm:$0xff] }
 0x2d5   :  { %v5982_v35 = vsub.f32 %v13678_v53, %v17379_v44  ;;  %8931 = vmatpush3.bf16.msra.mxu1 %v8930_v47  ;;  %v5990_v14 = vand.u32 4294901760, %v5989_v59  ;;  %v17383_v44 = vld [vmem:[#allocation107_spill] sm:$0xff] }
 0x2d6   :  { %8307 = vmatpush1.bf16.msra.mxu0 %v17378_v9  ;;  %v14256_v11 = vpop.permute.xlu1 %1108  ;;  %8933 = vmatprep.subr.bf16.mxu1 %v17382_v29  ;;  %v8934_v9 = vpack.c.bf16 %v5976_v33, %v5969_v51  ;;  %v8936_v47 = vpack.c.bf16 %v6102_v17, %v6095_v30  ;;  %v17385_v51 = vld [vmem:[#allocation91_spill] sm:$0xff]  ;;  %v8940_v33 = vpack.c.bf16 %v13236_v55, %v13220_v18 }
 0x2d7   :  { %8309 = vmatprep.subr.bf16.mxu0 %v17380_v45  ;;  %17381 = vst [vmem:[#allocation18_spill] sm:$0xff] %v14256_v11  ;;  %v14264_v34 = vsel %vm1112_vm8, %v1107_v25, %v14256_v11  ;;  %v1090_v45 = vpop.permute.xlu0 %1089  ;;  %v5983_v24 = vand.u32 4294901760, %v5982_v35  ;;  %v17392_v55 = vld [vmem:[#allocation115_spill] sm:$0xff] }
 0x2d8   :  { %v1100_v1 = vsel %vm1097_vm10, %v1090_v45, %v1092_v40  ;;  %v17388_v40 = vld [vmem:[#allocation135_spill] sm:$0xff] }
 0x2d9   :  { %8935 = vmatpush3.bf16.msra.mxu1 %v8934_v9  ;;  %v4054_v26 = vand.u32 4294901760, %v1100_v1  ;;  %v8938_v21 = vpack.c.bf16 %v5990_v14, %v5983_v24  ;;  %v8942_v24 = vpack.c.bf16 %v13260_v52, %v13245_v39  ;;  %v17395_v52 = vld [vmem:[#allocation105_spill] sm:$0xff] }
 0x2da   :  { %8311 = vmatpush1.bf16.msra.mxu0 %v17383_v44  ;;  %v1105_v29 = vpop.permute.xlu1 %1104  ;;  %8937 = vmatprep.subr.bf16.mxu1 %v8936_v47  ;;  %v8946_v47 = vpack.c.bf16 %v13368_v46, %v17291_v32  ;;  %v8950_v46 = vpack.c.bf16 %v17309_v63, %v17320_v13  ;;  %v17399_v32 = vld [vmem:[#allocation33_spill] sm:$0xff]  ;;  %v8954_v13 = vpack.c.bf16 %v13440_v48, %v13435_v49  ;;  %v17407_v49 = vld [vmem:[#allocation79_spill] sm:$0xff] }
 0x2db   :  { %8313 = vmatprep.subr.bf16.mxu0 %v17384_v54  ;;  %v1115_v11 = vsel %vm1112_vm8, %v1105_v29, %v1107_v25  ;;  %v14275_v35 = vpop.permute.xlu0 %1095  ;;  %v14277_v9 = vsub.f32 %v1100_v1, %v4054_v26  ;;  %v17397_v29 = vld [vmem:[#allocation99_spill] sm:$0xff]  ;;  %v8958_v48 = vpack.c.bf16 %v13535_v62, %v13522_v19  ;;  %v8962_v62 = vpack.c.bf16 %v13594_v8, %v13611_v20 }
 0x2dc   :  { %v4058_v59 = vand.u32 4294901760, %v1115_v11  ;;  %17386 = vst [vmem:[#allocation85_spill] sm:$0xff] %v14275_v35  ;;  %v8968_v20 = vpack.c.bf16 %v13644_v28, %v13673_v16  ;;  %v17492_v35 = vld [vmem:[#allocation112_spill] sm:$0xff] }
 0x2dd   :  { %17387 = vst [vmem:[#allocation78_spill] sm:$0xff] %v14277_v9  ;;  %8939 = vmatpush3.bf16.msra.mxu1 %v8938_v21  ;;  %v8944_v21 = vpack.c.bf16 %v17285_v43, %v17283_v31  ;;  %v17396_v43 = vld [vmem:[#allocation53_spill] sm:$0xff]  ;;  %v8948_v31 = vpack.c.bf16 %v13982_v41, %v14014_v56 }
 0x2de   :  { %8315 = vmatpush1.bf16.msra.mxu0 %v17385_v51  ;;  %v14280_v45 = vpack.c.bf16 %v4058_v59, %v4054_v26  ;;  %v14282_v17 = vsub.f32 %v1115_v11, %v4058_v59  ;;  %v14284_v30 = vpop.permute.xlu1 %1110  ;;  %8941 = vmatprep.subr.bf16.mxu1 %v8940_v33  ;;  %v17393_v11 = vld [vmem:[#allocation158_spill] sm:$0xff]  ;;  %v8952_v33 = vpack.c.bf16 %v17318_v15, %v17330_v23 }
 0x2df   :  { %8317 = vmatprep.subr.bf16.mxu0 %v17388_v40  ;;  %17391 = vst [vmem:[#allocation187_spill] sm:$0xff] %v14284_v30  ;;  %v1122_v25 = vpop.permute.xlu0 %1121  ;;  %v8956_v15 = vpack.c.bf16 %v13461_v22, %v13452_v60  ;;  %v17408_v22 = vld [vmem:[#allocation160_spill] sm:$0xff] }
 0x2e0   :  { %17389 = vst [vmem:[#allocation109_spill] sm:$0xff] %v14280_v45  ;;  %17390 = vst [vmem:[#allocation95_spill] sm:$0xff] %v14282_v17  ;;  %6107 = vmatmul.mubr.f32.vlgmr.msra.gmra.mrb[16].mxu1 %v17110_v61  ;;  %v17401_v45 = vld [vmem:[#allocation49_spill] sm:$0xff]  ;;  %v17414_v60 = vld [vmem:[#allocation28_spill] sm:$0xff] }
 0x2e1   :  { %8943 = vmatpush3.bf16.msra.mxu1 %v8942_v24  ;;  %6242 = vmatprep.mubr.f32.mxu1 %v17395_v52  ;;  %v17400_v52 = vld [vmem:[#allocation25_spill] sm:$0xff] }
 0x2e2   :  { %8319 = vmatpush1.bf16.msra.mxu0 %v17392_v55  ;;  %v14296_v14 = vpop.permute.xlu1 %1123  ;;  %8945 = vmatprep.subr.bf16.mxu1 %v8944_v21 }
 0x2e3   :  { %8321 = vmatprep.subr.bf16.mxu0 %v17393_v11  ;;  %17394 = vst [vmem:[#allocation19_spill] sm:$0xff] %v14296_v14  ;;  %v14301_v39 = vsel %vm1127_vm4, %v1122_v25, %v14296_v14  ;;  %v1137_v1 = vpop.permute.xlu0 %1136  ;;  %v17485_v14 = vld [vmem:[#allocation162_spill] sm:$0xff] }
 0x2e5   :  { %8947 = vmatpush3.bf16.msra.mxu1 %v8946_v47 }
 0x2e6   :  { %8323 = vmatpush1.bf16.msra.mxu0 %v17396_v43  ;;  %v14311_v26 = vpop.permute.xlu1 %1138  ;;  %8949 = vmatprep.subr.bf16.mxu1 %v8948_v31  ;;  %v17497_v43 = vld [vmem:[#allocation139_spill] sm:$0xff] }
 0x2e7   :  { %8325 = vmatprep.subr.bf16.mxu0 %v17397_v29  ;;  %17398 = vst [vmem:[#allocation118_spill] sm:$0xff] %v14311_v26  ;;  %v14316_v59 = vsel %vm1142_vm11, %v1137_v1, %v14311_v26  ;;  %v1120_v24 = vpop.permute.xlu0 %1119  ;;  %v16040_v29 = vand.u32 4294901760, %v14264_v34 }
 0x2e8   :  { %v1130_v21 = vsel %vm1127_vm4, %v1120_v24, %v1122_v25  ;;  %v17403_v25 = vld [vmem:[#allocation61_spill] sm:$0xff]  ;;  %v17406_v24 = vld [vmem:[#allocation47_spill] sm:$0xff] }
 0x2e9   :  { %8951 = vmatpush3.bf16.msra.mxu1 %v8950_v46  ;;  %v4062_v31 = vand.u32 4294901760, %v1130_v21 }
 0x2ea   :  { %8327 = vmatpush1.bf16.msra.mxu0 %v17399_v32  ;;  %v1135_v47 = vpop.permute.xlu1 %1134  ;;  %8953 = vmatprep.subr.bf16.mxu1 %v8952_v33  ;;  %v16041_v32 = vand.u32 4294901760, %v14245_v38 }
 0x2eb   :  { %8329 = vmatprep.subr.bf16.mxu0 %v17400_v52  ;;  %v1145_v18 = vsel %vm1142_vm11, %v1135_v47, %v1137_v1  ;;  %v14333_v23 = vsub.f32 %v1130_v21, %v4062_v31  ;;  %v4012_v1 = vand.u32 4294901760, %v17406_v24  ;;  %v4016_v47 = vand.u32 4294901760, %v17407_v49 }
 0x2ec   :  { %v4066_v63 = vand.u32 4294901760, %v1145_v18  ;;  %v8960_v21 = vpack.c.bf16 %v13584_v42, %v13579_v0  ;;  %v7371_v0 = vpop.f32.mrb[4].mxu1  ;;  %v17413_v42 = vld [vmem:[#allocation199_spill] sm:$0xff] }
 0x2ed   :  { %17402 = vst [vmem:[#allocation121_spill] sm:$0xff] %v14333_v23  ;;  %8955 = vmatpush3.bf16.msra.mxu1 %v8954_v13  ;;  %v14353_v13 = vsub.f32 %v17406_v24, %v4012_v1 }
 0x2ee   :  { %8331 = vmatpush1.bf16.msra.mxu0 %v17401_v45  ;;  %v14336_v46 = vpack.c.bf16 %v4066_v63, %v4062_v31  ;;  %v14338_v33 = vsub.f32 %v1145_v18, %v4066_v63  ;;  %8957 = vmatprep.subr.bf16.mxu1 %v8956_v15  ;;  %v14349_v31 = vpop.permute.xlu1 %1140  ;;  %v17410_v18 = vld [vmem:[#allocation197_spill] sm:$0xff]  ;;  %v14359_v63 = vsub.f32 %v17407_v49, %v4016_v47  ;;  %v17416_v49 = vld [vmem:[#allocation136_spill] sm:$0xff] }
 0x2ef   :  { %8333 = vmatprep.subr.bf16.mxu0 %v17403_v25  ;;  %17409 = vst [vmem:[#allocation142_spill] sm:$0xff] %v14349_v31  ;;  %17411 = vst [vmem:[#allocation137_spill] sm:$0xff] %v14353_v13  ;;  %v4129_v19 = vand.u32 4294901760, %v14353_v13 }
 0x2f0   :  { %17404 = vst [vmem:[#allocation45_spill] sm:$0xff] %v14336_v46  ;;  %17405 = vst [vmem:[#allocation174_spill] sm:$0xff] %v14338_v33  ;;  %v17417_v46 = vld [vmem:[#allocation133_spill] sm:$0xff] }
 0x2f1   :  { %8959 = vmatpush3.bf16.msra.mxu1 %v8958_v48  ;;  %17412 = vst [vmem:[#allocation77_spill] sm:$0xff] %v14359_v63  ;;  %v7372_v48 = vpop.f32.mrb[5].mxu1  ;;  %v17418_v15 = vpack.c.bf16 %v17416_v49, %v17417_v46  ;;  %v8970_v46 = vpack.c.bf16 %v13653_v57, %v13678_v53  ;;  %v17422_v49 = vld [vmem:[#allocation113_spill] sm:$0xff]  ;;  %v4130_v16 = vsub.f32 %v14353_v13, %v4129_v19  ;;  %v17433_v13 = vld [vmem:[#allocation147_spill] sm:$0xff] }
 0x2f2   :  { %8335 = vmatpush1.bf16.msra.mxu0 %v17408_v22  ;;  %8961 = vmatprep.subr.bf16.mxu1 %v8960_v21  ;;  %v14364_v24 = vadd.f32 %v7372_v48, %v7371_v0  ;;  %v17415_v21 = vand.u32 4294901760, %v13777_v2  ;;  %v4141_v0 = vand.u32 4294901760, %v14359_v63  ;;  %v17419_v48 = vand.u32 4294901760, %v13781_v36 }
 0x2f3   :  { %8337 = vmatprep.subr.bf16.mxu0 %v17410_v18  ;;  %v14374_v18 = vpop.permute.xlu1 %1153 }
 0x2f4   :  { %v4136_v8 = vsub.f32 %v13777_v2, %v17415_v21  ;;  %v17421_v21 = vld [vmem:[#allocation4_spill] sm:$0xff] }
 0x2f5   :  { %8963 = vmatpush3.bf16.msra.mxu1 %v8962_v62  ;;  %v8966_v62 = vpack.c.bf16 %v13620_v37, %v13639_v12  ;;  %v17423_v12 = vld [vmem:[#allocation167_spill] sm:$0xff]  ;;  %v4142_v37 = vsub.f32 %v14359_v63, %v4141_v0  ;;  %v4024_v63 = vand.u32 4294901760, %v17433_v13 }
 0x2f6   :  { %8339 = vmatpush1.bf16.msra.mxu0 %v17413_v42  ;;  %8965 = vmatprep.subr.bf16.mxu1 %v17418_v15  ;;  %v17420_v42 = vld [vmem:[#allocation26_spill] sm:$0xff]  ;;  %v4137_v2 = vand.u32 4294901760, %v4136_v8  ;;  %v17427_v8 = vld [vmem:[#allocation39_spill] sm:$0xff] }
 0x2f7   :  { %8341 = vmatprep.subr.bf16.mxu0 %v17414_v60  ;;  %v4148_v60 = vsub.f32 %v13781_v36, %v17419_v48  ;;  %v17424_v48 = vand.u32 4294901760, %v13796_v5  ;;  %v14394_v36 = vpack.c.bf16 %v4016_v47, %v4012_v1  ;;  %v17426_v53 = vand.u32 4294901760, %v17420_v42  ;;  %v14404_v15 = vpop.permute.xlu1 %1168  ;;  %v17659_v4 = vld [vmem:[#allocation45_spill] sm:$0xff] }
 0x2f8   :  { %v17429_v1 = vand.u32 4294901760, %v13908_v27 }
 0x2f9   :  { %8967 = vmatpush3.bf16.msra.mxu1 %v8966_v62  ;;  %v6731_v22 = vsub.f32 %v13796_v5, %v17424_v48  ;;  %17425 = vst [vmem:[#allocation31_spill] sm:$0xff] %v14394_v36  ;;  %v4149_v28 = vand.u32 4294901760, %v4148_v60  ;;  %v6738_v57 = vsub.f32 %v17420_v42, %v17426_v53  ;;  %v4131_v48 = vand.u32 4294901760, %v4130_v16  ;;  %v17431_v5 = vld [vmem:[#allocation129_spill] sm:$0xff]  ;;  %v17432_v42 = vld [vmem:[#allocation16_spill] sm:$0xff] }
 0x2fa   :  { %8343 = vmatpush1.bf16.msra.mxu0 %v17421_v21  ;;  %8969 = vmatprep.subr.bf16.mxu1 %v8968_v20  ;;  %v14406_v20 = vpack.c.bf16 %v4141_v0, %v4129_v19  ;;  %v6745_v47 = vsub.f32 %v13908_v27, %v17429_v1  ;;  %v17430_v60 = vand.u32 4294901760, %v17422_v49  ;;  %v4020_v62 = vand.u32 4294901760, %v17432_v42  ;;  %v17434_v36 = vld [vmem:[#allocation124_spill] sm:$0xff]  ;;  %v17436_v1 = vld [vmem:[#allocation7_spill] sm:$0xff] }
 0x2fb   :  { %8345 = vmatprep.subr.bf16.mxu0 %v17423_v12  ;;  %v4143_v16 = vand.u32 4294901760, %v4142_v37  ;;  %v6732_v19 = vand.u32 4294901760, %v6731_v22  ;;  %v6739_v0 = vand.u32 4294901760, %v6738_v57  ;;  %v17440_v12 = vld [vmem:[#allocation213_spill] sm:$0xff]  ;;  %v17443_v22 = vld [vmem:[#allocation134_spill] sm:$0xff]  ;;  %v14435_v57 = vpop.permute.xlu1 %1164  ;;  %v17465_v21 = vld [vmem:[#allocation143_spill] sm:$0xff] }
 0x2fc   :  { %17428 = vst [vmem:[#allocation8_spill] sm:$0xff] %v14406_v20  ;;  %v6752_v53 = vsub.f32 %v17422_v49, %v17430_v60  ;;  %v14418_v20 = vpack.c.bf16 %v4149_v28, %v4137_v2  ;;  %v6746_v49 = vand.u32 4294901760, %v6745_v47  ;;  %v14428_v37 = vsub.f32 %v17432_v42, %v4020_v62  ;;  %v17444_v28 = vld [vmem:[#allocation56_spill] sm:$0xff]  ;;  %17445 = vst [vmem:[#allocation196_spill] sm:$0xff] %v14435_v57  ;;  %v17447_v47 = vld [vmem:[#allocation215_spill] sm:$0xff] }
 0x2fd   :  { %8971 = vmatpush3.bf16.msra.mxu1 %v8970_v46  ;;  %v14422_v27 = vpack.c.bf16 %v4143_v16, %v4131_v48  ;;  %v17438_v46 = vld [vmem:[#allocation84_spill] sm:$0xff]  ;;  %v14431_v2 = vsub.f32 %v17433_v13, %v4024_v63  ;;  %v14438_v48 = vpack.c.bf16 %v6739_v0, %v6732_v19  ;;  %v17449_v13 = vld [vmem:[#allocation151_spill] sm:$0xff]  ;;  %v17452_v0 = vld [vmem:[#allocation98_spill] sm:$0xff] }
 0x2fe   :  { %8347 = vmatpush1.bf16.msra.mxu0 %v17427_v8  ;;  %8973 = vmatprep.subr.bf16.mxu1 %v17434_v36  ;;  %17435 = vst [vmem:[#allocation58_spill] sm:$0xff] %v14418_v20  ;;  %v16024_v60 = vand.u32 4294901760, %v17438_v46  ;;  %v17439_v8 = vld [vmem:[#allocation42_spill] sm:$0xff]  ;;  %17441 = vst [vmem:[#allocation192_spill] sm:$0xff] %v14428_v37 }
 0x2ff   :  { %8349 = vmatprep.subr.bf16.mxu0 %v17431_v5  ;;  %17437 = vst [vmem:[#allocation32_spill] sm:$0xff] %v14422_v27  ;;  %v6753_v5 = vand.u32 4294901760, %v6752_v53  ;;  %17442 = vst [vmem:[#allocation191_spill] sm:$0xff] %v14431_v2  ;;  %v17448_v53 = vld [vmem:[#allocation145_spill] sm:$0xff]  ;;  %v4165_v20 = vand.u32 4294901760, %v14431_v2  ;;  %v17453_v27 = vld [vmem:[#allocation44_spill] sm:$0xff]  ;;  %v14455_v57 = vpop.permute.xlu1 %1170 }
 0x300   :  { %6245 = vmatmul.mubr.f32.vlgmr.msra.gmra.mrb[18].mxu1 %v17369_v6  ;;  %17446 = vst [vmem:[#allocation40_spill] sm:$0xff] %v14438_v48  ;;  %v4160_v42 = vsub.f32 %v17438_v46, %v16024_v60  ;;  %v4153_v6 = vand.u32 4294901760, %v14428_v37  ;;  %17454 = vst [vmem:[#allocation200_spill] sm:$0xff] %v14455_v57  ;;  %v17455_v46 = vld [vmem:[#allocation90_spill] sm:$0xff] }
 0x301   :  { %8975 = vmatpush3.bf16.msra.mxu1 %v17439_v8  ;;  %6349 = vmatprep.mubr.f32.mxu1 %v17372_v50  ;;  %v14446_v16 = vpack.c.bf16 %v6753_v5, %v6746_v49  ;;  %v17451_v50 = vand.u32 4294901760, %v17443_v22  ;;  %v17457_v49 = vld [vmem:[#allocation68_spill] sm:$0xff] }
 0x302   :  { %8351 = vmatpush1.bf16.msra.mxu0 %v17436_v1  ;;  %8977 = vmatprep.subr.bf16.mxu1 %v17444_v28  ;;  %v4161_v60 = vand.u32 4294901760, %v4160_v42  ;;  %v17461_v1 = vld [vmem:[#allocation161_spill] sm:$0xff] }
 0x303   :  { %8353 = vmatprep.subr.bf16.mxu0 %v17440_v12  ;;  %17450 = vst [vmem:[#allocation35_spill] sm:$0xff] %v14446_v16  ;;  %v4172_v19 = vsub.f32 %v17443_v22, %v17451_v50  ;;  %v14460_v16 = vpack.c.bf16 %v4024_v63, %v4020_v62  ;;  %v4166_v50 = vsub.f32 %v14431_v2, %v4165_v20  ;;  %v17464_v62 = vld [vmem:[#allocation169_spill] sm:$0xff]  ;;  %v1438_v57 = vpop.permute.xlu1 %1437 }
 0x304   :  { %v14467_v12 = vpack.c.bf16 %v4165_v20, %v4153_v6  ;;  %v17470_v20 = vld [vmem:[#allocation184_spill] sm:$0xff]  ;;  %v17474_v2 = vld [vmem:[#allocation89_spill] sm:$0xff] }
 0x305   :  { %8979 = vmatpush3.bf16.msra.mxu1 %v17448_v53  ;;  %v4173_v5 = vand.u32 4294901760, %v4172_v19  ;;  %17458 = vst [vmem:[#allocation198_spill] sm:$0xff] %v14460_v16  ;;  %v4167_v42 = vand.u32 4294901760, %v4166_v50  ;;  %v17462_v19 = vld [vmem:[#allocation175_spill] sm:$0xff]  ;;  %v4032_v16 = vand.u32 4294901760, %v17464_v62  ;;  %v5015_v50 = vadd.f32 %v14258_v58, %v1438_v57 }
 0x306   :  { %8355 = vmatpush1.bf16.msra.mxu0 %v17447_v47  ;;  %8981 = vmatprep.subr.bf16.mxu1 %v17452_v0  ;;  %v4154_v47 = vsub.f32 %v14428_v37, %v4153_v6  ;;  %17460 = vst [vmem:[#allocation140_spill] sm:$0xff] %v14467_v12  ;;  %v17468_v37 = vld [vmem:[#allocation172_spill] sm:$0xff]  ;;  %v14482_v6 = vadd.f32 %v17470_v20, %v1438_v57 }
 0x307   :  { %8357 = vmatprep.subr.bf16.mxu0 %v17449_v13  ;;  %v17456_v13 = vld [vmem:[#allocation138_spill] sm:$0xff]  ;;  %v14476_v22 = vpack.c.bf16 %v4173_v5, %v4161_v60  ;;  %v17473_v12 = vld [vmem:[#allocation176_spill] sm:$0xff]  ;;  %v5247_v60 = vadd.f32 %v14364_v24, %v5015_v50  ;;  %v14497_v58 = vsub.f32 %v17464_v62, %v4032_v16 }
 0x308   :  { %v4155_v48 = vand.u32 4294901760, %v4154_v47  ;;  %v14479_v47 = vadd.f32 %v17468_v37, %v1438_v57  ;;  %17471 = vst [vmem:[#allocation207_spill] sm:$0xff] %v14482_v6  ;;  %v17477_v5 = vld [vmem:[#allocation166_spill] sm:$0xff]  ;;  %v17481_v57 = vld [vmem:[#allocation155_spill] sm:$0xff] }
 0x309   :  { %8983 = vmatpush3.bf16.msra.mxu1 %v17455_v46  ;;  %17467 = vst [vmem:[#allocation154_spill] sm:$0xff] %v14476_v22  ;;  %v17478_v37 = vld [vmem:[#allocation182_spill] sm:$0xff]  ;;  %17480 = vst [vmem:[#allocation17_spill] sm:$0xff] %v14497_v58  ;;  %v17484_v22 = vld [vmem:[#allocation97_spill] sm:$0xff] }
 0x30a   :  { %8359 = vmatpush1.bf16.msra.mxu0 %v17453_v27  ;;  %8985 = vmatprep.subr.bf16.mxu1 %v17457_v49  ;;  %v17459_v27 = vld [vmem:[#allocation34_spill] sm:$0xff]  ;;  %v14474_v26 = vpack.c.bf16 %v4167_v42, %v4155_v48  ;;  %17469 = vst [vmem:[#allocation209_spill] sm:$0xff] %v14479_v47  ;;  %v17482_v47 = vld [vmem:[#allocation125_spill] sm:$0xff] }
 0x30b   :  { %8361 = vmatprep.subr.bf16.mxu0 %v17456_v13  ;;  %v17463_v13 = vld [vmem:[#allocation164_spill] sm:$0xff]  ;;  %v17476_v48 = vld [vmem:[#allocation186_spill] sm:$0xff] }
 0x30c   :  { %v4028_v63 = vand.u32 4294901760, %v17463_v13  ;;  %17466 = vst [vmem:[#allocation9_spill] sm:$0xff] %v14474_v26  ;;  %v16034_v42 = vand.u32 4294901760, %v17476_v48  ;;  %v4189_v26 = vand.u32 4294901760, %v14497_v58 }
 0x30d   :  { %8987 = vmatpush3.bf16.msra.mxu1 %v17461_v1 }
 0x30e   :  { %8363 = vmatpush1.bf16.msra.mxu0 %v17459_v27  ;;  %8989 = vmatprep.subr.bf16.mxu1 %v17465_v21  ;;  %v17475_v27 = vld [vmem:[#allocation183_spill] sm:$0xff]  ;;  %v14494_v20 = vsub.f32 %v17463_v13, %v4028_v63  ;;  %v4196_v50 = vsub.f32 %v17476_v48, %v16034_v42  ;;  %v17483_v13 = vld [vmem:[#allocation50_spill] sm:$0xff]  ;;  %v14514_v25 = vpack.c.bf16 %v4032_v16, %v4028_v63  ;;  %v17488_v42 = vld [vmem:[#allocation189_spill] sm:$0xff] }
 0x30f   :  { %8365 = vmatprep.subr.bf16.mxu0 %v17462_v19  ;;  %v17472_v19 = vld [vmem:[#allocation69_spill] sm:$0xff]  ;;  %v16032_v31 = vand.u32 4294901760, %v17475_v27 }
 0x310   :  { %17479 = vst [vmem:[#allocation94_spill] sm:$0xff] %v14494_v20  ;;  %v4177_v62 = vand.u32 4294901760, %v14494_v20  ;;  %17486 = vst [vmem:[#allocation60_spill] sm:$0xff] %v14514_v25  ;;  %v4197_v45 = vand.u32 4294901760, %v4196_v50  ;;  %v17490_v48 = vld [vmem:[#allocation5_spill] sm:$0xff]  ;;  %v17496_v25 = vld [vmem:[#allocation114_spill] sm:$0xff] }
 0x311   :  { %3604 = vmatmul.mubr.f32.vlgmr.msra.gmra.mrb[0].mxu0 %v17472_v19  ;;  %8991 = vmatpush3.bf16.msra.mxu1 %v17477_v5  ;;  %v4184_v24 = vsub.f32 %v17475_v27, %v16032_v31  ;;  %v17487_v31 = vld [vmem:[#allocation188_spill] sm:$0xff] }
 0x312   :  { %8367 = vmatpush1.bf16.msra.mxu0 %v17473_v12  ;;  %3867 = vmatprep.mubr.f32.mxu0 %v17474_v2  ;;  %v7406_v12 = vpop.f32.mrb[6].mxu1  ;;  %v4178_v52 = vsub.f32 %v14494_v20, %v4177_v62  ;;  %v17528_v20 = vld [vmem:[#allocation149_spill] sm:$0xff] }
 0x313   :  { %8369 = vmatprep.subr.bf16.mxu0 %v17478_v37  ;;  %8993 = vmatprep.subr.bf16.mxu1 %v17481_v57  ;;  %v7407_v6 = vpop.f32.mrb[7].mxu1  ;;  %v4185_v27 = vand.u32 4294901760, %v4184_v24 }
 0x314   :  { %v7408_v37 = vadd.f32 %v7407_v6, %v7406_v12  ;;  %v4044_v6 = vand.u32 4294901760, %v17488_v42  ;;  %v17489_v12 = vld [vmem:[#allocation48_spill] sm:$0xff]  ;;  %v4179_v24 = vand.u32 4294901760, %v4178_v52  ;;  %v17498_v52 = vld [vmem:[#allocation54_spill] sm:$0xff] }
 0x315   :  { %8995 = vmatpush3.bf16.msra.mxu1 %v17483_v13  ;;  %v14538_v16 = vpack.c.bf16 %v4197_v45, %v4185_v27  ;;  %v16038_v27 = vand.u32 4294901760, %v14301_v39  ;;  %v16037_v45 = vand.u32 4294901760, %v14316_v59 }
 0x316   :  { %8371 = vmatpush1.bf16.msra.mxu0 %v17482_v47  ;;  %8997 = vmatprep.subr.bf16.mxu1 %v17485_v14  ;;  %v14512_v47 = vadd.f32 %v7408_v37, %v5247_v60  ;;  %v4190_v60 = vsub.f32 %v14497_v58, %v4189_v26  ;;  %v14529_v37 = vpack.c.bf16 %v4189_v26, %v4177_v62  ;;  %v17500_v62 = vld [vmem:[#allocation72_spill] sm:$0xff] }
 0x317   :  { %8373 = vmatprep.subr.bf16.mxu0 %v17484_v22  ;;  %v17491_v22 = vld [vmem:[#allocation24_spill] sm:$0xff]  ;;  %v14546_v26 = vpack.c.bf16 %v16040_v29, %v16041_v32  ;;  %v17524_v29 = vld [vmem:[#allocation203_spill] sm:$0xff] }
 0x318   :  { %v4048_v30 = vand.u32 4294901760, %v17491_v22  ;;  %v4191_v50 = vand.u32 4294901760, %v4190_v60  ;;  %17494 = vst [vmem:[#allocation80_spill] sm:$0xff] %v14529_v37  ;;  %v17501_v60 = vld [vmem:[#allocation156_spill] sm:$0xff] }
 0x319   :  { %8999 = vmatpush3.bf16.msra.mxu1 %v17489_v12  ;;  %v17525_v32 = vld [vmem:[#allocation168_spill] sm:$0xff] }
 0x31a   :  { %8375 = vmatpush1.bf16.msra.mxu0 %v17487_v31  ;;  %9001 = vmatprep.subr.bf16.mxu1 %v17492_v35  ;;  %v17493_v31 = vld [vmem:[#allocation20_spill] sm:$0xff]  ;;  %v14527_v63 = vpack.c.bf16 %v4048_v30, %v4044_v6  ;;  %v14536_v11 = vpack.c.bf16 %v4191_v50, %v4179_v24  ;;  %v17505_v50 = vld [vmem:[#allocation170_spill] sm:$0xff] }
 0x31b   :  { %8377 = vmatprep.subr.bf16.mxu0 %v17490_v48  ;;  %v17495_v48 = vld [vmem:[#allocation126_spill] sm:$0xff]  ;;  %v17526_v37 = vld [vmem:[#allocation204_spill] sm:$0xff] }
 0x31d   :  { %9003 = vmatpush3.bf16.msra.mxu1 %v17495_v48 }
 0x31e   :  { %8379 = vmatpush1.bf16.msra.mxu0 %v17493_v31  ;;  %9005 = vmatprep.subr.bf16.mxu1 %v17497_v43  ;;  %v17502_v43 = vld [vmem:[#allocation117_spill] sm:$0xff]  ;;  %v17504_v31 = vand.u32 4294901760, %v13982_v41  ;;  %v17511_v41 = vld [vmem:[#allocation14_spill] sm:$0xff] }
 0x31f   :  { %8381 = vmatprep.subr.bf16.mxu0 %v17496_v25  ;;  %v17499_v25 = vld [vmem:[#allocation38_spill] sm:$0xff] }
 0x320   :  { %6353 = vmatmul.mubr.f32.vlgmr.msra.gmra.mrb[20].mxu1 %v17472_v19  ;;  %v17503_v19 = vand.u32 4294901760, %v14014_v56  ;;  %v17510_v56 = vld [vmem:[#allocation71_spill] sm:$0xff] }
 0x321   :  { %9007 = vmatpush3.bf16.msra.mxu1 %v17499_v25  ;;  %6519 = vmatprep.mubr.f32.mxu1 %v17474_v2  ;;  %v14565_v25 = vpack.c.bf16 %v16037_v45, %v16038_v27  ;;  %v17523_v45 = vld [vmem:[#allocation46_spill] sm:$0xff] }
 0x322   :  { %8383 = vmatpush1.bf16.msra.mxu0 %v17498_v52  ;;  %9009 = vmatprep.subr.bf16.mxu1 %v17501_v60  ;;  %v9012_v24 = vpack.c.bf16 %v17504_v31, %v17503_v19  ;;  %v17506_v52 = vld [vmem:[#allocation119_spill] sm:$0xff]  ;;  %v17508_v60 = vld [vmem:[#allocation173_spill] sm:$0xff]  ;;  %v16039_v19 = vand.u32 4294901760, %v14212_v10 }
 0x323   :  { %8385 = vmatprep.subr.bf16.mxu0 %v17500_v62  ;;  %v17507_v62 = vld [vmem:[#allocation131_spill] sm:$0xff]  ;;  %v17512_v31 = vld [vmem:[#allocation205_spill] sm:$0xff] }
 0x325   :  { %9011 = vmatpush3.bf16.msra.mxu1 %v17505_v50  ;;  %v17513_v50 = vld [vmem:[#allocation73_spill] sm:$0xff] }
 0x326   :  { %8387 = vmatpush1.bf16.msra.mxu0 %v17502_v43  ;;  %9013 = vmatprep.subr.bf16.mxu1 %v9012_v24  ;;  %v17509_v43 = vld [vmem:[#allocation11_spill] sm:$0xff]  ;;  %v14579_v24 = vsub.f32 %v17491_v22, %v4048_v30  ;;  %v17520_v22 = vld [vmem:[#allocation206_spill] sm:$0xff] }
 0x327   :  { %8389 = vmatprep.subr.bf16.mxu0 %v17506_v52  ;;  %v14576_v52 = vsub.f32 %v17488_v42, %v4044_v6 }
 0x328   :  { %17515 = vst [vmem:[#allocation104_spill] sm:$0xff] %v14579_v24  ;;  %v4237_v6 = vand.u32 4294901760, %v14579_v24 }
 0x329   :  { %9015 = vmatpush3.bf16.msra.mxu1 %v17508_v60  ;;  %17514 = vst [vmem:[#allocation165_spill] sm:$0xff] %v14576_v52  ;;  %v17516_v60 = vld [vmem:[#allocation194_spill] sm:$0xff]  ;;  %v4225_v42 = vand.u32 4294901760, %v14576_v52 }
 0x32a   :  { %8391 = vmatpush1.bf16.msra.mxu0 %v17507_v62  ;;  %9017 = vmatprep.subr.bf16.mxu1 %v17510_v56  ;;  %v16046_v62 = vand.u32 4294901760, %v14217_v3  ;;  %v4232_v56 = vsub.f32 %v14212_v10, %v16039_v19  ;;  %v17527_v10 = vand.u32 4294901760, %v17526_v37  ;;  %v17531_v37 = vld [vmem:[#allocation144_spill] sm:$0xff] }
 0x32b   :  { %8393 = vmatprep.subr.bf16.mxu0 %v17509_v43  ;;  %v17517_v43 = vld [vmem:[#allocation193_spill] sm:$0xff] }
 0x32c   :  { %v4244_v30 = vsub.f32 %v14217_v3, %v16046_v62  ;;  %v8406_v58 = vpack.c.bf16 %v17528_v20, %v17527_v10  ;;  %v17529_v3 = vld [vmem:[#allocation15_spill] sm:$0xff]  ;;  %v16051_v20 = vand.u32 4294901760, %v14282_v17 }
 0x32d   :  { %9019 = vmatpush3.bf16.msra.mxu1 %v17512_v31  ;;  %v17519_v31 = vld [vmem:[#allocation202_spill] sm:$0xff]  ;;  %v17532_v10 = vld [vmem:[#allocation211_spill] sm:$0xff] }
 0x32e   :  { %8395 = vmatpush1.bf16.msra.mxu0 %v17511_v41  ;;  %9021 = vmatprep.subr.bf16.mxu1 %v17516_v60  ;;  %v17518_v41 = vld [vmem:[#allocation208_spill] sm:$0xff]  ;;  %v4245_v62 = vand.u32 4294901760, %v4244_v30 }
 0x32f   :  { %8397 = vmatprep.subr.bf16.mxu0 %v17513_v50  ;;  %v7441_v50 = vpop.f32.mrb[8].mxu1  ;;  %v17521_v60 = vld [vmem:[#allocation92_spill] sm:$0xff] }
 0x330   :  { %v7442_v19 = vpop.f32.mrb[9].mxu1 }
 0x331   :  { %9023 = vmatpush3.bf16.msra.mxu1 %v17518_v41  ;;  %v4233_v41 = vand.u32 4294901760, %v4232_v56  ;;  %v17533_v56 = vld [vmem:[#allocation43_spill] sm:$0xff] }
 0x332   :  { %8399 = vmatpush1.bf16.msra.mxu0 %v17517_v43  ;;  %9025 = vmatprep.subr.bf16.mxu1 %v17520_v22  ;;  %v17522_v43 = vand.u32 4294901760, %v17521_v60  ;;  %v4226_v22 = vsub.f32 %v14576_v52, %v4225_v42  ;;  %v4238_v60 = vsub.f32 %v14579_v24, %v4237_v6 }
 0x333   :  { %8401 = vmatprep.subr.bf16.mxu0 %v17519_v31  ;;  %v7443_v31 = vadd.f32 %v7442_v19, %v7441_v50  ;;  %v14611_v19 = vpack.c.bf16 %v4237_v6, %v4225_v42  ;;  %v14620_v50 = vpack.c.bf16 %v4245_v62, %v4233_v41  ;;  %v17536_v42 = vand.u32 4294901760, %v14264_v34 }
 0x334   :  { %v8404_v27 = vpack.c.bf16 %v17523_v45, %v17522_v43  ;;  %v17538_v43 = vld [vmem:[#allocation108_spill] sm:$0xff]  ;;  %v16050_v41 = vand.u32 4294901760, %v14333_v23 }
 0x335   :  { %9027 = vmatpush3.bf16.msra.mxu1 %v17525_v32  ;;  %v4227_v32 = vand.u32 4294901760, %v4226_v22  ;;  %17530 = vst [vmem:[#allocation41_spill] sm:$0xff] %v14611_v19  ;;  %v14630_v6 = vsub.f32 %v14264_v34, %v17536_v42  ;;  %v17540_v22 = vld [vmem:[#allocation13_spill] sm:$0xff] }
 0x336   :  { %8403 = vmatpush1.bf16.msra.mxu0 %v17524_v29  ;;  %9029 = vmatprep.subr.bf16.mxu1 %v17529_v3  ;;  %v14609_v29 = vadd.f32 %v7443_v31, %v14512_v47  ;;  %v16052_v3 = vand.u32 4294901760, %v14277_v9  ;;  %v17539_v31 = vld [vmem:[#allocation210_spill] sm:$0xff] }
 0x337   :  { %8405 = vmatprep.subr.bf16.mxu0 %v8404_v27  ;;  %v4239_v27 = vand.u32 4294901760, %v4238_v60  ;;  %17537 = vst [vmem:[#allocation179_spill] sm:$0xff] %v14630_v6  ;;  %v16049_v60 = vand.u32 4294901760, %v14338_v33 }
 0x338   :  { %v4256_v62 = vsub.f32 %v14277_v9, %v16052_v3  ;;  %v17606_v9 = vld [vmem:[#allocation28_spill] sm:$0xff] }
 0x339   :  { %9031 = vmatpush3.bf16.msra.mxu1 %v17531_v37  ;;  %v14618_v30 = vpack.c.bf16 %v4239_v27, %v4227_v32  ;;  %v4261_v32 = vand.u32 4294901760, %v14630_v6  ;;  %v17541_v27 = vand.u32 4294901760, %v14301_v39 }
 0x33a   :  { %8407 = vmatpush1.bf16.msra.mxu0 %v8406_v58  ;;  %9033 = vmatprep.subr.bf16.mxu1 %v17533_v56  ;;  %v17534_v58 = vand.u32 4294901760, %v14245_v38  ;;  %v4257_v42 = vand.u32 4294901760, %v4256_v62 }
 0x33b   :  { %8409 = vmatprep.subr.bf16.mxu0 %v17532_v10  ;;  %v14649_v37 = vsub.f32 %v14301_v39, %v17541_v27  ;;  %v17543_v10 = vand.u32 4294901760, %v14316_v59  ;;  %v4280_v39 = vsub.f32 %v14333_v23, %v16050_v41  ;;  %v4262_v62 = vsub.f32 %v14630_v6, %v4261_v32  ;;  %v17548_v27 = vld [vmem:[#allocation223_spill] sm:$0xff] }
 0x33c   :  { %v14625_v47 = vsub.f32 %v14245_v38, %v17534_v58  ;;  %v4268_v38 = vsub.f32 %v14282_v17, %v16051_v20  ;;  %v17545_v58 = vld [vmem:[#allocation30_spill] sm:$0xff]  ;;  %v17550_v41 = vand.u32 4294901760, %v17351_v7  ;;  %v17608_v17 = vld [vmem:[#allocation4_spill] sm:$0xff] }
 0x33d   :  { %9035 = vmatpush3.bf16.msra.mxu1 %v17539_v31  ;;  %17542 = vst [vmem:[#allocation225_spill] sm:$0xff] %v14649_v37  ;;  %v14654_v56 = vsub.f32 %v14316_v59, %v17543_v10  ;;  %v4292_v31 = vsub.f32 %v14338_v33, %v16049_v60  ;;  %v4273_v59 = vand.u32 4294901760, %v14649_v37  ;;  %v17549_v60 = vld [vmem:[#allocation152_spill] sm:$0xff] }
 0x33e   :  { %17535 = vst [vmem:[#allocation185_spill] sm:$0xff] %v14625_v47  ;;  %8411 = vmatpush1.bf16.msra.mxu0 %v17538_v43  ;;  %9037 = vmatprep.subr.bf16.mxu1 %v17434_v36  ;;  %v4249_v34 = vand.u32 4294901760, %v14625_v47  ;;  %v17546_v36 = vld [vmem:[#allocation217_spill] sm:$0xff]  ;;  %v4269_v43 = vand.u32 4294901760, %v4268_v38  ;;  %v17547_v38 = vld [vmem:[#allocation219_spill] sm:$0xff]  ;;  %v8424_v20 = vpack.c.bf16 %v17550_v41, %v17549_v60 }
 0x33f   :  { %8413 = vmatprep.subr.bf16.mxu0 %v17540_v22  ;;  %17544 = vst [vmem:[#allocation23_spill] sm:$0xff] %v14654_v56 }
 0x340   :  { %6521 = vmatmul.mubr.f32.vlgmr.msra.gmra.mrb[22].mxu1 %v17110_v61  ;;  %v4250_v22 = vsub.f32 %v14625_v47, %v4249_v34  ;;  %v14691_v7 = vpack.c.bf16 %v4261_v32, %v4249_v34  ;;  %v17557_v34 = vld [vmem:[#allocation65_spill] sm:$0xff]  ;;  %v17559_v32 = vld [vmem:[#allocation74_spill] sm:$0xff] }
 0x341   :  { %9039 = vmatpush3.bf16.msra.mxu1 %v17439_v8  ;;  %6623 = vmatprep.mubr.f32.mxu1 %v17474_v2  ;;  %v4285_v8 = vand.u32 4294901760, %v14654_v56 }
 0x342   :  { %8415 = vmatpush1.bf16.msra.mxu0 %v17545_v58  ;;  %9041 = vmatprep.subr.bf16.mxu1 %v17444_v28  ;;  %v4251_v10 = vand.u32 4294901760, %v4250_v22  ;;  %v4263_v58 = vand.u32 4294901760, %v4262_v62  ;;  %v4293_v28 = vand.u32 4294901760, %v4292_v31  ;;  %v17551_v62 = vld [vmem:[#allocation224_spill] sm:$0xff]  ;;  %17552 = vst [vmem:[#allocation103_spill] sm:$0xff] %v14691_v7  ;;  %v17595_v7 = vmov 0.0|0.0  }
 0x343   :  { %8417 = vmatprep.subr.bf16.mxu0 %v17546_v36  ;;  %v4281_v36 = vand.u32 4294901760, %v4280_v39  ;;  %v4286_v22 = vsub.f32 %v14654_v56, %v4285_v8 }
 0x344   :  { %v14681_v45 = vpack.c.bf16 %v4263_v58, %v4251_v10 }
 0x345   :  { %9043 = vmatpush3.bf16.msra.mxu1 %v17448_v53  ;;  %v4274_v53 = vsub.f32 %v14649_v37, %v4273_v59  ;;  %v4287_v60 = vand.u32 4294901760, %v4286_v22  ;;  %v14700_v58 = vpack.c.bf16 %v4293_v28, %v4281_v36  ;;  %v17602_v37 = vld [vmem:[#allocation199_spill] sm:$0xff] }
 0x346   :  { %8419 = vmatpush1.bf16.msra.mxu0 %v17547_v38  ;;  %9045 = vmatprep.subr.bf16.mxu1 %v17452_v0  ;;  %v14683_v38 = vpack.c.bf16 %v4269_v43, %v4257_v42  ;;  %v1190_v0 = vld [vmem:[%s15407_s1 + $0x28] sm:$0xff]  ;;  %v17553_v42 = vld [vmem:[#allocation163_spill] sm:$0xff]  ;;  %v17554_v43 = vld [vmem:[#allocation6_spill] sm:$0xff]  ;;  %v7476_v36 = vpop.f32.mrb[10].mxu1 }
 0x347   :  { %8421 = vmatprep.subr.bf16.mxu0 %v17548_v27  ;;  %v4275_v41 = vand.u32 4294901760, %v4274_v53  ;;  %v17555_v39 = vand.u32 4294901760, %v17554_v43  ;;  %v1442_v27 = vsel %vm1440_vm12, %v1190_v0, 0  ;;  %17556 = vst [vmem:[#allocation157_spill] sm:$0xff] %v14700_v58  ;;  %v17560_v53 = vld [vmem:[#allocation93_spill] sm:$0xff]  ;;  %v14733_v0 = vpack.c.bf16 %v4285_v8, %v4273_v59  ;;  %v17563_v8 = vld [vmem:[#allocation178_spill] sm:$0xff] }
 0x349   :  { %9047 = vmatpush3.bf16.msra.mxu1 %v17455_v46  ;;  %v8426_v31 = vpack.c.bf16 %v17555_v39, %v17553_v42  ;;  %v14698_v10 = vpack.c.bf16 %v4287_v60, %v4275_v41  ;;  %v14704_v46 = vpop.permute.xlu0 %1125  ;;  %17562 = vst [vmem:[#allocation100_spill] sm:$0xff] %v14733_v0  ;;  %v17564_v41 = vld [vmem:[#allocation96_spill] sm:$0xff]  ;;  %v17567_v60 = vld [vmem:[#allocation82_spill] sm:$0xff] }
 0x34a   :  { %8423 = vmatpush1.bf16.msra.mxu0 %v17551_v62  ;;  %9049 = vmatprep.subr.bf16.mxu1 %v17457_v49  ;;  %v17558_v49 = vld [vmem:[#allocation64_spill] sm:$0xff]  ;;  %v17561_v62 = vld [vmem:[#allocation102_spill] sm:$0xff] }
 0x34b   :  { %8425 = vmatprep.subr.bf16.mxu0 %v8424_v20  ;;  %v14707_v20 = vand.u32 4294901760, %v1442_v27  ;;  %v17568_v42 = vld [vmem:[#allocation218_spill] sm:$0xff] }
 0x34c   :  { %v14778_v43 = vsel %vm1031_vm1, %v17568_v42, %v17567_v60  ;;  %v17577_v60 = vld [vmem:[#allocation33_spill] sm:$0xff]  ;;  %v17594_v0 = vld [vmem:[#allocation118_spill] sm:$0xff] }
 0x34d   :  { %9051 = vmatpush3.bf16.msra.mxu1 %v17461_v1  ;;  %v14716_v1 = vsub.f32 %v1442_v27, %v14707_v20  ;;  %v14718_v28 = vpop.permute.xlu0 %1151 }
 0x34e   :  { %8427 = vmatpush1.bf16.msra.mxu0 %v8426_v31  ;;  %9053 = vmatprep.subr.bf16.mxu1 %v17465_v21  ;;  %v7477_v21 = vpop.f32.mrb[11].mxu1  ;;  %v17569_v31 = vld [vmem:[#allocation53_spill] sm:$0xff] }
 0x34f   :  { %8429 = vmatprep.subr.bf16.mxu0 %v17557_v34  ;;  %v7478_v22 = vadd.f32 %v7477_v21, %v7476_v36  ;;  %v6646_v34 = vand.u32 4294901760, %v14778_v43 }
 0x351   :  { %3869 = vmatmul.mubr.f32.vlgmr.msra.gmra.mrb[0].mxu0 %v17110_v61  ;;  %9055 = vmatpush3.bf16.msra.mxu1 %v17477_v5  ;;  %v17584_v5 = vld [vmem:[#allocation127_spill] sm:$0xff] }
 0x352   :  { %8431 = vmatpush1.bf16.msra.mxu0 %v17558_v49  ;;  %4004 = vmatprep.mubr.f32.mxu0 %v17474_v2  ;;  %v14725_v2 = vand.u32 4294901760, %v14716_v1  ;;  %v17570_v49 = vld [vmem:[#allocation106_spill] sm:$0xff]  ;;  %v17585_v3 = vand.u32 4294901760, %v17584_v5 }
 0x353   :  { %8433 = vmatprep.subr.bf16.mxu0 %v17559_v32  ;;  %9057 = vmatprep.subr.bf16.mxu1 %v17481_v57  ;;  %v14730_v57 = vadd.f32 %v7478_v22, %v14609_v29  ;;  %v16057_v29 = vmov 0.0|0.0   ;;  %v17571_v32 = vld [vmem:[#allocation99_spill] sm:$0xff] }
 0x354   :  { %v17573_v22 = vld [vmem:[#allocation3_spill] sm:$0xff] }
 0x355   :  { %9059 = vmatpush3.bf16.msra.mxu1 %v17483_v13  ;;  %v14737_v13 = vpop.permute.xlu0 %1166 }
 0x356   :  { %8435 = vmatpush1.bf16.msra.mxu0 %v17560_v53  ;;  %9061 = vmatprep.subr.bf16.mxu1 %v17485_v14  ;;  %v4113_v14 = vsub.f32 %v14716_v1, %v14725_v2 }
 0x357   :  { %8437 = vmatprep.subr.bf16.mxu0 %v17561_v62  ;;  %v17574_v62 = vld [vmem:[#allocation201_spill] sm:$0xff] }
 0x358   :  { %v14762_v59 = vand.u32 4294901760, %v4113_v14  ;;  %v14806_v14 = vsel %vm1067_vm3, %v17574_v62, %v17573_v22  ;;  %v17581_v22 = vld [vmem:[#allocation86_spill] sm:$0xff] }
 0x359   :  { %9063 = vmatpush3.bf16.msra.mxu1 %v17489_v12 }
 0x35a   :  { %8439 = vmatpush1.bf16.msra.mxu0 %v17383_v44  ;;  %9065 = vmatprep.subr.bf16.mxu1 %v17492_v35  ;;  %v14748_v44 = vsel %vm1157_vm9, %v14718_v28, %v14374_v18 }
 0x35b   :  { %8441 = vmatprep.subr.bf16.mxu0 %v17384_v54  ;;  %v14754_v54 = vsel %vm1172_vm6, %v14737_v13, %v14404_v15  ;;  %v16056_v35 = vand.u32 4294901760, %v14748_v44 }
 0x35c   :  { %v16055_v12 = vand.u32 4294901760, %v14754_v54 }
 0x35d   :  { %9067 = vmatpush3.bf16.msra.mxu1 %v17495_v48  ;;  %v17566_v48 = vld [vmem:[#allocation158_spill] sm:$0xff] }
 0x35e   :  { %8443 = vmatpush1.bf16.msra.mxu0 %v17385_v51  ;;  %9068 = vmatprep.subr.bf16.mxu1 %v16057_v29  ;;  %v14770_v51 = vsel %vm1016_vm15, %v17564_v41, %v17563_v8  ;;  %v14788_v39 = vsub.f32 %v14754_v54, %v16055_v12  ;;  %v17575_v8 = vld [vmem:[#allocation81_spill] sm:$0xff]  ;;  %v17576_v41 = vld [vmem:[#allocation110_spill] sm:$0xff] }
 0x35f   :  { %8445 = vmatprep.subr.bf16.mxu0 %v17388_v40  ;;  %v17565_v40 = vld [vmem:[#allocation122_spill] sm:$0xff]  ;;  %v6643_v27 = vand.u32 4294901760, %v14770_v51 }
 0x360   :  { %6625 = vmatmul.mubr.f32.vlgmr.msra.gmra.mrb[24].mxu1 %v17110_v61  ;;  %v16053_v21 = vand.u32 4294901760, %v14788_v39 }
 0x361   :  { %9070 = vmatpush1.bf16.msra.mxu1 %v17565_v40  ;;  %6716 = vmatprep.mubr.f32.mxu1 %v14762_v59  ;;  %v14800_v53 = vpack.c.bf16 %v6646_v34, %v6643_v27 }
 0x362   :  { %8447 = vmatpush1.bf16.msra.mxu0 %v17392_v55  ;;  %v14783_v55 = vsub.f32 %v14748_v44, %v16056_v35  ;;  %9071 = vmatprep.subr.bf16.mxu1 %v16057_v29 }
 0x363   :  { %8449 = vmatprep.subr.bf16.mxu0 %v17566_v48  ;;  %17572 = vst [vmem:[#allocation212_spill] sm:$0xff] %v14800_v53  ;;  %v14812_v48 = vsel %vm1082_vm7, %v17576_v41, %v17575_v8  ;;  %v17582_v8 = vld [vmem:[#allocation187_spill] sm:$0xff]  ;;  %v17583_v41 = vld [vmem:[#allocation18_spill] sm:$0xff] }
 0x364   :  { %v16054_v36 = vand.u32 4294901760, %v14783_v55  ;;  %v6658_v35 = vand.u32 4294901760, %v14812_v48 }
 0x365   :  { %9073 = vmatpush1.bf16.msra.mxu1 %v17570_v49 }
 0x366   :  { %8451 = vmatpush1.bf16.msra.mxu0 %v17569_v31  ;;  %9074 = vmatprep.subr.bf16.mxu1 %v16057_v29  ;;  %v14819_v42 = vpack.c.bf16 %v16053_v21, %v16054_v36  ;;  %v17579_v31 = vld [vmem:[#allocation25_spill] sm:$0xff] }
 0x367   :  { %8453 = vmatprep.subr.bf16.mxu0 %v17571_v32  ;;  %v17580_v32 = vld [vmem:[#allocation85_spill] sm:$0xff] }
 0x368   :  { %17578 = vst [vmem:[#allocation29_spill] sm:$0xff] %v14819_v42  ;;  %v14827_v62 = vsel %vm1097_vm10, %v17581_v22, %v17580_v32  ;;  %v17586_v21 = vld [vmem:[#allocation21_spill] sm:$0xff]  ;;  %v14844_v32 = vpop.permute.xlu0 %1149  ;;  %v1189_v22 = vld [vmem:[%s15407_s1 + $0x20] sm:$0xff]  ;;  %v17593_v42 = vld [vmem:[#allocation142_spill] sm:$0xff] }
 0x369   :  { %9076 = vmatpush1.bf16.msra.mxu1 %v14800_v53  ;;  %v17587_v36 = vand.u32 4294901760, %v17586_v21  ;;  %v14869_v5 = vand.u32 4294901760, %v1189_v22  ;;  %v17596_v21 = vld [vmem:[#allocation160_spill] sm:$0xff] }
 0x36a   :  { %8455 = vmatpush1.bf16.msra.mxu0 %v17577_v60  ;;  %v14833_v60 = vsel %vm1112_vm8, %v17583_v41, %v17582_v8  ;;  %9077 = vmatprep.subr.bf16.mxu1 %v16057_v29  ;;  %v17589_v8 = vld [vmem:[#allocation49_spill] sm:$0xff] }
 0x36b   :  { %8457 = vmatprep.subr.bf16.mxu0 %v17579_v31  ;;  %v14840_v12 = vpack.c.bf16 %v17587_v36, %v17585_v3  ;;  %v6655_v31 = vand.u32 4294901760, %v14806_v14  ;;  %v17591_v3 = vld [vmem:[#allocation61_spill] sm:$0xff]  ;;  %v17592_v36 = vld [vmem:[#allocation19_spill] sm:$0xff]  ;;  %v17598_v19 = vand.u32 4294901760, %v14833_v60 }
 0x36c   :  { %v14860_v29 = vsel %vm1127_vm4, %v17592_v36, %v14704_v46  ;;  %v1156_v33 = vpop.permute.xlu0 %1155  ;;  %v7511_v36 = vpop.f32.mrb[12].mxu1 }
 0x36d   :  { %17588 = vst [vmem:[#allocation132_spill] sm:$0xff] %v14840_v12  ;;  %v14850_v41 = vpack.c.bf16 %v6658_v35, %v6655_v31  ;;  %9079 = vmatpush1.bf16.msra.mxu1 %v14840_v12  ;;  %v7512_v46 = vpop.f32.mrb[13].mxu1 }
 0x36e   :  { %8459 = vmatpush1.bf16.msra.mxu0 %v17589_v8  ;;  %v14866_v8 = vsel %vm1142_vm11, %v17594_v0, %v17593_v42  ;;  %9080 = vmatprep.subr.bf16.mxu1 %v17595_v7  ;;  %v17600_v0 = vld [vmem:[#allocation197_spill] sm:$0xff]  ;;  %v14885_v42 = vsel %vm1157_vm9, %v14374_v18, %v1156_v33 }
 0x36f   :  { %17590 = vst [vmem:[#allocation216_spill] sm:$0xff] %v14850_v41  ;;  %8461 = vmatprep.subr.bf16.mxu0 %v17591_v3  ;;  %v17597_v3 = vand.u32 4294901760, %v14827_v62  ;;  %v17604_v33 = vand.u32 4294901760, %v14866_v8  ;;  %v6673_v56 = vand.u32 4294901760, %v14885_v42 }
 0x371   :  { %v14876_v23 = vpack.c.bf16 %v17598_v19, %v17597_v3  ;;  %9082 = vmatpush1.bf16.msra.mxu1 %v14850_v41  ;;  %v14895_v3 = vsub.f32 %v1189_v22, %v14869_v5 }
 0x372   :  { %8463 = vmatpush1.bf16.msra.mxu0 %v17596_v21  ;;  %v17601_v21 = vld [vmem:[#allocation200_spill] sm:$0xff]  ;;  %9083 = vmatprep.subr.bf16.mxu1 %v17595_v7 }
 0x373   :  { %17599 = vst [vmem:[#allocation214_spill] sm:$0xff] %v14876_v23  ;;  %8465 = vmatprep.subr.bf16.mxu0 %v17600_v0  ;;  %v14891_v19 = vsel %vm1172_vm6, %v14404_v15, %v17601_v21  ;;  %v17603_v0 = vand.u32 4294901760, %v14860_v29  ;;  %v7513_v21 = vadd.f32 %v7512_v46, %v7511_v36  ;;  %v14910_v22 = vand.u32 4294901760, %v14895_v3  ;;  %v1180_v46 = vpop.permute.xlu0 %1179 }
 0x374   :  { %v6676_v15 = vand.u32 4294901760, %v14891_v19 }
 0x375   :  { %v14902_v18 = vpack.c.bf16 %v17604_v33, %v17603_v0  ;;  %9085 = vmatpush1.bf16.msra.mxu1 %v14876_v23  ;;  %17607 = vst [vmem:[#allocation220_spill] sm:$0xff] %v14910_v22  ;;  %v14917_v0 = vsub.f32 %v14770_v51, %v6643_v27  ;;  %v14920_v33 = vsub.f32 %v14778_v43, %v6646_v34  ;;  %v17613_v51 = vld [vmem:[#allocation39_spill] sm:$0xff]  ;;  %v17614_v34 = vld [vmem:[#allocation129_spill] sm:$0xff] }
 0x376   :  { %8467 = vmatpush1.bf16.msra.mxu0 %v17602_v37  ;;  %9086 = vmatprep.subr.bf16.mxu1 %v17595_v7  ;;  %v14913_v37 = vadd.f32 %v7513_v21, %v14730_v57  ;;  %v14922_v36 = vpack.c.bf16 %v6676_v15, %v6673_v56  ;;  %v4119_v57 = vsub.f32 %v14895_v3, %v14910_v22  ;;  %v17611_v21 = vld [vmem:[#allocation63_spill] sm:$0xff] }
 0x377   :  { %17605 = vst [vmem:[#allocation221_spill] sm:$0xff] %v14902_v18  ;;  %8469 = vmatprep.subr.bf16.mxu0 %v17606_v9  ;;  %v17610_v9 = vld [vmem:[#allocation167_spill] sm:$0xff]  ;;  %v16074_v43 = vand.u32 4294901760, %v14917_v0  ;;  %v16075_v27 = vand.u32 4294901760, %v14920_v33 }
 0x378   :  { %17609 = vst [vmem:[#allocation148_spill] sm:$0xff] %v14922_v36  ;;  %v14940_v47 = vand.u32 4294901760, %v4119_v57 }
 0x379   :  { %9088 = vmatpush1.bf16.msra.mxu1 %v14902_v18  ;;  %v6766_v57 = vsub.f32 %v14920_v33, %v16075_v27  ;;  %v17624_v18 = vand.u32 4294901760, %v14833_v60 }
 0x37a   :  { %8471 = vmatpush1.bf16.msra.mxu0 %v17608_v17  ;;  %9089 = vmatprep.subr.bf16.mxu1 %v17595_v7  ;;  %v14932_v17 = vsel %vm17612_vm0, %v17611_v21, %v1180_v46  ;;  %v14946_v46 = vsub.f32 %v14806_v14, %v6655_v31  ;;  %v14949_v21 = vsub.f32 %v14812_v48, %v6658_v35  ;;  %v17617_v35 = vld [vmem:[#allocation171_spill] sm:$0xff]  ;;  %v17619_v31 = vld [vmem:[#allocation40_spill] sm:$0xff] }
 0x37b   :  { %8473 = vmatprep.subr.bf16.mxu0 %v17610_v9  ;;  %v16072_v9 = vmov 0.0   ;;  %v14943_v22 = vand.u32 4294901760, %v14932_v17  ;;  %v17618_v14 = vand.u32 4294901760, %v17617_v35  ;;  %v6767_v24 = vand.u32 4294901760, %v6766_v57 }
 0x37c   :  { %v14982_v23 = vsub.f32 %v14833_v60, %v17624_v18  ;;  %v17627_v41 = vand.u32 4294901760, %v14946_v46  ;;  %v17628_v57 = vand.u32 4294901760, %v14949_v21  ;;  %v17630_v60 = vld [vmem:[#allocation44_spill] sm:$0xff]  ;;  %v17633_v18 = vld [vmem:[#allocation34_spill] sm:$0xff] }
 0x37d   :  { %9091 = vmatpush1.bf16.msra.mxu1 %v14922_v36  ;;  %v6773_v48 = vsub.f32 %v17617_v35, %v17618_v14  ;;  %v17622_v36 = vld [vmem:[#allocation215_spill] sm:$0xff]  ;;  %v17623_v14 = vand.u32 4294901760, %v14827_v62 }
 0x37e   :  { %8475 = vmatpush1.bf16.msra.mxu0 %v17613_v51  ;;  %6678 = vmatprep.subr.mxu1 %v16072_v9  ;;  %v17615_v51 = vld [vmem:[#allocation7_spill] sm:$0xff]  ;;  %v17616_v9 = vld [vmem:[#allocation213_spill] sm:$0xff] }
 0x37f   :  { %8477 = vmatprep.subr.bf16.mxu0 %v17614_v34  ;;  %v6759_v34 = vsub.f32 %v14917_v0, %v16074_v43  ;;  %v6774_v6 = vand.u32 4294901760, %v6773_v48  ;;  %v17631_v48 = vand.u32 4294901760, %v14866_v8 }
 0x381   :  { %6680 = vmatpush1.msra.mxu1 %v14943_v22  ;;  %v6760_v52 = vand.u32 4294901760, %v6759_v34  ;;  %v6787_v34 = vsub.f32 %v14946_v46, %v17627_v41  ;;  %v15004_v41 = vsub.f32 %v14866_v8, %v17631_v48 }
 0x382   :  { %8479 = vmatpush1.bf16.msra.mxu0 %v17615_v51  ;;  %9092 = vmatprep.subr.bf16.mxu1 %v17595_v7  ;;  %v17620_v51 = vld [vmem:[#allocation190_spill] sm:$0xff] }
 0x383   :  { %8481 = vmatprep.subr.bf16.mxu0 %v17616_v9  ;;  %6722 = vmatmul.mubr.f32.vlgmr.msra.gmra.mrb[26].mxu1 %v14940_v47  ;;  %v17621_v43 = vand.u32 4294901760, %v17620_v51  ;;  %v17626_v9 = vld [vmem:[#allocation35_spill] sm:$0xff] }
 0x384   :  { %9094 = vmatpush1.bf16.msra.mxu1 %v17619_v31  ;;  %6877 = vmatprep.mubr.f32.mxu1 %v14707_v20  ;;  %v14977_v31 = vsub.f32 %v14827_v62, %v17623_v14  ;;  %v6794_v62 = vsub.f32 %v14949_v21, %v17628_v57  ;;  %v17629_v14 = vand.u32 4294901760, %v14860_v29  ;;  %v15008_v57 = vsub.f32 %v14885_v42, %v6673_v56 }
 0x385   :  { %v6780_v27 = vsub.f32 %v17620_v51, %v17621_v43  ;;  %9095 = vmatprep.subr.bf16.mxu1 %v17595_v7  ;;  %v17625_v43 = vld [vmem:[#allocation151_spill] sm:$0xff]  ;;  %v16090_v42 = vand.u32 4294901760, %v15004_v41 }
 0x386   :  { %8483 = vmatpush1.bf16.msra.mxu0 %v17622_v36  ;;  %v14995_v12 = vsub.f32 %v14860_v29, %v17629_v14  ;;  %v15011_v29 = vsub.f32 %v14891_v19, %v6676_v15  ;;  %v6788_v14 = vand.u32 4294901760, %v6787_v34  ;;  %v6795_v8 = vand.u32 4294901760, %v6794_v62  ;;  %v17636_v19 = vld [vmem:[#allocation31_spill] sm:$0xff] }
 0x387   :  { %8485 = vmatprep.subr.bf16.mxu0 %v17625_v43  ;;  %v6781_v36 = vand.u32 4294901760, %v6780_v27  ;;  %v9099_v43 = vpack.c.bf16 %v6767_v24, %v6760_v52  ;;  %v17634_v48 = vand.u32 4294901760, %v14977_v31  ;;  %v17635_v24 = vand.u32 4294901760, %v14982_v23 }
 0x388   :  { %9097 = vmatpush1.bf16.msra.mxu1 %v17626_v9  ;;  %v17632_v9 = vld [vmem:[#allocation138_spill] sm:$0xff]  ;;  %v16091_v15 = vand.u32 4294901760, %v15008_v57  ;;  %v16094_v34 = vand.u32 4294901760, %v15011_v29 }
 0x389   :  { %9098 = vmatprep.subr.bf16.mxu1 %v17595_v7  ;;  %v9102_v27 = vpack.c.bf16 %v6781_v36, %v6774_v6  ;;  %v6801_v52 = vsub.f32 %v14977_v31, %v17634_v48  ;;  %v6808_v56 = vsub.f32 %v14982_v23, %v17635_v24  ;;  %v17637_v36 = vld [vmem:[#allocation62_spill] sm:$0xff]  ;;  %v9105_v48 = vpack.c.bf16 %v6795_v8, %v6788_v14 }
 0x38a   :  { %8487 = vmatpush1.bf16.msra.mxu0 %v17630_v60  ;;  %v16089_v60 = vand.u32 4294901760, %v14995_v12  ;;  %v6829_v24 = vsub.f32 %v15008_v57, %v16091_v15 }
 0x38b   :  { %8489 = vmatprep.subr.bf16.mxu0 %v17632_v9  ;;  %v6802_v62 = vand.u32 4294901760, %v6801_v52  ;;  %v6822_v9 = vsub.f32 %v15004_v41, %v16090_v42  ;;  %v6836_v52 = vsub.f32 %v15011_v29, %v16094_v34  ;;  %v17640_v42 = vld [vmem:[#allocation37_spill] sm:$0xff] }
 0x38c   :  { %9100 = vmatpush1.bf16.msra.mxu1 %v9099_v43  ;;  %v6815_v6 = vsub.f32 %v14995_v12, %v16089_v60  ;;  %v17638_v43 = vld [vmem:[#allocation198_spill] sm:$0xff]  ;;  %v6830_v34 = vand.u32 4294901760, %v6829_v24 }
 0x38d   :  { %9101 = vmatprep.subr.bf16.mxu1 %v17595_v7  ;;  %v6823_v14 = vand.u32 4294901760, %v6822_v9  ;;  %v6837_v58 = vand.u32 4294901760, %v6836_v52  ;;  %v17644_v9 = vld [vmem:[#allocation153_spill] sm:$0xff]  ;;  %v17647_v52 = vmov 0.0  }
 0x38e   :  { %8491 = vmatpush1.bf16.msra.mxu0 %v17633_v18  ;;  %v6809_v18 = vand.u32 4294901760, %v6808_v56  ;;  %v6816_v60 = vand.u32 4294901760, %v6815_v6 }
 0x38f   :  { %8493 = vmatprep.subr.bf16.mxu0 %v17636_v19  ;;  %v17642_v19 = vld [vmem:[#allocation150_spill] sm:$0xff]  ;;  %v9114_v24 = vpack.c.bf16 %v6837_v58, %v6830_v34 }
 0x390   :  { %9103 = vmatpush1.bf16.msra.mxu1 %v9102_v27  ;;  %v9108_v15 = vpack.c.bf16 %v6809_v18, %v6802_v62  ;;  %v4038_v53 = vand.u32 4294901760, %v17642_v19  ;;  %v17645_v62 = vld [vmem:[#allocation83_spill] sm:$0xff]  ;;  %v17648_v58 = vld [vmem:[#allocation26_spill] sm:$0xff] }
 0x391   :  { %4006 = vmatmul.mubr.f32.vlgmr.msra.gmra.mrb[0].mxu0 %v17110_v61  ;;  %9104 = vmatprep.subr.bf16.mxu1 %v17595_v7  ;;  %v17639_v61 = vld [vmem:[#allocation116_spill] sm:$0xff]  ;;  %v7546_v56 = vpop.f32.mrb[14].mxu1  ;;  %v17649_v34 = vld [vmem:[#allocation10_spill] sm:$0xff] }
 0x392   :  { %8495 = vmatpush1.bf16.msra.mxu0 %v17637_v36  ;;  %4115 = vmatprep.mubr.f32.mxu0 %v14762_v59  ;;  %v4036_v27 = vand.u32 4294901760, %v17639_v61  ;;  %v7547_v36 = vpop.f32.mrb[15].mxu1  ;;  %v15048_v59 = vsub.f32 %v14932_v17, %v14943_v22  ;;  %v15063_v18 = vpack.c.bf16 %v17645_v62, %v4038_v53  ;;  %v17653_v62 = vand.u32 4294901760, %v14748_v44 }
 0x393   :  { %8497 = vmatprep.subr.bf16.mxu0 %v17638_v43  ;;  %v7548_v8 = vadd.f32 %v7547_v36, %v7546_v56  ;;  %v17641_v43 = vld [vmem:[#allocation60_spill] sm:$0xff]  ;;  %v9111_v36 = vpack.c.bf16 %v6823_v14, %v6816_v60  ;;  %v17650_v56 = vpack.c.bf16 %v17648_v58, %v17649_v34  ;;  %v17651_v14 = vld [vmem:[#allocation109_spill] sm:$0xff]  ;;  %v9123_v44 = vpack.c.bf16 %v14920_v33, %v14917_v0 }
 0x394   :  { %9106 = vmatpush1.bf16.msra.mxu1 %v9105_v48  ;;  %v17643_v48 = vld [vmem:[#allocation51_spill] sm:$0xff]  ;;  %v16095_v17 = vand.u32 4294901760, %v15048_v59 }
 0x395   :  { %9107 = vmatprep.subr.bf16.mxu1 %v17595_v7  ;;  %v15053_v6 = vadd.f32 %v7548_v8, %v14913_v37  ;;  %v1160_v8 = vsel %vm1157_vm9, %v14844_v32, %v14718_v28  ;;  %v17656_v28 = vld [vmem:[#allocation113_spill] sm:$0xff] }
 0x396   :  { %8499 = vmatpush1.bf16.msra.mxu0 %v17640_v42  ;;  %v15056_v42 = vpack.c.bf16 %v17643_v48, %v4036_v27  ;;  %v6843_v37 = vsub.f32 %v15048_v59, %v16095_v17  ;;  %v17652_v48 = vld [vmem:[#allocation196_spill] sm:$0xff]  ;;  %v17657_v32 = vld [vmem:[#allocation141_spill] sm:$0xff] }
 0x397   :  { %8501 = vmatprep.subr.bf16.mxu0 %v17641_v43  ;;  %v17658_v17 = vpack.c.bf16 %v17656_v28, %v17657_v32 }
 0x398   :  { %9109 = vmatpush1.bf16.msra.mxu1 %v9108_v15  ;;  %v17646_v15 = vld [vmem:[#allocation59_spill] sm:$0xff]  ;;  %v6844_v60 = vand.u32 4294901760, %v6843_v37 }
 0x399   :  { %9110 = vmatprep.subr.bf16.mxu1 %v17595_v7 }
 0x39a   :  { %8503 = vmatpush1.bf16.msra.mxu0 %v17644_v9 }
 0x39b   :  { %8505 = vmatprep.subr.bf16.mxu0 %v15056_v42 }
 0x39c   :  { %9112 = vmatpush1.bf16.msra.mxu1 %v9111_v36  ;;  %v1175_v36 = vsel %vm1172_vm6, %v17652_v48, %v14737_v13  ;;  %v15102_v13 = vsub.f32 %v17639_v61, %v4036_v27  ;;  %v15111_v48 = vsub.f32 %v17642_v19, %v4038_v53  ;;  %v9126_v61 = vpack.c.bf16 %v17620_v51, %v17617_v35  ;;  %v17665_v51 = vld [vmem:[#allocation9_spill] sm:$0xff] }
 0x39d   :  { %9113 = vmatprep.subr.bf16.mxu1 %v17595_v7  ;;  %v9129_v19 = vpack.c.bf16 %v14949_v21, %v14946_v46 }
 0x39e   :  { %8507 = vmatpush1.bf16.msra.mxu0 %v15063_v18  ;;  %v16101_v27 = vand.u32 4294901760, %v15111_v48 }
 0x39f   :  { %8509 = vmatprep.subr.bf16.mxu0 %v14527_v63 }
 0x3a0   :  { %9115 = vmatpush1.bf16.msra.mxu1 %v9114_v24  ;;  %v17654_v24 = vand.u32 4294901760, %v14754_v54 }
 0x3a1   :  { %6839 = vmatprep.subr.mxu1 %v17647_v52 }
 0x3a2   :  { %8511 = vmatpush1.bf16.msra.mxu0 %v17646_v15  ;;  %v15095_v37 = vpack.c.bf16 %v17654_v24, %v17653_v62  ;;  %v17661_v62 = vld [vmem:[#allocation146_spill] sm:$0xff] }
 0x3a3   :  { %8513 = vmatprep.subr.bf16.mxu0 %v14546_v26  ;;  %v17662_v24 = vld [vmem:[#allocation130_spill] sm:$0xff] }
 0x3a4   :  { %6845 = vmatpush1.msra.mxu1 %v6844_v60  ;;  %17655 = vst [vmem:[#allocation180_spill] sm:$0xff] %v15095_v37  ;;  %v4070_v60 = vand.u32 4294901760, %v1160_v8 }
 0x3a5   :  { %9116 = vmatprep.subr.bf16.mxu1 %v17595_v7  ;;  %6879 = vmatmul.mubr.f32.vlgmr.msra.gmra.mrb[26].mxu1 %v14869_v5 }
 0x3a6   :  { %9118 = vmatpush1.bf16.msra.mxu1 %v17650_v56  ;;  %8515 = vmatpush1.bf16.msra.mxu0 %v17651_v14  ;;  %v4074_v56 = vand.u32 4294901760, %v1175_v36 }
 0x3a7   :  { %8517 = vmatprep.subr.bf16.mxu0 %v14565_v25  ;;  %9119 = vmatprep.subr.bf16.mxu1 %v17595_v7 }
 0x3a8   :  { %6984 = vmatprep.mubr.f32.mxu1 %v14716_v1  ;;  %v15108_v54 = vpack.c.bf16 %v4074_v56, %v4070_v60 }
 0x3aa   :  { %9121 = vmatpush1.bf16.msra.mxu1 %v17658_v17  ;;  %8519 = vmatpush1.bf16.msra.mxu0 %v17659_v4  ;;  %17660 = vst [vmem:[#allocation76_spill] sm:$0xff] %v15108_v54  ;;  %v16098_v17 = vand.u32 4294901760, %v15102_v13 }
 0x3ab   :  { %8521 = vmatprep.subr.bf16.mxu0 %v15095_v37  ;;  %9122 = vmatprep.subr.bf16.mxu1 %v17595_v7  ;;  %v17663_v37 = vld [vmem:[#allocation32_spill] sm:$0xff] }
 0x3ac   :  { %v4202_v53 = vsub.f32 %v15102_v13, %v16098_v17  ;;  %v9132_v17 = vpack.c.bf16 %v14982_v23, %v14977_v31 }
 0x3ae   :  { %9124 = vmatpush1.bf16.msra.mxu1 %v9123_v44  ;;  %8523 = vmatpush1.bf16.msra.mxu0 %v15108_v54  ;;  %v17667_v54 = vld [vmem:[#allocation87_spill] sm:$0xff] }
 0x3af   :  { %4077 = vmatprep.subr.mxu0 %v17661_v62  ;;  %9125 = vmatprep.subr.bf16.mxu1 %v17595_v7  ;;  %v17664_v62 = vld [vmem:[#allocation58_spill] sm:$0xff] }
 0x3b2   :  { %9127 = vmatpush1.bf16.msra.mxu1 %v9126_v61  ;;  %4079 = vmatpush1.msra.mxu0 %v17662_v24  ;;  %v4203_v61 = vand.u32 4294901760, %v4202_v53  ;;  %v17666_v24 = vld [vmem:[#allocation154_spill] sm:$0xff]  ;;  %v15146_v53 = vsub.f32 %v1160_v8, %v4070_v60  ;;  %v17669_v8 = vand.u32 4294901760, %v14783_v55  ;;  %v17670_v60 = vand.u32 4294901760, %v14788_v39 }
 0x3b3   :  { %8525 = vmatprep.subr.bf16.mxu0 %v17663_v37  ;;  %4121 = vmatmul.mubr.f32.vlgmr.msra.gmra.mrb[0].mxu0 %v14940_v47  ;;  %v7581_v44 = vpop.f32.mrb[16].mxu1  ;;  %v4208_v47 = vsub.f32 %v15111_v48, %v16101_v27 }
 0x3b4   :  { %8527 = vmatpush1.bf16.msra.mxu0 %v17664_v62  ;;  %9128 = vmatprep.subr.bf16.mxu1 %v17595_v7  ;;  %v7582_v35 = vpop.f32.mrb[17].mxu1  ;;  %v8536_v27 = vpack.c.bf16 %v17667_v54, %v4203_v61  ;;  %v16103_v54 = vand.u32 4294901760, %v15146_v53 }
 0x3b5   :  { %8529 = vmatprep.subr.bf16.mxu0 %v17665_v51  ;;  %4362 = vmatprep.mubr.f32.mxu0 %v14707_v20  ;;  %v7583_v37 = vadd.f32 %v7582_v35, %v7581_v44  ;;  %v4209_v51 = vand.u32 4294901760, %v4208_v47  ;;  %v15148_v44 = vsub.f32 %v1175_v36, %v4074_v56  ;;  %v4298_v36 = vsub.f32 %v14783_v55, %v17669_v8  ;;  %v17677_v8 = vld [vmem:[#allocation137_spill] sm:$0xff] }
 0x3b6   :  { %9130 = vmatpush1.bf16.msra.mxu1 %v9129_v19  ;;  %v9135_v19 = vpack.c.bf16 %v15004_v41, %v14995_v12  ;;  %v4310_v56 = vsub.f32 %v14788_v39, %v17670_v60 }
 0x3b7   :  { %9131 = vmatprep.subr.bf16.mxu1 %v17595_v7  ;;  %v6109_v62 = vadd.f32 %v7583_v37, %v15053_v6  ;;  %v17668_v6 = vld [vmem:[#allocation75_spill] sm:$0xff]  ;;  %v17671_v37 = vld [vmem:[#allocation157_spill] sm:$0xff] }
 0x3b8   :  { %8531 = vmatpush1.bf16.msra.mxu0 %v17666_v24  ;;  %v8538_v24 = vpack.c.bf16 %v17668_v6, %v4209_v51  ;;  %v4311_v35 = vand.u32 4294901760, %v4310_v56  ;;  %v17672_v51 = vld [vmem:[#allocation212_spill] sm:$0xff]  ;;  %v17675_v6 = vld [vmem:[#allocation101_spill] sm:$0xff] }
 0x3b9   :  { %8533 = vmatprep.subr.bf16.mxu0 %v14536_v11  ;;  %v9138_v11 = vpack.c.bf16 %v15011_v29, %v15008_v57  ;;  %v17679_v56 = vld [vmem:[#allocation120_spill] sm:$0xff] }
 0x3ba   :  { %9133 = vmatpush1.bf16.msra.mxu1 %v9132_v17 }
 0x3bb   :  { %9134 = vmatprep.subr.bf16.mxu1 %v17595_v7 }
 0x3bc   :  { %8535 = vmatpush1.bf16.msra.mxu0 %v14538_v16  ;;  %v16102_v16 = vand.u32 4294901760, %v15148_v44 }
 0x3bd   :  { %8537 = vmatprep.subr.bf16.mxu0 %v8536_v27  ;;  %v4299_v27 = vand.u32 4294901760, %v4298_v36 }
 0x3be   :  { %9136 = vmatpush1.bf16.msra.mxu1 %v9135_v19  ;;  %v4316_v17 = vsub.f32 %v15148_v44, %v16102_v16  ;;  %v17674_v19 = vld [vmem:[#allocation132_spill] sm:$0xff]  ;;  %v17707_v16 = vld [vmem:[#allocation185_spill] sm:$0xff] }
 0x3bf   :  { %9137 = vmatprep.subr.bf16.mxu1 %v17595_v7  ;;  %v8552_v47 = vpack.c.bf16 %v4311_v35, %v4299_v27  ;;  %v17682_v27 = vld [vmem:[#allocation191_spill] sm:$0xff]  ;;  %v17683_v35 = vld [vmem:[#allocation192_spill] sm:$0xff] }
 0x3c0   :  { %8539 = vmatpush1.bf16.msra.mxu0 %v8538_v24 }
 0x3c1   :  { %8541 = vmatprep.subr.bf16.mxu0 %v14618_v30  ;;  %v4304_v30 = vsub.f32 %v15146_v53, %v16103_v54  ;;  %v17710_v54 = vand.u32 4294901760, %v17648_v58  ;;  %v17719_v58 = vand.u32 4294901760, %v17656_v28  ;;  %v17724_v28 = vand.u32 4294901760, %v14920_v33  ;;  %v17729_v33 = vld [vmem:[#allocation62_spill] sm:$0xff] }
 0x3c2   :  { %9139 = vmatpush1.bf16.msra.mxu1 %v9138_v11  ;;  %v17676_v11 = vld [vmem:[#allocation77_spill] sm:$0xff] }
 0x3c3   :  { %6948 = vmatprep.subr.mxu1 %v17647_v52  ;;  %v17678_v36 = vpack.c.bf16 %v17676_v11, %v17677_v8  ;;  %v17692_v11 = vld [vmem:[#allocation214_spill] sm:$0xff]  ;;  %v17693_v8 = vld [vmem:[#allocation55_spill] sm:$0xff] }
 0x3c4   :  { %8543 = vmatpush1.bf16.msra.mxu0 %v14620_v50  ;;  %v4317_v50 = vand.u32 4294901760, %v4316_v17 }
 0x3c5   :  { %8545 = vmatprep.subr.bf16.mxu0 %v14681_v45  ;;  %v4305_v45 = vand.u32 4294901760, %v4304_v30  ;;  %v17680_v30 = vld [vmem:[#allocation88_spill] sm:$0xff] }
 0x3c6   :  { %6951 = vmatpush1.msra.mxu1 %v15048_v59  ;;  %v17681_v17 = vpack.c.bf16 %v17679_v56, %v17680_v30 }
 0x3c7   :  { %9140 = vmatprep.subr.bf16.mxu1 %v17595_v7  ;;  %6987 = vmatmul.mubr.f32.vlgmr.msra.gmra.mrb[26].mxu1 %v14895_v3  ;;  %v8554_v61 = vpack.c.bf16 %v4317_v50, %v4305_v45  ;;  %v17684_v45 = vpack.c.bf16 %v17682_v27, %v17683_v35  ;;  %v17698_v35 = vld [vmem:[#allocation221_spill] sm:$0xff] }
 0x3c8   :  { %9142 = vmatpush1.bf16.msra.mxu1 %v17565_v40  ;;  %8547 = vmatpush1.bf16.msra.mxu0 %v14683_v38  ;;  %v17673_v38 = vld [vmem:[#allocation195_spill] sm:$0xff] }
 0x3c9   :  { %8549 = vmatprep.subr.bf16.mxu0 %v14698_v10  ;;  %9143 = vmatprep.subr.bf16.mxu1 %v17595_v7 }
 0x3ca   :  { %7076 = vmatprep.mubr.f32.mxu1 %v14725_v2 }
 0x3cc   :  { %9145 = vmatpush1.bf16.msra.mxu1 %v17570_v49  ;;  %8551 = vmatpush1.bf16.msra.mxu0 %v17671_v37  ;;  %v17686_v37 = vld [vmem:[#allocation134_spill] sm:$0xff] }
 0x3cd   :  { %8553 = vmatprep.subr.bf16.mxu0 %v8552_v47  ;;  %9146 = vmatprep.subr.bf16.mxu1 %v17595_v7  ;;  %v17685_v47 = vld [vmem:[#allocation216_spill] sm:$0xff] }
 0x3d0   :  { %9148 = vmatpush1.bf16.msra.mxu1 %v17672_v51  ;;  %8555 = vmatpush1.bf16.msra.mxu0 %v8554_v61  ;;  %v17687_v61 = vld [vmem:[#allocation84_spill] sm:$0xff] }
 0x3d1   :  { %4324 = vmatprep.subr.mxu0 %v17673_v38  ;;  %9149 = vmatprep.subr.bf16.mxu1 %v17595_v7  ;;  %v17688_v38 = vpack.c.bf16 %v17686_v37, %v17687_v61 }
 0x3d3   :  { %v7616_v10 = vpop.f32.mrb[18].mxu1 }
 0x3d4   :  { %9151 = vmatpush1.bf16.msra.mxu1 %v17674_v19  ;;  %4330 = vmatpush1.msra.mxu0 %v17675_v6  ;;  %v7617_v24 = vpop.f32.mrb[19].mxu1  ;;  %v17690_v6 = vld [vmem:[#allocation94_spill] sm:$0xff] }
 0x3d5   :  { %8557 = vmatprep.subr.bf16.mxu0 %v17678_v36  ;;  %4364 = vmatmul.mubr.f32.vlgmr.msra.gmra.mrb[0].mxu0 %v14869_v5  ;;  %v7618_v60 = vadd.f32 %v7617_v24, %v7616_v10  ;;  %v17689_v10 = vld [vmem:[#allocation17_spill] sm:$0xff]  ;;  %v17695_v36 = vld [vmem:[#allocation183_spill] sm:$0xff] }
 0x3d6   :  { %8559 = vmatpush1.bf16.msra.mxu0 %v17681_v17  ;;  %9152 = vmatprep.subr.bf16.mxu1 %v17595_v7  ;;  %v17691_v24 = vpack.c.bf16 %v17689_v10, %v17690_v6  ;;  %v17697_v17 = vld [vmem:[#allocation177_spill] sm:$0xff]  ;;  %v17702_v6 = vld [vmem:[#allocation148_spill] sm:$0xff] }
 0x3d7   :  { %8561 = vmatprep.subr.bf16.mxu0 %v17684_v45  ;;  %4504 = vmatprep.mubr.f32.mxu0 %v14716_v1  ;;  %v6247_v50 = vadd.f32 %v7618_v60, %v6109_v62  ;;  %v8568_v1 = vpack.c.bf16 %v17693_v8, %v15102_v13  ;;  %v17694_v62 = vld [vmem:[#allocation186_spill] sm:$0xff]  ;;  %v8570_v27 = vpack.c.bf16 %v17697_v17, %v15111_v48  ;;  %v17699_v45 = vld [vmem:[#allocation104_spill] sm:$0xff] }
 0x3d8   :  { %9154 = vmatpush1.bf16.msra.mxu1 %v17685_v47  ;;  %v17696_v60 = vpack.c.bf16 %v17694_v62, %v17695_v36  ;;  %v17704_v8 = vld [vmem:[#allocation36_spill] sm:$0xff] }
 0x3d9   :  { %9155 = vmatprep.subr.bf16.mxu1 %v17595_v7 }
 0x3da   :  { %8563 = vmatpush1.bf16.msra.mxu0 %v17688_v38  ;;  %v17700_v38 = vld [vmem:[#allocation165_spill] sm:$0xff] }
 0x3db   :  { %8565 = vmatprep.subr.bf16.mxu0 %v17691_v24  ;;  %v17701_v10 = vpack.c.bf16 %v17699_v45, %v17700_v38  ;;  %v17703_v24 = vld [vmem:[#allocation52_spill] sm:$0xff] }
 0x3dc   :  { %9157 = vmatpush1.bf16.msra.mxu1 %v17692_v11  ;;  %v17711_v38 = vld [vmem:[#allocation220_spill] sm:$0xff] }
 0x3dd   :  { %9158 = vmatprep.subr.bf16.mxu1 %v17595_v7 }
 0x3de   :  { %8567 = vmatpush1.bf16.msra.mxu0 %v17696_v60  ;;  %v17705_v60 = vpack.c.bf16 %v17703_v24, %v17704_v8  ;;  %v17716_v8 = vld [vmem:[#allocation225_spill] sm:$0xff] }
 0x3df   :  { %8569 = vmatprep.subr.bf16.mxu0 %v8568_v1  ;;  %v17706_v1 = vld [vmem:[#allocation179_spill] sm:$0xff] }
 0x3e0   :  { %9160 = vmatpush1.bf16.msra.mxu1 %v17698_v35  ;;  %v17708_v17 = vpack.c.bf16 %v17706_v1, %v17707_v16  ;;  %v8584_v1 = vpack.c.bf16 %v14788_v39, %v14783_v55 }
 0x3e1   :  { %9161 = vmatprep.subr.bf16.mxu1 %v17595_v7 }
 0x3e2   :  { %8571 = vmatpush1.bf16.msra.mxu0 %v8570_v27  ;;  %v17709_v27 = vand.u32 4294901760, %v17649_v34  ;;  %v17718_v34 = vand.u32 4294901760, %v17657_v32  ;;  %v17723_v32 = vand.u32 4294901760, %v14917_v0 }
 0x3e3   :  { %8573 = vmatprep.subr.bf16.mxu0 %v17701_v10  ;;  %v17712_v10 = vld [vmem:[#allocation95_spill] sm:$0xff] }
 0x3e4   :  { %9163 = vmatpush1.bf16.msra.mxu1 %v17702_v6  ;;  %v9165_v45 = vpack.c.bf16 %v17710_v54, %v17709_v27  ;;  %v17713_v6 = vld [vmem:[#allocation78_spill] sm:$0xff]  ;;  %v9168_v54 = vpack.c.bf16 %v17719_v58, %v17718_v34  ;;  %v17721_v27 = vld [vmem:[#allocation121_spill] sm:$0xff]  ;;  %v17726_v34 = vld [vmem:[#allocation12_spill] sm:$0xff] }
 0x3e5   :  { %7040 = vmatprep.subr.mxu1 %v17647_v52  ;;  %v17714_v24 = vpack.c.bf16 %v17712_v10, %v17713_v6  ;;  %v17727_v58 = vld [vmem:[#allocation128_spill] sm:$0xff] }
 0x3e6   :  { %8575 = vmatpush1.bf16.msra.mxu0 %v17705_v60  ;;  %v17715_v60 = vld [vmem:[#allocation23_spill] sm:$0xff] }
 0x3e7   :  { %8577 = vmatprep.subr.bf16.mxu0 %v17708_v17  ;;  %v17717_v16 = vpack.c.bf16 %v17715_v60, %v17716_v8  ;;  %v17720_v17 = vld [vmem:[#allocation174_spill] sm:$0xff]  ;;  %v8586_v8 = vpack.c.bf16 %v15148_v44, %v15146_v53  ;;  %v17725_v60 = vld [vmem:[#allocation27_spill] sm:$0xff] }
 0x3e8   :  { %7042 = vmatpush1.msra.mxu1 %v14943_v22 }
 0x3e9   :  { %9164 = vmatprep.subr.bf16.mxu1 %v17595_v7  ;;  %7080 = vmatmul.mubr.f32.vlgmr.msra.gmra.mrb[26].mxu1 %v17711_v38 }
 0x3ea   :  { %9166 = vmatpush1.bf16.msra.mxu1 %v9165_v45  ;;  %8579 = vmatpush1.bf16.msra.mxu0 %v17714_v24  ;;  %v17722_v24 = vpack.c.bf16 %v17720_v17, %v17721_v27  ;;  %v9171_v45 = vpack.c.bf16 %v17724_v28, %v17723_v32  ;;  %v17732_v32 = vld [vmem:[#allocation198_spill] sm:$0xff]  ;;  %v17733_v28 = vld [vmem:[#allocation37_spill] sm:$0xff] }
 0x3eb   :  { %8581 = vmatprep.subr.bf16.mxu0 %v17717_v16  ;;  %9167 = vmatprep.subr.bf16.mxu1 %v17595_v7 }
 0x3ec   :  { %7201 = vmatprep.mubr.f32.mxu1 %v14707_v20 }
 0x3ee   :  { %9169 = vmatpush1.bf16.msra.mxu1 %v9168_v54  ;;  %8583 = vmatpush1.bf16.msra.mxu0 %v17722_v24  ;;  %v17728_v54 = vld [vmem:[#allocation31_spill] sm:$0xff]  ;;  %v17731_v24 = vand.u32 4294901760, %v14949_v21 }
 0x3ef   :  { %8585 = vmatprep.subr.bf16.mxu0 %v8584_v1  ;;  %9170 = vmatprep.subr.bf16.mxu1 %v17595_v7  ;;  %v17730_v1 = vand.u32 4294901760, %v14946_v46  ;;  %v17736_v46 = vand.u32 4294901760, %v14995_v12  ;;  %v17740_v12 = vand.u32 4294901760, %v15048_v59  ;;  %v17743_v59 = vld [vmem:[#allocation146_spill] sm:$0xff] }
 0x3f2   :  { %9172 = vmatpush1.bf16.msra.mxu1 %v9171_v45  ;;  %8587 = vmatpush1.bf16.msra.mxu0 %v8586_v8  ;;  %v9177_v8 = vpack.c.bf16 %v17731_v24, %v17730_v1  ;;  %v17747_v1 = vld [vmem:[#allocation8_spill] sm:$0xff]  ;;  %v17753_v24 = vand.u32 4294901760, %v17694_v62 }
 0x3f3   :  { %4468 = vmatprep.subr.mxu0 %v17725_v60  ;;  %9173 = vmatprep.subr.bf16.mxu1 %v17595_v7  ;;  %v7651_v55 = vpop.f32.mrb[20].mxu1  ;;  %v17759_v62 = vld [vmem:[#allocation148_spill] sm:$0xff] }
 0x3f4   :  { %v7652_v39 = vpop.f32.mrb[21].mxu1 }
 0x3f5   :  { %v7653_v16 = vadd.f32 %v7652_v39, %v7651_v55 }
 0x3f6   :  { %9175 = vmatpush1.bf16.msra.mxu1 %v17726_v34  ;;  %4471 = vmatpush1.msra.mxu0 %v17727_v58  ;;  %v17746_v34 = vand.u32 4294901760, %v17679_v56  ;;  %v17751_v56 = vld [vmem:[#allocation80_spill] sm:$0xff] }
 0x3f7   :  { %8589 = vmatprep.subr.bf16.mxu0 %v17728_v54  ;;  %4507 = vmatmul.mubr.f32.vlgmr.msra.gmra.mrb[0].mxu0 %v14895_v3  ;;  %v6355_v0 = vadd.f32 %v7653_v16, %v6247_v50  ;;  %v17734_v3 = vand.u32 4294901760, %v14977_v31  ;;  %v17735_v50 = vand.u32 4294901760, %v14982_v23  ;;  %v17738_v23 = vand.u32 4294901760, %v15008_v57 }
 0x3f8   :  { %8591 = vmatpush1.bf16.msra.mxu0 %v17729_v33  ;;  %9176 = vmatprep.subr.bf16.mxu1 %v17595_v7  ;;  %v17739_v31 = vand.u32 4294901760, %v15011_v29  ;;  %v17745_v16 = vand.u32 4294901760, %v17680_v30  ;;  %v17750_v30 = vand.u32 4294901760, %v17686_v37  ;;  %v17756_v37 = vand.u32 4294901760, %v15111_v48 }
 0x3f9   :  { %8593 = vmatprep.subr.bf16.mxu0 %v17732_v32  ;;  %4614 = vmatprep.mubr.f32.mxu0 %v14725_v2  ;;  %v9180_v45 = vpack.c.bf16 %v17735_v50, %v17734_v3  ;;  %v17737_v2 = vand.u32 4294901760, %v15004_v41  ;;  %v17741_v41 = vld [vmem:[#allocation180_spill] sm:$0xff]  ;;  %v17757_v50 = vld [vmem:[#allocation181_spill] sm:$0xff]  ;;  %v17765_v48 = vand.u32 4294901760, %v17713_v6  ;;  %v17772_v6 = vand.u32 4294901760, %v15148_v44 }
 0x3fa   :  { %9178 = vmatpush1.bf16.msra.mxu1 %v9177_v8  ;;  %v9186_v60 = vpack.c.bf16 %v17739_v31, %v17738_v23  ;;  %v8622_v58 = vpack.c.bf16 %v17746_v34, %v17745_v16  ;;  %v17767_v31 = vld [vmem:[#allocation100_spill] sm:$0xff]  ;;  %v17773_v34 = vld [vmem:[#allocation57_spill] sm:$0xff] }
 0x3fb   :  { %9179 = vmatprep.subr.bf16.mxu1 %v17595_v7  ;;  %v9183_v21 = vpack.c.bf16 %v17737_v2, %v17736_v46 }
 0x3fc   :  { %8595 = vmatpush1.bf16.msra.mxu0 %v17733_v28 }
 0x3fd   :  { %8597 = vmatprep.subr.bf16.mxu0 %v17641_v43 }
 0x3fe   :  { %9181 = vmatpush1.bf16.msra.mxu1 %v9180_v45  ;;  %v8634_v45 = vpack.c.bf16 %v17757_v50, %v17756_v37 }
 0x3ff   :  { %9182 = vmatprep.subr.bf16.mxu1 %v17595_v7 }
 0x400   :  { %8599 = vmatpush1.bf16.msra.mxu0 %v17644_v9 }
 0x401   :  { %8601 = vmatprep.subr.bf16.mxu0 %v15056_v42 }
 0x402   :  { %9184 = vmatpush1.bf16.msra.mxu1 %v9183_v21 }
 0x403   :  { %9185 = vmatprep.subr.bf16.mxu1 %v17595_v7 }
 0x404   :  { %8603 = vmatpush1.bf16.msra.mxu0 %v15063_v18 }
 0x405   :  { %8605 = vmatprep.subr.bf16.mxu0 %v14527_v63 }
 0x406   :  { %9187 = vmatpush1.bf16.msra.mxu1 %v9186_v60  ;;  %v17768_v60 = vand.u32 4294901760, %v17721_v27 }
 0x407   :  { %7165 = vmatprep.subr.mxu1 %v17647_v52 }
 0x408   :  { %8607 = vmatpush1.bf16.msra.mxu0 %v17646_v15 }
 0x409   :  { %8609 = vmatprep.subr.bf16.mxu0 %v14546_v26 }
 0x40a   :  { %7169 = vmatpush1.msra.mxu1 %v17740_v12  ;;  %v17769_v12 = vand.u32 4294901760, %v17720_v17 }
 0x40b   :  { %9188 = vmatprep.subr.bf16.mxu1 %v17595_v7  ;;  %7203 = vmatmul.mubr.f32.vlgmr.msra.gmra.mrb[26].mxu1 %v14869_v5 }
 0x40c   :  { %9190 = vmatpush1.bf16.msra.mxu1 %v17565_v40  ;;  %8611 = vmatpush1.bf16.msra.mxu0 %v17651_v14  ;;  %v17742_v40 = vld [vmem:[#allocation76_spill] sm:$0xff] }
 0x40d   :  { %8613 = vmatprep.subr.bf16.mxu0 %v14565_v25  ;;  %9191 = vmatprep.subr.bf16.mxu1 %v17595_v7 }
 0x40e   :  { %7290 = vmatprep.mubr.f32.mxu1 %v14707_v20 }
 0x410   :  { %9193 = vmatpush1.bf16.msra.mxu1 %v17570_v49  ;;  %8615 = vmatpush1.bf16.msra.mxu0 %v17659_v4  ;;  %v17744_v49 = vld [vmem:[#allocation130_spill] sm:$0xff] }
 0x411   :  { %8617 = vmatprep.subr.bf16.mxu0 %v17741_v41  ;;  %9194 = vmatprep.subr.bf16.mxu1 %v17595_v7 }
 0x413   :  { %v7686_v57 = vpop.f32.mrb[22].mxu1 }
 0x414   :  { %9196 = vmatpush1.bf16.msra.mxu1 %v17672_v51  ;;  %8619 = vmatpush1.bf16.msra.mxu0 %v17742_v40  ;;  %v7687_v29 = vpop.f32.mrb[23].mxu1  ;;  %v17748_v51 = vld [vmem:[#allocation140_spill] sm:$0xff] }
 0x415   :  { %4578 = vmatprep.subr.mxu0 %v17743_v59  ;;  %9197 = vmatprep.subr.bf16.mxu1 %v17595_v7  ;;  %v7688_v55 = vadd.f32 %v7687_v29, %v7686_v57  ;;  %v17770_v57 = vld [vmem:[#allocation29_spill] sm:$0xff] }
 0x417   :  { %v6523_v39 = vadd.f32 %v7688_v55, %v6355_v0 }
 0x418   :  { %9199 = vmatpush1.bf16.msra.mxu1 %v17674_v19  ;;  %4580 = vmatpush1.msra.mxu0 %v17744_v49  ;;  %v17749_v19 = vand.u32 4294901760, %v17687_v61  ;;  %v17755_v61 = vld [vmem:[#allocation66_spill] sm:$0xff] }
 0x419   :  { %8621 = vmatprep.subr.bf16.mxu0 %v17747_v1  ;;  %4618 = vmatmul.mubr.f32.vlgmr.msra.gmra.mrb[0].mxu0 %v17711_v38  ;;  %v17752_v38 = vand.u32 4294901760, %v17695_v36  ;;  %v17760_v36 = vld [vmem:[#allocation36_spill] sm:$0xff]  ;;  %v17774_v1 = vld [vmem:[#allocation70_spill] sm:$0xff] }
 0x41a   :  { %8623 = vmatpush1.bf16.msra.mxu0 %v8622_v58  ;;  %9200 = vmatprep.subr.bf16.mxu1 %v17595_v7  ;;  %v8626_v0 = vpack.c.bf16 %v17750_v30, %v17749_v19  ;;  %v17761_v46 = vand.u32 4294901760, %v17760_v36 }
 0x41b   :  { %8625 = vmatprep.subr.bf16.mxu0 %v17748_v51  ;;  %4791 = vmatprep.mubr.f32.mxu0 %v14707_v20  ;;  %v8630_v8 = vpack.c.bf16 %v17753_v24, %v17752_v38 }
 0x41c   :  { %9202 = vmatpush1.bf16.msra.mxu1 %v17685_v47  ;;  %v17754_v47 = vand.u32 4294901760, %v15102_v13  ;;  %v17762_v13 = vld [vmem:[#allocation52_spill] sm:$0xff] }
 0x41d   :  { %9203 = vmatprep.subr.bf16.mxu1 %v17595_v7  ;;  %v17763_v2 = vand.u32 4294901760, %v17762_v13 }
 0x41e   :  { %8627 = vmatpush1.bf16.msra.mxu0 %v8626_v0  ;;  %v8632_v3 = vpack.c.bf16 %v17755_v61, %v17754_v47 }
 0x41f   :  { %8629 = vmatprep.subr.bf16.mxu0 %v17751_v56  ;;  %v8638_v21 = vpack.c.bf16 %v17763_v2, %v17761_v46 }
 0x420   :  { %9205 = vmatpush1.bf16.msra.mxu1 %v17692_v11  ;;  %v17758_v11 = vld [vmem:[#allocation41_spill] sm:$0xff] }
 0x421   :  { %9206 = vmatprep.subr.bf16.mxu1 %v17595_v7 }
 0x422   :  { %8631 = vmatpush1.bf16.msra.mxu0 %v8630_v8 }
 0x423   :  { %8633 = vmatprep.subr.bf16.mxu0 %v8632_v3 }
 0x424   :  { %9208 = vmatpush1.bf16.msra.mxu1 %v17698_v35  ;;  %v17764_v35 = vld [vmem:[#allocation103_spill] sm:$0xff] }
 0x425   :  { %9209 = vmatprep.subr.bf16.mxu1 %v17595_v7  ;;  %v17766_v7 = vand.u32 4294901760, %v17712_v10 }
 0x426   :  { %8635 = vmatpush1.bf16.msra.mxu0 %v8634_v45 }
 0x427   :  { %8637 = vmatprep.subr.bf16.mxu0 %v17758_v11  ;;  %v8642_v23 = vpack.c.bf16 %v17766_v7, %v17765_v48 }
 0x428   :  { %9211 = vmatpush1.bf16.msra.mxu1 %v17759_v62 }
 0x429   :  { %7256 = vmatprep.subr.mxu1 %v17647_v52  ;;  %v8646_v52 = vpack.c.bf16 %v17769_v12, %v17768_v60 }
 0x42a   :  { %8639 = vmatpush1.bf16.msra.mxu0 %v8638_v21 }
 0x42b   :  { %8641 = vmatprep.subr.bf16.mxu0 %v17764_v35 }
 0x42c   :  { %7258 = vmatpush1.msra.mxu1 %v14943_v22  ;;  %v17771_v22 = vand.u32 4294901760, %v15146_v53 }
 0x42d   :  { %7292 = vmatmul.mubr.f32.vlgmr.msra.gmra.mrb[26].mxu1 %v14869_v5 }
 0x42e   :  { %8643 = vmatpush1.bf16.msra.mxu0 %v8642_v23  ;;  %v8650_v10 = vpack.c.bf16 %v17772_v6, %v17771_v22 }
 0x42f   :  { %8645 = vmatprep.subr.bf16.mxu0 %v17767_v31 }
 0x432   :  { %8647 = vmatpush1.bf16.msra.mxu0 %v8646_v52 }
 0x433   :  { %8649 = vmatprep.subr.bf16.mxu0 %v17770_v57  ;;  %v7721_v29 = vpop.f32.mrb[24].mxu1 }
 0x434   :  { %v7722_v55 = vpop.f32.mrb[25].mxu1 }
 0x435   :  { %v7723_v16 = vadd.f32 %v7722_v55, %v7721_v29 }
 0x436   :  { %8651 = vmatpush1.bf16.msra.mxu0 %v8650_v10 }
 0x437   :  { %4755 = vmatprep.subr.mxu0 %v17773_v34  ;;  %v6627_v58 = vadd.f32 %v7723_v16, %v6523_v39 }
 0x43a   :  { %4759 = vmatpush1.msra.mxu0 %v17774_v1 }
 0x43b   :  { %8653 = vmatprep.subr.bf16.mxu0 %v17728_v54  ;;  %4793 = vmatmul.mubr.f32.vlgmr.msra.gmra.mrb[0].mxu0 %v14869_v5 }
 0x43c   :  { %8655 = vmatpush1.bf16.msra.mxu0 %v17729_v33  ;;  %4898 = vmatprep.mubr.f32.mxu0 %v14707_v20 }
 0x43d   :  { %8657 = vmatprep.subr.bf16.mxu0 %v17732_v32 }
 0x440   :  { %8659 = vmatpush1.bf16.msra.mxu0 %v17733_v28 }
 0x441   :  { %8661 = vmatprep.subr.bf16.mxu0 %v17641_v43 }
 0x444   :  { %8663 = vmatpush1.bf16.msra.mxu0 %v17644_v9 }
 0x445   :  { %8665 = vmatprep.subr.bf16.mxu0 %v15056_v42 }
 0x448   :  { %8667 = vmatpush1.bf16.msra.mxu0 %v15063_v18  ;;  %v17776_v18 = vld [vmem:[#allocation207_spill] sm:$0xff] }
 0x449   :  { %8669 = vmatprep.subr.bf16.mxu0 %v14527_v63 }
 0x44c   :  { %8671 = vmatpush1.bf16.msra.mxu0 %v17646_v15 }
 0x44d   :  { %8673 = vmatprep.subr.bf16.mxu0 %v14546_v26 }
 0x450   :  { %8675 = vmatpush1.bf16.msra.mxu0 %v17651_v14 }
 0x451   :  { %8677 = vmatprep.subr.bf16.mxu0 %v14565_v25  ;;  %v17775_v25 = vld [vmem:[#allocation209_spill] sm:$0xff] }
 0x454   :  { %8679 = vmatpush1.bf16.msra.mxu0 %v17659_v4 }
 0x455   :  { %8681 = vmatprep.subr.bf16.mxu0 %v17741_v41 }
 0x458   :  { %8683 = vmatpush1.bf16.msra.mxu0 %v17742_v40 }
 0x459   :  { %4864 = vmatprep.subr.mxu0 %v17743_v59 }
 0x45c   :  { %4866 = vmatpush1.msra.mxu0 %v17744_v49 }
 0x45d   :  { %4900 = vmatmul.mubr.f32.vlgmr.msra.gmra.mrb[0].mxu0 %v14869_v5 }
 0x500   :  { %v7293_v63 = vpop.f32.mrb[26].mxu1 }
 0x501   :  { %v9216_v20 = vadd.f32 %v7293_v63, %v6627_v58  ;;  %v7295_v42 = vpop.f32.mrb[27].mxu1 }
 0x503   :  { %7299 = vst [vmem:[%s15409_s3 + $0x10] sm:$0xff] %v9216_v20 }
 0x530   :  { %v4901_v26 = vpop.f32.mrb[0].mxu0 }
 0x531   :  { %v9213_v43 = vadd.f32 %v17775_v25, %v4901_v26  ;;  %v4903_v9 = vpop.f32.mrb[1].mxu0 }
 0x532   :  { %v9215_v15 = vadd.f32 %v17776_v18, %v4903_v9 }
 0x533   :  { %7297 = vst [vmem:[%s15409_s3] sm:$0xff] %v9213_v43 }
 0x534   :  { %7298 = vst [vmem:[%s15409_s3 + $0x8] sm:$0xff] %v9215_v15 }

</bundles_post_ra>
